<compile_context>
chip_gen: v5e
topology: v5e:2x2
jax: 0.10.0
libtpu: 0.0.40
codegen_flags: <defaults>
</compile_context>

<pallas_src>
import jax
import jax.numpy as jnp
from jax.experimental import pallas as pl
from jax.experimental.pallas import tpu as pltpu


# ---------------------------------------------------------------------------
# Helpers
# ---------------------------------------------------------------------------
def _round_up(x, m):
    return (x + m - 1) // m * m


def _vmem_capacity_bytes():
    try:
        return int(pltpu.get_tpu_info().vmem_capacity_bytes)
    except Exception:
        return 64 << 20   # conservative fallback: v7x per-TensorCore VMEM


def _vmem_limit_bytes(need_bytes, cap=None):
    cap = _vmem_capacity_bytes() if cap is None else cap
    return int(min(max(need_bytes + (4 << 20), 16 << 20), cap - (8 << 20)))


# ---------------------------------------------------------------------------
# Tiled matmul + bias (bf16 MXU inputs, f32 accumulation).  Used for the final
# vocab projection.  Pads M/N/K to tile-divisible shapes so the output store is
# always lane-dense and no weight block can exceed VMEM, then slices back.
# ---------------------------------------------------------------------------
def _matmul_bias_kernel(x_ref, w_ref, b_ref, o_ref, acc_ref):
    @pl.when(pl.program_id(2) == 0)
    def _():
        acc_ref[...] = jnp.zeros_like(acc_ref)

    acc_ref[...] += jnp.dot(x_ref[...], w_ref[...],
                            preferred_element_type=jnp.float32)

    @pl.when(pl.program_id(2) == pl.num_programs(2) - 1)
    def _():
        o_ref[...] = (acc_ref[...] + b_ref[...]).astype(o_ref.dtype)


def matmul_bias(x, w, b, *, tm_target=256, tn_target=512, tk_target=512,
                out_dtype=jnp.float32):
    m, k = x.shape
    k2, n = w.shape
    assert k == k2 and b.shape == (1, n)
    if x.dtype != w.dtype:                       # single wrapper-level cast
        x = x.astype(w.dtype)

    tm = min(tm_target, _round_up(m, 8))
    tn = min(tn_target, _round_up(n, 128))
    tk = k if k <= tk_target else tk_target      # full-K block or 128-mult tile
    mp, npad, kp = _round_up(m, tm), _round_up(n, tn), _round_up(k, tk)

    if (mp, kp) != (m, k):
        x = jnp.pad(x, ((0, mp - m), (0, kp - k)))
    if (kp, npad) != (k, n):
        w = jnp.pad(w, ((0, kp - k), (0, npad - n)))
    if npad != n:
        b = jnp.pad(b, ((0, 0), (0, npad - n)))

    grid = (mp // tm, npad // tn, kp // tk)
    out_isz = jnp.dtype(out_dtype).itemsize
    need = (2 * tm * tk * x.dtype.itemsize       # double-buffered x tile
            + 2 * tk * tn * w.dtype.itemsize     # double-buffered w tile
            + 2 * tn * 4                         # bias tile
            + 2 * tm * tn * out_isz              # double-buffered out tile
            + tm * tn * 4)                       # f32 accumulator
    cap = _vmem_capacity_bytes()

    out = pl.pallas_call(
        _matmul_bias_kernel,
        out_shape=jax.ShapeDtypeStruct((mp, npad), out_dtype),
        grid_spec=pltpu.PrefetchScalarGridSpec(
            num_scalar_prefetch=0,
            grid=grid,
            in_specs=[
                pl.BlockSpec((tm, tk), lambda i, j, kk: (i, kk)),
                pl.BlockSpec((tk, tn), lambda i, j, kk: (kk, j)),
                pl.BlockSpec((1, tn), lambda i, j, kk: (0, j)),
            ],
            out_specs=pl.BlockSpec((tm, tn), lambda i, j, kk: (i, j)),
            scratch_shapes=[pltpu.VMEM((tm, tn), jnp.float32)],
        ),
        compiler_params=pltpu.CompilerParams(
            dimension_semantics=("parallel", "parallel", "arbitrary"),
            vmem_limit_bytes=_vmem_limit_bytes(need, cap)),
    )(x, w, b)
    return out[:m, :n]


# ---------------------------------------------------------------------------
# Fused 2-layer LSTM, layer-1 input projection folded in.
#   Per time block of T steps:
#     - g1 block = x_block @ W_ih1 + b1  (one block-wide MXU matmul, W resident)
#     - layer-1 recurrence (only h_prev @ W_hh1 per step),
#     - g2 block = h1_block @ W_ih2 + b2 (one block-wide MXU matmul),
#     - layer-2 recurrence, writing the whole (T*B, H) bf16 output block.
#   h/c carries persist in VMEM scratch across grid steps (time is "arbitrary").
# ---------------------------------------------------------------------------
def _lstm2_kernel(x_ref, wih1_ref, whh1_ref, b1_ref, wih2_ref, whh2_ref, b2_ref,
                  h_out_ref,
                  h1_sc, c1_sc, h2_sc, c2_sc, g1_blk, h1_blk, g2_blk):
    blk = pl.program_id(0)

    @pl.when(blk == 0)
    def _():
        h1_sc[...] = jnp.zeros_like(h1_sc)
        c1_sc[...] = jnp.zeros_like(c1_sc)
        h2_sc[...] = jnp.zeros_like(h2_sc)
        c2_sc[...] = jnp.zeros_like(c2_sc)

    batch, hidden = h1_sc.shape
    t_block = g1_blk.shape[0] // batch
    unroll = min(8, t_block)                      # bounded unroll: no vreg spill

    def cell(gates, c_prev):
        # PyTorch gate order i, f, g, o; hidden is a multiple of 128 so these
        # slices are lane-aligned sub-vreg views.
        i = jax.nn.sigmoid(gates[:, 0 * hidden:1 * hidden])
        f = jax.nn.sigmoid(gates[:, 1 * hidden:2 * hidden])
        g = jnp.tanh(gates[:, 2 * hidden:3 * hidden])
        o = jax.nn.sigmoid(gates[:, 3 * hidden:4 * hidden])
        c_new = f * c_prev + i * g
        h_new = o * jnp.tanh(c_new)
        return h_new, c_new

    # ---- layer-1 input projection for the whole block (W_ih1/b1 resident) ---
    g1_blk[...] = (jnp.dot(x_ref[...], wih1_ref[...],
                           preferred_element_type=jnp.float32) + b1_ref[...])

    # TODO(synk): hold W_hh resident in MXU weight registers across the
    # recurrence via pltpu.matmul_push_rhs / matmul_acc_lhs / matmul_pop.
    def step1(t, carry):
        row = pl.multiple_of(t * batch, batch)
        gates = (g1_blk[pl.ds(row, batch), :]
                 + jnp.dot(h1_sc[...].astype(whh1_ref.dtype), whh1_ref[...],
                           preferred_element_type=jnp.float32))
        h_new, c_new = cell(gates, c1_sc[...])
        h1_sc[...] = h_new
        c1_sc[...] = c_new
        h1_blk[pl.ds(row, batch), :] = h_new.astype(h1_blk.dtype)
        return carry

    jax.lax.fori_loop(0, t_block, step1, 0, unroll=unroll)

    # ---- layer-2 input projection for the whole block: one MXU matmul -------
    # TODO(synk): inter-layer dropout(p=0.5) is identity (eval mode).
    g2_blk[...] = (jnp.dot(h1_blk[...], wih2_ref[...],
                           preferred_element_type=jnp.float32) + b2_ref[...])

    def step2(t, carry):
        row = pl.multiple_of(t * batch, batch)
        gates = (g2_blk[pl.ds(row, batch), :]
                 + jnp.dot(h2_sc[...].astype(whh2_ref.dtype), whh2_ref[...],
                           preferred_element_type=jnp.float32))
        h_new, c_new = cell(gates, c2_sc[...])
        h2_sc[...] = h_new
        c2_sc[...] = c_new
        h_out_ref[pl.ds(row, batch), :] = h_new.astype(h_out_ref.dtype)
        return carry

    jax.lax.fori_loop(0, t_block, step2, 0, unroll=unroll)


def _time_block(seq_len, batch, emb_dim, hidden, cap):
    """Largest divisor T of seq_len whose block-scaled VMEM footprint fits a
    generation-aware budget (cap/4 minus the resident weights/carries)."""
    gw = 4 * hidden
    fixed = (2 * 2 * (emb_dim + 3 * hidden) * gw   # bf16 weights, double-buffered
             + 2 * 2 * 4 * gw                      # f32 biases, double-buffered
             + 4 * batch * hidden * 4)             # h/c carries
    per_t = batch * (2 * 2 * emb_dim               # x block (bf16, 2 bufs)
                     + 2 * 4 * gw                  # g1 + g2 f32 slabs
                     + 2 * hidden                  # h1 bf16 slab
                     + 2 * 2 * hidden)             # out block (bf16, 2 bufs)
    budget = max(cap // 4 - fixed, per_t)
    t_max = max(1, min(seq_len, budget // per_t))
    for t in range(t_max, 0, -1):
        if seq_len % t == 0:
            return t
    return 1


def lstm2_fused(x, w_ih1, w_hh1, b1, w_ih2, w_hh2, b2, *, batch):
    sb, emb_dim = x.shape
    hidden = w_hh1.shape[0]
    gw = 4 * hidden
    assert sb % batch == 0 and batch % 8 == 0 and hidden % 128 == 0
    seq_len = sb // batch
    cap = _vmem_capacity_bytes()
    t_block = _time_block(seq_len, batch, emb_dim, hidden, cap)
    tb = t_block * batch
    grid = (seq_len // t_block,)

    # TODO(synk): single-buffer the grid-invariant weights (pl.Buffered(1)) and
    # add a leading "parallel" batch-shard axis to use v7x's second TensorCore.
    need = (2 * (emb_dim + 3 * hidden) * gw * 2    # bf16 weights, double-buffered
            + 2 * 2 * gw * 4                       # biases, double-buffered
            + 2 * tb * emb_dim * 2                 # x blocks (bf16)
            + 2 * tb * hidden * 2                  # out blocks (bf16)
            + 4 * batch * hidden * 4               # h/c carries
            + 2 * tb * gw * 4                      # g1 / g2 f32 slabs
            + tb * hidden * 2)                     # h1 bf16 slab

    return pl.pallas_call(
        _lstm2_kernel,
        out_shape=jax.ShapeDtypeStruct((sb, hidden), jnp.bfloat16),
        grid_spec=pltpu.PrefetchScalarGridSpec(
            num_scalar_prefetch=0,
            grid=grid,
            in_specs=[
                pl.BlockSpec((tb, emb_dim), lambda b: (b, 0)),
                pl.BlockSpec((emb_dim, gw), lambda b: (0, 0)),
                pl.BlockSpec((hidden, gw), lambda b: (0, 0)),
                pl.BlockSpec((1, gw), lambda b: (0, 0)),
                pl.BlockSpec((hidden, gw), lambda b: (0, 0)),
                pl.BlockSpec((hidden, gw), lambda b: (0, 0)),
                pl.BlockSpec((1, gw), lambda b: (0, 0)),
            ],
            out_specs=pl.BlockSpec((tb, hidden), lambda b: (b, 0)),
            scratch_shapes=[
                pltpu.VMEM((batch, hidden), jnp.float32),    # h1 carry
                pltpu.VMEM((batch, hidden), jnp.float32),    # c1 carry
                pltpu.VMEM((batch, hidden), jnp.float32),    # h2 carry
                pltpu.VMEM((batch, hidden), jnp.float32),    # c2 carry
                pltpu.VMEM((tb, gw), jnp.float32),           # layer-1 gate slab
                pltpu.VMEM((tb, hidden), jnp.bfloat16),      # layer-1 h slab
                pltpu.VMEM((tb, gw), jnp.float32),           # layer-2 gate slab
            ],
        ),
        compiler_params=pltpu.CompilerParams(
            dimension_semantics=("arbitrary",),              # time is sequential
            vmem_limit_bytes=_vmem_limit_bytes(need, cap)),
    )(x, w_ih1, w_hh1, b1, w_ih2, w_hh2, b2)


# ---------------------------------------------------------------------------
# Parameter init (shapes follow nn.Embedding / nn.LSTM(2 layers) / nn.Linear,
# stored transposed) + preparation (hidden padded to a multiple of 128, bf16).
# ---------------------------------------------------------------------------
def init_params(key, vocab, emb_dim, hidden_dim):
    ks = jax.random.split(key, 11)
    bound = hidden_dim ** -0.5

    def uni(k, shape):
        return jax.random.uniform(k, shape, jnp.float32, -bound, bound)

    return {
        "embedding": jax.random.normal(ks[0], (vocab, emb_dim), jnp.float32),
        # LSTM layer 0 (gate order i, f, g, o); b = b_ih + b_hh
        "w_ih1": uni(ks[1], (emb_dim, 4 * hidden_dim)),
        "w_hh1": uni(ks[2], (hidden_dim, 4 * hidden_dim)),
        "b1": uni(ks[3], (1, 4 * hidden_dim)) + uni(ks[4], (1, 4 * hidden_dim)),
        # LSTM layer 1
        "w_ih2": uni(ks[5], (hidden_dim, 4 * hidden_dim)),
        "w_hh2": uni(ks[6], (hidden_dim, 4 * hidden_dim)),
        "b2": uni(ks[7], (1, 4 * hidden_dim)) + uni(ks[8], (1, 4 * hidden_dim)),
        # fc
        "fc_w": uni(ks[9], (hidden_dim, vocab)),
        "fc_b": uni(ks[10], (1, vocab)),
    }


def _pad_gate_cols(w, hidden, hidden_pad):
    """Zero-pad the 4H gate axis gate-blockwise: (..., 4H) -> (..., 4H_pad)."""
    if hidden == hidden_pad:
        return w
    lead = w.shape[:-1]
    w4 = w.reshape(lead + (4, hidden))
    w4 = jnp.pad(w4, [(0, 0)] * len(lead) + [(0, 0), (0, hidden_pad - hidden)])
    return w4.reshape(lead + (4 * hidden_pad,))


def _pad_rows(w, hidden, hidden_pad):
    if hidden == hidden_pad:
        return w
    return jnp.pad(w, ((0, hidden_pad - hidden), (0, 0)))


def prepare_params(params, hidden_dim):
    """Pad hidden to a lane-aligned multiple of 128 (zero padding keeps the
    padded LSTM units' h/c identically zero, so outputs are unchanged) and cast
    all MXU-stream weights to bf16."""
    hp = _round_up(hidden_dim, 128)
    bf = jnp.bfloat16
    return {
        "embedding": params["embedding"].astype(bf),
        "w_ih1": _pad_gate_cols(params["w_ih1"], hidden_dim, hp).astype(bf),
        "w_hh1": _pad_rows(_pad_gate_cols(params["w_hh1"], hidden_dim, hp),
                           hidden_dim, hp).astype(bf),
        "b1": _pad_gate_cols(params["b1"], hidden_dim, hp),
        "w_ih2": _pad_rows(_pad_gate_cols(params["w_ih2"], hidden_dim, hp),
                           hidden_dim, hp).astype(bf),
        "w_hh2": _pad_rows(_pad_gate_cols(params["w_hh2"], hidden_dim, hp),
                           hidden_dim, hp).astype(bf),
        "b2": _pad_gate_cols(params["b2"], hidden_dim, hp),
        "fc_w": _pad_rows(params["fc_w"], hidden_dim, hp).astype(bf),
        "fc_b": params["fc_b"],
    }


# ---------------------------------------------------------------------------
# Forward: Embedding -> dropout(identity) -> 2-layer LSTM -> Linear
# ---------------------------------------------------------------------------
@jax.jit
def rnn_language_model_forward(params, text):
    """text: (seq_len, batch) int32 -> predictions: (seq_len, batch, vocab)."""
    seq_len, batch = text.shape
    vocab = params["fc_b"].shape[1]
    batch_pad = _round_up(batch, 8)

    ids = jnp.pad(text, ((0, 0), (0, batch_pad - batch)))
    ids = ids.reshape(seq_len * batch_pad)
    # TODO(synk): fuse the embedding gather into lstm2_fused via a manual DMA
    # row gather; XLA's gather materializes (S*B, E) once here.
    x = jnp.take(params["embedding"], ids, axis=0)          # (S*Bp, E) bf16
    # TODO(synk): dropout(p=0.5) is identity (eval/inference semantics).

    # Fused layer-1 projection + 2-layer LSTM recurrence (carries in VMEM,
    # no HBM round trip between projection and recurrence or between layers).
    h2 = lstm2_fused(x, params["w_ih1"], params["w_hh1"], params["b1"],
                     params["w_ih2"], params["w_hh2"], params["b2"],
                     batch=batch_pad)                        # (S*Bp, Hp) bf16

    # Tiled, pipelined, padded vocab projection.
    logits = matmul_bias(h2, params["fc_w"], params["fc_b"])  # (S*Bp, V) f32
    logits = logits.reshape(seq_len, batch_pad, vocab)
    return logits[:, :batch, :]


if __name__ == "__main__":
    # Small shapes consistent with the module's forward (n_layers=2 as in spec).
    VOCAB = 50
    EMB = 32
    HIDDEN = 32
    SEQ = 8
    BATCH = 2

    key = jax.random.PRNGKey(0)
    pkey, tkey = jax.random.split(key)
    params = prepare_params(init_params(pkey, VOCAB, EMB, HIDDEN), HIDDEN)
    text = jax.random.randint(tkey, (SEQ, BATCH), 0, VOCAB, dtype=jnp.int32)

    preds = rnn_language_model_forward(params, text)
    preds = jax.block_until_ready(preds)
    assert preds.shape == (SEQ, BATCH, VOCAB)
    assert preds.dtype == jnp.float32
    print("KERNEL_OK")
</pallas_src>

<mosaic_0001>
module attributes {stable_mosaic.version = 11 : i64} {
  func.func @_matmul_bias_kernel(%arg0: i32, %arg1: i32, %arg2: i32, %arg3: memref<64x128xbf16, #tpu.memory_space<vmem>>, %arg4: memref<128x128xbf16, #tpu.memory_space<vmem>>, %arg5: memref<1x128xf32, #tpu.memory_space<vmem>>, %arg6: memref<64x128xf32, #tpu.memory_space<vmem>>, %arg7: memref<64x128xf32, #tpu.memory_space<vmem>>) attributes {dimension_semantics = [#tpu.dimension_semantics<parallel>, #tpu.dimension_semantics<parallel>, #tpu.dimension_semantics<arbitrary>], iteration_bounds = array<i64: 1, 1, 1>, scalar_prefetch = 0 : i64, scratch_operands = 1 : i64, tpu.core_type = #tpu.core_type<tc>, window_params = [{transform_indices = @transform_0, window_bounds = array<i64: 64, 128>}, {transform_indices = @transform_1, window_bounds = array<i64: 128, 128>}, {transform_indices = @transform_2, window_bounds = array<i64: 1, 128>}, {transform_indices = @transform_3, window_bounds = array<i64: 64, 128>}]} {
    %c0_i32 = arith.constant 0 : i32
    %0 = arith.cmpi eq, %arg2, %c0_i32 : i32
    %1 = arith.extui %0 : i1 to i32
    %c0_i32_0 = arith.constant 0 : i32
    %2 = arith.cmpi ne, %1, %c0_i32_0 : i32
    scf.if %2 {
      %cst_10 = arith.constant 0.000000e+00 : f32
      %12 = vector.broadcast %cst_10 : f32 to vector<64x128xf32>
      %c0_11 = arith.constant 0 : index
      %c0_12 = arith.constant 0 : index
      %13 = vector.load %arg7[%c0_11, %c0_12] : memref<64x128xf32, #tpu.memory_space<vmem>>, vector<64x128xf32>
      tpu.vector_store %arg7[%c0_11, %c0_12], %12 {strides = array<i32>} : memref<64x128xf32, #tpu.memory_space<vmem>>, vector<64x128xf32>,
    } else {
    }
    %c0 = arith.constant 0 : index
    %c0_1 = arith.constant 0 : index
    %3 = vector.load %arg7[%c0, %c0_1] : memref<64x128xf32, #tpu.memory_space<vmem>>, vector<64x128xf32>
    %c0_2 = arith.constant 0 : index
    %c0_3 = arith.constant 0 : index
    %4 = vector.load %arg3[%c0_2, %c0_3] : memref<64x128xbf16, #tpu.memory_space<vmem>>, vector<64x128xbf16>
    %c0_4 = arith.constant 0 : index
    %c0_5 = arith.constant 0 : index
    %5 = vector.load %arg4[%c0_4, %c0_5] : memref<128x128xbf16, #tpu.memory_space<vmem>>, vector<128x128xbf16>
    %cst = arith.constant dense<0.000000e+00> : vector<64x128xf32>
    %6 = tpu.matmul %4, %5, %cst {dimension_numbers = #tpu.dot_dimension_numbers<[1], [0], [0], [1], [0, 0, 1, 1], [], []>} : vector<64x128xbf16>, vector<128x128xbf16>, vector<64x128xf32> -> vector<64x128xf32>
    %7 = arith.addf %3, %6 : vector<64x128xf32>
    %c0_6 = arith.constant 0 : index
    %c0_7 = arith.constant 0 : index
    %8 = vector.load %arg7[%c0_6, %c0_7] : memref<64x128xf32, #tpu.memory_space<vmem>>, vector<64x128xf32>
    tpu.vector_store %arg7[%c0_6, %c0_7], %7 {strides = array<i32>} : memref<64x128xf32, #tpu.memory_space<vmem>>, vector<64x128xf32>,
    %c0_i32_8 = arith.constant 0 : i32
    %9 = arith.cmpi eq, %arg2, %c0_i32_8 : i32
    %10 = arith.extui %9 : i1 to i32
    %c0_i32_9 = arith.constant 0 : i32
    %11 = arith.cmpi ne, %10, %c0_i32_9 : i32
    scf.if %11 {
      %c0_10 = arith.constant 0 : index
      %c0_11 = arith.constant 0 : index
      %12 = vector.load %arg7[%c0_10, %c0_11] : memref<64x128xf32, #tpu.memory_space<vmem>>, vector<64x128xf32>
      %c0_12 = arith.constant 0 : index
      %c0_13 = arith.constant 0 : index
      %13 = vector.load %arg5[%c0_12, %c0_13] : memref<1x128xf32, #tpu.memory_space<vmem>>, vector<1x128xf32>
      %14 = vector.broadcast %13 : vector<1x128xf32> to vector<64x128xf32>
      %15 = arith.addf %12, %14 : vector<64x128xf32>
      %c0_14 = arith.constant 0 : index
      %c0_15 = arith.constant 0 : index
      %16 = vector.load %arg6[%c0_14, %c0_15] : memref<64x128xf32, #tpu.memory_space<vmem>>, vector<64x128xf32>
      tpu.vector_store %arg6[%c0_14, %c0_15], %15 {strides = array<i32>} : memref<64x128xf32, #tpu.memory_space<vmem>>, vector<64x128xf32>,
    } else {
    }
    return
  }
  func.func @transform_0(%arg0: i32, %arg1: i32, %arg2: i32) -> (i32, i32) {
    %c0_i32 = arith.constant 0 : i32
    return %arg0, %arg2 : i32, i32
  }
  func.func @transform_1(%arg0: i32, %arg1: i32, %arg2: i32) -> (i32, i32) {
    %c0_i32 = arith.constant 0 : i32
    return %arg2, %arg1 : i32, i32
  }
  func.func @transform_2(%arg0: i32, %arg1: i32, %arg2: i32) -> (i32, i32) {
    %c0_i32 = arith.constant 0 : i32
    %c0_i32_0 = arith.constant 0 : i32
    return %c0_i32, %arg1 : i32, i32
  }
  func.func @transform_3(%arg0: i32, %arg1: i32, %arg2: i32) -> (i32, i32) {
    %c0_i32 = arith.constant 0 : i32
    return %arg0, %arg1 : i32, i32
  }
}

module attributes {stable_mosaic.version = 11 : i64} {
  func.func @_lstm2_kernel(%arg0: i32, %arg1: memref<64x32xbf16, #tpu.memory_space<vmem>>, %arg2: memref<32x512xbf16, #tpu.memory_space<vmem>>, %arg3: memref<128x512xbf16, #tpu.memory_space<vmem>>, %arg4: memref<1x512xf32, #tpu.memory_space<vmem>>, %arg5: memref<128x512xbf16, #tpu.memory_space<vmem>>, %arg6: memref<128x512xbf16, #tpu.memory_space<vmem>>, %arg7: memref<1x512xf32, #tpu.memory_space<vmem>>, %arg8: memref<64x128xbf16, #tpu.memory_space<vmem>>, %arg9: memref<8x128xf32, #tpu.memory_space<vmem>>, %arg10: memref<8x128xf32, #tpu.memory_space<vmem>>, %arg11: memref<8x128xf32, #tpu.memory_space<vmem>>, %arg12: memref<8x128xf32, #tpu.memory_space<vmem>>, %arg13: memref<64x512xf32, #tpu.memory_space<vmem>>, %arg14: memref<64x128xbf16, #tpu.memory_space<vmem>>, %arg15: memref<64x512xf32, #tpu.memory_space<vmem>>) attributes {dimension_semantics = [#tpu.dimension_semantics<arbitrary>], iteration_bounds = array<i64: 1>, scalar_prefetch = 0 : i64, scratch_operands = 7 : i64, tpu.core_type = #tpu.core_type<tc>, window_params = [{transform_indices = @transform_0, window_bounds = array<i64: 64, 32>}, {pipeline_mode = #tpu.pipeline_mode<synchronous>, transform_indices = @transform_1, window_bounds = array<i64: 32, 512>}, {pipeline_mode = #tpu.pipeline_mode<synchronous>, transform_indices = @transform_2, window_bounds = array<i64: 128, 512>}, {pipeline_mode = #tpu.pipeline_mode<synchronous>, transform_indices = @transform_3, window_bounds = array<i64: 1, 512>}, {pipeline_mode = #tpu.pipeline_mode<synchronous>, transform_indices = @transform_4, window_bounds = array<i64: 128, 512>}, {pipeline_mode = #tpu.pipeline_mode<synchronous>, transform_indices = @transform_5, window_bounds = array<i64: 128, 512>}, {pipeline_mode = #tpu.pipeline_mode<synchronous>, transform_indices = @transform_6, window_bounds = array<i64: 1, 512>}, {transform_indices = @transform_7, window_bounds = array<i64: 64, 128>}]} {
    %c0_i32 = arith.constant 0 : i32
    %0 = arith.cmpi eq, %arg0, %c0_i32 : i32
    %1 = arith.extui %0 : i1 to i32
    %c0_i32_0 = arith.constant 0 : i32
    %2 = arith.cmpi ne, %1, %c0_i32_0 : i32
    scf.if %2 {
      %cst_299 = arith.constant 0.000000e+00 : f32
      %657 = vector.broadcast %cst_299 : f32 to vector<8x128xf32>
      %c0_300 = arith.constant 0 : index
      %c0_301 = arith.constant 0 : index
      %658 = vector.load %arg9[%c0_300, %c0_301] : memref<8x128xf32, #tpu.memory_space<vmem>>, vector<8x128xf32>
      tpu.vector_store %arg9[%c0_300, %c0_301], %657 {strides = array<i32>} : memref<8x128xf32, #tpu.memory_space<vmem>>, vector<8x128xf32>,
      %cst_302 = arith.constant 0.000000e+00 : f32
      %659 = vector.broadcast %cst_302 : f32 to vector<8x128xf32>
      %c0_303 = arith.constant 0 : index
      %c0_304 = arith.constant 0 : index
      %660 = vector.load %arg10[%c0_303, %c0_304] : memref<8x128xf32, #tpu.memory_space<vmem>>, vector<8x128xf32>
      tpu.vector_store %arg10[%c0_303, %c0_304], %659 {strides = array<i32>} : memref<8x128xf32, #tpu.memory_space<vmem>>, vector<8x128xf32>,
      %cst_305 = arith.constant 0.000000e+00 : f32
      %661 = vector.broadcast %cst_305 : f32 to vector<8x128xf32>
      %c0_306 = arith.constant 0 : index
      %c0_307 = arith.constant 0 : index
      %662 = vector.load %arg11[%c0_306, %c0_307] : memref<8x128xf32, #tpu.memory_space<vmem>>, vector<8x128xf32>
      tpu.vector_store %arg11[%c0_306, %c0_307], %661 {strides = array<i32>} : memref<8x128xf32, #tpu.memory_space<vmem>>, vector<8x128xf32>,
      %cst_308 = arith.constant 0.000000e+00 : f32
      %663 = vector.broadcast %cst_308 : f32 to vector<8x128xf32>
      %c0_309 = arith.constant 0 : index
      %c0_310 = arith.constant 0 : index
      %664 = vector.load %arg12[%c0_309, %c0_310] : memref<8x128xf32, #tpu.memory_space<vmem>>, vector<8x128xf32>
      tpu.vector_store %arg12[%c0_309, %c0_310], %663 {strides = array<i32>} : memref<8x128xf32, #tpu.memory_space<vmem>>, vector<8x128xf32>,
    } else {
    }
    %c0 = arith.constant 0 : index
    %c0_1 = arith.constant 0 : index
    %3 = vector.load %arg1[%c0, %c0_1] : memref<64x32xbf16, #tpu.memory_space<vmem>>, vector<64x32xbf16>
    %c0_2 = arith.constant 0 : index
    %c0_3 = arith.constant 0 : index
    %4 = vector.load %arg2[%c0_2, %c0_3] : memref<32x512xbf16, #tpu.memory_space<vmem>>, vector<32x512xbf16>
    %cst = arith.constant dense<0.000000e+00> : vector<64x512xf32>
    %5 = tpu.matmul %3, %4, %cst {dimension_numbers = #tpu.dot_dimension_numbers<[1], [0], [0], [1], [0, 0, 1, 1], [], []>} : vector<64x32xbf16>, vector<32x512xbf16>, vector<64x512xf32> -> vector<64x512xf32>
    %c0_4 = arith.constant 0 : index
    %c0_5 = arith.constant 0 : index
    %6 = vector.load %arg4[%c0_4, %c0_5] : memref<1x512xf32, #tpu.memory_space<vmem>>, vector<1x512xf32>
    %7 = vector.broadcast %6 : vector<1x512xf32> to vector<64x512xf32>
    %8 = arith.addf %5, %7 : vector<64x512xf32>
    %c0_6 = arith.constant 0 : index
    %c0_7 = arith.constant 0 : index
    %9 = vector.load %arg13[%c0_6, %c0_7] : memref<64x512xf32, #tpu.memory_space<vmem>>, vector<64x512xf32>
    tpu.vector_store %arg13[%c0_6, %c0_7], %8 {strides = array<i32>} : memref<64x512xf32, #tpu.memory_space<vmem>>, vector<64x512xf32>,
    %c0_i32_8 = arith.constant 0 : i32
    %c8_i32 = arith.constant 8 : i32
    %10 = arith.muli %c0_i32_8, %c8_i32 : i32
    %11 = tpu.assume_multiple %10, 8 : i32
    %12 = arith.index_cast %11 : i32 to index
    %c0_9 = arith.constant 0 : index
    %13 = vector.load %arg13[%12, %c0_9] : memref<64x512xf32, #tpu.memory_space<vmem>>, vector<8x512xf32>
    %c0_10 = arith.constant 0 : index
    %c0_11 = arith.constant 0 : index
    %14 = vector.load %arg9[%c0_10, %c0_11] : memref<8x128xf32, #tpu.memory_space<vmem>>, vector<8x128xf32>
    %15 = arith.truncf %14 : vector<8x128xf32> to vector<8x128xbf16>
    %c0_12 = arith.constant 0 : index
    %c0_13 = arith.constant 0 : index
    %16 = vector.load %arg3[%c0_12, %c0_13] : memref<128x512xbf16, #tpu.memory_space<vmem>>, vector<128x512xbf16>
    %cst_14 = arith.constant dense<0.000000e+00> : vector<8x512xf32>
    %17 = tpu.matmul %15, %16, %cst_14 {dimension_numbers = #tpu.dot_dimension_numbers<[1], [0], [0], [1], [0, 0, 1, 1], [], []>} : vector<8x128xbf16>, vector<128x512xbf16>, vector<8x512xf32> -> vector<8x512xf32>
    %18 = arith.addf %13, %17 : vector<8x512xf32>
    %c0_15 = arith.constant 0 : index
    %c0_16 = arith.constant 0 : index
    %19 = vector.load %arg10[%c0_15, %c0_16] : memref<8x128xf32, #tpu.memory_space<vmem>>, vector<8x128xf32>
    %20 = vector.extract_strided_slice %18 {offsets = [0, 0], sizes = [8, 128], strides = [1, 1]} : vector<8x512xf32> to vector<8x128xf32>
    %21 = arith.negf %20 : vector<8x128xf32>
    %22 = math.exp %21 : vector<8x128xf32>
    %cst_17 = arith.constant 1.000000e+00 : f32
    %23 = vector.broadcast %cst_17 : f32 to vector<8x128xf32>
    %24 = arith.addf %23, %22 : vector<8x128xf32>
    %25 = arith.divf %23, %24 : vector<8x128xf32>
    %26 = vector.extract_strided_slice %18 {offsets = [0, 128], sizes = [8, 128], strides = [1, 1]} : vector<8x512xf32> to vector<8x128xf32>
    %27 = arith.negf %26 : vector<8x128xf32>
    %28 = math.exp %27 : vector<8x128xf32>
    %cst_18 = arith.constant 1.000000e+00 : f32
    %29 = vector.broadcast %cst_18 : f32 to vector<8x128xf32>
    %30 = arith.addf %29, %28 : vector<8x128xf32>
    %31 = arith.divf %29, %30 : vector<8x128xf32>
    %32 = vector.extract_strided_slice %18 {offsets = [0, 256], sizes = [8, 128], strides = [1, 1]} : vector<8x512xf32> to vector<8x128xf32>
    %33 = math.tanh %32 : vector<8x128xf32>
    %34 = vector.extract_strided_slice %18 {offsets = [0, 384], sizes = [8, 128], strides = [1, 1]} : vector<8x512xf32> to vector<8x128xf32>
    %35 = arith.negf %34 : vector<8x128xf32>
    %36 = math.exp %35 : vector<8x128xf32>
    %cst_19 = arith.constant 1.000000e+00 : f32
    %37 = vector.broadcast %cst_19 : f32 to vector<8x128xf32>
    %38 = arith.addf %37, %36 : vector<8x128xf32>
    %39 = arith.divf %37, %38 : vector<8x128xf32>
    %40 = arith.mulf %31, %19 : vector<8x128xf32>
    %41 = arith.mulf %25, %33 : vector<8x128xf32>
    %42 = arith.addf %40, %41 : vector<8x128xf32>
    %43 = math.tanh %42 : vector<8x128xf32>
    %44 = arith.mulf %39, %43 : vector<8x128xf32>
    %c0_20 = arith.constant 0 : index
    %c0_21 = arith.constant 0 : index
    %45 = vector.load %arg9[%c0_20, %c0_21] : memref<8x128xf32, #tpu.memory_space<vmem>>, vector<8x128xf32>
    tpu.vector_store %arg9[%c0_20, %c0_21], %44 {strides = array<i32>} : memref<8x128xf32, #tpu.memory_space<vmem>>, vector<8x128xf32>,
    %c0_22 = arith.constant 0 : index
    %c0_23 = arith.constant 0 : index
    %46 = vector.load %arg10[%c0_22, %c0_23] : memref<8x128xf32, #tpu.memory_space<vmem>>, vector<8x128xf32>
    tpu.vector_store %arg10[%c0_22, %c0_23], %42 {strides = array<i32>} : memref<8x128xf32, #tpu.memory_space<vmem>>, vector<8x128xf32>,
    %47 = arith.truncf %44 : vector<8x128xf32> to vector<8x128xbf16>
    %48 = arith.index_cast %11 : i32 to index
    %c0_24 = arith.constant 0 : index
    %49 = vector.load %arg14[%48, %c0_24] : memref<64x128xbf16, #tpu.memory_space<vmem>>, vector<8x128xbf16>
    tpu.vector_store %arg14[%48, %c0_24], %47 {strides = array<i32>} : memref<64x128xbf16, #tpu.memory_space<vmem>>, vector<8x128xbf16>,
    %c1_i32 = arith.constant 1 : i32
    %c8_i32_25 = arith.constant 8 : i32
    %50 = arith.muli %c1_i32, %c8_i32_25 : i32
    %51 = tpu.assume_multiple %50, 8 : i32
    %52 = arith.index_cast %51 : i32 to index
    %c0_26 = arith.constant 0 : index
    %53 = vector.load %arg13[%52, %c0_26] : memref<64x512xf32, #tpu.memory_space<vmem>>, vector<8x512xf32>
    %c0_27 = arith.constant 0 : index
    %c0_28 = arith.constant 0 : index
    %54 = vector.load %arg9[%c0_27, %c0_28] : memref<8x128xf32, #tpu.memory_space<vmem>>, vector<8x128xf32>
    %55 = arith.truncf %54 : vector<8x128xf32> to vector<8x128xbf16>
    %c0_29 = arith.constant 0 : index
    %c0_30 = arith.constant 0 : index
    %56 = vector.load %arg3[%c0_29, %c0_30] : memref<128x512xbf16, #tpu.memory_space<vmem>>, vector<128x512xbf16>
    %cst_31 = arith.constant dense<0.000000e+00> : vector<8x512xf32>
    %57 = tpu.matmul %55, %56, %cst_31 {dimension_numbers = #tpu.dot_dimension_numbers<[1], [0], [0], [1], [0, 0, 1, 1], [], []>} : vector<8x128xbf16>, vector<128x512xbf16>, vector<8x512xf32> -> vector<8x512xf32>
    %58 = arith.addf %53, %57 : vector<8x512xf32>
    %c0_32 = arith.constant 0 : index
    %c0_33 = arith.constant 0 : index
    %59 = vector.load %arg10[%c0_32, %c0_33] : memref<8x128xf32, #tpu.memory_space<vmem>>, vector<8x128xf32>
    %60 = vector.extract_strided_slice %58 {offsets = [0, 0], sizes = [8, 128], strides = [1, 1]} : vector<8x512xf32> to vector<8x128xf32>
    %61 = arith.negf %60 : vector<8x128xf32>
    %62 = math.exp %61 : vector<8x128xf32>
    %cst_34 = arith.constant 1.000000e+00 : f32
    %63 = vector.broadcast %cst_34 : f32 to vector<8x128xf32>
    %64 = arith.addf %63, %62 : vector<8x128xf32>
    %65 = arith.divf %63, %64 : vector<8x128xf32>
    %66 = vector.extract_strided_slice %58 {offsets = [0, 128], sizes = [8, 128], strides = [1, 1]} : vector<8x512xf32> to vector<8x128xf32>
    %67 = arith.negf %66 : vector<8x128xf32>
    %68 = math.exp %67 : vector<8x128xf32>
    %cst_35 = arith.constant 1.000000e+00 : f32
    %69 = vector.broadcast %cst_35 : f32 to vector<8x128xf32>
    %70 = arith.addf %69, %68 : vector<8x128xf32>
    %71 = arith.divf %69, %70 : vector<8x128xf32>
    %72 = vector.extract_strided_slice %58 {offsets = [0, 256], sizes = [8, 128], strides = [1, 1]} : vector<8x512xf32> to vector<8x128xf32>
    %73 = math.tanh %72 : vector<8x128xf32>
    %74 = vector.extract_strided_slice %58 {offsets = [0, 384], sizes = [8, 128], strides = [1, 1]} : vector<8x512xf32> to vector<8x128xf32>
    %75 = arith.negf %74 : vector<8x128xf32>
    %76 = math.exp %75 : vector<8x128xf32>
    %cst_36 = arith.constant 1.000000e+00 : f32
    %77 = vector.broadcast %cst_36 : f32 to vector<8x128xf32>
    %78 = arith.addf %77, %76 : vector<8x128xf32>
    %79 = arith.divf %77, %78 : vector<8x128xf32>
    %80 = arith.mulf %71, %59 : vector<8x128xf32>
    %81 = arith.mulf %65, %73 : vector<8x128xf32>
    %82 = arith.addf %80, %81 : vector<8x128xf32>
    %83 = math.tanh %82 : vector<8x128xf32>
    %84 = arith.mulf %79, %83 : vector<8x128xf32>
    %c0_37 = arith.constant 0 : index
    %c0_38 = arith.constant 0 : index
    %85 = vector.load %arg9[%c0_37, %c0_38] : memref<8x128xf32, #tpu.memory_space<vmem>>, vector<8x128xf32>
    tpu.vector_store %arg9[%c0_37, %c0_38], %84 {strides = array<i32>} : memref<8x128xf32, #tpu.memory_space<vmem>>, vector<8x128xf32>,
    %c0_39 = arith.constant 0 : index
    %c0_40 = arith.constant 0 : index
    %86 = vector.load %arg10[%c0_39, %c0_40] : memref<8x128xf32, #tpu.memory_space<vmem>>, vector<8x128xf32>
    tpu.vector_store %arg10[%c0_39, %c0_40], %82 {strides = array<i32>} : memref<8x128xf32, #tpu.memory_space<vmem>>, vector<8x128xf32>,
    %87 = arith.truncf %84 : vector<8x128xf32> to vector<8x128xbf16>
    %88 = arith.index_cast %51 : i32 to index
    %c0_41 = arith.constant 0 : index
    %89 = vector.load %arg14[%88, %c0_41] : memref<64x128xbf16, #tpu.memory_space<vmem>>, vector<8x128xbf16>
    tpu.vector_store %arg14[%88, %c0_41], %87 {strides = array<i32>} : memref<64x128xbf16, #tpu.memory_space<vmem>>, vector<8x128xbf16>,
    %c2_i32 = arith.constant 2 : i32
    %c8_i32_42 = arith.constant 8 : i32
    %90 = arith.muli %c2_i32, %c8_i32_42 : i32
    %91 = tpu.assume_multiple %90, 8 : i32
    %92 = arith.index_cast %91 : i32 to index
    %c0_43 = arith.constant 0 : index
    %93 = vector.load %arg13[%92, %c0_43] : memref<64x512xf32, #tpu.memory_space<vmem>>, vector<8x512xf32>
    %c0_44 = arith.constant 0 : index
    %c0_45 = arith.constant 0 : index
    %94 = vector.load %arg9[%c0_44, %c0_45] : memref<8x128xf32, #tpu.memory_space<vmem>>, vector<8x128xf32>
    %95 = arith.truncf %94 : vector<8x128xf32> to vector<8x128xbf16>
    %c0_46 = arith.constant 0 : index
    %c0_47 = arith.constant 0 : index
    %96 = vector.load %arg3[%c0_46, %c0_47] : memref<128x512xbf16, #tpu.memory_space<vmem>>, vector<128x512xbf16>
    %cst_48 = arith.constant dense<0.000000e+00> : vector<8x512xf32>
    %97 = tpu.matmul %95, %96, %cst_48 {dimension_numbers = #tpu.dot_dimension_numbers<[1], [0], [0], [1], [0, 0, 1, 1], [], []>} : vector<8x128xbf16>, vector<128x512xbf16>, vector<8x512xf32> -> vector<8x512xf32>
    %98 = arith.addf %93, %97 : vector<8x512xf32>
    %c0_49 = arith.constant 0 : index
    %c0_50 = arith.constant 0 : index
    %99 = vector.load %arg10[%c0_49, %c0_50] : memref<8x128xf32, #tpu.memory_space<vmem>>, vector<8x128xf32>
    %100 = vector.extract_strided_slice %98 {offsets = [0, 0], sizes = [8, 128], strides = [1, 1]} : vector<8x512xf32> to vector<8x128xf32>
    %101 = arith.negf %100 : vector<8x128xf32>
    %102 = math.exp %101 : vector<8x128xf32>
    %cst_51 = arith.constant 1.000000e+00 : f32
    %103 = vector.broadcast %cst_51 : f32 to vector<8x128xf32>
    %104 = arith.addf %103, %102 : vector<8x128xf32>
    %105 = arith.divf %103, %104 : vector<8x128xf32>
    %106 = vector.extract_strided_slice %98 {offsets = [0, 128], sizes = [8, 128], strides = [1, 1]} : vector<8x512xf32> to vector<8x128xf32>
    %107 = arith.negf %106 : vector<8x128xf32>
    %108 = math.exp %107 : vector<8x128xf32>
    %cst_52 = arith.constant 1.000000e+00 : f32
    %109 = vector.broadcast %cst_52 : f32 to vector<8x128xf32>
    %110 = arith.addf %109, %108 : vector<8x128xf32>
    %111 = arith.divf %109, %110 : vector<8x128xf32>
    %112 = vector.extract_strided_slice %98 {offsets = [0, 256], sizes = [8, 128], strides = [1, 1]} : vector<8x512xf32> to vector<8x128xf32>
    %113 = math.tanh %112 : vector<8x128xf32>
    %114 = vector.extract_strided_slice %98 {offsets = [0, 384], sizes = [8, 128], strides = [1, 1]} : vector<8x512xf32> to vector<8x128xf32>
    %115 = arith.negf %114 : vector<8x128xf32>
    %116 = math.exp %115 : vector<8x128xf32>
    %cst_53 = arith.constant 1.000000e+00 : f32
    %117 = vector.broadcast %cst_53 : f32 to vector<8x128xf32>
    %118 = arith.addf %117, %116 : vector<8x128xf32>
    %119 = arith.divf %117, %118 : vector<8x128xf32>
    %120 = arith.mulf %111, %99 : vector<8x128xf32>
    %121 = arith.mulf %105, %113 : vector<8x128xf32>
    %122 = arith.addf %120, %121 : vector<8x128xf32>
    %123 = math.tanh %122 : vector<8x128xf32>
    %124 = arith.mulf %119, %123 : vector<8x128xf32>
    %c0_54 = arith.constant 0 : index
    %c0_55 = arith.constant 0 : index
    %125 = vector.load %arg9[%c0_54, %c0_55] : memref<8x128xf32, #tpu.memory_space<vmem>>, vector<8x128xf32>
    tpu.vector_store %arg9[%c0_54, %c0_55], %124 {strides = array<i32>} : memref<8x128xf32, #tpu.memory_space<vmem>>, vector<8x128xf32>,
    %c0_56 = arith.constant 0 : index
    %c0_57 = arith.constant 0 : index
    %126 = vector.load %arg10[%c0_56, %c0_57] : memref<8x128xf32, #tpu.memory_space<vmem>>, vector<8x128xf32>
    tpu.vector_store %arg10[%c0_56, %c0_57], %122 {strides = array<i32>} : memref<8x128xf32, #tpu.memory_space<vmem>>, vector<8x128xf32>,
    %127 = arith.truncf %124 : vector<8x128xf32> to vector<8x128xbf16>
    %128 = arith.index_cast %91 : i32 to index
    %c0_58 = arith.constant 0 : index
    %129 = vector.load %arg14[%128, %c0_58] : memref<64x128xbf16, #tpu.memory_space<vmem>>, vector<8x128xbf16>
    tpu.vector_store %arg14[%128, %c0_58], %127 {strides = array<i32>} : memref<64x128xbf16, #tpu.memory_space<vmem>>, vector<8x128xbf16>,
    %c3_i32 = arith.constant 3 : i32
    %c8_i32_59 = arith.constant 8 : i32
    %130 = arith.muli %c3_i32, %c8_i32_59 : i32
    %131 = tpu.assume_multiple %130, 8 : i32
    %132 = arith.index_cast %131 : i32 to index
    %c0_60 = arith.constant 0 : index
    %133 = vector.load %arg13[%132, %c0_60] : memref<64x512xf32, #tpu.memory_space<vmem>>, vector<8x512xf32>
    %c0_61 = arith.constant 0 : index
    %c0_62 = arith.constant 0 : index
    %134 = vector.load %arg9[%c0_61, %c0_62] : memref<8x128xf32, #tpu.memory_space<vmem>>, vector<8x128xf32>
    %135 = arith.truncf %134 : vector<8x128xf32> to vector<8x128xbf16>
    %c0_63 = arith.constant 0 : index
    %c0_64 = arith.constant 0 : index
    %136 = vector.load %arg3[%c0_63, %c0_64] : memref<128x512xbf16, #tpu.memory_space<vmem>>, vector<128x512xbf16>
    %cst_65 = arith.constant dense<0.000000e+00> : vector<8x512xf32>
    %137 = tpu.matmul %135, %136, %cst_65 {dimension_numbers = #tpu.dot_dimension_numbers<[1], [0], [0], [1], [0, 0, 1, 1], [], []>} : vector<8x128xbf16>, vector<128x512xbf16>, vector<8x512xf32> -> vector<8x512xf32>
    %138 = arith.addf %133, %137 : vector<8x512xf32>
    %c0_66 = arith.constant 0 : index
    %c0_67 = arith.constant 0 : index
    %139 = vector.load %arg10[%c0_66, %c0_67] : memref<8x128xf32, #tpu.memory_space<vmem>>, vector<8x128xf32>
    %140 = vector.extract_strided_slice %138 {offsets = [0, 0], sizes = [8, 128], strides = [1, 1]} : vector<8x512xf32> to vector<8x128xf32>
    %141 = arith.negf %140 : vector<8x128xf32>
    %142 = math.exp %141 : vector<8x128xf32>
    %cst_68 = arith.constant 1.000000e+00 : f32
    %143 = vector.broadcast %cst_68 : f32 to vector<8x128xf32>
    %144 = arith.addf %143, %142 : vector<8x128xf32>
    %145 = arith.divf %143, %144 : vector<8x128xf32>
    %146 = vector.extract_strided_slice %138 {offsets = [0, 128], sizes = [8, 128], strides = [1, 1]} : vector<8x512xf32> to vector<8x128xf32>
    %147 = arith.negf %146 : vector<8x128xf32>
    %148 = math.exp %147 : vector<8x128xf32>
    %cst_69 = arith.constant 1.000000e+00 : f32
    %149 = vector.broadcast %cst_69 : f32 to vector<8x128xf32>
    %150 = arith.addf %149, %148 : vector<8x128xf32>
    %151 = arith.divf %149, %150 : vector<8x128xf32>
    %152 = vector.extract_strided_slice %138 {offsets = [0, 256], sizes = [8, 128], strides = [1, 1]} : vector<8x512xf32> to vector<8x128xf32>
    %153 = math.tanh %152 : vector<8x128xf32>
    %154 = vector.extract_strided_slice %138 {offsets = [0, 384], sizes = [8, 128], strides = [1, 1]} : vector<8x512xf32> to vector<8x128xf32>
    %155 = arith.negf %154 : vector<8x128xf32>
    %156 = math.exp %155 : vector<8x128xf32>
    %cst_70 = arith.constant 1.000000e+00 : f32
    %157 = vector.broadcast %cst_70 : f32 to vector<8x128xf32>
    %158 = arith.addf %157, %156 : vector<8x128xf32>
    %159 = arith.divf %157, %158 : vector<8x128xf32>
    %160 = arith.mulf %151, %139 : vector<8x128xf32>
    %161 = arith.mulf %145, %153 : vector<8x128xf32>
    %162 = arith.addf %160, %161 : vector<8x128xf32>
    %163 = math.tanh %162 : vector<8x128xf32>
    %164 = arith.mulf %159, %163 : vector<8x128xf32>
    %c0_71 = arith.constant 0 : index
    %c0_72 = arith.constant 0 : index
    %165 = vector.load %arg9[%c0_71, %c0_72] : memref<8x128xf32, #tpu.memory_space<vmem>>, vector<8x128xf32>
    tpu.vector_store %arg9[%c0_71, %c0_72], %164 {strides = array<i32>} : memref<8x128xf32, #tpu.memory_space<vmem>>, vector<8x128xf32>,
    %c0_73 = arith.constant 0 : index
    %c0_74 = arith.constant 0 : index
    %166 = vector.load %arg10[%c0_73, %c0_74] : memref<8x128xf32, #tpu.memory_space<vmem>>, vector<8x128xf32>
    tpu.vector_store %arg10[%c0_73, %c0_74], %162 {strides = array<i32>} : memref<8x128xf32, #tpu.memory_space<vmem>>, vector<8x128xf32>,
    %167 = arith.truncf %164 : vector<8x128xf32> to vector<8x128xbf16>
    %168 = arith.index_cast %131 : i32 to index
    %c0_75 = arith.constant 0 : index
    %169 = vector.load %arg14[%168, %c0_75] : memref<64x128xbf16, #tpu.memory_space<vmem>>, vector<8x128xbf16>
    tpu.vector_store %arg14[%168, %c0_75], %167 {strides = array<i32>} : memref<64x128xbf16, #tpu.memory_space<vmem>>, vector<8x128xbf16>,
    %c4_i32 = arith.constant 4 : i32
    %c8_i32_76 = arith.constant 8 : i32
    %170 = arith.muli %c4_i32, %c8_i32_76 : i32
    %171 = tpu.assume_multiple %170, 8 : i32
    %172 = arith.index_cast %171 : i32 to index
    %c0_77 = arith.constant 0 : index
    %173 = vector.load %arg13[%172, %c0_77] : memref<64x512xf32, #tpu.memory_space<vmem>>, vector<8x512xf32>
    %c0_78 = arith.constant 0 : index
    %c0_79 = arith.constant 0 : index
    %174 = vector.load %arg9[%c0_78, %c0_79] : memref<8x128xf32, #tpu.memory_space<vmem>>, vector<8x128xf32>
    %175 = arith.truncf %174 : vector<8x128xf32> to vector<8x128xbf16>
    %c0_80 = arith.constant 0 : index
    %c0_81 = arith.constant 0 : index
    %176 = vector.load %arg3[%c0_80, %c0_81] : memref<128x512xbf16, #tpu.memory_space<vmem>>, vector<128x512xbf16>
    %cst_82 = arith.constant dense<0.000000e+00> : vector<8x512xf32>
    %177 = tpu.matmul %175, %176, %cst_82 {dimension_numbers = #tpu.dot_dimension_numbers<[1], [0], [0], [1], [0, 0, 1, 1], [], []>} : vector<8x128xbf16>, vector<128x512xbf16>, vector<8x512xf32> -> vector<8x512xf32>
    %178 = arith.addf %173, %177 : vector<8x512xf32>
    %c0_83 = arith.constant 0 : index
    %c0_84 = arith.constant 0 : index
    %179 = vector.load %arg10[%c0_83, %c0_84] : memref<8x128xf32, #tpu.memory_space<vmem>>, vector<8x128xf32>
    %180 = vector.extract_strided_slice %178 {offsets = [0, 0], sizes = [8, 128], strides = [1, 1]} : vector<8x512xf32> to vector<8x128xf32>
    %181 = arith.negf %180 : vector<8x128xf32>
    %182 = math.exp %181 : vector<8x128xf32>
    %cst_85 = arith.constant 1.000000e+00 : f32
    %183 = vector.broadcast %cst_85 : f32 to vector<8x128xf32>
    %184 = arith.addf %183, %182 : vector<8x128xf32>
    %185 = arith.divf %183, %184 : vector<8x128xf32>
    %186 = vector.extract_strided_slice %178 {offsets = [0, 128], sizes = [8, 128], strides = [1, 1]} : vector<8x512xf32> to vector<8x128xf32>
    %187 = arith.negf %186 : vector<8x128xf32>
    %188 = math.exp %187 : vector<8x128xf32>
    %cst_86 = arith.constant 1.000000e+00 : f32
    %189 = vector.broadcast %cst_86 : f32 to vector<8x128xf32>
    %190 = arith.addf %189, %188 : vector<8x128xf32>
    %191 = arith.divf %189, %190 : vector<8x128xf32>
    %192 = vector.extract_strided_slice %178 {offsets = [0, 256], sizes = [8, 128], strides = [1, 1]} : vector<8x512xf32> to vector<8x128xf32>
    %193 = math.tanh %192 : vector<8x128xf32>
    %194 = vector.extract_strided_slice %178 {offsets = [0, 384], sizes = [8, 128], strides = [1, 1]} : vector<8x512xf32> to vector<8x128xf32>
    %195 = arith.negf %194 : vector<8x128xf32>
    %196 = math.exp %195 : vector<8x128xf32>
    %cst_87 = arith.constant 1.000000e+00 : f32
    %197 = vector.broadcast %cst_87 : f32 to vector<8x128xf32>
    %198 = arith.addf %197, %196 : vector<8x128xf32>
    %199 = arith.divf %197, %198 : vector<8x128xf32>
    %200 = arith.mulf %191, %179 : vector<8x128xf32>
    %201 = arith.mulf %185, %193 : vector<8x128xf32>
    %202 = arith.addf %200, %201 : vector<8x128xf32>
    %203 = math.tanh %202 : vector<8x128xf32>
    %204 = arith.mulf %199, %203 : vector<8x128xf32>
    %c0_88 = arith.constant 0 : index
    %c0_89 = arith.constant 0 : index
    %205 = vector.load %arg9[%c0_88, %c0_89] : memref<8x128xf32, #tpu.memory_space<vmem>>, vector<8x128xf32>
    tpu.vector_store %arg9[%c0_88, %c0_89], %204 {strides = array<i32>} : memref<8x128xf32, #tpu.memory_space<vmem>>, vector<8x128xf32>,
    %c0_90 = arith.constant 0 : index
    %c0_91 = arith.constant 0 : index
    %206 = vector.load %arg10[%c0_90, %c0_91] : memref<8x128xf32, #tpu.memory_space<vmem>>, vector<8x128xf32>
    tpu.vector_store %arg10[%c0_90, %c0_91], %202 {strides = array<i32>} : memref<8x128xf32, #tpu.memory_space<vmem>>, vector<8x128xf32>,
    %207 = arith.truncf %204 : vector<8x128xf32> to vector<8x128xbf16>
    %208 = arith.index_cast %171 : i32 to index
    %c0_92 = arith.constant 0 : index
    %209 = vector.load %arg14[%208, %c0_92] : memref<64x128xbf16, #tpu.memory_space<vmem>>, vector<8x128xbf16>
    tpu.vector_store %arg14[%208, %c0_92], %207 {strides = array<i32>} : memref<64x128xbf16, #tpu.memory_space<vmem>>, vector<8x128xbf16>,
    %c5_i32 = arith.constant 5 : i32
    %c8_i32_93 = arith.constant 8 : i32
    %210 = arith.muli %c5_i32, %c8_i32_93 : i32
    %211 = tpu.assume_multiple %210, 8 : i32
    %212 = arith.index_cast %211 : i32 to index
    %c0_94 = arith.constant 0 : index
    %213 = vector.load %arg13[%212, %c0_94] : memref<64x512xf32, #tpu.memory_space<vmem>>, vector<8x512xf32>
    %c0_95 = arith.constant 0 : index
    %c0_96 = arith.constant 0 : index
    %214 = vector.load %arg9[%c0_95, %c0_96] : memref<8x128xf32, #tpu.memory_space<vmem>>, vector<8x128xf32>
    %215 = arith.truncf %214 : vector<8x128xf32> to vector<8x128xbf16>
    %c0_97 = arith.constant 0 : index
    %c0_98 = arith.constant 0 : index
    %216 = vector.load %arg3[%c0_97, %c0_98] : memref<128x512xbf16, #tpu.memory_space<vmem>>, vector<128x512xbf16>
    %cst_99 = arith.constant dense<0.000000e+00> : vector<8x512xf32>
    %217 = tpu.matmul %215, %216, %cst_99 {dimension_numbers = #tpu.dot_dimension_numbers<[1], [0], [0], [1], [0, 0, 1, 1], [], []>} : vector<8x128xbf16>, vector<128x512xbf16>, vector<8x512xf32> -> vector<8x512xf32>
    %218 = arith.addf %213, %217 : vector<8x512xf32>
    %c0_100 = arith.constant 0 : index
    %c0_101 = arith.constant 0 : index
    %219 = vector.load %arg10[%c0_100, %c0_101] : memref<8x128xf32, #tpu.memory_space<vmem>>, vector<8x128xf32>
    %220 = vector.extract_strided_slice %218 {offsets = [0, 0], sizes = [8, 128], strides = [1, 1]} : vector<8x512xf32> to vector<8x128xf32>
    %221 = arith.negf %220 : vector<8x128xf32>
    %222 = math.exp %221 : vector<8x128xf32>
    %cst_102 = arith.constant 1.000000e+00 : f32
    %223 = vector.broadcast %cst_102 : f32 to vector<8x128xf32>
    %224 = arith.addf %223, %222 : vector<8x128xf32>
    %225 = arith.divf %223, %224 : vector<8x128xf32>
    %226 = vector.extract_strided_slice %218 {offsets = [0, 128], sizes = [8, 128], strides = [1, 1]} : vector<8x512xf32> to vector<8x128xf32>
    %227 = arith.negf %226 : vector<8x128xf32>
    %228 = math.exp %227 : vector<8x128xf32>
    %cst_103 = arith.constant 1.000000e+00 : f32
    %229 = vector.broadcast %cst_103 : f32 to vector<8x128xf32>
    %230 = arith.addf %229, %228 : vector<8x128xf32>
    %231 = arith.divf %229, %230 : vector<8x128xf32>
    %232 = vector.extract_strided_slice %218 {offsets = [0, 256], sizes = [8, 128], strides = [1, 1]} : vector<8x512xf32> to vector<8x128xf32>
    %233 = math.tanh %232 : vector<8x128xf32>
    %234 = vector.extract_strided_slice %218 {offsets = [0, 384], sizes = [8, 128], strides = [1, 1]} : vector<8x512xf32> to vector<8x128xf32>
    %235 = arith.negf %234 : vector<8x128xf32>
    %236 = math.exp %235 : vector<8x128xf32>
    %cst_104 = arith.constant 1.000000e+00 : f32
    %237 = vector.broadcast %cst_104 : f32 to vector<8x128xf32>
    %238 = arith.addf %237, %236 : vector<8x128xf32>
    %239 = arith.divf %237, %238 : vector<8x128xf32>
    %240 = arith.mulf %231, %219 : vector<8x128xf32>
    %241 = arith.mulf %225, %233 : vector<8x128xf32>
    %242 = arith.addf %240, %241 : vector<8x128xf32>
    %243 = math.tanh %242 : vector<8x128xf32>
    %244 = arith.mulf %239, %243 : vector<8x128xf32>
    %c0_105 = arith.constant 0 : index
    %c0_106 = arith.constant 0 : index
    %245 = vector.load %arg9[%c0_105, %c0_106] : memref<8x128xf32, #tpu.memory_space<vmem>>, vector<8x128xf32>
    tpu.vector_store %arg9[%c0_105, %c0_106], %244 {strides = array<i32>} : memref<8x128xf32, #tpu.memory_space<vmem>>, vector<8x128xf32>,
    %c0_107 = arith.constant 0 : index
    %c0_108 = arith.constant 0 : index
    %246 = vector.load %arg10[%c0_107, %c0_108] : memref<8x128xf32, #tpu.memory_space<vmem>>, vector<8x128xf32>
    tpu.vector_store %arg10[%c0_107, %c0_108], %242 {strides = array<i32>} : memref<8x128xf32, #tpu.memory_space<vmem>>, vector<8x128xf32>,
    %247 = arith.truncf %244 : vector<8x128xf32> to vector<8x128xbf16>
    %248 = arith.index_cast %211 : i32 to index
    %c0_109 = arith.constant 0 : index
    %249 = vector.load %arg14[%248, %c0_109] : memref<64x128xbf16, #tpu.memory_space<vmem>>, vector<8x128xbf16>
    tpu.vector_store %arg14[%248, %c0_109], %247 {strides = array<i32>} : memref<64x128xbf16, #tpu.memory_space<vmem>>, vector<8x128xbf16>,
    %c6_i32 = arith.constant 6 : i32
    %c8_i32_110 = arith.constant 8 : i32
    %250 = arith.muli %c6_i32, %c8_i32_110 : i32
    %251 = tpu.assume_multiple %250, 8 : i32
    %252 = arith.index_cast %251 : i32 to index
    %c0_111 = arith.constant 0 : index
    %253 = vector.load %arg13[%252, %c0_111] : memref<64x512xf32, #tpu.memory_space<vmem>>, vector<8x512xf32>
    %c0_112 = arith.constant 0 : index
    %c0_113 = arith.constant 0 : index
    %254 = vector.load %arg9[%c0_112, %c0_113] : memref<8x128xf32, #tpu.memory_space<vmem>>, vector<8x128xf32>
    %255 = arith.truncf %254 : vector<8x128xf32> to vector<8x128xbf16>
    %c0_114 = arith.constant 0 : index
    %c0_115 = arith.constant 0 : index
    %256 = vector.load %arg3[%c0_114, %c0_115] : memref<128x512xbf16, #tpu.memory_space<vmem>>, vector<128x512xbf16>
    %cst_116 = arith.constant dense<0.000000e+00> : vector<8x512xf32>
    %257 = tpu.matmul %255, %256, %cst_116 {dimension_numbers = #tpu.dot_dimension_numbers<[1], [0], [0], [1], [0, 0, 1, 1], [], []>} : vector<8x128xbf16>, vector<128x512xbf16>, vector<8x512xf32> -> vector<8x512xf32>
    %258 = arith.addf %253, %257 : vector<8x512xf32>
    %c0_117 = arith.constant 0 : index
    %c0_118 = arith.constant 0 : index
    %259 = vector.load %arg10[%c0_117, %c0_118] : memref<8x128xf32, #tpu.memory_space<vmem>>, vector<8x128xf32>
    %260 = vector.extract_strided_slice %258 {offsets = [0, 0], sizes = [8, 128], strides = [1, 1]} : vector<8x512xf32> to vector<8x128xf32>
    %261 = arith.negf %260 : vector<8x128xf32>
    %262 = math.exp %261 : vector<8x128xf32>
    %cst_119 = arith.constant 1.000000e+00 : f32
    %263 = vector.broadcast %cst_119 : f32 to vector<8x128xf32>
    %264 = arith.addf %263, %262 : vector<8x128xf32>
    %265 = arith.divf %263, %264 : vector<8x128xf32>
    %266 = vector.extract_strided_slice %258 {offsets = [0, 128], sizes = [8, 128], strides = [1, 1]} : vector<8x512xf32> to vector<8x128xf32>
    %267 = arith.negf %266 : vector<8x128xf32>
    %268 = math.exp %267 : vector<8x128xf32>
    %cst_120 = arith.constant 1.000000e+00 : f32
    %269 = vector.broadcast %cst_120 : f32 to vector<8x128xf32>
    %270 = arith.addf %269, %268 : vector<8x128xf32>
    %271 = arith.divf %269, %270 : vector<8x128xf32>
    %272 = vector.extract_strided_slice %258 {offsets = [0, 256], sizes = [8, 128], strides = [1, 1]} : vector<8x512xf32> to vector<8x128xf32>
    %273 = math.tanh %272 : vector<8x128xf32>
    %274 = vector.extract_strided_slice %258 {offsets = [0, 384], sizes = [8, 128], strides = [1, 1]} : vector<8x512xf32> to vector<8x128xf32>
    %275 = arith.negf %274 : vector<8x128xf32>
    %276 = math.exp %275 : vector<8x128xf32>
    %cst_121 = arith.constant 1.000000e+00 : f32
    %277 = vector.broadcast %cst_121 : f32 to vector<8x128xf32>
    %278 = arith.addf %277, %276 : vector<8x128xf32>
    %279 = arith.divf %277, %278 : vector<8x128xf32>
    %280 = arith.mulf %271, %259 : vector<8x128xf32>
    %281 = arith.mulf %265, %273 : vector<8x128xf32>
    %282 = arith.addf %280, %281 : vector<8x128xf32>
    %283 = math.tanh %282 : vector<8x128xf32>
    %284 = arith.mulf %279, %283 : vector<8x128xf32>
    %c0_122 = arith.constant 0 : index
    %c0_123 = arith.constant 0 : index
    %285 = vector.load %arg9[%c0_122, %c0_123] : memref<8x128xf32, #tpu.memory_space<vmem>>, vector<8x128xf32>
    tpu.vector_store %arg9[%c0_122, %c0_123], %284 {strides = array<i32>} : memref<8x128xf32, #tpu.memory_space<vmem>>, vector<8x128xf32>,
    %c0_124 = arith.constant 0 : index
    %c0_125 = arith.constant 0 : index
    %286 = vector.load %arg10[%c0_124, %c0_125] : memref<8x128xf32, #tpu.memory_space<vmem>>, vector<8x128xf32>
    tpu.vector_store %arg10[%c0_124, %c0_125], %282 {strides = array<i32>} : memref<8x128xf32, #tpu.memory_space<vmem>>, vector<8x128xf32>,
    %287 = arith.truncf %284 : vector<8x128xf32> to vector<8x128xbf16>
    %288 = arith.index_cast %251 : i32 to index
    %c0_126 = arith.constant 0 : index
    %289 = vector.load %arg14[%288, %c0_126] : memref<64x128xbf16, #tpu.memory_space<vmem>>, vector<8x128xbf16>
    tpu.vector_store %arg14[%288, %c0_126], %287 {strides = array<i32>} : memref<64x128xbf16, #tpu.memory_space<vmem>>, vector<8x128xbf16>,
    %c7_i32 = arith.constant 7 : i32
    %c8_i32_127 = arith.constant 8 : i32
    %290 = arith.muli %c7_i32, %c8_i32_127 : i32
    %291 = tpu.assume_multiple %290, 8 : i32
    %292 = arith.index_cast %291 : i32 to index
    %c0_128 = arith.constant 0 : index
    %293 = vector.load %arg13[%292, %c0_128] : memref<64x512xf32, #tpu.memory_space<vmem>>, vector<8x512xf32>
    %c0_129 = arith.constant 0 : index
    %c0_130 = arith.constant 0 : index
    %294 = vector.load %arg9[%c0_129, %c0_130] : memref<8x128xf32, #tpu.memory_space<vmem>>, vector<8x128xf32>
    %295 = arith.truncf %294 : vector<8x128xf32> to vector<8x128xbf16>
    %c0_131 = arith.constant 0 : index
    %c0_132 = arith.constant 0 : index
    %296 = vector.load %arg3[%c0_131, %c0_132] : memref<128x512xbf16, #tpu.memory_space<vmem>>, vector<128x512xbf16>
    %cst_133 = arith.constant dense<0.000000e+00> : vector<8x512xf32>
    %297 = tpu.matmul %295, %296, %cst_133 {dimension_numbers = #tpu.dot_dimension_numbers<[1], [0], [0], [1], [0, 0, 1, 1], [], []>} : vector<8x128xbf16>, vector<128x512xbf16>, vector<8x512xf32> -> vector<8x512xf32>
    %298 = arith.addf %293, %297 : vector<8x512xf32>
    %c0_134 = arith.constant 0 : index
    %c0_135 = arith.constant 0 : index
    %299 = vector.load %arg10[%c0_134, %c0_135] : memref<8x128xf32, #tpu.memory_space<vmem>>, vector<8x128xf32>
    %300 = vector.extract_strided_slice %298 {offsets = [0, 0], sizes = [8, 128], strides = [1, 1]} : vector<8x512xf32> to vector<8x128xf32>
    %301 = arith.negf %300 : vector<8x128xf32>
    %302 = math.exp %301 : vector<8x128xf32>
    %cst_136 = arith.constant 1.000000e+00 : f32
    %303 = vector.broadcast %cst_136 : f32 to vector<8x128xf32>
    %304 = arith.addf %303, %302 : vector<8x128xf32>
    %305 = arith.divf %303, %304 : vector<8x128xf32>
    %306 = vector.extract_strided_slice %298 {offsets = [0, 128], sizes = [8, 128], strides = [1, 1]} : vector<8x512xf32> to vector<8x128xf32>
    %307 = arith.negf %306 : vector<8x128xf32>
    %308 = math.exp %307 : vector<8x128xf32>
    %cst_137 = arith.constant 1.000000e+00 : f32
    %309 = vector.broadcast %cst_137 : f32 to vector<8x128xf32>
    %310 = arith.addf %309, %308 : vector<8x128xf32>
    %311 = arith.divf %309, %310 : vector<8x128xf32>
    %312 = vector.extract_strided_slice %298 {offsets = [0, 256], sizes = [8, 128], strides = [1, 1]} : vector<8x512xf32> to vector<8x128xf32>
    %313 = math.tanh %312 : vector<8x128xf32>
    %314 = vector.extract_strided_slice %298 {offsets = [0, 384], sizes = [8, 128], strides = [1, 1]} : vector<8x512xf32> to vector<8x128xf32>
    %315 = arith.negf %314 : vector<8x128xf32>
    %316 = math.exp %315 : vector<8x128xf32>
    %cst_138 = arith.constant 1.000000e+00 : f32
    %317 = vector.broadcast %cst_138 : f32 to vector<8x128xf32>
    %318 = arith.addf %317, %316 : vector<8x128xf32>
    %319 = arith.divf %317, %318 : vector<8x128xf32>
    %320 = arith.mulf %311, %299 : vector<8x128xf32>
    %321 = arith.mulf %305, %313 : vector<8x128xf32>
    %322 = arith.addf %320, %321 : vector<8x128xf32>
    %323 = math.tanh %322 : vector<8x128xf32>
    %324 = arith.mulf %319, %323 : vector<8x128xf32>
    %c0_139 = arith.constant 0 : index
    %c0_140 = arith.constant 0 : index
    %325 = vector.load %arg9[%c0_139, %c0_140] : memref<8x128xf32, #tpu.memory_space<vmem>>, vector<8x128xf32>
    tpu.vector_store %arg9[%c0_139, %c0_140], %324 {strides = array<i32>} : memref<8x128xf32, #tpu.memory_space<vmem>>, vector<8x128xf32>,
    %c0_141 = arith.constant 0 : index
    %c0_142 = arith.constant 0 : index
    %326 = vector.load %arg10[%c0_141, %c0_142] : memref<8x128xf32, #tpu.memory_space<vmem>>, vector<8x128xf32>
    tpu.vector_store %arg10[%c0_141, %c0_142], %322 {strides = array<i32>} : memref<8x128xf32, #tpu.memory_space<vmem>>, vector<8x128xf32>,
    %327 = arith.truncf %324 : vector<8x128xf32> to vector<8x128xbf16>
    %328 = arith.index_cast %291 : i32 to index
    %c0_143 = arith.constant 0 : index
    %329 = vector.load %arg14[%328, %c0_143] : memref<64x128xbf16, #tpu.memory_space<vmem>>, vector<8x128xbf16>
    tpu.vector_store %arg14[%328, %c0_143], %327 {strides = array<i32>} : memref<64x128xbf16, #tpu.memory_space<vmem>>, vector<8x128xbf16>,
    %c8_i32_144 = arith.constant 8 : i32
    %c0_145 = arith.constant 0 : index
    %c0_146 = arith.constant 0 : index
    %330 = vector.load %arg14[%c0_145, %c0_146] : memref<64x128xbf16, #tpu.memory_space<vmem>>, vector<64x128xbf16>
    %c0_147 = arith.constant 0 : index
    %c0_148 = arith.constant 0 : index
    %331 = vector.load %arg5[%c0_147, %c0_148] : memref<128x512xbf16, #tpu.memory_space<vmem>>, vector<128x512xbf16>
    %cst_149 = arith.constant dense<0.000000e+00> : vector<64x512xf32>
    %332 = tpu.matmul %330, %331, %cst_149 {dimension_numbers = #tpu.dot_dimension_numbers<[1], [0], [0], [1], [0, 0, 1, 1], [], []>} : vector<64x128xbf16>, vector<128x512xbf16>, vector<64x512xf32> -> vector<64x512xf32>
    %c0_150 = arith.constant 0 : index
    %c0_151 = arith.constant 0 : index
    %333 = vector.load %arg7[%c0_150, %c0_151] : memref<1x512xf32, #tpu.memory_space<vmem>>, vector<1x512xf32>
    %334 = vector.broadcast %333 : vector<1x512xf32> to vector<64x512xf32>
    %335 = arith.addf %332, %334 : vector<64x512xf32>
    %c0_152 = arith.constant 0 : index
    %c0_153 = arith.constant 0 : index
    %336 = vector.load %arg15[%c0_152, %c0_153] : memref<64x512xf32, #tpu.memory_space<vmem>>, vector<64x512xf32>
    tpu.vector_store %arg15[%c0_152, %c0_153], %335 {strides = array<i32>} : memref<64x512xf32, #tpu.memory_space<vmem>>, vector<64x512xf32>,
    %c0_i32_154 = arith.constant 0 : i32
    %c8_i32_155 = arith.constant 8 : i32
    %337 = arith.muli %c0_i32_154, %c8_i32_155 : i32
    %338 = tpu.assume_multiple %337, 8 : i32
    %339 = arith.index_cast %338 : i32 to index
    %c0_156 = arith.constant 0 : index
    %340 = vector.load %arg15[%339, %c0_156] : memref<64x512xf32, #tpu.memory_space<vmem>>, vector<8x512xf32>
    %c0_157 = arith.constant 0 : index
    %c0_158 = arith.constant 0 : index
    %341 = vector.load %arg11[%c0_157, %c0_158] : memref<8x128xf32, #tpu.memory_space<vmem>>, vector<8x128xf32>
    %342 = arith.truncf %341 : vector<8x128xf32> to vector<8x128xbf16>
    %c0_159 = arith.constant 0 : index
    %c0_160 = arith.constant 0 : index
    %343 = vector.load %arg6[%c0_159, %c0_160] : memref<128x512xbf16, #tpu.memory_space<vmem>>, vector<128x512xbf16>
    %cst_161 = arith.constant dense<0.000000e+00> : vector<8x512xf32>
    %344 = tpu.matmul %342, %343, %cst_161 {dimension_numbers = #tpu.dot_dimension_numbers<[1], [0], [0], [1], [0, 0, 1, 1], [], []>} : vector<8x128xbf16>, vector<128x512xbf16>, vector<8x512xf32> -> vector<8x512xf32>
    %345 = arith.addf %340, %344 : vector<8x512xf32>
    %c0_162 = arith.constant 0 : index
    %c0_163 = arith.constant 0 : index
    %346 = vector.load %arg12[%c0_162, %c0_163] : memref<8x128xf32, #tpu.memory_space<vmem>>, vector<8x128xf32>
    %347 = vector.extract_strided_slice %345 {offsets = [0, 0], sizes = [8, 128], strides = [1, 1]} : vector<8x512xf32> to vector<8x128xf32>
    %348 = arith.negf %347 : vector<8x128xf32>
    %349 = math.exp %348 : vector<8x128xf32>
    %cst_164 = arith.constant 1.000000e+00 : f32
    %350 = vector.broadcast %cst_164 : f32 to vector<8x128xf32>
    %351 = arith.addf %350, %349 : vector<8x128xf32>
    %352 = arith.divf %350, %351 : vector<8x128xf32>
    %353 = vector.extract_strided_slice %345 {offsets = [0, 128], sizes = [8, 128], strides = [1, 1]} : vector<8x512xf32> to vector<8x128xf32>
    %354 = arith.negf %353 : vector<8x128xf32>
    %355 = math.exp %354 : vector<8x128xf32>
    %cst_165 = arith.constant 1.000000e+00 : f32
    %356 = vector.broadcast %cst_165 : f32 to vector<8x128xf32>
    %357 = arith.addf %356, %355 : vector<8x128xf32>
    %358 = arith.divf %356, %357 : vector<8x128xf32>
    %359 = vector.extract_strided_slice %345 {offsets = [0, 256], sizes = [8, 128], strides = [1, 1]} : vector<8x512xf32> to vector<8x128xf32>
    %360 = math.tanh %359 : vector<8x128xf32>
    %361 = vector.extract_strided_slice %345 {offsets = [0, 384], sizes = [8, 128], strides = [1, 1]} : vector<8x512xf32> to vector<8x128xf32>
    %362 = arith.negf %361 : vector<8x128xf32>
    %363 = math.exp %362 : vector<8x128xf32>
    %cst_166 = arith.constant 1.000000e+00 : f32
    %364 = vector.broadcast %cst_166 : f32 to vector<8x128xf32>
    %365 = arith.addf %364, %363 : vector<8x128xf32>
    %366 = arith.divf %364, %365 : vector<8x128xf32>
    %367 = arith.mulf %358, %346 : vector<8x128xf32>
    %368 = arith.mulf %352, %360 : vector<8x128xf32>
    %369 = arith.addf %367, %368 : vector<8x128xf32>
    %370 = math.tanh %369 : vector<8x128xf32>
    %371 = arith.mulf %366, %370 : vector<8x128xf32>
    %c0_167 = arith.constant 0 : index
    %c0_168 = arith.constant 0 : index
    %372 = vector.load %arg11[%c0_167, %c0_168] : memref<8x128xf32, #tpu.memory_space<vmem>>, vector<8x128xf32>
    tpu.vector_store %arg11[%c0_167, %c0_168], %371 {strides = array<i32>} : memref<8x128xf32, #tpu.memory_space<vmem>>, vector<8x128xf32>,
    %c0_169 = arith.constant 0 : index
    %c0_170 = arith.constant 0 : index
    %373 = vector.load %arg12[%c0_169, %c0_170] : memref<8x128xf32, #tpu.memory_space<vmem>>, vector<8x128xf32>
    tpu.vector_store %arg12[%c0_169, %c0_170], %369 {strides = array<i32>} : memref<8x128xf32, #tpu.memory_space<vmem>>, vector<8x128xf32>,
    %374 = arith.truncf %371 : vector<8x128xf32> to vector<8x128xbf16>
    %375 = arith.index_cast %338 : i32 to index
    %c0_171 = arith.constant 0 : index
    %376 = vector.load %arg8[%375, %c0_171] : memref<64x128xbf16, #tpu.memory_space<vmem>>, vector<8x128xbf16>
    tpu.vector_store %arg8[%375, %c0_171], %374 {strides = array<i32>} : memref<64x128xbf16, #tpu.memory_space<vmem>>, vector<8x128xbf16>,
    %c1_i32_172 = arith.constant 1 : i32
    %c8_i32_173 = arith.constant 8 : i32
    %377 = arith.muli %c1_i32_172, %c8_i32_173 : i32
    %378 = tpu.assume_multiple %377, 8 : i32
    %379 = arith.index_cast %378 : i32 to index
    %c0_174 = arith.constant 0 : index
    %380 = vector.load %arg15[%379, %c0_174] : memref<64x512xf32, #tpu.memory_space<vmem>>, vector<8x512xf32>
    %c0_175 = arith.constant 0 : index
    %c0_176 = arith.constant 0 : index
    %381 = vector.load %arg11[%c0_175, %c0_176] : memref<8x128xf32, #tpu.memory_space<vmem>>, vector<8x128xf32>
    %382 = arith.truncf %381 : vector<8x128xf32> to vector<8x128xbf16>
    %c0_177 = arith.constant 0 : index
    %c0_178 = arith.constant 0 : index
    %383 = vector.load %arg6[%c0_177, %c0_178] : memref<128x512xbf16, #tpu.memory_space<vmem>>, vector<128x512xbf16>
    %cst_179 = arith.constant dense<0.000000e+00> : vector<8x512xf32>
    %384 = tpu.matmul %382, %383, %cst_179 {dimension_numbers = #tpu.dot_dimension_numbers<[1], [0], [0], [1], [0, 0, 1, 1], [], []>} : vector<8x128xbf16>, vector<128x512xbf16>, vector<8x512xf32> -> vector<8x512xf32>
    %385 = arith.addf %380, %384 : vector<8x512xf32>
    %c0_180 = arith.constant 0 : index
    %c0_181 = arith.constant 0 : index
    %386 = vector.load %arg12[%c0_180, %c0_181] : memref<8x128xf32, #tpu.memory_space<vmem>>, vector<8x128xf32>
    %387 = vector.extract_strided_slice %385 {offsets = [0, 0], sizes = [8, 128], strides = [1, 1]} : vector<8x512xf32> to vector<8x128xf32>
    %388 = arith.negf %387 : vector<8x128xf32>
    %389 = math.exp %388 : vector<8x128xf32>
    %cst_182 = arith.constant 1.000000e+00 : f32
    %390 = vector.broadcast %cst_182 : f32 to vector<8x128xf32>
    %391 = arith.addf %390, %389 : vector<8x128xf32>
    %392 = arith.divf %390, %391 : vector<8x128xf32>
    %393 = vector.extract_strided_slice %385 {offsets = [0, 128], sizes = [8, 128], strides = [1, 1]} : vector<8x512xf32> to vector<8x128xf32>
    %394 = arith.negf %393 : vector<8x128xf32>
    %395 = math.exp %394 : vector<8x128xf32>
    %cst_183 = arith.constant 1.000000e+00 : f32
    %396 = vector.broadcast %cst_183 : f32 to vector<8x128xf32>
    %397 = arith.addf %396, %395 : vector<8x128xf32>
    %398 = arith.divf %396, %397 : vector<8x128xf32>
    %399 = vector.extract_strided_slice %385 {offsets = [0, 256], sizes = [8, 128], strides = [1, 1]} : vector<8x512xf32> to vector<8x128xf32>
    %400 = math.tanh %399 : vector<8x128xf32>
    %401 = vector.extract_strided_slice %385 {offsets = [0, 384], sizes = [8, 128], strides = [1, 1]} : vector<8x512xf32> to vector<8x128xf32>
    %402 = arith.negf %401 : vector<8x128xf32>
    %403 = math.exp %402 : vector<8x128xf32>
    %cst_184 = arith.constant 1.000000e+00 : f32
    %404 = vector.broadcast %cst_184 : f32 to vector<8x128xf32>
    %405 = arith.addf %404, %403 : vector<8x128xf32>
    %406 = arith.divf %404, %405 : vector<8x128xf32>
    %407 = arith.mulf %398, %386 : vector<8x128xf32>
    %408 = arith.mulf %392, %400 : vector<8x128xf32>
    %409 = arith.addf %407, %408 : vector<8x128xf32>
    %410 = math.tanh %409 : vector<8x128xf32>
    %411 = arith.mulf %406, %410 : vector<8x128xf32>
    %c0_185 = arith.constant 0 : index
    %c0_186 = arith.constant 0 : index
    %412 = vector.load %arg11[%c0_185, %c0_186] : memref<8x128xf32, #tpu.memory_space<vmem>>, vector<8x128xf32>
    tpu.vector_store %arg11[%c0_185, %c0_186], %411 {strides = array<i32>} : memref<8x128xf32, #tpu.memory_space<vmem>>, vector<8x128xf32>,
    %c0_187 = arith.constant 0 : index
    %c0_188 = arith.constant 0 : index
    %413 = vector.load %arg12[%c0_187, %c0_188] : memref<8x128xf32, #tpu.memory_space<vmem>>, vector<8x128xf32>
    tpu.vector_store %arg12[%c0_187, %c0_188], %409 {strides = array<i32>} : memref<8x128xf32, #tpu.memory_space<vmem>>, vector<8x128xf32>,
    %414 = arith.truncf %411 : vector<8x128xf32> to vector<8x128xbf16>
    %415 = arith.index_cast %378 : i32 to index
    %c0_189 = arith.constant 0 : index
    %416 = vector.load %arg8[%415, %c0_189] : memref<64x128xbf16, #tpu.memory_space<vmem>>, vector<8x128xbf16>
    tpu.vector_store %arg8[%415, %c0_189], %414 {strides = array<i32>} : memref<64x128xbf16, #tpu.memory_space<vmem>>, vector<8x128xbf16>,
    %c2_i32_190 = arith.constant 2 : i32
    %c8_i32_191 = arith.constant 8 : i32
    %417 = arith.muli %c2_i32_190, %c8_i32_191 : i32
    %418 = tpu.assume_multiple %417, 8 : i32
    %419 = arith.index_cast %418 : i32 to index
    %c0_192 = arith.constant 0 : index
    %420 = vector.load %arg15[%419, %c0_192] : memref<64x512xf32, #tpu.memory_space<vmem>>, vector<8x512xf32>
    %c0_193 = arith.constant 0 : index
    %c0_194 = arith.constant 0 : index
    %421 = vector.load %arg11[%c0_193, %c0_194] : memref<8x128xf32, #tpu.memory_space<vmem>>, vector<8x128xf32>
    %422 = arith.truncf %421 : vector<8x128xf32> to vector<8x128xbf16>
    %c0_195 = arith.constant 0 : index
    %c0_196 = arith.constant 0 : index
    %423 = vector.load %arg6[%c0_195, %c0_196] : memref<128x512xbf16, #tpu.memory_space<vmem>>, vector<128x512xbf16>
    %cst_197 = arith.constant dense<0.000000e+00> : vector<8x512xf32>
    %424 = tpu.matmul %422, %423, %cst_197 {dimension_numbers = #tpu.dot_dimension_numbers<[1], [0], [0], [1], [0, 0, 1, 1], [], []>} : vector<8x128xbf16>, vector<128x512xbf16>, vector<8x512xf32> -> vector<8x512xf32>
    %425 = arith.addf %420, %424 : vector<8x512xf32>
    %c0_198 = arith.constant 0 : index
    %c0_199 = arith.constant 0 : index
    %426 = vector.load %arg12[%c0_198, %c0_199] : memref<8x128xf32, #tpu.memory_space<vmem>>, vector<8x128xf32>
    %427 = vector.extract_strided_slice %425 {offsets = [0, 0], sizes = [8, 128], strides = [1, 1]} : vector<8x512xf32> to vector<8x128xf32>
    %428 = arith.negf %427 : vector<8x128xf32>
    %429 = math.exp %428 : vector<8x128xf32>
    %cst_200 = arith.constant 1.000000e+00 : f32
    %430 = vector.broadcast %cst_200 : f32 to vector<8x128xf32>
    %431 = arith.addf %430, %429 : vector<8x128xf32>
    %432 = arith.divf %430, %431 : vector<8x128xf32>
    %433 = vector.extract_strided_slice %425 {offsets = [0, 128], sizes = [8, 128], strides = [1, 1]} : vector<8x512xf32> to vector<8x128xf32>
    %434 = arith.negf %433 : vector<8x128xf32>
    %435 = math.exp %434 : vector<8x128xf32>
    %cst_201 = arith.constant 1.000000e+00 : f32
    %436 = vector.broadcast %cst_201 : f32 to vector<8x128xf32>
    %437 = arith.addf %436, %435 : vector<8x128xf32>
    %438 = arith.divf %436, %437 : vector<8x128xf32>
    %439 = vector.extract_strided_slice %425 {offsets = [0, 256], sizes = [8, 128], strides = [1, 1]} : vector<8x512xf32> to vector<8x128xf32>
    %440 = math.tanh %439 : vector<8x128xf32>
    %441 = vector.extract_strided_slice %425 {offsets = [0, 384], sizes = [8, 128], strides = [1, 1]} : vector<8x512xf32> to vector<8x128xf32>
    %442 = arith.negf %441 : vector<8x128xf32>
    %443 = math.exp %442 : vector<8x128xf32>
    %cst_202 = arith.constant 1.000000e+00 : f32
    %444 = vector.broadcast %cst_202 : f32 to vector<8x128xf32>
    %445 = arith.addf %444, %443 : vector<8x128xf32>
    %446 = arith.divf %444, %445 : vector<8x128xf32>
    %447 = arith.mulf %438, %426 : vector<8x128xf32>
    %448 = arith.mulf %432, %440 : vector<8x128xf32>
    %449 = arith.addf %447, %448 : vector<8x128xf32>
    %450 = math.tanh %449 : vector<8x128xf32>
    %451 = arith.mulf %446, %450 : vector<8x128xf32>
    %c0_203 = arith.constant 0 : index
    %c0_204 = arith.constant 0 : index
    %452 = vector.load %arg11[%c0_203, %c0_204] : memref<8x128xf32, #tpu.memory_space<vmem>>, vector<8x128xf32>
    tpu.vector_store %arg11[%c0_203, %c0_204], %451 {strides = array<i32>} : memref<8x128xf32, #tpu.memory_space<vmem>>, vector<8x128xf32>,
    %c0_205 = arith.constant 0 : index
    %c0_206 = arith.constant 0 : index
    %453 = vector.load %arg12[%c0_205, %c0_206] : memref<8x128xf32, #tpu.memory_space<vmem>>, vector<8x128xf32>
    tpu.vector_store %arg12[%c0_205, %c0_206], %449 {strides = array<i32>} : memref<8x128xf32, #tpu.memory_space<vmem>>, vector<8x128xf32>,
    %454 = arith.truncf %451 : vector<8x128xf32> to vector<8x128xbf16>
    %455 = arith.index_cast %418 : i32 to index
    %c0_207 = arith.constant 0 : index
    %456 = vector.load %arg8[%455, %c0_207] : memref<64x128xbf16, #tpu.memory_space<vmem>>, vector<8x128xbf16>
    tpu.vector_store %arg8[%455, %c0_207], %454 {strides = array<i32>} : memref<64x128xbf16, #tpu.memory_space<vmem>>, vector<8x128xbf16>,
    %c3_i32_208 = arith.constant 3 : i32
    %c8_i32_209 = arith.constant 8 : i32
    %457 = arith.muli %c3_i32_208, %c8_i32_209 : i32
    %458 = tpu.assume_multiple %457, 8 : i32
    %459 = arith.index_cast %458 : i32 to index
    %c0_210 = arith.constant 0 : index
    %460 = vector.load %arg15[%459, %c0_210] : memref<64x512xf32, #tpu.memory_space<vmem>>, vector<8x512xf32>
    %c0_211 = arith.constant 0 : index
    %c0_212 = arith.constant 0 : index
    %461 = vector.load %arg11[%c0_211, %c0_212] : memref<8x128xf32, #tpu.memory_space<vmem>>, vector<8x128xf32>
    %462 = arith.truncf %461 : vector<8x128xf32> to vector<8x128xbf16>
    %c0_213 = arith.constant 0 : index
    %c0_214 = arith.constant 0 : index
    %463 = vector.load %arg6[%c0_213, %c0_214] : memref<128x512xbf16, #tpu.memory_space<vmem>>, vector<128x512xbf16>
    %cst_215 = arith.constant dense<0.000000e+00> : vector<8x512xf32>
    %464 = tpu.matmul %462, %463, %cst_215 {dimension_numbers = #tpu.dot_dimension_numbers<[1], [0], [0], [1], [0, 0, 1, 1], [], []>} : vector<8x128xbf16>, vector<128x512xbf16>, vector<8x512xf32> -> vector<8x512xf32>
    %465 = arith.addf %460, %464 : vector<8x512xf32>
    %c0_216 = arith.constant 0 : index
    %c0_217 = arith.constant 0 : index
    %466 = vector.load %arg12[%c0_216, %c0_217] : memref<8x128xf32, #tpu.memory_space<vmem>>, vector<8x128xf32>
    %467 = vector.extract_strided_slice %465 {offsets = [0, 0], sizes = [8, 128], strides = [1, 1]} : vector<8x512xf32> to vector<8x128xf32>
    %468 = arith.negf %467 : vector<8x128xf32>
    %469 = math.exp %468 : vector<8x128xf32>
    %cst_218 = arith.constant 1.000000e+00 : f32
    %470 = vector.broadcast %cst_218 : f32 to vector<8x128xf32>
    %471 = arith.addf %470, %469 : vector<8x128xf32>
    %472 = arith.divf %470, %471 : vector<8x128xf32>
    %473 = vector.extract_strided_slice %465 {offsets = [0, 128], sizes = [8, 128], strides = [1, 1]} : vector<8x512xf32> to vector<8x128xf32>
    %474 = arith.negf %473 : vector<8x128xf32>
    %475 = math.exp %474 : vector<8x128xf32>
    %cst_219 = arith.constant 1.000000e+00 : f32
    %476 = vector.broadcast %cst_219 : f32 to vector<8x128xf32>
    %477 = arith.addf %476, %475 : vector<8x128xf32>
    %478 = arith.divf %476, %477 : vector<8x128xf32>
    %479 = vector.extract_strided_slice %465 {offsets = [0, 256], sizes = [8, 128], strides = [1, 1]} : vector<8x512xf32> to vector<8x128xf32>
    %480 = math.tanh %479 : vector<8x128xf32>
    %481 = vector.extract_strided_slice %465 {offsets = [0, 384], sizes = [8, 128], strides = [1, 1]} : vector<8x512xf32> to vector<8x128xf32>
    %482 = arith.negf %481 : vector<8x128xf32>
    %483 = math.exp %482 : vector<8x128xf32>
    %cst_220 = arith.constant 1.000000e+00 : f32
    %484 = vector.broadcast %cst_220 : f32 to vector<8x128xf32>
    %485 = arith.addf %484, %483 : vector<8x128xf32>
    %486 = arith.divf %484, %485 : vector<8x128xf32>
    %487 = arith.mulf %478, %466 : vector<8x128xf32>
    %488 = arith.mulf %472, %480 : vector<8x128xf32>
    %489 = arith.addf %487, %488 : vector<8x128xf32>
    %490 = math.tanh %489 : vector<8x128xf32>
    %491 = arith.mulf %486, %490 : vector<8x128xf32>
    %c0_221 = arith.constant 0 : index
    %c0_222 = arith.constant 0 : index
    %492 = vector.load %arg11[%c0_221, %c0_222] : memref<8x128xf32, #tpu.memory_space<vmem>>, vector<8x128xf32>
    tpu.vector_store %arg11[%c0_221, %c0_222], %491 {strides = array<i32>} : memref<8x128xf32, #tpu.memory_space<vmem>>, vector<8x128xf32>,
    %c0_223 = arith.constant 0 : index
    %c0_224 = arith.constant 0 : index
    %493 = vector.load %arg12[%c0_223, %c0_224] : memref<8x128xf32, #tpu.memory_space<vmem>>, vector<8x128xf32>
    tpu.vector_store %arg12[%c0_223, %c0_224], %489 {strides = array<i32>} : memref<8x128xf32, #tpu.memory_space<vmem>>, vector<8x128xf32>,
    %494 = arith.truncf %491 : vector<8x128xf32> to vector<8x128xbf16>
    %495 = arith.index_cast %458 : i32 to index
    %c0_225 = arith.constant 0 : index
    %496 = vector.load %arg8[%495, %c0_225] : memref<64x128xbf16, #tpu.memory_space<vmem>>, vector<8x128xbf16>
    tpu.vector_store %arg8[%495, %c0_225], %494 {strides = array<i32>} : memref<64x128xbf16, #tpu.memory_space<vmem>>, vector<8x128xbf16>,
    %c4_i32_226 = arith.constant 4 : i32
    %c8_i32_227 = arith.constant 8 : i32
    %497 = arith.muli %c4_i32_226, %c8_i32_227 : i32
    %498 = tpu.assume_multiple %497, 8 : i32
    %499 = arith.index_cast %498 : i32 to index
    %c0_228 = arith.constant 0 : index
    %500 = vector.load %arg15[%499, %c0_228] : memref<64x512xf32, #tpu.memory_space<vmem>>, vector<8x512xf32>
    %c0_229 = arith.constant 0 : index
    %c0_230 = arith.constant 0 : index
    %501 = vector.load %arg11[%c0_229, %c0_230] : memref<8x128xf32, #tpu.memory_space<vmem>>, vector<8x128xf32>
    %502 = arith.truncf %501 : vector<8x128xf32> to vector<8x128xbf16>
    %c0_231 = arith.constant 0 : index
    %c0_232 = arith.constant 0 : index
    %503 = vector.load %arg6[%c0_231, %c0_232] : memref<128x512xbf16, #tpu.memory_space<vmem>>, vector<128x512xbf16>
    %cst_233 = arith.constant dense<0.000000e+00> : vector<8x512xf32>
    %504 = tpu.matmul %502, %503, %cst_233 {dimension_numbers = #tpu.dot_dimension_numbers<[1], [0], [0], [1], [0, 0, 1, 1], [], []>} : vector<8x128xbf16>, vector<128x512xbf16>, vector<8x512xf32> -> vector<8x512xf32>
    %505 = arith.addf %500, %504 : vector<8x512xf32>
    %c0_234 = arith.constant 0 : index
    %c0_235 = arith.constant 0 : index
    %506 = vector.load %arg12[%c0_234, %c0_235] : memref<8x128xf32, #tpu.memory_space<vmem>>, vector<8x128xf32>
    %507 = vector.extract_strided_slice %505 {offsets = [0, 0], sizes = [8, 128], strides = [1, 1]} : vector<8x512xf32> to vector<8x128xf32>
    %508 = arith.negf %507 : vector<8x128xf32>
    %509 = math.exp %508 : vector<8x128xf32>
    %cst_236 = arith.constant 1.000000e+00 : f32
    %510 = vector.broadcast %cst_236 : f32 to vector<8x128xf32>
    %511 = arith.addf %510, %509 : vector<8x128xf32>
    %512 = arith.divf %510, %511 : vector<8x128xf32>
    %513 = vector.extract_strided_slice %505 {offsets = [0, 128], sizes = [8, 128], strides = [1, 1]} : vector<8x512xf32> to vector<8x128xf32>
    %514 = arith.negf %513 : vector<8x128xf32>
    %515 = math.exp %514 : vector<8x128xf32>
    %cst_237 = arith.constant 1.000000e+00 : f32
    %516 = vector.broadcast %cst_237 : f32 to vector<8x128xf32>
    %517 = arith.addf %516, %515 : vector<8x128xf32>
    %518 = arith.divf %516, %517 : vector<8x128xf32>
    %519 = vector.extract_strided_slice %505 {offsets = [0, 256], sizes = [8, 128], strides = [1, 1]} : vector<8x512xf32> to vector<8x128xf32>
    %520 = math.tanh %519 : vector<8x128xf32>
    %521 = vector.extract_strided_slice %505 {offsets = [0, 384], sizes = [8, 128], strides = [1, 1]} : vector<8x512xf32> to vector<8x128xf32>
    %522 = arith.negf %521 : vector<8x128xf32>
    %523 = math.exp %522 : vector<8x128xf32>
    %cst_238 = arith.constant 1.000000e+00 : f32
    %524 = vector.broadcast %cst_238 : f32 to vector<8x128xf32>
    %525 = arith.addf %524, %523 : vector<8x128xf32>
    %526 = arith.divf %524, %525 : vector<8x128xf32>
    %527 = arith.mulf %518, %506 : vector<8x128xf32>
    %528 = arith.mulf %512, %520 : vector<8x128xf32>
    %529 = arith.addf %527, %528 : vector<8x128xf32>
    %530 = math.tanh %529 : vector<8x128xf32>
    %531 = arith.mulf %526, %530 : vector<8x128xf32>
    %c0_239 = arith.constant 0 : index
    %c0_240 = arith.constant 0 : index
    %532 = vector.load %arg11[%c0_239, %c0_240] : memref<8x128xf32, #tpu.memory_space<vmem>>, vector<8x128xf32>
    tpu.vector_store %arg11[%c0_239, %c0_240], %531 {strides = array<i32>} : memref<8x128xf32, #tpu.memory_space<vmem>>, vector<8x128xf32>,
    %c0_241 = arith.constant 0 : index
    %c0_242 = arith.constant 0 : index
    %533 = vector.load %arg12[%c0_241, %c0_242] : memref<8x128xf32, #tpu.memory_space<vmem>>, vector<8x128xf32>
    tpu.vector_store %arg12[%c0_241, %c0_242], %529 {strides = array<i32>} : memref<8x128xf32, #tpu.memory_space<vmem>>, vector<8x128xf32>,
    %534 = arith.truncf %531 : vector<8x128xf32> to vector<8x128xbf16>
    %535 = arith.index_cast %498 : i32 to index
    %c0_243 = arith.constant 0 : index
    %536 = vector.load %arg8[%535, %c0_243] : memref<64x128xbf16, #tpu.memory_space<vmem>>, vector<8x128xbf16>
    tpu.vector_store %arg8[%535, %c0_243], %534 {strides = array<i32>} : memref<64x128xbf16, #tpu.memory_space<vmem>>, vector<8x128xbf16>,
    %c5_i32_244 = arith.constant 5 : i32
    %c8_i32_245 = arith.constant 8 : i32
    %537 = arith.muli %c5_i32_244, %c8_i32_245 : i32
    %538 = tpu.assume_multiple %537, 8 : i32
    %539 = arith.index_cast %538 : i32 to index
    %c0_246 = arith.constant 0 : index
    %540 = vector.load %arg15[%539, %c0_246] : memref<64x512xf32, #tpu.memory_space<vmem>>, vector<8x512xf32>
    %c0_247 = arith.constant 0 : index
    %c0_248 = arith.constant 0 : index
    %541 = vector.load %arg11[%c0_247, %c0_248] : memref<8x128xf32, #tpu.memory_space<vmem>>, vector<8x128xf32>
    %542 = arith.truncf %541 : vector<8x128xf32> to vector<8x128xbf16>
    %c0_249 = arith.constant 0 : index
    %c0_250 = arith.constant 0 : index
    %543 = vector.load %arg6[%c0_249, %c0_250] : memref<128x512xbf16, #tpu.memory_space<vmem>>, vector<128x512xbf16>
    %cst_251 = arith.constant dense<0.000000e+00> : vector<8x512xf32>
    %544 = tpu.matmul %542, %543, %cst_251 {dimension_numbers = #tpu.dot_dimension_numbers<[1], [0], [0], [1], [0, 0, 1, 1], [], []>} : vector<8x128xbf16>, vector<128x512xbf16>, vector<8x512xf32> -> vector<8x512xf32>
    %545 = arith.addf %540, %544 : vector<8x512xf32>
    %c0_252 = arith.constant 0 : index
    %c0_253 = arith.constant 0 : index
    %546 = vector.load %arg12[%c0_252, %c0_253] : memref<8x128xf32, #tpu.memory_space<vmem>>, vector<8x128xf32>
    %547 = vector.extract_strided_slice %545 {offsets = [0, 0], sizes = [8, 128], strides = [1, 1]} : vector<8x512xf32> to vector<8x128xf32>
    %548 = arith.negf %547 : vector<8x128xf32>
    %549 = math.exp %548 : vector<8x128xf32>
    %cst_254 = arith.constant 1.000000e+00 : f32
    %550 = vector.broadcast %cst_254 : f32 to vector<8x128xf32>
    %551 = arith.addf %550, %549 : vector<8x128xf32>
    %552 = arith.divf %550, %551 : vector<8x128xf32>
    %553 = vector.extract_strided_slice %545 {offsets = [0, 128], sizes = [8, 128], strides = [1, 1]} : vector<8x512xf32> to vector<8x128xf32>
    %554 = arith.negf %553 : vector<8x128xf32>
    %555 = math.exp %554 : vector<8x128xf32>
    %cst_255 = arith.constant 1.000000e+00 : f32
    %556 = vector.broadcast %cst_255 : f32 to vector<8x128xf32>
    %557 = arith.addf %556, %555 : vector<8x128xf32>
    %558 = arith.divf %556, %557 : vector<8x128xf32>
    %559 = vector.extract_strided_slice %545 {offsets = [0, 256], sizes = [8, 128], strides = [1, 1]} : vector<8x512xf32> to vector<8x128xf32>
    %560 = math.tanh %559 : vector<8x128xf32>
    %561 = vector.extract_strided_slice %545 {offsets = [0, 384], sizes = [8, 128], strides = [1, 1]} : vector<8x512xf32> to vector<8x128xf32>
    %562 = arith.negf %561 : vector<8x128xf32>
    %563 = math.exp %562 : vector<8x128xf32>
    %cst_256 = arith.constant 1.000000e+00 : f32
    %564 = vector.broadcast %cst_256 : f32 to vector<8x128xf32>
    %565 = arith.addf %564, %563 : vector<8x128xf32>
    %566 = arith.divf %564, %565 : vector<8x128xf32>
    %567 = arith.mulf %558, %546 : vector<8x128xf32>
    %568 = arith.mulf %552, %560 : vector<8x128xf32>
    %569 = arith.addf %567, %568 : vector<8x128xf32>
    %570 = math.tanh %569 : vector<8x128xf32>
    %571 = arith.mulf %566, %570 : vector<8x128xf32>
    %c0_257 = arith.constant 0 : index
    %c0_258 = arith.constant 0 : index
    %572 = vector.load %arg11[%c0_257, %c0_258] : memref<8x128xf32, #tpu.memory_space<vmem>>, vector<8x128xf32>
    tpu.vector_store %arg11[%c0_257, %c0_258], %571 {strides = array<i32>} : memref<8x128xf32, #tpu.memory_space<vmem>>, vector<8x128xf32>,
    %c0_259 = arith.constant 0 : index
    %c0_260 = arith.constant 0 : index
    %573 = vector.load %arg12[%c0_259, %c0_260] : memref<8x128xf32, #tpu.memory_space<vmem>>, vector<8x128xf32>
    tpu.vector_store %arg12[%c0_259, %c0_260], %569 {strides = array<i32>} : memref<8x128xf32, #tpu.memory_space<vmem>>, vector<8x128xf32>,
    %574 = arith.truncf %571 : vector<8x128xf32> to vector<8x128xbf16>
    %575 = arith.index_cast %538 : i32 to index
    %c0_261 = arith.constant 0 : index
    %576 = vector.load %arg8[%575, %c0_261] : memref<64x128xbf16, #tpu.memory_space<vmem>>, vector<8x128xbf16>
    tpu.vector_store %arg8[%575, %c0_261], %574 {strides = array<i32>} : memref<64x128xbf16, #tpu.memory_space<vmem>>, vector<8x128xbf16>,
    %c6_i32_262 = arith.constant 6 : i32
    %c8_i32_263 = arith.constant 8 : i32
    %577 = arith.muli %c6_i32_262, %c8_i32_263 : i32
    %578 = tpu.assume_multiple %577, 8 : i32
    %579 = arith.index_cast %578 : i32 to index
    %c0_264 = arith.constant 0 : index
    %580 = vector.load %arg15[%579, %c0_264] : memref<64x512xf32, #tpu.memory_space<vmem>>, vector<8x512xf32>
    %c0_265 = arith.constant 0 : index
    %c0_266 = arith.constant 0 : index
    %581 = vector.load %arg11[%c0_265, %c0_266] : memref<8x128xf32, #tpu.memory_space<vmem>>, vector<8x128xf32>
    %582 = arith.truncf %581 : vector<8x128xf32> to vector<8x128xbf16>
    %c0_267 = arith.constant 0 : index
    %c0_268 = arith.constant 0 : index
    %583 = vector.load %arg6[%c0_267, %c0_268] : memref<128x512xbf16, #tpu.memory_space<vmem>>, vector<128x512xbf16>
    %cst_269 = arith.constant dense<0.000000e+00> : vector<8x512xf32>
    %584 = tpu.matmul %582, %583, %cst_269 {dimension_numbers = #tpu.dot_dimension_numbers<[1], [0], [0], [1], [0, 0, 1, 1], [], []>} : vector<8x128xbf16>, vector<128x512xbf16>, vector<8x512xf32> -> vector<8x512xf32>
    %585 = arith.addf %580, %584 : vector<8x512xf32>
    %c0_270 = arith.constant 0 : index
    %c0_271 = arith.constant 0 : index
    %586 = vector.load %arg12[%c0_270, %c0_271] : memref<8x128xf32, #tpu.memory_space<vmem>>, vector<8x128xf32>
    %587 = vector.extract_strided_slice %585 {offsets = [0, 0], sizes = [8, 128], strides = [1, 1]} : vector<8x512xf32> to vector<8x128xf32>
    %588 = arith.negf %587 : vector<8x128xf32>
    %589 = math.exp %588 : vector<8x128xf32>
    %cst_272 = arith.constant 1.000000e+00 : f32
    %590 = vector.broadcast %cst_272 : f32 to vector<8x128xf32>
    %591 = arith.addf %590, %589 : vector<8x128xf32>
    %592 = arith.divf %590, %591 : vector<8x128xf32>
    %593 = vector.extract_strided_slice %585 {offsets = [0, 128], sizes = [8, 128], strides = [1, 1]} : vector<8x512xf32> to vector<8x128xf32>
    %594 = arith.negf %593 : vector<8x128xf32>
    %595 = math.exp %594 : vector<8x128xf32>
    %cst_273 = arith.constant 1.000000e+00 : f32
    %596 = vector.broadcast %cst_273 : f32 to vector<8x128xf32>
    %597 = arith.addf %596, %595 : vector<8x128xf32>
    %598 = arith.divf %596, %597 : vector<8x128xf32>
    %599 = vector.extract_strided_slice %585 {offsets = [0, 256], sizes = [8, 128], strides = [1, 1]} : vector<8x512xf32> to vector<8x128xf32>
    %600 = math.tanh %599 : vector<8x128xf32>
    %601 = vector.extract_strided_slice %585 {offsets = [0, 384], sizes = [8, 128], strides = [1, 1]} : vector<8x512xf32> to vector<8x128xf32>
    %602 = arith.negf %601 : vector<8x128xf32>
    %603 = math.exp %602 : vector<8x128xf32>
    %cst_274 = arith.constant 1.000000e+00 : f32
    %604 = vector.broadcast %cst_274 : f32 to vector<8x128xf32>
    %605 = arith.addf %604, %603 : vector<8x128xf32>
    %606 = arith.divf %604, %605 : vector<8x128xf32>
    %607 = arith.mulf %598, %586 : vector<8x128xf32>
    %608 = arith.mulf %592, %600 : vector<8x128xf32>
    %609 = arith.addf %607, %608 : vector<8x128xf32>
    %610 = math.tanh %609 : vector<8x128xf32>
    %611 = arith.mulf %606, %610 : vector<8x128xf32>
    %c0_275 = arith.constant 0 : index
    %c0_276 = arith.constant 0 : index
    %612 = vector.load %arg11[%c0_275, %c0_276] : memref<8x128xf32, #tpu.memory_space<vmem>>, vector<8x128xf32>
    tpu.vector_store %arg11[%c0_275, %c0_276], %611 {strides = array<i32>} : memref<8x128xf32, #tpu.memory_space<vmem>>, vector<8x128xf32>,
    %c0_277 = arith.constant 0 : index
    %c0_278 = arith.constant 0 : index
    %613 = vector.load %arg12[%c0_277, %c0_278] : memref<8x128xf32, #tpu.memory_space<vmem>>, vector<8x128xf32>
    tpu.vector_store %arg12[%c0_277, %c0_278], %609 {strides = array<i32>} : memref<8x128xf32, #tpu.memory_space<vmem>>, vector<8x128xf32>,
    %614 = arith.truncf %611 : vector<8x128xf32> to vector<8x128xbf16>
    %615 = arith.index_cast %578 : i32 to index
    %c0_279 = arith.constant 0 : index
    %616 = vector.load %arg8[%615, %c0_279] : memref<64x128xbf16, #tpu.memory_space<vmem>>, vector<8x128xbf16>
    tpu.vector_store %arg8[%615, %c0_279], %614 {strides = array<i32>} : memref<64x128xbf16, #tpu.memory_space<vmem>>, vector<8x128xbf16>,
    %c7_i32_280 = arith.constant 7 : i32
    %c8_i32_281 = arith.constant 8 : i32
    %617 = arith.muli %c7_i32_280, %c8_i32_281 : i32
    %618 = tpu.assume_multiple %617, 8 : i32
    %619 = arith.index_cast %618 : i32 to index
    %c0_282 = arith.constant 0 : index
    %620 = vector.load %arg15[%619, %c0_282] : memref<64x512xf32, #tpu.memory_space<vmem>>, vector<8x512xf32>
    %c0_283 = arith.constant 0 : index
    %c0_284 = arith.constant 0 : index
    %621 = vector.load %arg11[%c0_283, %c0_284] : memref<8x128xf32, #tpu.memory_space<vmem>>, vector<8x128xf32>
    %622 = arith.truncf %621 : vector<8x128xf32> to vector<8x128xbf16>
    %c0_285 = arith.constant 0 : index
    %c0_286 = arith.constant 0 : index
    %623 = vector.load %arg6[%c0_285, %c0_286] : memref<128x512xbf16, #tpu.memory_space<vmem>>, vector<128x512xbf16>
    %cst_287 = arith.constant dense<0.000000e+00> : vector<8x512xf32>
    %624 = tpu.matmul %622, %623, %cst_287 {dimension_numbers = #tpu.dot_dimension_numbers<[1], [0], [0], [1], [0, 0, 1, 1], [], []>} : vector<8x128xbf16>, vector<128x512xbf16>, vector<8x512xf32> -> vector<8x512xf32>
    %625 = arith.addf %620, %624 : vector<8x512xf32>
    %c0_288 = arith.constant 0 : index
    %c0_289 = arith.constant 0 : index
    %626 = vector.load %arg12[%c0_288, %c0_289] : memref<8x128xf32, #tpu.memory_space<vmem>>, vector<8x128xf32>
    %627 = vector.extract_strided_slice %625 {offsets = [0, 0], sizes = [8, 128], strides = [1, 1]} : vector<8x512xf32> to vector<8x128xf32>
    %628 = arith.negf %627 : vector<8x128xf32>
    %629 = math.exp %628 : vector<8x128xf32>
    %cst_290 = arith.constant 1.000000e+00 : f32
    %630 = vector.broadcast %cst_290 : f32 to vector<8x128xf32>
    %631 = arith.addf %630, %629 : vector<8x128xf32>
    %632 = arith.divf %630, %631 : vector<8x128xf32>
    %633 = vector.extract_strided_slice %625 {offsets = [0, 128], sizes = [8, 128], strides = [1, 1]} : vector<8x512xf32> to vector<8x128xf32>
    %634 = arith.negf %633 : vector<8x128xf32>
    %635 = math.exp %634 : vector<8x128xf32>
    %cst_291 = arith.constant 1.000000e+00 : f32
    %636 = vector.broadcast %cst_291 : f32 to vector<8x128xf32>
    %637 = arith.addf %636, %635 : vector<8x128xf32>
    %638 = arith.divf %636, %637 : vector<8x128xf32>
    %639 = vector.extract_strided_slice %625 {offsets = [0, 256], sizes = [8, 128], strides = [1, 1]} : vector<8x512xf32> to vector<8x128xf32>
    %640 = math.tanh %639 : vector<8x128xf32>
    %641 = vector.extract_strided_slice %625 {offsets = [0, 384], sizes = [8, 128], strides = [1, 1]} : vector<8x512xf32> to vector<8x128xf32>
    %642 = arith.negf %641 : vector<8x128xf32>
    %643 = math.exp %642 : vector<8x128xf32>
    %cst_292 = arith.constant 1.000000e+00 : f32
    %644 = vector.broadcast %cst_292 : f32 to vector<8x128xf32>
    %645 = arith.addf %644, %643 : vector<8x128xf32>
    %646 = arith.divf %644, %645 : vector<8x128xf32>
    %647 = arith.mulf %638, %626 : vector<8x128xf32>
    %648 = arith.mulf %632, %640 : vector<8x128xf32>
    %649 = arith.addf %647, %648 : vector<8x128xf32>
    %650 = math.tanh %649 : vector<8x128xf32>
    %651 = arith.mulf %646, %650 : vector<8x128xf32>
    %c0_293 = arith.constant 0 : index
    %c0_294 = arith.constant 0 : index
    %652 = vector.load %arg11[%c0_293, %c0_294] : memref<8x128xf32, #tpu.memory_space<vmem>>, vector<8x128xf32>
    tpu.vector_store %arg11[%c0_293, %c0_294], %651 {strides = array<i32>} : memref<8x128xf32, #tpu.memory_space<vmem>>, vector<8x128xf32>,
    %c0_295 = arith.constant 0 : index
    %c0_296 = arith.constant 0 : index
    %653 = vector.load %arg12[%c0_295, %c0_296] : memref<8x128xf32, #tpu.memory_space<vmem>>, vector<8x128xf32>
    tpu.vector_store %arg12[%c0_295, %c0_296], %649 {strides = array<i32>} : memref<8x128xf32, #tpu.memory_space<vmem>>, vector<8x128xf32>,
    %654 = arith.truncf %651 : vector<8x128xf32> to vector<8x128xbf16>
    %655 = arith.index_cast %618 : i32 to index
    %c0_297 = arith.constant 0 : index
    %656 = vector.load %arg8[%655, %c0_297] : memref<64x128xbf16, #tpu.memory_space<vmem>>, vector<8x128xbf16>
    tpu.vector_store %arg8[%655, %c0_297], %654 {strides = array<i32>} : memref<64x128xbf16, #tpu.memory_space<vmem>>, vector<8x128xbf16>,
    %c8_i32_298 = arith.constant 8 : i32
    return
  }
  func.func @transform_0(%arg0: i32) -> (i32, i32) {
    %c0_i32 = arith.constant 0 : i32
    %c0_i32_0 = arith.constant 0 : i32
    return %arg0, %c0_i32 : i32, i32
  }
  func.func @transform_1(%arg0: i32) -> (i32, i32) {
    %c0_i32 = arith.constant 0 : i32
    %c0_i32_0 = arith.constant 0 : i32
    %c0_i32_1 = arith.constant 0 : i32
    return %c0_i32, %c0_i32_0 : i32, i32
  }
  func.func @transform_2(%arg0: i32) -> (i32, i32) {
    %c0_i32 = arith.constant 0 : i32
    %c0_i32_0 = arith.constant 0 : i32
    %c0_i32_1 = arith.constant 0 : i32
    return %c0_i32, %c0_i32_0 : i32, i32
  }
  func.func @transform_3(%arg0: i32) -> (i32, i32) {
    %c0_i32 = arith.constant 0 : i32
    %c0_i32_0 = arith.constant 0 : i32
    %c0_i32_1 = arith.constant 0 : i32
    return %c0_i32, %c0_i32_0 : i32, i32
  }
  func.func @transform_4(%arg0: i32) -> (i32, i32) {
    %c0_i32 = arith.constant 0 : i32
    %c0_i32_0 = arith.constant 0 : i32
    %c0_i32_1 = arith.constant 0 : i32
    return %c0_i32, %c0_i32_0 : i32, i32
  }
  func.func @transform_5(%arg0: i32) -> (i32, i32) {
    %c0_i32 = arith.constant 0 : i32
    %c0_i32_0 = arith.constant 0 : i32
    %c0_i32_1 = arith.constant 0 : i32
    return %c0_i32, %c0_i32_0 : i32, i32
  }
  func.func @transform_6(%arg0: i32) -> (i32, i32) {
    %c0_i32 = arith.constant 0 : i32
    %c0_i32_0 = arith.constant 0 : i32
    %c0_i32_1 = arith.constant 0 : i32
    return %c0_i32, %c0_i32_0 : i32, i32
  }
  func.func @transform_7(%arg0: i32) -> (i32, i32) {
    %c0_i32 = arith.constant 0 : i32
    %c0_i32_0 = arith.constant 0 : i32
    return %arg0, %c0_i32 : i32, i32
  }
}

</mosaic_0001>

<bundles_post_ra>
// kernel: rnn_language_model_forward.3
= control target key start
LH: loop header
LB: loop body
LE: loop exit
PB: predicated region body
PF: predicated region fallthrough
CT: control target
= control target key end

     0   :  { %s378_s1 = inlined_call_operand.vmem [shape: bf16[128,128], index: 1, kind: input, shape index: {}]   ;;  %s379_s2 = inlined_call_operand.vmem [shape: f32[1,128], index: 2, kind: input, shape index: {}]   ;;  %s380_s0 = inlined_call_operand.vmem [shape: bf16[64,128], index: 0, kind: input, shape index: {}]   ;;  %s381_s3 = inlined_call_operand.vmem [shape: f32[64,128], index: 3, kind: output, shape index: {}]  }
   0x1   :  { %v269_v0 = vld [vmem:[%s378_s1 + $0x38] sm:$0xff]  ;;  %v268_v1 = vld [vmem:[%s378_s1 + $0x30] sm:$0xff]  ;;  %v267_v2 = vld [vmem:[%s378_s1 + $0x28] sm:$0xff] }
   0x2   :  { %130 = vmatpush.bf16.msra.mxu0 %v269_v0  ;;  %270 = vmatpush.bf16.msra.mxu1 %v269_v0  ;;  %v266_v3 = vld [vmem:[%s378_s1 + $0x20] sm:$0xff]  ;;  %v265_v4 = vld [vmem:[%s378_s1 + $0x18] sm:$0xff]  ;;  %v264_v5 = vld [vmem:[%s378_s1 + $0x10] sm:$0xff] }
   0x3   :  { %271 = vmatpush.bf16.msra.mxu2 %v269_v0  ;;  %272 = vmatpush.bf16.msra.mxu3 %v269_v0  ;;  %v263_v6 = vld [vmem:[%s378_s1 + $0x8] sm:$0xff]  ;;  %v262_v7 = vld [vmem:[%s378_s1] sm:$0xff]  ;;  %v260_v10 = vld [vmem:[%s380_s0 + $0x10] sm:$0xff] }
   0x4   :  { %v258_v8 = vld [vmem:[%s380_s0] sm:$0xff]  ;;  %v259_v9 = vld [vmem:[%s380_s0 + $0x8] sm:$0xff]  ;;  %v261_v11 = vld [vmem:[%s380_s0 + $0x18] sm:$0xff] }
   0x5   :  { %v294_v12 = vld [vmem:[%s379_s2] ss:$0 sm:$0xff] }
   0x6   :  { %131 = vmatpush.bf16.msra.mxu0 %v268_v1  ;;  %273 = vmatpush.bf16.msra.mxu1 %v268_v1 }
   0x7   :  { %274 = vmatpush.bf16.msra.mxu2 %v268_v1  ;;  %275 = vmatpush.bf16.msra.mxu3 %v268_v1 }
   0xa   :  { %132 = vmatpush.bf16.msra.mxu0 %v267_v2  ;;  %276 = vmatpush.bf16.msra.mxu1 %v267_v2 }
   0xb   :  { %277 = vmatpush.bf16.msra.mxu2 %v267_v2  ;;  %278 = vmatpush.bf16.msra.mxu3 %v267_v2 }
   0xe   :  { %133 = vmatpush.bf16.msra.mxu0 %v266_v3  ;;  %279 = vmatpush.bf16.msra.mxu1 %v266_v3 }
   0xf   :  { %280 = vmatpush.bf16.msra.mxu2 %v266_v3  ;;  %281 = vmatpush.bf16.msra.mxu3 %v266_v3 }
  0x12   :  { %134 = vmatpush.bf16.msra.mxu0 %v265_v4  ;;  %282 = vmatpush.bf16.msra.mxu1 %v265_v4 }
  0x13   :  { %283 = vmatpush.bf16.msra.mxu2 %v265_v4  ;;  %284 = vmatpush.bf16.msra.mxu3 %v265_v4 }
  0x16   :  { %135 = vmatpush.bf16.msra.mxu0 %v264_v5  ;;  %285 = vmatpush.bf16.msra.mxu1 %v264_v5 }
  0x17   :  { %286 = vmatpush.bf16.msra.mxu2 %v264_v5  ;;  %287 = vmatpush.bf16.msra.mxu3 %v264_v5 }
  0x1a   :  { %136 = vmatpush.bf16.msra.mxu0 %v263_v6  ;;  %288 = vmatpush.bf16.msra.mxu1 %v263_v6 }
  0x1b   :  { %289 = vmatpush.bf16.msra.mxu2 %v263_v6  ;;  %290 = vmatpush.bf16.msra.mxu3 %v263_v6 }
  0x1e   :  { %137 = vmatpush.bf16.msra.mxu0 %v262_v7  ;;  %291 = vmatpush.bf16.msra.mxu1 %v262_v7 }
  0x1f   :  { %292 = vmatpush.bf16.msra.mxu2 %v262_v7  ;;  %293 = vmatpush.bf16.msra.mxu3 %v262_v7 }
  0x21   :  { %138 = vmatmul.bf16.vlgmr.msra.gmra.mxu0 %v258_v8  ;;  %143 = vmatmul.bf16.vlgmr.msra.gmra.mxu1 %v259_v9 }
  0x22   :  { %148 = vmatmul.bf16.vlgmr.msra.gmra.mxu2 %v260_v10  ;;  %153 = vmatmul.bf16.vlgmr.msra.gmra.mxu3 %v261_v11 }
  0x9e   :  { %v139_v13 = vpop.f32.mrf.mxu0  ;;  %v144_v14 = vpop.f32.mrf.mxu1 }
  0x9f   :  { %v190_v15 = vadd.f32 %v294_v12, %v139_v13  ;;  %v192_v16 = vadd.f32 %v294_v12, %v144_v14 }
  0xa1   :  { %198 = vst [vmem:[%s381_s3] sm:$0xff] %v190_v15 }
  0xa2   :  { %200 = vst [vmem:[%s381_s3 + $0x10] sm:$0xff] %v192_v16 }
  0xa5   :  { %v149_v17 = vpop.f32.mrf.mxu2  ;;  %v154_v18 = vpop.f32.mrf.mxu3 }
  0xa6   :  { %v194_v19 = vadd.f32 %v294_v12, %v149_v17  ;;  %v196_v20 = vadd.f32 %v294_v12, %v154_v18  ;;  %v141_v21 = vpop.f32.mrf.mxu0  ;;  %v146_v22 = vpop.f32.mrf.mxu1 }
  0xa7   :  { %v191_v23 = vadd.f32 %v294_v12, %v141_v21  ;;  %v193_v24 = vadd.f32 %v294_v12, %v146_v22 }
  0xa8   :  { %202 = vst [vmem:[%s381_s3 + $0x20] sm:$0xff] %v194_v19 }
  0xa9   :  { %204 = vst [vmem:[%s381_s3 + $0x30] sm:$0xff] %v196_v20 }
  0xaa   :  { %199 = vst [vmem:[%s381_s3 + $0x8] sm:$0xff] %v191_v23 }
  0xab   :  { %201 = vst [vmem:[%s381_s3 + $0x18] sm:$0xff] %v193_v24 }
  0xad   :  { %v151_v25 = vpop.f32.mrf.mxu2  ;;  %v156_v26 = vpop.f32.mrf.mxu3 }
  0xae   :  { %v195_v27 = vadd.f32 %v294_v12, %v151_v25  ;;  %v197_v28 = vadd.f32 %v294_v12, %v156_v26 }
  0xb0   :  { %203 = vst [vmem:[%s381_s3 + $0x28] sm:$0xff] %v195_v27 }
  0xb1   :  { %205 = vst [vmem:[%s381_s3 + $0x38] sm:$0xff] %v197_v28 }

// kernel: rnn_language_model_forward.2
= control target key start
LH: loop header
LB: loop body
LE: loop exit
PB: predicated region body
PF: predicated region fallthrough
CT: control target
= control target key end

     0   :  { %12 = vsyncpa [#allocation10], 0  ;;  %s11258_s0 = inlined_call_operand.vmem [shape: bf16[64,32], index: 0, kind: input, shape index: {}]   ;;  %s11259_s1 = inlined_call_operand.vmem [shape: bf16[32,512], index: 1, kind: input, shape index: {}]   ;;  %s11260_s2 = inlined_call_operand.vmem [shape: bf16[128,512], index: 2, kind: input, shape index: {}]   ;;  %s11261_s3 = inlined_call_operand.vmem [shape: f32[1,512], index: 3, kind: input, shape index: {}]   ;;  %s11262_s4 = inlined_call_operand.hbm [shape: bf16[128,512], index: 4, kind: input, shape index: {}]   ;;  %s11263_s5 = inlined_call_operand.hbm [shape: bf16[128,512], index: 5, kind: input, shape index: {}]   ;;  %s11264_s6 = inlined_call_operand.vmem [shape: f32[1,512], index: 6, kind: input, shape index: {}]   ;;  %s11265_s7 = inlined_call_operand.vmem [shape: bf16[64,128], index: 7, kind: output, shape index: {}]  }
   0x1   :  { %s26_s26 = sshll.u32 %s11262_s4, 4  ;;  %s27_s26 = int_to_ptr.hbm [resolvable:$true] %s26_s26 }
   0x2   :  { %13 = vsyncpa [#allocation12], 0  ;;  %s9106_s27 = smov [#allocation9]   ;;  %s39_s8 = sshll.u32 %s11263_s5, 4  ;;  %s40_s8 = int_to_ptr.hbm [resolvable:$true] %s39_s8 }
   0x3   :  { %s28_s28 = sshll.u32 %s9106_s27, 4  ;;  %s9107_s9 = smov 256   ;;  %s29_s28 = int_to_ptr.vmem [resolvable:$true] %s28_s28 }
   0x4   :  { %s9108_s10 = smov 16   ;;  %s9109_s11 = smov [#allocation11]  }
   0x5   :  { %34 = dma.hbm_to_vmem [thread:$0]  %s27_s26, 4096, %s29_s28, [#allocation10], %s9107_s9, %s9107_s9, %s9108_s10  }
   0x6   :  { %s41_s12 = sshll.u32 %s9109_s11, 4  ;;  %s42_s12 = int_to_ptr.vmem [resolvable:$true] %s41_s12 }
   0x7   :  { %47 = dma.hbm_to_vmem [thread:$0]  %s40_s8, 4096, %s42_s12, [#allocation12], %s9107_s9, %s9107_s9, %s9108_s10  }
   0x8   :  { %9102 = dma.done.wait [#allocation10], 4096  }
   0x9   :  { %9103 = vsyncadd [#allocation10], 4294963200 }
   0xa   :  { %9104 = dma.done.wait [#allocation12], 4096  }
   0xb   :  { %9105 = vsyncadd [#allocation12], 4294963200  ;;  %v5956_v0 = vld [vmem:[%s11259_s1 + $0x20] sm:$0xf]  ;;  %v8243_v1 = vld [vmem:[%s11259_s1 + $0x2c] sm:$0xf0] }
   0xc   :  { %v8241_v2 = vld [vmem:[%s11259_s1 + $0x24] sm:$0xf]  ;;  %v5957_v3 = vor.u32 %v8243_v1, %v5956_v0  ;;  %v5958_v4 = vld [vmem:[%s11259_s1 + $0x30] sm:$0xf0]  ;;  %v5964_v5 = vld [vmem:[%s11259_s1 + $0x28] sm:$0xf] }
   0xd   :  { %v8244_v6 = vld [vmem:[%s11259_s1 + $0x34] sm:$0xf0]  ;;  %v5961_v7 = vor.u32 %v8241_v2, %v5958_v4  ;;  %v8242_v9 = vld [vmem:[%s11259_s1 + $0x2c] sm:$0xf]  ;;  %v5966_v10 = vld [vmem:[%s11259_s1 + $0x38] sm:$0xf0] }
   0xe   :  { %v5965_v8 = vor.u32 %v8244_v6, %v5964_v5  ;;  %v5940_v11 = vld [vmem:[%s11259_s1] sm:$0xf]  ;;  %172 = vmatpush.bf16.msra.mxu0 %v5957_v3  ;;  %v5969_v12 = vor.u32 %v8242_v9, %v5966_v10  ;;  %v8239_v13 = vld [vmem:[%s11259_s1 + $0xc] sm:$0xf0]  ;;  %v8237_v14 = vld [vmem:[%s11259_s1 + $0x4] sm:$0xf] }
   0xf   :  { %v5942_v15 = vld [vmem:[%s11259_s1 + $0x10] sm:$0xf0]  ;;  %201 = vmatpush.bf16.msra.mxu1 %v5961_v7  ;;  %v5941_v16 = vor.u32 %v8239_v13, %v5940_v11  ;;  %v5948_v18 = vld [vmem:[%s11259_s1 + $0x8] sm:$0xf]  ;;  %v8240_v19 = vld [vmem:[%s11259_s1 + $0x14] sm:$0xf0] }
  0x10   :  { %230 = vmatpush.bf16.msra.mxu2 %v5965_v8  ;;  %v5945_v17 = vor.u32 %v8237_v14, %v5942_v15  ;;  %v8238_v20 = vld [vmem:[%s11259_s1 + $0xc] sm:$0xf]  ;;  %259 = vmatpush.bf16.msra.mxu3 %v5969_v12  ;;  %v5949_v21 = vor.u32 %v8240_v19, %v5948_v18  ;;  %v5950_v22 = vld [vmem:[%s11259_s1 + $0x18] sm:$0xf0]  ;;  %v8233_v23 = vld [vmem:[%s11258_s0] sm:$0xff]  ;;  %vm153_vm0 = vcmask 261120  }
  0x11   :  { %v6100_v24 = vld [vmem:[%s11260_s2 + $0xe0] sm:$0xf]  ;;  %v5953_v25 = vor.u32 %v8238_v20, %v5950_v22  ;;  %v8275_v26 = vld [vmem:[%s11260_s2 + $0xec] sm:$0xf0]  ;;  %v8273_v27 = vld [vmem:[%s11260_s2 + $0xe4] sm:$0xf] }
  0x12   :  { %v6102_v28 = vld [vmem:[%s11260_s2 + $0xf0] sm:$0xf0]  ;;  %173 = vmatpush.bf16.msra.mxu0 %v5941_v16  ;;  %v6101_v29 = vor.u32 %v8275_v26, %v6100_v24  ;;  %v8274_v31 = vld [vmem:[%s11260_s2 + $0xec] sm:$0xf]  ;;  %v6110_v32 = vld [vmem:[%s11260_s2 + $0xf8] sm:$0xf0] }
  0x13   :  { %v6105_v30 = vor.u32 %v8273_v27, %v6102_v28  ;;  %v6084_v33 = vld [vmem:[%s11260_s2 + $0xc0] sm:$0xf]  ;;  %202 = vmatpush.bf16.msra.mxu1 %v5945_v17  ;;  %v8271_v34 = vld [vmem:[%s11260_s2 + $0xcc] sm:$0xf0]  ;;  %v8269_v35 = vld [vmem:[%s11260_s2 + $0xc4] sm:$0xf]  ;;  %v6113_v37 = vor.u32 %v8274_v31, %v6110_v32 }
  0x14   :  { %231 = vmatpush.bf16.msra.mxu2 %v5949_v21  ;;  %v6086_v36 = vld [vmem:[%s11260_s2 + $0xd0] sm:$0xf0]  ;;  %260 = vmatpush.bf16.msra.mxu3 %v5953_v25  ;;  %v6085_v38 = vor.u32 %v8271_v34, %v6084_v33  ;;  %v8270_v39 = vld [vmem:[%s11260_s2 + $0xcc] sm:$0xf]  ;;  %v6108_v40 = vld [vmem:[%s11260_s2 + $0xe8] sm:$0xf] }
  0x15   :  { %5970 = vmatmul.msk.bf16.vlgmr.msra.gmra.mxu0 %vm153_vm0, %v8233_v23  ;;  %v6089_v41 = vor.u32 %v8269_v35, %v6086_v36  ;;  %v6094_v42 = vld [vmem:[%s11260_s2 + $0xd8] sm:$0xf0]  ;;  %v8276_v43 = vld [vmem:[%s11260_s2 + $0xf4] sm:$0xf0]  ;;  %v6068_v44 = vld [vmem:[%s11260_s2 + $0xa0] sm:$0xf] }
  0x16   :  { %515 = vmatpush.bf16.msrb.mxu0 %v6101_v29  ;;  %5974 = vmatmul.msk.bf16.vlgmr.msra.gmra.mxu1 %vm153_vm0, %v8233_v23  ;;  %v6109_v45 = vor.u32 %v8276_v43, %v6108_v40  ;;  %v8267_v46 = vld [vmem:[%s11260_s2 + $0xac] sm:$0xf0]  ;;  %v8265_v47 = vld [vmem:[%s11260_s2 + $0xa4] sm:$0xf]  ;;  %v6070_v48 = vld [vmem:[%s11260_s2 + $0xb0] sm:$0xf0]  ;;  %v6097_v50 = vor.u32 %v8270_v39, %v6094_v42 }
  0x17   :  { %528 = vmatpush.bf16.msrb.mxu1 %v6105_v30  ;;  %5978 = vmatmul.msk.bf16.vlgmr.msra.gmra.mxu2 %vm153_vm0, %v8233_v23  ;;  %v6092_v49 = vld [vmem:[%s11260_s2 + $0xc8] sm:$0xf]  ;;  %v6069_v51 = vor.u32 %v8267_v46, %v6068_v44  ;;  %v8266_v52 = vld [vmem:[%s11260_s2 + $0xac] sm:$0xf]  ;;  %v6078_v53 = vld [vmem:[%s11260_s2 + $0xb8] sm:$0xf0]  ;;  %v6073_v55 = vor.u32 %v8265_v47, %v6070_v48 }
  0x18   :  { %5982 = vmatmul.msk.bf16.vlgmr.msra.gmra.mxu3 %vm153_vm0, %v8233_v23  ;;  %v8272_v54 = vld [vmem:[%s11260_s2 + $0xd4] sm:$0xf0]  ;;  %541 = vmatpush.bf16.msrb.mxu2 %v6109_v45  ;;  %v6052_v57 = vld [vmem:[%s11260_s2 + $0x80] sm:$0xf]  ;;  %v8263_v58 = vld [vmem:[%s11260_s2 + $0x8c] sm:$0xf0]  ;;  %v6081_v63 = vor.u32 %v8266_v52, %v6078_v53 }
  0x19   :  { %554 = vmatpush.bf16.msrb.mxu3 %v6113_v37  ;;  %v6093_v56 = vor.u32 %v8272_v54, %v6092_v49  ;;  %v8261_v59 = vld [vmem:[%s11260_s2 + $0x84] sm:$0xf]  ;;  %v6054_v60 = vld [vmem:[%s11260_s2 + $0x90] sm:$0xf0]  ;;  %v6076_v61 = vld [vmem:[%s11260_s2 + $0xa8] sm:$0xf]  ;;  %v6053_v0 = vor.u32 %v8263_v58, %v6052_v57 }
  0x1a   :  { %516 = vmatpush.bf16.msrb.mxu0 %v6085_v38  ;;  %v8268_v62 = vld [vmem:[%s11260_s2 + $0xb4] sm:$0xf0]  ;;  %v8262_v1 = vld [vmem:[%s11260_s2 + $0x8c] sm:$0xf]  ;;  %v6057_v2 = vor.u32 %v8261_v59, %v6054_v60  ;;  %v6062_v3 = vld [vmem:[%s11260_s2 + $0x98] sm:$0xf0] }
  0x1b   :  { %529 = vmatpush.bf16.msrb.mxu1 %v6089_v41  ;;  %v6077_v4 = vor.u32 %v8268_v62, %v6076_v61  ;;  %v6036_v5 = vld [vmem:[%s11260_s2 + $0x60] sm:$0xf]  ;;  %v8259_v6 = vld [vmem:[%s11260_s2 + $0x6c] sm:$0xf0]  ;;  %v8257_v7 = vld [vmem:[%s11260_s2 + $0x64] sm:$0xf]  ;;  %v6065_v10 = vor.u32 %v8262_v1, %v6062_v3 }
  0x1c   :  { %542 = vmatpush.bf16.msrb.mxu2 %v6093_v56  ;;  %v6038_v8 = vld [vmem:[%s11260_s2 + $0x70] sm:$0xf0]  ;;  %v8234_v9 = vld [vmem:[%s11258_s0 + $0x8] sm:$0xff]  ;;  %v6037_v11 = vor.u32 %v8259_v6, %v6036_v5  ;;  %v8264_v14 = vld [vmem:[%s11260_s2 + $0x94] sm:$0xf0]  ;;  %v9110_v60 = vmov 0.0|0.0  }
  0x1d   :  { %555 = vmatpush.bf16.msrb.mxu3 %v6097_v50  ;;  %v8258_v12 = vld [vmem:[%s11260_s2 + $0x6c] sm:$0xf]  ;;  %v6060_v13 = vld [vmem:[%s11260_s2 + $0x88] sm:$0xf]  ;;  %v6041_v15 = vor.u32 %v8257_v7, %v6038_v8  ;;  %v6046_v16 = vld [vmem:[%s11260_s2 + $0x78] sm:$0xf0] }
  0x1e   :  { %517 = vmatpush.bf16.msrb.mxu0 %v6069_v51  ;;  %v6020_v17 = vld [vmem:[%s11260_s2 + $0x40] sm:$0xf]  ;;  %v8255_v18 = vld [vmem:[%s11260_s2 + $0x4c] sm:$0xf0]  ;;  %v8253_v19 = vld [vmem:[%s11260_s2 + $0x44] sm:$0xf]  ;;  %v6061_v21 = vor.u32 %v8264_v14, %v6060_v13  ;;  %v6049_v22 = vor.u32 %v8258_v12, %v6046_v16 }
  0x1f   :  { %530 = vmatpush.bf16.msrb.mxu1 %v6073_v55  ;;  %v6022_v20 = vld [vmem:[%s11260_s2 + $0x50] sm:$0xf0]  ;;  %v6021_v23 = vor.u32 %v8255_v18, %v6020_v17  ;;  %v6044_v24 = vld [vmem:[%s11260_s2 + $0x68] sm:$0xf]  ;;  %v8260_v25 = vld [vmem:[%s11260_s2 + $0x74] sm:$0xf0] }
  0x20   :  { %543 = vmatpush.bf16.msrb.mxu2 %v6077_v4  ;;  %v6025_v26 = vor.u32 %v8253_v19, %v6022_v20  ;;  %v8254_v27 = vld [vmem:[%s11260_s2 + $0x4c] sm:$0xf]  ;;  %v6030_v28 = vld [vmem:[%s11260_s2 + $0x58] sm:$0xf0]  ;;  %v6045_v29 = vor.u32 %v8260_v25, %v6044_v24  ;;  %v6004_v30 = vld [vmem:[%s11260_s2 + $0x20] sm:$0xf] }
  0x21   :  { %556 = vmatpush.bf16.msrb.mxu3 %v6081_v63  ;;  %v8251_v31 = vld [vmem:[%s11260_s2 + $0x2c] sm:$0xf0]  ;;  %v8249_v32 = vld [vmem:[%s11260_s2 + $0x24] sm:$0xf]  ;;  %v6033_v33 = vor.u32 %v8254_v27, %v6030_v28  ;;  %v6006_v35 = vld [vmem:[%s11260_s2 + $0x30] sm:$0xf0] }
  0x22   :  { %518 = vmatpush.bf16.msrb.mxu0 %v6053_v0  ;;  %v6005_v34 = vor.u32 %v8251_v31, %v6004_v30  ;;  %v6028_v36 = vld [vmem:[%s11260_s2 + $0x48] sm:$0xf]  ;;  %v8256_v37 = vld [vmem:[%s11260_s2 + $0x54] sm:$0xf0]  ;;  %v6009_v38 = vor.u32 %v8249_v32, %v6006_v35  ;;  %v8250_v39 = vld [vmem:[%s11260_s2 + $0x2c] sm:$0xf] }
  0x23   :  { %531 = vmatpush.bf16.msrb.mxu1 %v6057_v2  ;;  %v6014_v40 = vld [vmem:[%s11260_s2 + $0x38] sm:$0xf0]  ;;  %v5988_v41 = vld [vmem:[%s11260_s2] sm:$0xf]  ;;  %v8247_v42 = vld [vmem:[%s11260_s2 + $0xc] sm:$0xf0]  ;;  %v6029_v45 = vor.u32 %v8256_v37, %v6028_v36 }
  0x24   :  { %544 = vmatpush.bf16.msrb.mxu2 %v6061_v21  ;;  %v8245_v43 = vld [vmem:[%s11260_s2 + $0x4] sm:$0xf]  ;;  %v5990_v44 = vld [vmem:[%s11260_s2 + $0x10] sm:$0xf0]  ;;  %v6017_v46 = vor.u32 %v8250_v39, %v6014_v40  ;;  %v5989_v47 = vor.u32 %v8247_v42, %v5988_v41  ;;  %v6012_v48 = vld [vmem:[%s11260_s2 + $0x28] sm:$0xf] }
  0x25   :  { %557 = vmatpush.bf16.msrb.mxu3 %v6065_v10  ;;  %5971 = vmatmul.msk.bf16.gmra.mxu0 %vm153_vm0, %v8234_v9  ;;  %v8252_v49 = vld [vmem:[%s11260_s2 + $0x34] sm:$0xf0]  ;;  %v5993_v50 = vor.u32 %v8245_v43, %v5990_v44  ;;  %v8246_v51 = vld [vmem:[%s11260_s2 + $0xc] sm:$0xf]  ;;  %v5998_v52 = vld [vmem:[%s11260_s2 + $0x18] sm:$0xf0] }
  0x26   :  { %519 = vmatpush.bf16.msrb.mxu0 %v6037_v11  ;;  %5975 = vmatmul.msk.bf16.gmra.mxu1 %vm153_vm0, %v8234_v9  ;;  %v6013_v53 = vor.u32 %v8252_v49, %v6012_v48  ;;  %v5996_v54 = vld [vmem:[%s11260_s2 + $0x8] sm:$0xf]  ;;  %v8248_v55 = vld [vmem:[%s11260_s2 + $0x14] sm:$0xf0]  ;;  %v6001_v56 = vor.u32 %v8246_v51, %v5998_v52  ;;  %v8235_v57 = vld [vmem:[%s11258_s0 + $0x10] sm:$0xff] }
  0x27   :  { %532 = vmatpush.bf16.msrb.mxu1 %v6041_v15  ;;  %5979 = vmatmul.msk.bf16.gmra.mxu2 %vm153_vm0, %v8234_v9  ;;  %v5997_v58 = vor.u32 %v8248_v55, %v5996_v54  ;;  %v8236_v59 = vld [vmem:[%s11258_s0 + $0x18] sm:$0xff]  ;;  %v83_v3 = vld [vmem:[%s11261_s3] sm:$0xf]  ;;  %v8305_v35 = vld [vmem:[%s11260_s2 + $0xe4] sm:$0xf] }
  0x28   :  { %5983 = vmatmul.msk.bf16.gmra.mxu3 %vm153_vm0, %v8234_v9  ;;  %545 = vmatpush.bf16.msrb.mxu2 %v6045_v29  ;;  %v9444_v4 = vperm.slane %v83_v3, 0  ;;  %v9448_v6 = vperm.slane %v83_v3, 1  ;;  %v9458_v12 = vperm.slane %v83_v3, 2  ;;  %v9460_v13 = vperm.slane %v83_v3, 3  ;;  %v6233_v39 = vld [vmem:[%s11260_s2 + $0xf0] sm:$0xf0] }
  0x29   :  { %558 = vmatpush.bf16.msrb.mxu3 %v6049_v22  ;;  %v6239_v40 = vld [vmem:[%s11260_s2 + $0xe8] sm:$0xf]  ;;  %v8308_v41 = vld [vmem:[%s11260_s2 + $0xf4] sm:$0xf0]  ;;  %v6236_v44 = vor.u32 %v8305_v35, %v6233_v39  ;;  %v8303_v51 = vld [vmem:[%s11260_s2 + $0xcc] sm:$0xf0] }
  0x2a   :  { %520 = vmatpush.bf16.msrb.mxu0 %v6021_v23  ;;  %v8301_v52 = vld [vmem:[%s11260_s2 + $0xc4] sm:$0xf]  ;;  %v6217_v54 = vld [vmem:[%s11260_s2 + $0xd0] sm:$0xf0]  ;;  %v6223_v55 = vld [vmem:[%s11260_s2 + $0xc8] sm:$0xf] }
  0x2b   :  { %533 = vmatpush.bf16.msrb.mxu1 %v6025_v26  ;;  %v6225_v3 = vld [vmem:[%s11260_s2 + $0xd8] sm:$0xf0]  ;;  %v6207_v35 = vld [vmem:[%s11260_s2 + $0xa8] sm:$0xf] }
  0x2c   :  { %546 = vmatpush.bf16.msrb.mxu2 %v6029_v45  ;;  %v6240_v45 = vor.u32 %v8308_v41, %v6239_v40 }
  0x2d   :  { %559 = vmatpush.bf16.msrb.mxu3 %v6033_v33  ;;  %v6231_v33 = vld [vmem:[%s11260_s2 + $0xe0] sm:$0xf] }
  0x2e   :  { %521 = vmatpush.bf16.msrb.mxu0 %v6005_v34  ;;  %v8307_v34 = vld [vmem:[%s11260_s2 + $0xec] sm:$0xf0] }
  0x2f   :  { %534 = vmatpush.bf16.msrb.mxu1 %v6009_v38  ;;  %v6232_v38 = vor.u32 %v8307_v34, %v6231_v33  ;;  %v6201_v34 = vld [vmem:[%s11260_s2 + $0xb0] sm:$0xf0] }
  0x30   :  { %547 = vmatpush.bf16.msrb.mxu2 %v6013_v53 }
  0x31   :  { %560 = vmatpush.bf16.msrb.mxu3 %v6017_v46  ;;  %v8306_v46 = vld [vmem:[%s11260_s2 + $0xec] sm:$0xf] }
  0x32   :  { %522 = vmatpush.bf16.msrb.mxu0 %v5989_v47  ;;  %v6241_v47 = vld [vmem:[%s11260_s2 + $0xf8] sm:$0xf0] }
  0x33   :  { %535 = vmatpush.bf16.msrb.mxu1 %v5993_v50  ;;  %v6244_v49 = vor.u32 %v8306_v46, %v6241_v47  ;;  %v6215_v50 = vld [vmem:[%s11260_s2 + $0xc0] sm:$0xf]  ;;  %v8295_v47 = vld [vmem:[%s11260_s2 + $0x8c] sm:$0xf0] }
  0x34   :  { %548 = vmatpush.bf16.msrb.mxu2 %v5997_v58  ;;  %v6216_v53 = vor.u32 %v8303_v51, %v6215_v50  ;;  %v6183_v46 = vld [vmem:[%s11260_s2 + $0x80] sm:$0xf]  ;;  %v6185_v51 = vld [vmem:[%s11260_s2 + $0x90] sm:$0xf0] }
  0x35   :  { %561 = vmatpush.bf16.msrb.mxu3 %v6001_v56  ;;  %5972 = vmatmul.msk.bf16.gmra.mxu0 %vm153_vm0, %v8235_v57  ;;  %v8304_v56 = vld [vmem:[%s11260_s2 + $0xd4] sm:$0xf0]  ;;  %v6184_v50 = vor.u32 %v8295_v47, %v6183_v46 }
  0x36   :  { %5976 = vmatmul.msk.bf16.gmra.mxu1 %vm153_vm0, %v8235_v57  ;;  %840 = vmatpush.bf16.msra.mxu0 %v6232_v38  ;;  %v6224_v58 = vor.u32 %v8304_v56, %v6223_v55  ;;  %v8294_v56 = vld [vmem:[%s11260_s2 + $0x8c] sm:$0xf] }
  0x37   :  { %5980 = vmatmul.msk.bf16.gmra.mxu2 %vm153_vm0, %v8235_v57  ;;  %853 = vmatpush.bf16.msra.mxu1 %v6236_v44  ;;  %v6209_v44 = vld [vmem:[%s11260_s2 + $0xb8] sm:$0xf0] }
  0x38   :  { %5984 = vmatmul.msk.bf16.gmra.mxu3 %vm153_vm0, %v8235_v57  ;;  %866 = vmatpush.bf16.msra.mxu2 %v6240_v45  ;;  %v6220_v57 = vor.u32 %v8301_v52, %v6217_v54  ;;  %v6191_v52 = vld [vmem:[%s11260_s2 + $0x88] sm:$0xf] }
  0x39   :  { %879 = vmatpush.bf16.msra.mxu3 %v6244_v49  ;;  %v8293_v49 = vld [vmem:[%s11260_s2 + $0x84] sm:$0xf] }
  0x3a   :  { %841 = vmatpush.bf16.msra.mxu0 %v6216_v53  ;;  %v8296_v53 = vld [vmem:[%s11260_s2 + $0x94] sm:$0xf0]  ;;  %v6188_v54 = vor.u32 %v8293_v49, %v6185_v51  ;;  %v6151_v49 = vld [vmem:[%s11260_s2 + $0x40] sm:$0xf] }
  0x3b   :  { %854 = vmatpush.bf16.msra.mxu1 %v6220_v57  ;;  %v6192_v55 = vor.u32 %v8296_v53, %v6191_v52  ;;  %v6193_v57 = vld [vmem:[%s11260_s2 + $0x98] sm:$0xf0]  ;;  %v8285_v53 = vld [vmem:[%s11260_s2 + $0x44] sm:$0xf] }
  0x3c   :  { %867 = vmatpush.bf16.msra.mxu2 %v6224_v58  ;;  %v6196_v58 = vor.u32 %v8294_v56, %v6193_v57  ;;  %v6159_v56 = vld [vmem:[%s11260_s2 + $0x48] sm:$0xf]  ;;  %v8288_v57 = vld [vmem:[%s11260_s2 + $0x54] sm:$0xf0] }
  0x45   :  { %5973 = vmatmul.msk.bf16.gmra.mxu0 %vm153_vm0, %v8236_v59 }
  0x46   :  { %5977 = vmatmul.msk.bf16.gmra.mxu1 %vm153_vm0, %v8236_v59 }
  0x47   :  { %5981 = vmatmul.msk.bf16.gmra.mxu2 %vm153_vm0, %v8236_v59 }
  0x48   :  { %5985 = vmatmul.msk.bf16.gmra.mxu3 %vm153_vm0, %v8236_v59  ;;  %v8302_v59 = vld [vmem:[%s11260_s2 + $0xcc] sm:$0xf] }
  0x55   :  { %523 = vmatmul.bf16.vlgmr.msrb.gmra.mxu0 %v9110_v60 }
  0x56   :  { %536 = vmatmul.bf16.vlgmr.msrb.gmra.mxu1 %v9110_v60 }
  0x57   :  { %549 = vmatmul.bf16.vlgmr.msrb.gmra.mxu2 %v9110_v60 }
  0x58   :  { %562 = vmatmul.bf16.vlgmr.msrb.gmra.mxu3 %v9110_v60 }
  0x92   :  { %v9429_v61 = vpop.f32.mrf.mxu0 }
  0x93   :  { %v9431_v62 = vpop.f32.mrf.mxu1 }
  0x9a   :  { %v9433_v63 = vpop.f32.mrf.mxu2  ;;  %v9437_v1 = vpop.f32.mrf.mxu0 }
  0x9b   :  { %v9435_v0 = vpop.f32.mrf.mxu3  ;;  %v9439_v2 = vpop.f32.mrf.mxu1 }
  0xa2   :  { %v9446_v5 = vpop.f32.mrf.mxu2  ;;  %v180_v8 = vpop.f32.mrf.mxu0 }
  0xa3   :  { %v9450_v7 = vpop.f32.mrf.mxu3  ;;  %v9453_v9 = vadd.f32 %v180_v8, %v9444_v4  ;;  %v209_v10 = vpop.f32.mrf.mxu1  ;;  %v6228_v8 = vor.u32 %v8302_v59, %v6225_v3  ;;  %v176_v59 = vadd.f32 %v9429_v61, %v9444_v4 }
  0xa4   :  { %v9456_v11 = vadd.f32 %v209_v10, %v9448_v6 }
  0xa5   :  { %880 = vmatpush.bf16.msra.mxu3 %v6228_v8  ;;  %v6167_v8 = vld [vmem:[%s11260_s2 + $0x60] sm:$0xf] }
  0xaa   :  { %v238_v14 = vpop.f32.mrf.mxu2  ;;  %v9465_v17 = vpop.f32.mrf.mxu0 }
  0xab   :  { %v9463_v15 = vadd.f32 %v238_v14, %v9458_v12  ;;  %v267_v16 = vpop.f32.mrf.mxu3  ;;  %v9470_v19 = vpop.f32.mrf.mxu1  ;;  %v6199_v14 = vld [vmem:[%s11260_s2 + $0xa0] sm:$0xf] }
  0xac   :  { %v9468_v18 = vadd.f32 %v267_v16, %v9460_v13  ;;  %v8299_v16 = vld [vmem:[%s11260_s2 + $0xac] sm:$0xf0] }
  0xad   :  { %v6200_v33 = vor.u32 %v8299_v16, %v6199_v14  ;;  %v8289_v14 = vld [vmem:[%s11260_s2 + $0x64] sm:$0xf]  ;;  %v205_v16 = vadd.f32 %v9431_v62, %v9448_v6 }
  0xaf   :  { %842 = vmatpush.bf16.msra.mxu0 %v6200_v33  ;;  %v6169_v33 = vld [vmem:[%s11260_s2 + $0x70] sm:$0xf0] }
  0xb0   :  { %v6172_v62 = vor.u32 %v8289_v14, %v6169_v33  ;;  %v8283_v14 = vld [vmem:[%s11260_s2 + $0x2c] sm:$0xf0] }
  0xb2   :  { %v9472_v20 = vpop.f32.mrf.mxu2  ;;  %v185_v22 = vpop.f32.mrf.mxu0 }
  0xb3   :  { %v9474_v21 = vpop.f32.mrf.mxu3  ;;  %v9477_v23 = vadd.f32 %v185_v22, %v9444_v4  ;;  %v214_v24 = vpop.f32.mrf.mxu1  ;;  %v8297_v22 = vld [vmem:[%s11260_s2 + $0xa4] sm:$0xf]  ;;  %843 = vmatpush.bf16.msra.mxu0 %v6184_v50  ;;  %v8287_v50 = vld [vmem:[%s11260_s2 + $0x4c] sm:$0xf0] }
  0xb4   :  { %v9480_v25 = vadd.f32 %v214_v24, %v9448_v6  ;;  %v6204_v40 = vor.u32 %v8297_v22, %v6201_v34  ;;  %v6175_v34 = vld [vmem:[%s11260_s2 + $0x68] sm:$0xf]  ;;  %v6152_v52 = vor.u32 %v8287_v50, %v6151_v49  ;;  %v6119_v50 = vld [vmem:[%s11260_s2] sm:$0xf] }
  0xb6   :  { %855 = vmatpush.bf16.msra.mxu1 %v6204_v40 }
  0xba   :  { %v243_v26 = vpop.f32.mrf.mxu2  ;;  %v9485_v29 = vpop.f32.mrf.mxu0  ;;  %856 = vmatpush.bf16.msra.mxu1 %v6188_v54  ;;  %v6153_v54 = vld [vmem:[%s11260_s2 + $0x50] sm:$0xf0] }
  0xbb   :  { %v9483_v27 = vadd.f32 %v243_v26, %v9458_v12  ;;  %v272_v28 = vpop.f32.mrf.mxu3  ;;  %v9490_v31 = vpop.f32.mrf.mxu1 }
  0xbc   :  { %v9488_v30 = vadd.f32 %v272_v28, %v9460_v13 }
  0xbe   :  { %857 = vmatpush.bf16.msra.mxu1 %v6172_v62 }
  0xc2   :  { %v9492_v32 = vpop.f32.mrf.mxu2  ;;  %v190_v37 = vpop.f32.mrf.mxu0 }
  0xc3   :  { %v9503_v36 = vpop.f32.mrf.mxu3  ;;  %v9515_v42 = vadd.f32 %v190_v37, %v9444_v4  ;;  %v219_v43 = vpop.f32.mrf.mxu1  ;;  %v8300_v37 = vld [vmem:[%s11260_s2 + $0xb4] sm:$0xf0] }
  0xc4   :  { %v9524_v48 = vadd.f32 %v219_v43, %v9448_v6  ;;  %v6208_v41 = vor.u32 %v8300_v37, %v6207_v35  ;;  %v8298_v43 = vld [vmem:[%s11260_s2 + $0xac] sm:$0xf]  ;;  %v8292_v35 = vld [vmem:[%s11260_s2 + $0x74] sm:$0xf0] }
  0xc5   :  { %v6212_v45 = vor.u32 %v8298_v43, %v6209_v44  ;;  %v8290_v43 = vld [vmem:[%s11260_s2 + $0x6c] sm:$0xf]  ;;  %v6177_v44 = vld [vmem:[%s11260_s2 + $0x78] sm:$0xf0] }
  0xc6   :  { %868 = vmatpush.bf16.msra.mxu2 %v6208_v41  ;;  %v6176_v41 = vor.u32 %v8292_v35, %v6175_v34  ;;  %v6180_v46 = vor.u32 %v8290_v43, %v6177_v44  ;;  %v8281_v34 = vld [vmem:[%s11260_s2 + $0x24] sm:$0xf]  ;;  %v6137_v35 = vld [vmem:[%s11260_s2 + $0x30] sm:$0xf0]  ;;  %v8282_v43 = vld [vmem:[%s11260_s2 + $0x2c] sm:$0xf] }
  0xc7   :  { %881 = vmatpush.bf16.msra.mxu3 %v6212_v45  ;;  %v6145_v44 = vld [vmem:[%s11260_s2 + $0x38] sm:$0xf0] }
  0xc8   :  { %v6148_v49 = vor.u32 %v8282_v43, %v6145_v44 }
  0xca   :  { %v248_v10 = vpop.f32.mrf.mxu2  ;;  %v9562_v28 = vpop.f32.mrf.mxu0  ;;  %869 = vmatpush.bf16.msra.mxu2 %v6192_v55  ;;  %v6156_v55 = vor.u32 %v8285_v53, %v6153_v54  ;;  %v6121_v54 = vld [vmem:[%s11260_s2 + $0x10] sm:$0xf0] }
  0xcb   :  { %v9560_v24 = vadd.f32 %v248_v10, %v9458_v12  ;;  %v277_v26 = vpop.f32.mrf.mxu3  ;;  %v9576_v39 = vpop.f32.mrf.mxu1  ;;  %v8291_v10 = vld [vmem:[%s11260_s2 + $0x6c] sm:$0xf0]  ;;  %882 = vmatpush.bf16.msra.mxu3 %v6196_v58  ;;  %v8286_v58 = vld [vmem:[%s11260_s2 + $0x4c] sm:$0xf] }
  0xcc   :  { %v9574_v38 = vadd.f32 %v277_v26, %v9460_v13  ;;  %v6168_v26 = vor.u32 %v8291_v10, %v6167_v8  ;;  %v6161_v8 = vld [vmem:[%s11260_s2 + $0x58] sm:$0xf0]  ;;  %v6135_v10 = vld [vmem:[%s11260_s2 + $0x20] sm:$0xf]  ;;  %858 = vmatpush.bf16.msra.mxu1 %v6156_v55  ;;  %v6127_v55 = vld [vmem:[%s11260_s2 + $0x8] sm:$0xf] }
  0xcd   :  { %v6136_v33 = vor.u32 %v8283_v14, %v6135_v10  ;;  %v6129_v10 = vld [vmem:[%s11260_s2 + $0x18] sm:$0xf0] }
  0xce   :  { %844 = vmatpush.bf16.msra.mxu0 %v6168_v26  ;;  %870 = vmatpush.bf16.msra.mxu2 %v6176_v41  ;;  %v6164_v26 = vor.u32 %v8286_v58, %v6161_v8  ;;  %v8284_v41 = vld [vmem:[%s11260_s2 + $0x34] sm:$0xf0]  ;;  %v8278_v8 = vld [vmem:[%s11260_s2 + $0xc] sm:$0xf] }
  0xcf   :  { %883 = vmatpush.bf16.msra.mxu3 %v6180_v46 }
  0xd2   :  { %v9610_v3 = vpop.f32.mrf.mxu2  ;;  %v524_v22 = vpop.f32.mrf.mxu0  ;;  %845 = vmatpush.bf16.msra.mxu0 %v6152_v52  ;;  %v8277_v52 = vld [vmem:[%s11260_s2 + $0x4] sm:$0xf] }
  0xd3   :  { %v9623_v61 = vpop.f32.mrf.mxu3  ;;  %v567_v37 = vadd.f32 %v524_v22, %v176_v59  ;;  %v537_v40 = vpop.f32.mrf.mxu1  ;;  %v6160_v59 = vor.u32 %v8288_v57, %v6159_v56  ;;  %884 = vmatpush.bf16.msra.mxu3 %v6164_v26  ;;  %v8280_v56 = vld [vmem:[%s11260_s2 + $0x14] sm:$0xf0] }
  0xd4   :  { %v568_v45 = vadd.f32 %v537_v40, %v205_v16  ;;  %v263_v16 = vadd.f32 %v9435_v0, %v9460_v13  ;;  %v6140_v0 = vor.u32 %v8281_v34, %v6137_v35  ;;  %v6128_v26 = vor.u32 %v8280_v56, %v6127_v55 }
  0xd5   :  { %v6114_v47 = vmul.f32 -1.442695, %v567_v37  ;;  %v6143_v37 = vld [vmem:[%s11260_s2 + $0x28] sm:$0xf]  ;;  %871 = vmatpush.bf16.msra.mxu2 %v6160_v59  ;;  %v6124_v59 = vor.u32 %v8277_v52, %v6121_v54  ;;  %v6132_v34 = vor.u32 %v8278_v8, %v6129_v10 }
  0xd6   :  { %v6115_v51 = vmul.f32 -1.442695, %v568_v45  ;;  %846 = vmatpush.bf16.msra.mxu0 %v6136_v33  ;;  %859 = vmatpush.bf16.msra.mxu1 %v6140_v0 }
  0xd7   :  { %8798 = vpow2.f32 %v6114_v47  ;;  %v6144_v47 = vor.u32 %v8284_v41, %v6143_v37  ;;  %885 = vmatpush.bf16.msra.mxu3 %v6148_v49 }
  0xd8   :  { %8800 = vpow2.f32 %v6115_v51  ;;  %v8279_v51 = vld [vmem:[%s11260_s2 + $0xc] sm:$0xf0] }
  0xd9   :  { %v6120_v53 = vor.u32 %v8279_v51, %v6119_v50  ;;  %872 = vmatpush.bf16.msra.mxu2 %v6144_v47 }
  0xda   :  { %v550_v22 = vpop.f32.mrf.mxu2  ;;  %v526_v62 = vpop.f32.mrf.mxu0  ;;  %860 = vmatpush.bf16.msra.mxu1 %v6124_v59 }
  0xdb   :  { %v563_v40 = vpop.f32.mrf.mxu3  ;;  %v539_v46 = vpop.f32.mrf.mxu1  ;;  %847 = vmatpush.bf16.msra.mxu0 %v6120_v53  ;;  %886 = vmatpush.bf16.msra.mxu3 %v6132_v34 }
  0xdc   :  { %v570_v45 = vadd.f32 %v563_v40, %v263_v16  ;;  %v234_v40 = vadd.f32 %v9433_v63, %v9458_v12 }
  0xdd   :  { %v8799_v57 = vpop.eup %8798  ;;  %873 = vmatpush.bf16.msra.mxu2 %v6128_v26 }
  0xde   :  { %v6116_v58 = vmul.f32 -1.442695, %v570_v45  ;;  %v8801_v14 = vpop.eup %8800  ;;  %v575_v16 = vadd.f32 1.0, %v8799_v57  ;;  %v569_v41 = vadd.f32 %v550_v22, %v234_v40 }
  0xdf   :  { %v594_v33 = vadd.f32 1.0, %v8801_v14 }
  0xe0   :  { %8802 = vpow2.f32 %v6116_v58  ;;  %v587_v50 = vand.u32 2147483648, %v575_v16  ;;  %v585_v53 = vand.u32 2147483647, %v575_v16  ;;  %vm581_vm3 = vweird.f32 %v575_v16 }
  0xe1   :  { %8804 = vrcp.f32 %v575_v16  ;;  %v606_v51 = vand.u32 2147483648, %v594_v33  ;;  %v604_v55 = vand.u32 2147483647, %v594_v33  ;;  %vm600_vm4 = vweird.f32 %v594_v33 }
  0xe2   :  { %8806 = vrcp.f32 %v594_v33  ;;  %v552_v35 = vpop.f32.mrf.mxu2  ;;  %v588_v22 = vor.u32 1.1754944e-38, %v587_v50  ;;  %vm586_vm6 = vcmp.eq.f32.partialorder %v585_v53, 8.507059e+37 }
  0xe3   :  { %v565_v37 = vpop.f32.mrf.mxu3  ;;  %v607_v58 = vor.u32 1.1754944e-38, %v606_v51  ;;  %vm605_vm8 = vcmp.eq.f32.partialorder %v604_v55, 8.507059e+37  ;;  %v6362_v51 = vld [vmem:[%s11260_s2 + $0xe0] sm:$0xf]  ;;  %v6370_v55 = vld [vmem:[%s11260_s2 + $0xe8] sm:$0xf] }
  0xe6   :  { %v8803_v62 = vpop.eup %8802 }
  0xe7   :  { %v8805_v0 = vpop.eup %8804  ;;  %v614_v43 = vadd.f32 1.0, %v8803_v62 }
  0xe8   :  { %v8807_v44 = vpop.eup %8806  ;;  %v577_v45 = vmul.f32 %v8805_v0, %v575_v16  ;;  %vm582_vm1 = vweird.f32 %v8805_v0 }
  0xe9   :  { %v596_v46 = vmul.f32 %v8807_v44, %v594_v33  ;;  %8808 = vrcp.f32 %v614_v43  ;;  %vm601_vm2 = vweird.f32 %v8807_v44  ;;  %vm583_vm5 = vmor %vm581_vm3, %vm582_vm1  ;;  %vm620_vm10 = vweird.f32 %v614_v43 }
  0xea   :  { %v578_v47 = vsub.f32 1.0, %v577_v45  ;;  %8810 = vtanh.f32 %v569_v41  ;;  %vm602_vm7 = vmor %vm600_vm4, %vm601_vm2  ;;  %v626_v41 = vand.u32 2147483648, %v614_v43 }
  0xeb   :  { %v597_v49 = vsub.f32 1.0, %v596_v46 }
  0xec   :  { %v579_v52 = vmul.f32 %v8805_v0, %v578_v47  ;;  %v627_v46 = vor.u32 1.1754944e-38, %v626_v41  ;;  %v6356_v41 = vld [vmem:[%s11260_s2 + $0xd8] sm:$0xf0] }
  0xed   :  { %v598_v54 = vmul.f32 %v8807_v44, %v597_v49 }
  0xee   :  { %v580_v63 = vadd.f32 %v8805_v0, %v579_v52  ;;  %v8337_v52 = vld [vmem:[%s11260_s2 + $0xe4] sm:$0xf] }
  0xef   :  { %v8809_v56 = vpop.eup %8808  ;;  %v599_v57 = vadd.f32 %v8807_v44, %v598_v54  ;;  %v6364_v54 = vld [vmem:[%s11260_s2 + $0xf0] sm:$0xf0] }
  0xf0   :  { %v584_v59 = vsel %vm583_vm5, %v8805_v0, %v580_v63  ;;  %v616_v8 = vmul.f32 %v8809_v56, %v614_v43  ;;  %v8811_v10 = vpop.eup %8810  ;;  %vm621_vm9 = vweird.f32 %v8809_v56  ;;  %v624_v0 = vand.u32 2147483647, %v614_v43  ;;  %v8339_v43 = vld [vmem:[%s11260_s2 + $0xec] sm:$0xf0]  ;;  %v8340_v63 = vld [vmem:[%s11260_s2 + $0xf4] sm:$0xf0] }
  0xf1   :  { %v589_v14 = vsel %vm586_vm6, %v588_v22, %v584_v59  ;;  %v603_v26 = vsel %vm602_vm7, %v8807_v44, %v599_v57  ;;  %vm622_vm11 = vmor %vm620_vm10, %vm621_vm9  ;;  %v6363_v53 = vor.u32 %v8339_v43, %v6362_v51  ;;  %v6371_v22 = vor.u32 %v8340_v63, %v6370_v55  ;;  %v8338_v57 = vld [vmem:[%s11260_s2 + $0xec] sm:$0xf]  ;;  %v8332_v51 = vld [vmem:[%s11260_s2 + $0xb4] sm:$0xf0] }
  0xf2   :  { %v608_v34 = vsel %vm605_vm8, %v607_v58, %v603_v26  ;;  %v631_v35 = vmul.f32 %v8811_v10, %v589_v14  ;;  %v617_v37 = vsub.f32 1.0, %v616_v8  ;;  %vm625_vm12 = vcmp.eq.f32.partialorder %v624_v0, 8.507059e+37  ;;  %v6372_v58 = vld [vmem:[%s11260_s2 + $0xf8] sm:$0xf0]  ;;  %v6346_v8 = vld [vmem:[%s11260_s2 + $0xc0] sm:$0xf] }
  0xf3   :  { %v630_v40 = vmul.f32 0.0, %v608_v34  ;;  %1166 = vmatpush.bf16.msrb.mxu0 %v6363_v53  ;;  %v6375_v59 = vor.u32 %v8338_v57, %v6372_v58  ;;  %1192 = vmatpush.bf16.msrb.mxu2 %v6371_v22  ;;  %v8335_v10 = vld [vmem:[%s11260_s2 + $0xcc] sm:$0xf0]  ;;  %v8333_v14 = vld [vmem:[%s11260_s2 + $0xc4] sm:$0xf] }
  0xf4   :  { %v618_v62 = vmul.f32 %v8809_v56, %v617_v37  ;;  %v6347_v26 = vor.u32 %v8335_v10, %v6346_v8  ;;  %v6348_v34 = vld [vmem:[%s11260_s2 + $0xd0] sm:$0xf0]  ;;  %v8336_v37 = vld [vmem:[%s11260_s2 + $0xd4] sm:$0xf0]  ;;  %v8330_v53 = vld [vmem:[%s11260_s2 + $0xac] sm:$0xf] }
  0xf5   :  { %v9716_v16 = vadd.f32 %v631_v35, %v630_v40  ;;  %1205 = vmatpush.bf16.msrb.mxu3 %v6375_v59  ;;  %v6354_v35 = vld [vmem:[%s11260_s2 + $0xc8] sm:$0xf]  ;;  %v6351_v40 = vor.u32 %v8333_v14, %v6348_v34  ;;  %v6314_v63 = vld [vmem:[%s11260_s2 + $0x80] sm:$0xf]  ;;  %v8325_v22 = vld [vmem:[%s11260_s2 + $0x84] sm:$0xf] }
  0xf6   :  { %v619_v33 = vadd.f32 %v8809_v56, %v618_v62  ;;  %v6355_v62 = vor.u32 %v8336_v37, %v6354_v35  ;;  %v6316_v58 = vld [vmem:[%s11260_s2 + $0x90] sm:$0xf0]  ;;  %v6322_v59 = vld [vmem:[%s11260_s2 + $0x88] sm:$0xf]  ;;  %v8328_v8 = vld [vmem:[%s11260_s2 + $0x94] sm:$0xf0] }
  0xf7   :  { %8812 = vtanh.f32 %v9716_v16  ;;  %1167 = vmatpush.bf16.msrb.mxu0 %v6347_v26  ;;  %v6319_v10 = vor.u32 %v8325_v22, %v6316_v58  ;;  %v6323_v14 = vor.u32 %v8328_v8, %v6322_v59  ;;  %v8326_v26 = vld [vmem:[%s11260_s2 + $0x8c] sm:$0xf]  ;;  %v6324_v34 = vld [vmem:[%s11260_s2 + $0x98] sm:$0xf0]  ;;  %v6298_v37 = vld [vmem:[%s11260_s2 + $0x60] sm:$0xf] }
  0xf8   :  { %v623_v45 = vsel %vm622_vm11, %v8809_v56, %v619_v33  ;;  %v6367_v56 = vor.u32 %v8337_v52, %v6364_v54  ;;  %v8334_v33 = vld [vmem:[%s11260_s2 + $0xcc] sm:$0xf]  ;;  %1193 = vmatpush.bf16.msrb.mxu2 %v6355_v62  ;;  %v6340_v54 = vld [vmem:[%s11260_s2 + $0xb8] sm:$0xf0]  ;;  %v6327_v35 = vor.u32 %v8326_v26, %v6324_v34  ;;  %v8321_v62 = vld [vmem:[%s11260_s2 + $0x64] sm:$0xf] }
  0xf9   :  { %v628_v47 = vsel %vm625_vm12, %v627_v46, %v623_v45  ;;  %v6359_v0 = vor.u32 %v8334_v33, %v6356_v41  ;;  %v6330_v45 = vld [vmem:[%s11260_s2 + $0xa0] sm:$0xf]  ;;  %v8331_v46 = vld [vmem:[%s11260_s2 + $0xac] sm:$0xf0]  ;;  %v6343_v55 = vor.u32 %v8330_v53, %v6340_v54  ;;  %v178_v33 = vadd.f32 %v9437_v1, %v9444_v4  ;;  %v6284_v58 = vld [vmem:[%s11260_s2 + $0x50] sm:$0xf0] }
  0xfa   :  { %1179 = vmatpush.bf16.msrb.mxu1 %v6367_v56  ;;  %v8327_v56 = vld [vmem:[%s11260_s2 + $0x8c] sm:$0xf0]  ;;  %v207_v41 = vadd.f32 %v9439_v2, %v9448_v6  ;;  %v8322_v2 = vld [vmem:[%s11260_s2 + $0x6c] sm:$0xf]  ;;  %v6282_v54 = vld [vmem:[%s11260_s2 + $0x40] sm:$0xf] }
  0xfb   :  { %1206 = vmatpush.bf16.msrb.mxu3 %v6359_v0  ;;  %v6315_v57 = vor.u32 %v8327_v56, %v6314_v63  ;;  %v8317_v63 = vld [vmem:[%s11260_s2 + $0x44] sm:$0xf]  ;;  %v6290_v8 = vld [vmem:[%s11260_s2 + $0x48] sm:$0xf]  ;;  %v6292_v34 = vld [vmem:[%s11260_s2 + $0x58] sm:$0xf0] }
  0xfc   :  { %v6287_v59 = vor.u32 %v8317_v63, %v6284_v58 }
  0xfd   :  { %v8813_v44 = vpop.eup %8812 }
  0xfe   :  { %v634_v49 = vmul.f32 %v8813_v44, %v628_v47  ;;  %1180 = vmatpush.bf16.msrb.mxu1 %v6351_v40  ;;  %v8329_v44 = vld [vmem:[%s11260_s2 + $0xa4] sm:$0xf]  ;;  %v6331_v47 = vor.u32 %v8331_v46, %v6330_v45  ;;  %v8323_v40 = vld [vmem:[%s11260_s2 + $0x6c] sm:$0xf0]  ;;  %v6300_v45 = vld [vmem:[%s11260_s2 + $0x70] sm:$0xf0] }
  0xff   :  { %1207 = vmatpush.bf16.msrb.mxu3 %v6343_v55  ;;  %v6299_v0 = vor.u32 %v8323_v40, %v6298_v37  ;;  %v6306_v46 = vld [vmem:[%s11260_s2 + $0x68] sm:$0xf]  ;;  %v6303_v1 = vor.u32 %v8321_v62, %v6300_v45  ;;  %v8319_v55 = vld [vmem:[%s11260_s2 + $0x4c] sm:$0xf0]  ;;  %v265_v40 = vadd.f32 %v9450_v7, %v9460_v13 }
 0x100   :  { %v637_v50 = vpack.c.bf16 %v634_v49, %v634_v49  ;;  %v6332_v49 = vld [vmem:[%s11260_s2 + $0xb0] sm:$0xf0]  ;;  %1168 = vmatpush.bf16.msrb.mxu0 %v6331_v47  ;;  %v8315_v37 = vld [vmem:[%s11260_s2 + $0x2c] sm:$0xf0]  ;;  %v6274_v45 = vld [vmem:[%s11260_s2 + $0x28] sm:$0xf] }
 0x101   :  { %v6335_v43 = vor.u32 %v8329_v44, %v6332_v49  ;;  %v8324_v44 = vld [vmem:[%s11260_s2 + $0x74] sm:$0xf0] }
 0x102   :  { %638 = vst [vmem:[#allocation7] sm:$0xf] %v637_v50  ;;  %848 = vmatmul.bf16.vlgmr.msra.gmra.mxu0 %v637_v50  ;;  %861 = vmatmul.bf16.vlgmr.msra.gmra.mxu1 %v637_v50 }
 0x103   :  { %874 = vmatmul.bf16.vlgmr.msra.gmra.mxu2 %v637_v50  ;;  %887 = vmatmul.bf16.vlgmr.msra.gmra.mxu3 %v637_v50  ;;  %v6338_v50 = vld [vmem:[%s11260_s2 + $0xa8] sm:$0xf] }
 0x104   :  { %v6339_v52 = vor.u32 %v8332_v51, %v6338_v50  ;;  %1181 = vmatpush.bf16.msrb.mxu1 %v6335_v43  ;;  %1169 = vmatpush.bf16.msrb.mxu0 %v6315_v57  ;;  %v6307_v50 = vor.u32 %v8324_v44, %v6306_v46  ;;  %v6308_v51 = vld [vmem:[%s11260_s2 + $0x78] sm:$0xf0]  ;;  %v6283_v57 = vor.u32 %v8319_v55, %v6282_v54  ;;  %v8311_v54 = vld [vmem:[%s11260_s2 + $0xc] sm:$0xf0]  ;;  %v8309_v55 = vld [vmem:[%s11260_s2 + $0x4] sm:$0xf] }
 0x105   :  { %1208 = vmatpush.bf16.msrb.mxu3 %v6327_v35  ;;  %v6311_v53 = vor.u32 %v8322_v2, %v6308_v51  ;;  %v6266_v35 = vld [vmem:[%s11260_s2 + $0x20] sm:$0xf] }
 0x106   :  { %1194 = vmatpush.bf16.msrb.mxu2 %v6339_v52 }
 0x108   :  { %1182 = vmatpush.bf16.msrb.mxu1 %v6319_v10  ;;  %1170 = vmatpush.bf16.msrb.mxu0 %v6299_v0  ;;  %v8320_v10 = vld [vmem:[%s11260_s2 + $0x54] sm:$0xf0]  ;;  %v6268_v0 = vld [vmem:[%s11260_s2 + $0x30] sm:$0xf0] }
 0x109   :  { %1209 = vmatpush.bf16.msrb.mxu3 %v6311_v53  ;;  %v6291_v26 = vor.u32 %v8320_v10, %v6290_v8  ;;  %v6250_v53 = vld [vmem:[%s11260_s2] sm:$0xf]  ;;  %v8310_v8 = vld [vmem:[%s11260_s2 + $0xc] sm:$0xf]  ;;  %v6260_v10 = vld [vmem:[%s11260_s2 + $0x18] sm:$0xf0] }
 0x10a   :  { %1195 = vmatpush.bf16.msrb.mxu2 %v6323_v14  ;;  %v8318_v14 = vld [vmem:[%s11260_s2 + $0x4c] sm:$0xf]  ;;  %v6251_v63 = vor.u32 %v8311_v54, %v6250_v53 }
 0x10b   :  { %v6295_v62 = vor.u32 %v8318_v14, %v6292_v34 }
 0x10c   :  { %1183 = vmatpush.bf16.msrb.mxu1 %v6303_v1  ;;  %1171 = vmatpush.bf16.msrb.mxu0 %v6283_v57  ;;  %v6276_v1 = vld [vmem:[%s11260_s2 + $0x38] sm:$0xf0]  ;;  %v8312_v57 = vld [vmem:[%s11260_s2 + $0x14] sm:$0xf0] }
 0x10d   :  { %1210 = vmatpush.bf16.msrb.mxu3 %v6295_v62 }
 0x10e   :  { %1196 = vmatpush.bf16.msrb.mxu2 %v6307_v50 }
 0x110   :  { %1184 = vmatpush.bf16.msrb.mxu1 %v6287_v59 }
 0x112   :  { %1197 = vmatpush.bf16.msrb.mxu2 %v6291_v26 }
 0x17f   :  { %v849_v47 = vpop.f32.mrf.mxu0  ;;  %v862_v49 = vpop.f32.mrf.mxu1 }
 0x180   :  { %v892_v43 = vadd.f32 %v849_v47, %v178_v33  ;;  %v893_v52 = vadd.f32 %v862_v49, %v207_v41  ;;  %v6267_v33 = vor.u32 %v8315_v37, %v6266_v35  ;;  %v8313_v41 = vld [vmem:[%s11260_s2 + $0x24] sm:$0xf]  ;;  %v8316_v47 = vld [vmem:[%s11260_s2 + $0x34] sm:$0xf0]  ;;  %v8314_v49 = vld [vmem:[%s11260_s2 + $0x2c] sm:$0xf]  ;;  %v6263_v37 = vor.u32 %v8310_v8, %v6260_v10 }
 0x181   :  { %v6271_v7 = vor.u32 %v8313_v41, %v6268_v0  ;;  %v236_v0 = vadd.f32 %v9446_v5, %v9458_v12 }
 0x182   :  { %v6245_v56 = vmul.f32 -1.442695, %v892_v43  ;;  %v6246_v22 = vmul.f32 -1.442695, %v893_v52  ;;  %v6275_v43 = vor.u32 %v8316_v47, %v6274_v45  ;;  %v6279_v52 = vor.u32 %v8314_v49, %v6276_v1  ;;  %1172 = vmatpush.bf16.msrb.mxu0 %v6267_v33 }
 0x183   :  { %1185 = vmatpush.bf16.msrb.mxu1 %v6271_v7 }
 0x184   :  { %8814 = vpow2.f32 %v6245_v56  ;;  %v6252_v56 = vld [vmem:[%s11260_s2 + $0x10] sm:$0xf0]  ;;  %1198 = vmatpush.bf16.msrb.mxu2 %v6275_v43  ;;  %1211 = vmatpush.bf16.msrb.mxu3 %v6279_v52 }
 0x185   :  { %8816 = vpow2.f32 %v6246_v22  ;;  %v6258_v22 = vld [vmem:[%s11260_s2 + $0x8] sm:$0xf]  ;;  %v6255_v59 = vor.u32 %v8309_v55, %v6252_v56 }
 0x186   :  { %v875_v46 = vpop.f32.mrf.mxu2  ;;  %v888_v44 = vpop.f32.mrf.mxu3  ;;  %v6259_v26 = vor.u32 %v8312_v57, %v6258_v22  ;;  %1173 = vmatpush.bf16.msrb.mxu0 %v6251_v63 }
 0x187   :  { %v895_v50 = vadd.f32 %v888_v44, %v265_v40  ;;  %v851_v2 = vpop.f32.mrf.mxu0  ;;  %v864_v51 = vpop.f32.mrf.mxu1  ;;  %1186 = vmatpush.bf16.msrb.mxu1 %v6255_v59  ;;  %v894_v7 = vadd.f32 %v875_v46, %v236_v0 }
 0x188   :  { %1199 = vmatpush.bf16.msrb.mxu2 %v6259_v26  ;;  %1212 = vmatpush.bf16.msrb.mxu3 %v6263_v37 }
 0x189   :  { %v6247_v58 = vmul.f32 -1.442695, %v895_v50 }
 0x18a   :  { %v8815_v14 = vpop.eup %8814 }
 0x18b   :  { %v8817_v34 = vpop.eup %8816  ;;  %v900_v35 = vadd.f32 1.0, %v8815_v14  ;;  %8818 = vpow2.f32 %v6247_v58 }
 0x18c   :  { %v919_v40 = vadd.f32 1.0, %v8817_v34 }
 0x18d   :  { %8820 = vrcp.f32 %v900_v35  ;;  %v912_v51 = vand.u32 2147483648, %v900_v35  ;;  %v910_v53 = vand.u32 2147483647, %v900_v35  ;;  %vm906_vm15 = vweird.f32 %v900_v35 }
 0x18e   :  { %8822 = vrcp.f32 %v919_v40  ;;  %v877_v62 = vpop.f32.mrf.mxu2  ;;  %v890_v33 = vpop.f32.mrf.mxu3  ;;  %v931_v43 = vand.u32 2147483648, %v919_v40  ;;  %v929_v55 = vand.u32 2147483647, %v919_v40  ;;  %vm925_vm0 = vweird.f32 %v919_v40 }
 0x18f   :  { %v913_v46 = vor.u32 1.1754944e-38, %v912_v51  ;;  %vm911_vm3 = vcmp.eq.f32.partialorder %v910_v53, 8.507059e+37  ;;  %v6495_v51 = vld [vmem:[%s11260_s2 + $0xf0] sm:$0xf0] }
 0x190   :  { %v932_v57 = vor.u32 1.1754944e-38, %v931_v43  ;;  %vm930_vm4 = vcmp.eq.f32.partialorder %v929_v55, 8.507059e+37  ;;  %v6501_v43 = vld [vmem:[%s11260_s2 + $0xe8] sm:$0xf]  ;;  %v8370_v55 = vld [vmem:[%s11260_s2 + $0xec] sm:$0xf] }
 0x191   :  { %v8819_v41 = vpop.eup %8818 }
 0x192   :  { %v939_v45 = vadd.f32 1.0, %v8819_v41 }
 0x193   :  { %v8821_v44 = vpop.eup %8820 }
 0x194   :  { %v8823_v47 = vpop.eup %8822  ;;  %v902_v49 = vmul.f32 %v8821_v44, %v900_v35  ;;  %8824 = vrcp.f32 %v939_v45  ;;  %vm907_vm13 = vweird.f32 %v8821_v44  ;;  %v951_v33 = vand.u32 2147483648, %v939_v45 }
 0x195   :  { %v921_v1 = vmul.f32 %v8823_v47, %v919_v40  ;;  %8826 = vtanh.f32 %v894_v7  ;;  %vm926_vm14 = vweird.f32 %v8823_v47  ;;  %vm908_vm1 = vmor %vm906_vm15, %vm907_vm13  ;;  %vm945_vm6 = vweird.f32 %v939_v45 }
 0x196   :  { %v903_v50 = vsub.f32 1.0, %v902_v49  ;;  %vm927_vm2 = vmor %vm925_vm0, %vm926_vm14  ;;  %v949_v41 = vand.u32 2147483647, %v939_v45 }
 0x197   :  { %v922_v2 = vsub.f32 1.0, %v921_v1 }
 0x198   :  { %v904_v52 = vmul.f32 %v8821_v44, %v903_v50  ;;  %vm950_vm8 = vcmp.eq.f32.partialorder %v949_v41, 8.507059e+37  ;;  %v8369_v50 = vld [vmem:[%s11260_s2 + $0xe4] sm:$0xf] }
 0x199   :  { %v923_v54 = vmul.f32 %v8823_v47, %v922_v2  ;;  %v6498_v53 = vor.u32 %v8369_v50, %v6495_v51  ;;  %v6445_v50 = vld [vmem:[%s11260_s2 + $0x80] sm:$0xf]  ;;  %v8357_v51 = vld [vmem:[%s11260_s2 + $0x84] sm:$0xf] }
 0x19a   :  { %v8825_v63 = vpop.eup %8824  ;;  %v905_v5 = vadd.f32 %v8821_v44, %v904_v52  ;;  %v8372_v52 = vld [vmem:[%s11260_s2 + $0xf4] sm:$0xf0] }
 0x19b   :  { %v924_v56 = vadd.f32 %v8823_v47, %v923_v54  ;;  %v941_v22 = vmul.f32 %v8825_v63, %v939_v45  ;;  %v8827_v59 = vpop.eup %8826  ;;  %vm946_vm5 = vweird.f32 %v8825_v63  ;;  %v8371_v45 = vld [vmem:[%s11260_s2 + $0xec] sm:$0xf0]  ;;  %v6502_v54 = vor.u32 %v8372_v52, %v6501_v43  ;;  %1505 = vmatpush.bf16.msra.mxu1 %v6498_v53  ;;  %v6447_v52 = vld [vmem:[%s11260_s2 + $0x90] sm:$0xf0]  ;;  %v6453_v53 = vld [vmem:[%s11260_s2 + $0x88] sm:$0xf] }
 0x19c   :  { %v909_v58 = vsel %vm908_vm1, %v8821_v44, %v905_v5  ;;  %vm947_vm7 = vmor %vm945_vm6, %vm946_vm5  ;;  %v952_v44 = vor.u32 1.1754944e-38, %v951_v33  ;;  %v8361_v33 = vld [vmem:[%s11260_s2 + $0xa4] sm:$0xf] }
 0x19d   :  { %v914_v8 = vsel %vm911_vm3, %v913_v46, %v909_v58  ;;  %v928_v10 = vsel %vm927_vm2, %v8823_v47, %v924_v56  ;;  %v942_v14 = vsub.f32 1.0, %v941_v22  ;;  %1518 = vmatpush.bf16.msra.mxu2 %v6502_v54  ;;  %v6477_v46 = vld [vmem:[%s11260_s2 + $0xc0] sm:$0xf]  ;;  %v8367_v56 = vld [vmem:[%s11260_s2 + $0xcc] sm:$0xf0] }
 0x19e   :  { %v933_v26 = vsel %vm930_vm4, %v932_v57, %v928_v10  ;;  %v956_v34 = vmul.f32 %v8827_v59, %v914_v8  ;;  %v8365_v22 = vld [vmem:[%s11260_s2 + $0xc4] sm:$0xf]  ;;  %v6478_v57 = vor.u32 %v8367_v56, %v6477_v46  ;;  %v6479_v58 = vld [vmem:[%s11260_s2 + $0xd0] sm:$0xf0]  ;;  %v6485_v59 = vld [vmem:[%s11260_s2 + $0xc8] sm:$0xf] }
 0x19f   :  { %v955_v37 = vmul.f32 %v933_v26, %v9716_v16  ;;  %v943_v62 = vmul.f32 %v8825_v63, %v942_v14  ;;  %v6493_v16 = vld [vmem:[%s11260_s2 + $0xe0] sm:$0xf]  ;;  %v8368_v8 = vld [vmem:[%s11260_s2 + $0xd4] sm:$0xf0]  ;;  %v6482_v10 = vor.u32 %v8365_v22, %v6479_v58  ;;  %v8366_v26 = vld [vmem:[%s11260_s2 + $0xcc] sm:$0xf] }
 0x1a0   :  { %v6494_v2 = vor.u32 %v8371_v45, %v6493_v16  ;;  %v6486_v14 = vor.u32 %v8368_v8, %v6485_v59  ;;  %v6471_v16 = vld [vmem:[%s11260_s2 + $0xb8] sm:$0xf0]  ;;  %v8360_v54 = vld [vmem:[%s11260_s2 + $0x94] sm:$0xf0]  ;;  %v6429_v22 = vld [vmem:[%s11260_s2 + $0x60] sm:$0xf] }
 0x1a1   :  { %v9920_v35 = vadd.f32 %v956_v34, %v955_v37  ;;  %v944_v40 = vadd.f32 %v8825_v63, %v943_v62  ;;  %v6487_v34 = vld [vmem:[%s11260_s2 + $0xd8] sm:$0xf0]  ;;  %1506 = vmatpush.bf16.msra.mxu1 %v6482_v10  ;;  %v6461_v62 = vld [vmem:[%s11260_s2 + $0xa0] sm:$0xf]  ;;  %v8353_v58 = vld [vmem:[%s11260_s2 + $0x64] sm:$0xf] }
 0x1a2   :  { %1492 = vmatpush.bf16.msra.mxu0 %v6494_v2  ;;  %v6490_v37 = vor.u32 %v8366_v26, %v6487_v34  ;;  %1519 = vmatpush.bf16.msra.mxu2 %v6486_v14  ;;  %v8359_v2 = vld [vmem:[%s11260_s2 + $0x8c] sm:$0xf0]  ;;  %v6455_v46 = vld [vmem:[%s11260_s2 + $0x98] sm:$0xf0]  ;;  %v6431_v8 = vld [vmem:[%s11260_s2 + $0x70] sm:$0xf0] }
 0x1a3   :  { %8828 = vtanh.f32 %v9920_v35  ;;  %v948_v0 = vsel %vm947_vm7, %v8825_v63, %v944_v40  ;;  %v6503_v63 = vld [vmem:[%s11260_s2 + $0xf8] sm:$0xf0]  ;;  %v8363_v40 = vld [vmem:[%s11260_s2 + $0xac] sm:$0xf0]  ;;  %v6446_v43 = vor.u32 %v8359_v2, %v6445_v50  ;;  %v6437_v10 = vld [vmem:[%s11260_s2 + $0x68] sm:$0xf] }
 0x1a4   :  { %v953_v47 = vsel %vm950_vm8, %v952_v44, %v948_v0  ;;  %v6506_v5 = vor.u32 %v8370_v55, %v6503_v63  ;;  %v6462_v41 = vor.u32 %v8363_v40, %v6461_v62  ;;  %v6463_v0 = vld [vmem:[%s11260_s2 + $0xb0] sm:$0xf0]  ;;  %v6469_v44 = vld [vmem:[%s11260_s2 + $0xa8] sm:$0xf]  ;;  %v6450_v55 = vor.u32 %v8357_v51, %v6447_v52  ;;  %v8356_v14 = vld [vmem:[%s11260_s2 + $0x74] sm:$0xf0] }
 0x1a5   :  { %v6454_v63 = vor.u32 %v8360_v54, %v6453_v53  ;;  %v6438_v62 = vor.u32 %v8356_v14, %v6437_v10  ;;  %v8354_v40 = vld [vmem:[%s11260_s2 + $0x6c] sm:$0xf]  ;;  %v6421_v50 = vld [vmem:[%s11260_s2 + $0x48] sm:$0xf]  ;;  %v8352_v2 = vld [vmem:[%s11260_s2 + $0x54] sm:$0xf0] }
 0x1a6   :  { %1531 = vmatpush.bf16.msra.mxu3 %v6506_v5  ;;  %1493 = vmatpush.bf16.msra.mxu0 %v6478_v57  ;;  %v8358_v5 = vld [vmem:[%s11260_s2 + $0x8c] sm:$0xf]  ;;  %v8355_v57 = vld [vmem:[%s11260_s2 + $0x6c] sm:$0xf0]  ;;  %v6423_v52 = vld [vmem:[%s11260_s2 + $0x58] sm:$0xf0] }
 0x1a7   :  { %v6458_v56 = vor.u32 %v8358_v5, %v6455_v46  ;;  %v6430_v59 = vor.u32 %v8355_v57, %v6429_v22  ;;  %v8350_v51 = vld [vmem:[%s11260_s2 + $0x4c] sm:$0xf]  ;;  %v6397_v53 = vld [vmem:[%s11260_s2 + $0x20] sm:$0xf]  ;;  %v8347_v54 = vld [vmem:[%s11260_s2 + $0x2c] sm:$0xf0] }
 0x1a8   :  { %v8345_v5 = vld [vmem:[%s11260_s2 + $0x24] sm:$0xf]  ;;  %v6399_v46 = vld [vmem:[%s11260_s2 + $0x30] sm:$0xf0]  ;;  %v6407_v10 = vld [vmem:[%s11260_s2 + $0x38] sm:$0xf0] }
 0x1a9   :  { %v8829_v7 = vpop.eup %8828 }
 0x1aa   :  { %v959_v49 = vmul.f32 %v8829_v7, %v953_v47  ;;  %1532 = vmatpush.bf16.msra.mxu3 %v6490_v37  ;;  %v8364_v7 = vld [vmem:[%s11260_s2 + $0xb4] sm:$0xf0]  ;;  %v6466_v47 = vor.u32 %v8361_v33, %v6463_v0  ;;  %1494 = vmatpush.bf16.msra.mxu0 %v6462_v41  ;;  %v6434_v37 = vor.u32 %v8353_v58, %v6431_v8  ;;  %v6439_v33 = vld [vmem:[%s11260_s2 + $0x78] sm:$0xf0]  ;;  %v8346_v8 = vld [vmem:[%s11260_s2 + $0x2c] sm:$0xf] }
 0x1ab   :  { %v6402_v58 = vor.u32 %v8345_v5, %v6399_v46 }
 0x1ac   :  { %v962_v1 = vpack.c.bf16 %v959_v49, %v959_v49  ;;  %v6470_v49 = vor.u32 %v8364_v7, %v6469_v44  ;;  %1507 = vmatpush.bf16.msra.mxu1 %v6466_v47  ;;  %v6442_v44 = vor.u32 %v8354_v40, %v6439_v33  ;;  %v6413_v7 = vld [vmem:[%s11260_s2 + $0x40] sm:$0xf]  ;;  %v8351_v47 = vld [vmem:[%s11260_s2 + $0x4c] sm:$0xf0] }
 0x1ad   :  { %v6381_v40 = vld [vmem:[%s11260_s2] sm:$0xf]  ;;  %v8343_v33 = vld [vmem:[%s11260_s2 + $0xc] sm:$0xf0] }
 0x1ae   :  { %964 = vst [vmem:[#allocation7 + $0x4] sm:$0xf] %v962_v1  ;;  %1174 = vmatmul.bf16.vlgmr.msrb.gmra.mxu0 %v962_v1  ;;  %1187 = vmatmul.bf16.vlgmr.msrb.gmra.mxu1 %v962_v1 }
 0x1af   :  { %1200 = vmatmul.bf16.vlgmr.msrb.gmra.mxu2 %v962_v1  ;;  %1213 = vmatmul.bf16.vlgmr.msrb.gmra.mxu3 %v962_v1  ;;  %v8362_v1 = vld [vmem:[%s11260_s2 + $0xac] sm:$0xf] }
 0x1b0   :  { %v6474_v45 = vor.u32 %v8362_v1, %v6471_v16  ;;  %1520 = vmatpush.bf16.msra.mxu2 %v6470_v49  ;;  %1495 = vmatpush.bf16.msra.mxu0 %v6446_v43  ;;  %v8349_v49 = vld [vmem:[%s11260_s2 + $0x44] sm:$0xf]  ;;  %v6415_v16 = vld [vmem:[%s11260_s2 + $0x50] sm:$0xf0]  ;;  %v6422_v43 = vor.u32 %v8352_v2, %v6421_v50 }
 0x1b1   :  { %1508 = vmatpush.bf16.msra.mxu1 %v6450_v55  ;;  %v6426_v55 = vor.u32 %v8350_v51, %v6423_v52 }
 0x1b2   :  { %1533 = vmatpush.bf16.msra.mxu3 %v6474_v45  ;;  %v6418_v45 = vor.u32 %v8349_v49, %v6415_v16 }
 0x1b4   :  { %1521 = vmatpush.bf16.msra.mxu2 %v6454_v63  ;;  %1496 = vmatpush.bf16.msra.mxu0 %v6430_v59  ;;  %v6398_v63 = vor.u32 %v8347_v54, %v6397_v53  ;;  %v8348_v59 = vld [vmem:[%s11260_s2 + $0x34] sm:$0xf0] }
 0x1b5   :  { %1509 = vmatpush.bf16.msra.mxu1 %v6434_v37 }
 0x1b6   :  { %1534 = vmatpush.bf16.msra.mxu3 %v6458_v56  ;;  %v6405_v56 = vld [vmem:[%s11260_s2 + $0x28] sm:$0xf] }
 0x1b7   :  { %v6406_v37 = vor.u32 %v8348_v59, %v6405_v56 }
 0x1b8   :  { %1522 = vmatpush.bf16.msra.mxu2 %v6438_v62  ;;  %v6410_v62 = vor.u32 %v8346_v8, %v6407_v10 }
 0x1b9   :  { %1510 = vmatpush.bf16.msra.mxu1 %v6418_v45 }
 0x1ba   :  { %1535 = vmatpush.bf16.msra.mxu3 %v6442_v44  ;;  %v6389_v44 = vld [vmem:[%s11260_s2 + $0x8] sm:$0xf] }
 0x1bc   :  { %1523 = vmatpush.bf16.msra.mxu2 %v6422_v43 }
 0x1bd   :  { %1511 = vmatpush.bf16.msra.mxu1 %v6402_v58 }
 0x1be   :  { %1536 = vmatpush.bf16.msra.mxu3 %v6426_v55 }
 0x1c0   :  { %1524 = vmatpush.bf16.msra.mxu2 %v6406_v37 }
 0x1c2   :  { %1537 = vmatpush.bf16.msra.mxu3 %v6410_v62 }
 0x22b   :  { %v1175_v26 = vpop.f32.mrf.mxu0  ;;  %v1188_v34 = vpop.f32.mrf.mxu1 }
 0x22c   :  { %v1218_v41 = vadd.f32 %v1175_v26, %v9453_v9  ;;  %v1219_v0 = vadd.f32 %v1188_v34, %v9456_v11  ;;  %v6414_v11 = vor.u32 %v8351_v47, %v6413_v7  ;;  %v8344_v7 = vld [vmem:[%s11260_s2 + $0x14] sm:$0xf0] }
 0x22d   :  { %v6390_v16 = vor.u32 %v8344_v7, %v6389_v44 }
 0x22e   :  { %v6376_v1 = vmul.f32 -1.442695, %v1218_v41  ;;  %v6377_v9 = vmul.f32 -1.442695, %v1219_v0  ;;  %1497 = vmatpush.bf16.msra.mxu0 %v6414_v11  ;;  %v8341_v41 = vld [vmem:[%s11260_s2 + $0x4] sm:$0xf]  ;;  %v6382_v0 = vor.u32 %v8343_v33, %v6381_v40 }
 0x22f   :  { %1525 = vmatpush.bf16.msra.mxu2 %v6390_v16 }
 0x230   :  { %8830 = vpow2.f32 %v6376_v1  ;;  %v8342_v1 = vld [vmem:[%s11260_s2 + $0xc] sm:$0xf] }
 0x231   :  { %8832 = vpow2.f32 %v6377_v9  ;;  %v6391_v9 = vld [vmem:[%s11260_s2 + $0x18] sm:$0xf0] }
 0x232   :  { %v1201_v22 = vpop.f32.mrf.mxu2  ;;  %v1214_v57 = vpop.f32.mrf.mxu3  ;;  %1498 = vmatpush.bf16.msra.mxu0 %v6398_v63  ;;  %v6394_v2 = vor.u32 %v8342_v1, %v6391_v9 }
 0x233   :  { %v1221_v14 = vadd.f32 %v1214_v57, %v9468_v18  ;;  %v1177_v26 = vpop.f32.mrf.mxu0  ;;  %v1190_v34 = vpop.f32.mrf.mxu1  ;;  %v6383_v18 = vld [vmem:[%s11260_s2 + $0x10] sm:$0xf0]  ;;  %v1220_v63 = vadd.f32 %v1201_v22, %v9463_v15 }
 0x234   :  { %v6386_v49 = vor.u32 %v8341_v41, %v6383_v18  ;;  %1538 = vmatpush.bf16.msra.mxu3 %v6394_v2 }
 0x235   :  { %v6378_v47 = vmul.f32 -1.442695, %v1221_v14 }
 0x236   :  { %v8831_v11 = vpop.eup %8830  ;;  %1499 = vmatpush.bf16.msra.mxu0 %v6382_v0  ;;  %1512 = vmatpush.bf16.msra.mxu1 %v6386_v49 }
 0x237   :  { %v8833_v45 = vpop.eup %8832  ;;  %v1226_v50 = vadd.f32 1.0, %v8831_v11  ;;  %8834 = vpow2.f32 %v6378_v47 }
 0x238   :  { %v1245_v51 = vadd.f32 1.0, %v8833_v45 }
 0x239   :  { %8836 = vrcp.f32 %v1226_v50  ;;  %v1238_v59 = vand.u32 2147483648, %v1226_v50  ;;  %v1236_v14 = vand.u32 2147483647, %v1226_v50  ;;  %vm1232_vm11 = vweird.f32 %v1226_v50 }
 0x23a   :  { %8838 = vrcp.f32 %v1245_v51  ;;  %v1203_v43 = vpop.f32.mrf.mxu2  ;;  %v1216_v52 = vpop.f32.mrf.mxu3  ;;  %v1257_v8 = vand.u32 2147483648, %v1245_v51  ;;  %v1255_v34 = vand.u32 2147483647, %v1245_v51  ;;  %vm1251_vm12 = vweird.f32 %v1245_v51 }
 0x23b   :  { %v1239_v15 = vor.u32 1.1754944e-38, %v1238_v59  ;;  %vm1237_vm15 = vcmp.eq.f32.partialorder %v1236_v14, 8.507059e+37 }
 0x23c   :  { %v1258_v33 = vor.u32 1.1754944e-38, %v1257_v8  ;;  %vm1256_vm0 = vcmp.eq.f32.partialorder %v1255_v34, 8.507059e+37  ;;  %v8402_v8 = vld [vmem:[%s11260_s2 + $0xec] sm:$0xf]  ;;  %v8399_v34 = vld [vmem:[%s11260_s2 + $0xcc] sm:$0xf0] }
 0x23d   :  { %v8835_v53 = vpop.eup %8834 }
 0x23e   :  { %v1265_v54 = vadd.f32 1.0, %v8835_v53 }
 0x23f   :  { %v8837_v55 = vpop.eup %8836 }
 0x240   :  { %v8839_v5 = vpop.eup %8838  ;;  %v1228_v46 = vmul.f32 %v8837_v55, %v1226_v50  ;;  %8840 = vrcp.f32 %v1265_v54  ;;  %vm1233_vm9 = vweird.f32 %v8837_v55  ;;  %v1277_v45 = vand.u32 2147483648, %v1265_v54 }
 0x241   :  { %v1247_v56 = vmul.f32 %v8839_v5, %v1245_v51  ;;  %8842 = vtanh.f32 %v1220_v63  ;;  %vm1252_vm10 = vweird.f32 %v8839_v5  ;;  %vm1234_vm13 = vmor %vm1232_vm11, %vm1233_vm9  ;;  %vm1271_vm2 = vweird.f32 %v1265_v54  ;;  %v8401_v63 = vld [vmem:[%s11260_s2 + $0xe4] sm:$0xf] }
 0x242   :  { %v1229_v57 = vsub.f32 1.0, %v1228_v46  ;;  %vm1253_vm14 = vmor %vm1251_vm12, %vm1252_vm10  ;;  %v1275_v50 = vand.u32 2147483647, %v1265_v54  ;;  %v1278_v51 = vor.u32 1.1754944e-38, %v1277_v45  ;;  %v6626_v46 = vld [vmem:[%s11260_s2 + $0xf0] sm:$0xf0] }
 0x243   :  { %v1248_v58 = vsub.f32 1.0, %v1247_v56  ;;  %v6632_v56 = vld [vmem:[%s11260_s2 + $0xe8] sm:$0xf]  ;;  %v8396_v45 = vld [vmem:[%s11260_s2 + $0xb4] sm:$0xf0] }
 0x244   :  { %v1230_v10 = vmul.f32 %v8837_v55, %v1229_v57  ;;  %vm1276_vm4 = vcmp.eq.f32.partialorder %v1275_v50, 8.507059e+37  ;;  %v8404_v57 = vld [vmem:[%s11260_s2 + $0xf4] sm:$0xf0] }
 0x245   :  { %v1249_v26 = vmul.f32 %v8839_v5, %v1248_v58  ;;  %v6629_v58 = vor.u32 %v8401_v63, %v6626_v46  ;;  %v6633_v59 = vor.u32 %v8404_v57, %v6632_v56  ;;  %v6578_v63 = vld [vmem:[%s11260_s2 + $0x90] sm:$0xf0]  ;;  %v8392_v46 = vld [vmem:[%s11260_s2 + $0x94] sm:$0xf0] }
 0x246   :  { %v8841_v37 = vpop.eup %8840  ;;  %v1231_v62 = vadd.f32 %v8837_v55, %v1230_v10  ;;  %v6634_v10 = vld [vmem:[%s11260_s2 + $0xf8] sm:$0xf0] }
 0x247   :  { %v1250_v22 = vadd.f32 %v8839_v5, %v1249_v26  ;;  %v1267_v40 = vmul.f32 %v8841_v37, %v1265_v54  ;;  %v8843_v0 = vpop.eup %8842  ;;  %vm1272_vm1 = vweird.f32 %v8841_v37  ;;  %v8403_v54 = vld [vmem:[%s11260_s2 + $0xec] sm:$0xf0]  ;;  %v6637_v14 = vor.u32 %v8402_v8, %v6634_v10  ;;  %1831 = vmatpush.bf16.msrb.mxu1 %v6629_v58  ;;  %1844 = vmatpush.bf16.msrb.mxu2 %v6633_v59  ;;  %v6608_v26 = vld [vmem:[%s11260_s2 + $0xc0] sm:$0xf]  ;;  %v8390_v58 = vld [vmem:[%s11260_s2 + $0x8c] sm:$0xf] }
 0x248   :  { %v1235_v41 = vsel %vm1234_vm13, %v8837_v55, %v1231_v62  ;;  %vm1273_vm3 = vmor %vm1271_vm2, %vm1272_vm1  ;;  %v6609_v62 = vor.u32 %v8399_v34, %v6608_v26  ;;  %v6586_v59 = vld [vmem:[%s11260_s2 + $0x98] sm:$0xf0]  ;;  %v6560_v10 = vld [vmem:[%s11260_s2 + $0x60] sm:$0xf]  ;;  %v183_v34 = vadd.f32 %v9465_v17, %v9444_v4 }
 0x249   :  { %v1240_v18 = vsel %vm1237_vm15, %v1239_v15, %v1235_v41  ;;  %v1254_v44 = vsel %vm1253_vm14, %v8839_v5, %v1250_v22  ;;  %v1268_v7 = vsub.f32 1.0, %v1267_v40  ;;  %1857 = vmatpush.bf16.msrb.mxu3 %v6637_v14  ;;  %v6610_v15 = vld [vmem:[%s11260_s2 + $0xd0] sm:$0xf0]  ;;  %v6616_v22 = vld [vmem:[%s11260_s2 + $0xc8] sm:$0xf]  ;;  %v6589_v8 = vor.u32 %v8390_v58, %v6586_v59 }
 0x24a   :  { %v1259_v47 = vsel %vm1256_vm0, %v1258_v33, %v1254_v44  ;;  %v1282_v49 = vmul.f32 %v8843_v0, %v1240_v18  ;;  %v8400_v40 = vld [vmem:[%s11260_s2 + $0xd4] sm:$0xf0]  ;;  %v8398_v0 = vld [vmem:[%s11260_s2 + $0xcc] sm:$0xf]  ;;  %v6618_v18 = vld [vmem:[%s11260_s2 + $0xd8] sm:$0xf0] }
 0x24b   :  { %v1281_v1 = vmul.f32 %v1259_v47, %v9920_v35  ;;  %v1269_v9 = vmul.f32 %v8841_v37, %v1268_v7  ;;  %v6624_v35 = vld [vmem:[%s11260_s2 + $0xe0] sm:$0xf]  ;;  %v6617_v41 = vor.u32 %v8400_v40, %v6616_v22  ;;  %v6621_v44 = vor.u32 %v8398_v0, %v6618_v18  ;;  %v8395_v47 = vld [vmem:[%s11260_s2 + $0xac] sm:$0xf0]  ;;  %v8385_v26 = vld [vmem:[%s11260_s2 + $0x64] sm:$0xf] }
 0x24c   :  { %v6625_v5 = vor.u32 %v8403_v54, %v6624_v35  ;;  %v6592_v7 = vld [vmem:[%s11260_s2 + $0xa0] sm:$0xf]  ;;  %v8389_v35 = vld [vmem:[%s11260_s2 + $0x84] sm:$0xf]  ;;  %v8387_v14 = vld [vmem:[%s11260_s2 + $0x6c] sm:$0xf0] }
 0x24d   :  { %v10120_v11 = vadd.f32 %v1282_v49, %v1281_v1  ;;  %v1270_v16 = vadd.f32 %v8841_v37, %v1269_v9  ;;  %1845 = vmatpush.bf16.msrb.mxu2 %v6617_v41  ;;  %v8393_v49 = vld [vmem:[%s11260_s2 + $0xa4] sm:$0xf]  ;;  %1858 = vmatpush.bf16.msrb.mxu3 %v6621_v44  ;;  %v6593_v1 = vor.u32 %v8395_v47, %v6592_v7  ;;  %v6594_v9 = vld [vmem:[%s11260_s2 + $0xb0] sm:$0xf0]  ;;  %v6568_v22 = vld [vmem:[%s11260_s2 + $0x68] sm:$0xf] }
 0x24e   :  { %1818 = vmatpush.bf16.msrb.mxu0 %v6625_v5  ;;  %v6597_v50 = vor.u32 %v8393_v49, %v6594_v9  ;;  %v6584_v5 = vld [vmem:[%s11260_s2 + $0x88] sm:$0xf]  ;;  %v6581_v56 = vor.u32 %v8389_v35, %v6578_v63  ;;  %v8388_v40 = vld [vmem:[%s11260_s2 + $0x74] sm:$0xf0]  ;;  %v6570_v18 = vld [vmem:[%s11260_s2 + $0x78] sm:$0xf0] }
 0x24f   :  { %8844 = vtanh.f32 %v10120_v11  ;;  %v1274_v2 = vsel %vm1273_vm3, %v8841_v37, %v1270_v16  ;;  %v8397_v37 = vld [vmem:[%s11260_s2 + $0xc4] sm:$0xf]  ;;  %v6600_v16 = vld [vmem:[%s11260_s2 + $0xa8] sm:$0xf]  ;;  %v6585_v57 = vor.u32 %v8392_v46, %v6584_v5  ;;  %v6569_v0 = vor.u32 %v8388_v40, %v6568_v22  ;;  %v6544_v49 = vld [vmem:[%s11260_s2 + $0x40] sm:$0xf] }
 0x250   :  { %v1279_v52 = vsel %vm1276_vm4, %v1278_v51, %v1274_v2  ;;  %v6613_v33 = vor.u32 %v8397_v37, %v6610_v15  ;;  %v6601_v2 = vor.u32 %v8396_v45, %v6600_v16  ;;  %v8394_v51 = vld [vmem:[%s11260_s2 + $0xac] sm:$0xf]  ;;  %v212_v37 = vadd.f32 %v9470_v19, %v9448_v6  ;;  %v6562_v15 = vld [vmem:[%s11260_s2 + $0x70] sm:$0xf0]  ;;  %v8381_v9 = vld [vmem:[%s11260_s2 + $0x44] sm:$0xf] }
 0x251   :  { %v6565_v17 = vor.u32 %v8385_v26, %v6562_v15  ;;  %v8386_v19 = vld [vmem:[%s11260_s2 + $0x6c] sm:$0xf]  ;;  %v6554_v35 = vld [vmem:[%s11260_s2 + $0x58] sm:$0xf0]  ;;  %v8379_v63 = vld [vmem:[%s11260_s2 + $0x2c] sm:$0xf0]  ;;  %v270_v5 = vadd.f32 %v9474_v21, %v9460_v13 }
 0x252   :  { %1819 = vmatpush.bf16.msrb.mxu0 %v6609_v62  ;;  %1832 = vmatpush.bf16.msrb.mxu1 %v6613_v33  ;;  %v6561_v62 = vor.u32 %v8387_v14, %v6560_v10  ;;  %v6573_v47 = vor.u32 %v8386_v19, %v6570_v18  ;;  %v6530_v58 = vld [vmem:[%s11260_s2 + $0x30] sm:$0xf0]  ;;  %v6536_v59 = vld [vmem:[%s11260_s2 + $0x28] sm:$0xf]  ;;  %v8380_v14 = vld [vmem:[%s11260_s2 + $0x34] sm:$0xf0] }
 0x253   :  { %1846 = vmatpush.bf16.msrb.mxu2 %v6601_v2  ;;  %v6546_v2 = vld [vmem:[%s11260_s2 + $0x50] sm:$0xf0]  ;;  %v8378_v26 = vld [vmem:[%s11260_s2 + $0x2c] sm:$0xf]  ;;  %v6537_v22 = vor.u32 %v8380_v14, %v6536_v59  ;;  %v6520_v18 = vld [vmem:[%s11260_s2 + $0x8] sm:$0xf] }
 0x254   :  { %v6514_v19 = vld [vmem:[%s11260_s2 + $0x10] sm:$0xf0] }
 0x255   :  { %v8845_v43 = vpop.eup %8844 }
 0x256   :  { %v1285_v53 = vmul.f32 %v8845_v43, %v1279_v52  ;;  %v6602_v43 = vld [vmem:[%s11260_s2 + $0xb8] sm:$0xf0]  ;;  %1820 = vmatpush.bf16.msrb.mxu0 %v6593_v1  ;;  %1833 = vmatpush.bf16.msrb.mxu1 %v6597_v50  ;;  %v8383_v1 = vld [vmem:[%s11260_s2 + $0x4c] sm:$0xf0] }
 0x257   :  { %v6605_v52 = vor.u32 %v8394_v51, %v6602_v43  ;;  %1847 = vmatpush.bf16.msrb.mxu2 %v6585_v57  ;;  %v6545_v50 = vor.u32 %v8383_v1, %v6544_v49  ;;  %v6549_v51 = vor.u32 %v8381_v9, %v6546_v2  ;;  %v6552_v43 = vld [vmem:[%s11260_s2 + $0x48] sm:$0xf]  ;;  %v8377_v57 = vld [vmem:[%s11260_s2 + $0x24] sm:$0xf]  ;;  %v8374_v49 = vld [vmem:[%s11260_s2 + $0xc] sm:$0xf] }
 0x258   :  { %v1288_v55 = vpack.c.bf16 %v1285_v53, %v1285_v53  ;;  %v6576_v53 = vld [vmem:[%s11260_s2 + $0x80] sm:$0xf]  ;;  %v6533_v21 = vor.u32 %v8377_v57, %v6530_v58  ;;  %v6522_v1 = vld [vmem:[%s11260_s2 + $0x18] sm:$0xf0] }
 0x259   :  { %1859 = vmatpush.bf16.msrb.mxu3 %v6605_v52  ;;  %v8384_v52 = vld [vmem:[%s11260_s2 + $0x54] sm:$0xf0]  ;;  %v6525_v2 = vor.u32 %v8374_v49, %v6522_v1 }
 0x25a   :  { %1290 = vst [vmem:[#allocation7 + $0x8] sm:$0xf] %v1288_v55  ;;  %1500 = vmatmul.bf16.vlgmr.msra.gmra.mxu0 %v1288_v55  ;;  %1513 = vmatmul.bf16.vlgmr.msra.gmra.mxu1 %v1288_v55 }
 0x25b   :  { %1526 = vmatmul.bf16.vlgmr.msra.gmra.mxu2 %v1288_v55  ;;  %1539 = vmatmul.bf16.vlgmr.msra.gmra.mxu3 %v1288_v55  ;;  %v8391_v55 = vld [vmem:[%s11260_s2 + $0x8c] sm:$0xf0] }
 0x25c   :  { %v6577_v54 = vor.u32 %v8391_v55, %v6576_v53  ;;  %1834 = vmatpush.bf16.msrb.mxu1 %v6581_v56  ;;  %1848 = vmatpush.bf16.msrb.mxu2 %v6569_v0  ;;  %v8382_v53 = vld [vmem:[%s11260_s2 + $0x4c] sm:$0xf]  ;;  %v6553_v55 = vor.u32 %v8384_v52, %v6552_v43 }
 0x25d   :  { %1860 = vmatpush.bf16.msrb.mxu3 %v6589_v8  ;;  %v6557_v46 = vor.u32 %v8382_v53, %v6554_v35 }
 0x25e   :  { %1821 = vmatpush.bf16.msrb.mxu0 %v6577_v54  ;;  %v6528_v54 = vld [vmem:[%s11260_s2 + $0x20] sm:$0xf] }
 0x25f   :  { %v6529_v56 = vor.u32 %v8379_v63, %v6528_v54 }
 0x260   :  { %1835 = vmatpush.bf16.msrb.mxu1 %v6565_v17  ;;  %1849 = vmatpush.bf16.msrb.mxu2 %v6553_v55  ;;  %v8373_v17 = vld [vmem:[%s11260_s2 + $0x4] sm:$0xf]  ;;  %v241_v55 = vadd.f32 %v9472_v20, %v9458_v12 }
 0x261   :  { %1861 = vmatpush.bf16.msrb.mxu3 %v6573_v47  ;;  %v6517_v47 = vor.u32 %v8373_v17, %v6514_v19 }
 0x262   :  { %1822 = vmatpush.bf16.msrb.mxu0 %v6561_v62 }
 0x264   :  { %1836 = vmatpush.bf16.msrb.mxu1 %v6549_v51  ;;  %1850 = vmatpush.bf16.msrb.mxu2 %v6537_v22 }
 0x265   :  { %1862 = vmatpush.bf16.msrb.mxu3 %v6557_v46 }
 0x266   :  { %1823 = vmatpush.bf16.msrb.mxu0 %v6545_v50 }
 0x268   :  { %1837 = vmatpush.bf16.msrb.mxu1 %v6533_v21 }
 0x26a   :  { %1824 = vmatpush.bf16.msrb.mxu0 %v6529_v56 }
 0x26c   :  { %1838 = vmatpush.bf16.msrb.mxu1 %v6517_v47 }
 0x2d7   :  { %v1501_v33 = vpop.f32.mrf.mxu0  ;;  %v1514_v41 = vpop.f32.mrf.mxu1 }
 0x2d8   :  { %v1544_v44 = vadd.f32 %v1501_v33, %v183_v34  ;;  %v1545_v7 = vadd.f32 %v1514_v41, %v212_v37  ;;  %v6538_v34 = vld [vmem:[%s11260_s2 + $0x38] sm:$0xf0]  ;;  %v6512_v33 = vld [vmem:[%s11260_s2] sm:$0xf]  ;;  %v8375_v41 = vld [vmem:[%s11260_s2 + $0xc] sm:$0xf0] }
 0x2d9   :  { %v6541_v40 = vor.u32 %v8378_v26, %v6538_v34  ;;  %v6513_v0 = vor.u32 %v8375_v41, %v6512_v33 }
 0x2da   :  { %v6507_v16 = vmul.f32 -1.442695, %v1544_v44  ;;  %v6508_v45 = vmul.f32 -1.442695, %v1545_v7  ;;  %v8376_v44 = vld [vmem:[%s11260_s2 + $0x14] sm:$0xf0] }
 0x2db   :  { %1863 = vmatpush.bf16.msrb.mxu3 %v6541_v40  ;;  %1825 = vmatpush.bf16.msrb.mxu0 %v6513_v0 }
 0x2dc   :  { %8846 = vpow2.f32 %v6507_v16  ;;  %v6521_v16 = vor.u32 %v8376_v44, %v6520_v18 }
 0x2dd   :  { %8848 = vpow2.f32 %v6508_v45 }
 0x2de   :  { %v1527_v8 = vpop.f32.mrf.mxu2  ;;  %v1540_v10 = vpop.f32.mrf.mxu3  ;;  %1851 = vmatpush.bf16.msrb.mxu2 %v6521_v16 }
 0x2df   :  { %v1547_v37 = vadd.f32 %v1540_v10, %v270_v5  ;;  %v1503_v62 = vpop.f32.mrf.mxu0  ;;  %v1516_v15 = vpop.f32.mrf.mxu1  ;;  %1864 = vmatpush.bf16.msrb.mxu3 %v6525_v2  ;;  %v1546_v63 = vadd.f32 %v1527_v8, %v241_v55 }
 0x2e1   :  { %v6509_v7 = vmul.f32 -1.442695, %v1547_v37 }
 0x2e2   :  { %v8847_v9 = vpop.eup %8846 }
 0x2e3   :  { %v8849_v45 = vpop.eup %8848  ;;  %v1552_v50 = vadd.f32 1.0, %v8847_v9  ;;  %8850 = vpow2.f32 %v6509_v7 }
 0x2e4   :  { %v1571_v51 = vadd.f32 1.0, %v8849_v45 }
 0x2e5   :  { %8852 = vrcp.f32 %v1552_v50  ;;  %v1564_v59 = vand.u32 2147483648, %v1552_v50  ;;  %v1562_v14 = vand.u32 2147483647, %v1552_v50  ;;  %vm1558_vm7 = vweird.f32 %v1552_v50 }
 0x2e6   :  { %8854 = vrcp.f32 %v1571_v51  ;;  %v1529_v43 = vpop.f32.mrf.mxu2  ;;  %v1542_v52 = vpop.f32.mrf.mxu3  ;;  %v1583_v10 = vand.u32 2147483648, %v1571_v51  ;;  %v1581_v34 = vand.u32 2147483647, %v1571_v51  ;;  %vm1577_vm8 = vweird.f32 %v1571_v51 }
 0x2e7   :  { %v1565_v8 = vor.u32 1.1754944e-38, %v1564_v59  ;;  %vm1563_vm11 = vcmp.eq.f32.partialorder %v1562_v14, 8.507059e+37  ;;  %v8435_v52 = vld [vmem:[%s11260_s2 + $0xec] sm:$0xf0]  ;;  %v6739_v59 = vld [vmem:[%s11260_s2 + $0xc0] sm:$0xf] }
 0x2e8   :  { %v1584_v22 = vor.u32 1.1754944e-38, %v1583_v10  ;;  %vm1582_vm12 = vcmp.eq.f32.partialorder %v1581_v34, 8.507059e+37  ;;  %v8431_v10 = vld [vmem:[%s11260_s2 + $0xcc] sm:$0xf0]  ;;  %v6747_v34 = vld [vmem:[%s11260_s2 + $0xc8] sm:$0xf] }
 0x2e9   :  { %v8851_v53 = vpop.eup %8850  ;;  %v6740_v14 = vor.u32 %v8431_v10, %v6739_v59  ;;  %v8420_v59 = vld [vmem:[%s11260_s2 + $0x74] sm:$0xf0] }
 0x2ea   :  { %v1591_v35 = vadd.f32 1.0, %v8851_v53  ;;  %v8433_v53 = vld [vmem:[%s11260_s2 + $0xe4] sm:$0xf] }
 0x2eb   :  { %v8853_v54 = vpop.eup %8852 }
 0x2ec   :  { %v8855_v5 = vpop.eup %8854  ;;  %v1554_v46 = vmul.f32 %v8853_v54, %v1552_v50  ;;  %8856 = vrcp.f32 %v1591_v35  ;;  %vm1559_vm5 = vweird.f32 %v8853_v54  ;;  %v1603_v1 = vand.u32 2147483648, %v1591_v35 }
 0x2ed   :  { %v1573_v56 = vmul.f32 %v8855_v5, %v1571_v51  ;;  %8858 = vtanh.f32 %v1546_v63  ;;  %vm1578_vm6 = vweird.f32 %v8855_v5  ;;  %vm1560_vm9 = vmor %vm1558_vm7, %vm1559_vm5  ;;  %vm1597_vm14 = vweird.f32 %v1591_v35  ;;  %v8436_v63 = vld [vmem:[%s11260_s2 + $0xf4] sm:$0xf0] }
 0x2ee   :  { %v1555_v57 = vsub.f32 1.0, %v1554_v46  ;;  %vm1579_vm10 = vmor %vm1577_vm8, %vm1578_vm6  ;;  %v1601_v9 = vand.u32 2147483647, %v1591_v35  ;;  %v1604_v45 = vor.u32 1.1754944e-38, %v1603_v1  ;;  %v6733_v1 = vld [vmem:[%s11260_s2 + $0xb8] sm:$0xf0] }
 0x2ef   :  { %v1574_v58 = vsub.f32 1.0, %v1573_v56  ;;  %v8434_v56 = vld [vmem:[%s11260_s2 + $0xec] sm:$0xf] }
 0x2f0   :  { %v1556_v21 = vmul.f32 %v8853_v54, %v1555_v57  ;;  %vm1602_vm0 = vcmp.eq.f32.partialorder %v1601_v9, 8.507059e+37  ;;  %v6765_v57 = vld [vmem:[%s11260_s2 + $0xf8] sm:$0xf0] }
 0x2f1   :  { %v1575_v26 = vmul.f32 %v8855_v5, %v1574_v58  ;;  %v6768_v58 = vor.u32 %v8434_v56, %v6765_v57  ;;  %v6693_v57 = vld [vmem:[%s11260_s2 + $0x70] sm:$0xf0] }
 0x2f2   :  { %v8857_v37 = vpop.eup %8856  ;;  %v1557_v20 = vadd.f32 %v8853_v54, %v1556_v21  ;;  %v8429_v21 = vld [vmem:[%s11260_s2 + $0xc4] sm:$0xf] }
 0x2f3   :  { %v1576_v62 = vadd.f32 %v8855_v5, %v1575_v26  ;;  %v1593_v15 = vmul.f32 %v8857_v37, %v1591_v35  ;;  %v8859_v33 = vpop.eup %8858  ;;  %vm1598_vm13 = vweird.f32 %v8857_v37  ;;  %v6757_v35 = vld [vmem:[%s11260_s2 + $0xf0] sm:$0xf0]  ;;  %2183 = vmatpush.bf16.msra.mxu3 %v6768_v58  ;;  %v6699_v58 = vld [vmem:[%s11260_s2 + $0x68] sm:$0xf] }
 0x2f4   :  { %v1561_v40 = vsel %vm1560_vm9, %v8853_v54, %v1557_v20  ;;  %vm1599_vm15 = vmor %vm1597_vm14, %vm1598_vm13  ;;  %v6763_v54 = vld [vmem:[%s11260_s2 + $0xe8] sm:$0xf]  ;;  %v6741_v26 = vld [vmem:[%s11260_s2 + $0xd0] sm:$0xf0] }
 0x2f5   :  { %v1566_v41 = vsel %vm1563_vm11, %v1565_v8, %v1561_v40  ;;  %v1580_v17 = vsel %vm1579_vm10, %v8855_v5, %v1576_v62  ;;  %v1594_v0 = vsub.f32 1.0, %v1593_v15  ;;  %v6760_v5 = vor.u32 %v8433_v53, %v6757_v35  ;;  %v8430_v62 = vld [vmem:[%s11260_s2 + $0xcc] sm:$0xf]  ;;  %v6749_v15 = vld [vmem:[%s11260_s2 + $0xd8] sm:$0xf0] }
 0x2f6   :  { %v1585_v19 = vsel %vm1582_vm12, %v1584_v22, %v1580_v17  ;;  %v1608_v18 = vmul.f32 %v8859_v33, %v1566_v41  ;;  %v6764_v46 = vor.u32 %v8436_v63, %v6763_v54  ;;  %v6744_v20 = vor.u32 %v8429_v21, %v6741_v26  ;;  %v6723_v40 = vld [vmem:[%s11260_s2 + $0xa0] sm:$0xf]  ;;  %v8427_v33 = vld [vmem:[%s11260_s2 + $0xac] sm:$0xf0]  ;;  %v8425_v41 = vld [vmem:[%s11260_s2 + $0xa4] sm:$0xf] }
 0x2f7   :  { %v1607_v44 = vmul.f32 %v1585_v19, %v10120_v11  ;;  %v1595_v7 = vmul.f32 %v8857_v37, %v1594_v0  ;;  %v6755_v11 = vld [vmem:[%s11260_s2 + $0xe0] sm:$0xf]  ;;  %2157 = vmatpush.bf16.msra.mxu1 %v6760_v5  ;;  %v6752_v22 = vor.u32 %v8430_v62, %v6749_v15  ;;  %v6724_v17 = vor.u32 %v8427_v33, %v6723_v40  ;;  %v6725_v0 = vld [vmem:[%s11260_s2 + $0xb0] sm:$0xf0]  ;;  %v6731_v19 = vld [vmem:[%s11260_s2 + $0xa8] sm:$0xf] }
 0x2f8   :  { %v6756_v55 = vor.u32 %v8435_v52, %v6755_v11  ;;  %2170 = vmatpush.bf16.msra.mxu2 %v6764_v46  ;;  %v8424_v11 = vld [vmem:[%s11260_s2 + $0x94] sm:$0xf0]  ;;  %v6717_v35 = vld [vmem:[%s11260_s2 + $0x98] sm:$0xf0]  ;;  %v6691_v63 = vld [vmem:[%s11260_s2 + $0x60] sm:$0xf]  ;;  %v6700_v26 = vor.u32 %v8420_v59, %v6699_v58 }
 0x2f9   :  { %v10324_v47 = vadd.f32 %v1608_v18, %v1607_v44  ;;  %v1596_v49 = vadd.f32 %v8857_v37, %v1595_v7  ;;  %2184 = vmatpush.bf16.msra.mxu3 %v6752_v22  ;;  %v8428_v18 = vld [vmem:[%s11260_s2 + $0xb4] sm:$0xf0]  ;;  %v6728_v44 = vor.u32 %v8425_v41, %v6725_v0  ;;  %v8419_v5 = vld [vmem:[%s11260_s2 + $0x6c] sm:$0xf0]  ;;  %v8417_v46 = vld [vmem:[%s11260_s2 + $0x64] sm:$0xf] }
 0x2fa   :  { %2144 = vmatpush.bf16.msra.mxu0 %v6756_v55  ;;  %v6732_v7 = vor.u32 %v8428_v18, %v6731_v19  ;;  %v8422_v55 = vld [vmem:[%s11260_s2 + $0x8c] sm:$0xf]  ;;  %v6692_v56 = vor.u32 %v8419_v5, %v6691_v63  ;;  %v6675_v15 = vld [vmem:[%s11260_s2 + $0x40] sm:$0xf]  ;;  %v8415_v22 = vld [vmem:[%s11260_s2 + $0x4c] sm:$0xf0] }
 0x2fb   :  { %8860 = vtanh.f32 %v10324_v47  ;;  %v1600_v16 = vsel %vm1599_vm15, %v8857_v37, %v1596_v49  ;;  %v8432_v37 = vld [vmem:[%s11260_s2 + $0xd4] sm:$0xf0]  ;;  %2158 = vmatpush.bf16.msra.mxu1 %v6744_v20  ;;  %v8426_v49 = vld [vmem:[%s11260_s2 + $0xac] sm:$0xf]  ;;  %v6720_v54 = vor.u32 %v8422_v55, %v6717_v35  ;;  %v8413_v40 = vld [vmem:[%s11260_s2 + $0x44] sm:$0xf] }
 0x2fc   :  { %v1605_v2 = vsel %vm1602_vm0, %v1604_v45, %v1600_v16  ;;  %v6748_v8 = vor.u32 %v8432_v37, %v6747_v34  ;;  %v6736_v9 = vor.u32 %v8426_v49, %v6733_v1  ;;  %v6707_v16 = vld [vmem:[%s11260_s2 + $0x80] sm:$0xf]  ;;  %v8423_v45 = vld [vmem:[%s11260_s2 + $0x8c] sm:$0xf0]  ;;  %v8418_v34 = vld [vmem:[%s11260_s2 + $0x6c] sm:$0xf] }
 0x2fd   :  { %v6701_v37 = vld [vmem:[%s11260_s2 + $0x78] sm:$0xf0]  ;;  %v6677_v41 = vld [vmem:[%s11260_s2 + $0x50] sm:$0xf0]  ;;  %v6683_v0 = vld [vmem:[%s11260_s2 + $0x48] sm:$0xf] }
 0x2fe   :  { %2145 = vmatpush.bf16.msra.mxu0 %v6740_v14  ;;  %2171 = vmatpush.bf16.msra.mxu2 %v6748_v8  ;;  %v6696_v14 = vor.u32 %v8417_v46, %v6693_v57  ;;  %v6704_v62 = vor.u32 %v8418_v34, %v6701_v37  ;;  %v8416_v19 = vld [vmem:[%s11260_s2 + $0x54] sm:$0xf0]  ;;  %v8414_v18 = vld [vmem:[%s11260_s2 + $0x4c] sm:$0xf]  ;;  %v6659_v49 = vld [vmem:[%s11260_s2 + $0x20] sm:$0xf] }
 0x2ff   :  { %2159 = vmatpush.bf16.msra.mxu1 %v6728_v44  ;;  %2185 = vmatpush.bf16.msra.mxu3 %v6736_v9  ;;  %v6684_v44 = vor.u32 %v8416_v19, %v6683_v0  ;;  %v8411_v1 = vld [vmem:[%s11260_s2 + $0x2c] sm:$0xf0]  ;;  %v6669_v55 = vld [vmem:[%s11260_s2 + $0x38] sm:$0xf0]  ;;  %v8405_v58 = vld [vmem:[%s11260_s2 + $0x4] sm:$0xf] }
 0x300   :  { %v8407_v57 = vld [vmem:[%s11260_s2 + $0xc] sm:$0xf0]  ;;  %v8406_v34 = vld [vmem:[%s11260_s2 + $0xc] sm:$0xf]  ;;  %v6653_v37 = vld [vmem:[%s11260_s2 + $0x18] sm:$0xf0] }
 0x301   :  { %v8861_v50 = vpop.eup %8860 }
 0x302   :  { %v1611_v51 = vmul.f32 %v8861_v50, %v1605_v2  ;;  %2146 = vmatpush.bf16.msra.mxu0 %v6724_v17  ;;  %2172 = vmatpush.bf16.msra.mxu2 %v6732_v7  ;;  %v8421_v50 = vld [vmem:[%s11260_s2 + $0x84] sm:$0xf]  ;;  %v6708_v2 = vor.u32 %v8423_v45, %v6707_v16  ;;  %v6680_v17 = vor.u32 %v8413_v40, %v6677_v41  ;;  %v6685_v7 = vld [vmem:[%s11260_s2 + $0x58] sm:$0xf0] }
 0x303   :  { %2186 = vmatpush.bf16.msra.mxu3 %v6720_v54  ;;  %v6688_v9 = vor.u32 %v8414_v18, %v6685_v7  ;;  %v6660_v16 = vor.u32 %v8411_v1, %v6659_v49  ;;  %v8409_v45 = vld [vmem:[%s11260_s2 + $0x24] sm:$0xf] }
 0x304   :  { %v1614_v43 = vpack.c.bf16 %v1611_v51, %v1611_v51  ;;  %v6709_v51 = vld [vmem:[%s11260_s2 + $0x90] sm:$0xf0] }
 0x305   :  { %v6712_v52 = vor.u32 %v8421_v50, %v6709_v51  ;;  %v6661_v50 = vld [vmem:[%s11260_s2 + $0x30] sm:$0xf0] }
 0x306   :  { %1616 = vst [vmem:[#allocation7 + $0xc] sm:$0xf] %v1614_v43  ;;  %1826 = vmatmul.bf16.vlgmr.msrb.gmra.mxu0 %v1614_v43  ;;  %1839 = vmatmul.bf16.vlgmr.msrb.gmra.mxu1 %v1614_v43 }
 0x307   :  { %1852 = vmatmul.bf16.vlgmr.msrb.gmra.mxu2 %v1614_v43  ;;  %1865 = vmatmul.bf16.vlgmr.msrb.gmra.mxu3 %v1614_v43  ;;  %v6715_v43 = vld [vmem:[%s11260_s2 + $0x88] sm:$0xf] }
 0x308   :  { %v6716_v53 = vor.u32 %v8424_v11, %v6715_v43  ;;  %2147 = vmatpush.bf16.msra.mxu0 %v6708_v2  ;;  %2160 = vmatpush.bf16.msra.mxu1 %v6712_v52  ;;  %v6667_v2 = vld [vmem:[%s11260_s2 + $0x28] sm:$0xf]  ;;  %v6664_v11 = vor.u32 %v8409_v45, %v6661_v50  ;;  %v8412_v52 = vld [vmem:[%s11260_s2 + $0x34] sm:$0xf0] }
 0x309   :  { %2187 = vmatpush.bf16.msra.mxu3 %v6704_v62  ;;  %v6668_v5 = vor.u32 %v8412_v52, %v6667_v2 }
 0x30a   :  { %2173 = vmatpush.bf16.msra.mxu2 %v6716_v53  ;;  %v8410_v53 = vld [vmem:[%s11260_s2 + $0x2c] sm:$0xf] }
 0x30b   :  { %v6672_v46 = vor.u32 %v8410_v53, %v6669_v55 }
 0x30c   :  { %2148 = vmatpush.bf16.msra.mxu0 %v6692_v56  ;;  %2161 = vmatpush.bf16.msra.mxu1 %v6696_v14  ;;  %v6643_v56 = vld [vmem:[%s11260_s2] sm:$0xf] }
 0x30d   :  { %2188 = vmatpush.bf16.msra.mxu3 %v6688_v9  ;;  %v6644_v59 = vor.u32 %v8407_v57, %v6643_v56 }
 0x30e   :  { %2174 = vmatpush.bf16.msra.mxu2 %v6700_v26 }
 0x310   :  { %2162 = vmatpush.bf16.msra.mxu1 %v6680_v17 }
 0x311   :  { %2189 = vmatpush.bf16.msra.mxu3 %v6672_v46 }
 0x312   :  { %2175 = vmatpush.bf16.msra.mxu2 %v6684_v44 }
 0x314   :  { %2163 = vmatpush.bf16.msra.mxu1 %v6664_v11 }
 0x316   :  { %2176 = vmatpush.bf16.msra.mxu2 %v6668_v5 }
 0x383   :  { %v1827_v10 = vpop.f32.mrf.mxu0  ;;  %v1840_v21 = vpop.f32.mrf.mxu1 }
 0x384   :  { %v1870_v20 = vadd.f32 %v1827_v10, %v9477_v23  ;;  %v1871_v8 = vadd.f32 %v1840_v21, %v9480_v25  ;;  %v6676_v25 = vor.u32 %v8415_v22, %v6675_v15  ;;  %v6651_v10 = vld [vmem:[%s11260_s2 + $0x8] sm:$0xf]  ;;  %v8408_v21 = vld [vmem:[%s11260_s2 + $0x14] sm:$0xf0]  ;;  %v6656_v22 = vor.u32 %v8406_v34, %v6653_v37 }
 0x386   :  { %v6638_v33 = vmul.f32 -1.442695, %v1870_v20  ;;  %v6639_v23 = vmul.f32 -1.442695, %v1871_v8  ;;  %2149 = vmatpush.bf16.msra.mxu0 %v6676_v25  ;;  %v6652_v8 = vor.u32 %v8408_v21, %v6651_v10  ;;  %2190 = vmatpush.bf16.msra.mxu3 %v6656_v22 }
 0x388   :  { %8862 = vpow2.f32 %v6638_v33  ;;  %2177 = vmatpush.bf16.msra.mxu2 %v6652_v8 }
 0x389   :  { %8864 = vpow2.f32 %v6639_v23 }
 0x38a   :  { %v1853_v51 = vpop.f32.mrf.mxu2  ;;  %v1866_v43 = vpop.f32.mrf.mxu3  ;;  %2150 = vmatpush.bf16.msra.mxu0 %v6660_v16 }
 0x38b   :  { %v1873_v35 = vadd.f32 %v1866_v43, %v9488_v30  ;;  %v1829_v54 = vpop.f32.mrf.mxu0  ;;  %v1842_v63 = vpop.f32.mrf.mxu1  ;;  %v6645_v30 = vld [vmem:[%s11260_s2 + $0x10] sm:$0xf0]  ;;  %v1872_v0 = vadd.f32 %v1853_v51, %v9483_v27 }
 0x38c   :  { %v6648_v26 = vor.u32 %v8405_v58, %v6645_v30 }
 0x38d   :  { %v6640_v14 = vmul.f32 -1.442695, %v1873_v35 }
 0x38e   :  { %v8863_v20 = vpop.eup %8862  ;;  %2151 = vmatpush.bf16.msra.mxu0 %v6644_v59  ;;  %2164 = vmatpush.bf16.msra.mxu1 %v6648_v26 }
 0x38f   :  { %v8865_v62 = vpop.eup %8864  ;;  %v1878_v15 = vadd.f32 1.0, %v8863_v20  ;;  %8866 = vpow2.f32 %v6640_v14 }
 0x390   :  { %v1897_v40 = vadd.f32 1.0, %v8865_v62  ;;  %v8467_v62 = vld [vmem:[%s11260_s2 + $0xec] sm:$0xf0] }
 0x391   :  { %8868 = vrcp.f32 %v1878_v15  ;;  %v1890_v1 = vand.u32 2147483648, %v1878_v15  ;;  %v1888_v45 = vand.u32 2147483647, %v1878_v15  ;;  %vm1884_vm3 = vweird.f32 %v1878_v15 }
 0x392   :  { %8870 = vrcp.f32 %v1897_v40  ;;  %v1855_v33 = vpop.f32.mrf.mxu2  ;;  %v1868_v23 = vpop.f32.mrf.mxu3  ;;  %v1909_v9 = vand.u32 2147483648, %v1897_v40  ;;  %v1907_v2 = vand.u32 2147483647, %v1897_v40  ;;  %vm1903_vm4 = vweird.f32 %v1897_v40 }
 0x393   :  { %v1891_v27 = vor.u32 1.1754944e-38, %v1890_v1  ;;  %vm1889_vm7 = vcmp.eq.f32.partialorder %v1888_v45, 8.507059e+37  ;;  %v6894_v33 = vld [vmem:[%s11260_s2 + $0xe8] sm:$0xf]  ;;  %v8468_v23 = vld [vmem:[%s11260_s2 + $0xf4] sm:$0xf0] }
 0x394   :  { %v1910_v53 = vor.u32 1.1754944e-38, %v1909_v9  ;;  %vm1908_vm8 = vcmp.eq.f32.partialorder %v1907_v2, 8.507059e+37  ;;  %v6872_v1 = vld [vmem:[%s11260_s2 + $0xd0] sm:$0xf0]  ;;  %v6878_v9 = vld [vmem:[%s11260_s2 + $0xc8] sm:$0xf] }
 0x395   :  { %v8867_v25 = vpop.eup %8866  ;;  %v8462_v2 = vld [vmem:[%s11260_s2 + $0xcc] sm:$0xf] }
 0x396   :  { %v1917_v41 = vadd.f32 1.0, %v8867_v25 }
 0x397   :  { %v8869_v17 = vpop.eup %8868 }
 0x398   :  { %v8871_v19 = vpop.eup %8870  ;;  %v1880_v18 = vmul.f32 %v8869_v17, %v1878_v15  ;;  %8872 = vrcp.f32 %v1917_v41  ;;  %vm1885_vm1 = vweird.f32 %v8869_v17  ;;  %v1929_v10 = vand.u32 2147483648, %v1917_v41  ;;  %v8465_v15 = vld [vmem:[%s11260_s2 + $0xe4] sm:$0xf] }
 0x399   :  { %v1899_v44 = vmul.f32 %v8871_v19, %v1897_v40  ;;  %8874 = vtanh.f32 %v1872_v0  ;;  %vm1904_vm2 = vweird.f32 %v8871_v19  ;;  %vm1886_vm5 = vmor %vm1884_vm3, %vm1885_vm1  ;;  %vm1923_vm10 = vweird.f32 %v1917_v41  ;;  %v6888_v40 = vld [vmem:[%s11260_s2 + $0xf0] sm:$0xf0]  ;;  %v6896_v0 = vld [vmem:[%s11260_s2 + $0xf8] sm:$0xf0] }
 0x39a   :  { %v1881_v7 = vsub.f32 1.0, %v1880_v18  ;;  %vm1905_vm6 = vmor %vm1903_vm4, %vm1904_vm2  ;;  %v1927_v21 = vand.u32 2147483647, %v1917_v41  ;;  %v1930_v26 = vor.u32 1.1754944e-38, %v1929_v10  ;;  %v6891_v25 = vor.u32 %v8465_v15, %v6888_v40  ;;  %v6870_v18 = vld [vmem:[%s11260_s2 + $0xc0] sm:$0xf] }
 0x39b   :  { %v1900_v49 = vsub.f32 1.0, %v1899_v44  ;;  %v8463_v44 = vld [vmem:[%s11260_s2 + $0xcc] sm:$0xf0]  ;;  %v8453_v10 = vld [vmem:[%s11260_s2 + $0x84] sm:$0xf] }
 0x39c   :  { %v1882_v16 = vmul.f32 %v8869_v17, %v1881_v7  ;;  %vm1928_vm12 = vcmp.eq.f32.partialorder %v1927_v21, 8.507059e+37  ;;  %2483 = vmatpush.bf16.msrb.mxu1 %v6891_v25  ;;  %v8461_v7 = vld [vmem:[%s11260_s2 + $0xc4] sm:$0xf]  ;;  %v6822_v15 = vld [vmem:[%s11260_s2 + $0x60] sm:$0xf] }
 0x39d   :  { %v1901_v50 = vmul.f32 %v8871_v19, %v1900_v49  ;;  %v6871_v49 = vor.u32 %v8463_v44, %v6870_v18  ;;  %v6875_v45 = vor.u32 %v8461_v7, %v6872_v1  ;;  %v8449_v40 = vld [vmem:[%s11260_s2 + $0x64] sm:$0xf]  ;;  %v6832_v7 = vld [vmem:[%s11260_s2 + $0x78] sm:$0xf0] }
 0x39e   :  { %v8873_v43 = vpop.eup %8872  ;;  %v1883_v11 = vadd.f32 %v8869_v17, %v1882_v16  ;;  %v8464_v16 = vld [vmem:[%s11260_s2 + $0xd4] sm:$0xf0] }
 0x39f   :  { %v1902_v51 = vadd.f32 %v8871_v19, %v1901_v50  ;;  %v1919_v52 = vmul.f32 %v8873_v43, %v1917_v41  ;;  %v8875_v35 = vpop.eup %8874  ;;  %vm1924_vm9 = vweird.f32 %v8873_v43  ;;  %v6895_v41 = vor.u32 %v8468_v23, %v6894_v33 }
 0x3a0   :  { %v1887_v55 = vsel %vm1886_vm5, %v8869_v17, %v1883_v11  ;;  %vm1925_vm11 = vmor %vm1923_vm10, %vm1924_vm9  ;;  %v8466_v17 = vld [vmem:[%s11260_s2 + $0xec] sm:$0xf]  ;;  %v6879_v50 = vor.u32 %v8464_v16, %v6878_v9  ;;  %2484 = vmatpush.bf16.msrb.mxu1 %v6875_v45  ;;  %v188_v33 = vadd.f32 %v9485_v29, %v9444_v4  ;;  %v217_v23 = vadd.f32 %v9490_v31, %v9448_v6  ;;  %v6806_v16 = vld [vmem:[%s11260_s2 + $0x40] sm:$0xf] }
 0x3a1   :  { %v1892_v54 = vsel %vm1889_vm7, %v1891_v27, %v1887_v55  ;;  %v1906_v63 = vsel %vm1905_vm6, %v8871_v19, %v1902_v51  ;;  %v1920_v5 = vsub.f32 1.0, %v1919_v52  ;;  %v6899_v19 = vor.u32 %v8466_v17, %v6896_v0  ;;  %2496 = vmatpush.bf16.msrb.mxu2 %v6895_v41  ;;  %v6854_v27 = vld [vmem:[%s11260_s2 + $0xa0] sm:$0xf]  ;;  %v8459_v51 = vld [vmem:[%s11260_s2 + $0xac] sm:$0xf0] }
 0x3a2   :  { %v1911_v46 = vsel %vm1908_vm8, %v1910_v53, %v1906_v63  ;;  %v1934_v56 = vmul.f32 %v8875_v35, %v1892_v54  ;;  %v8457_v52 = vld [vmem:[%s11260_s2 + $0xa4] sm:$0xf]  ;;  %v6855_v53 = vor.u32 %v8459_v51, %v6854_v27  ;;  %v6856_v55 = vld [vmem:[%s11260_s2 + $0xb0] sm:$0xf0]  ;;  %v6862_v35 = vld [vmem:[%s11260_s2 + $0xa8] sm:$0xf] }
 0x3a3   :  { %v1933_v57 = vmul.f32 %v1911_v46, %v10324_v47  ;;  %v1921_v58 = vmul.f32 %v8873_v43, %v1920_v5  ;;  %v6886_v47 = vld [vmem:[%s11260_s2 + $0xe0] sm:$0xf]  ;;  %2509 = vmatpush.bf16.msrb.mxu3 %v6899_v19  ;;  %v8460_v54 = vld [vmem:[%s11260_s2 + $0xb4] sm:$0xf0]  ;;  %v6859_v63 = vor.u32 %v8457_v52, %v6856_v55  ;;  %v8458_v46 = vld [vmem:[%s11260_s2 + $0xac] sm:$0xf] }
 0x3a4   :  { %v6887_v22 = vor.u32 %v8467_v62, %v6886_v47  ;;  %v6863_v5 = vor.u32 %v8460_v54, %v6862_v35  ;;  %v6848_v47 = vld [vmem:[%s11260_s2 + $0x98] sm:$0xf0]  ;;  %v6824_v41 = vld [vmem:[%s11260_s2 + $0x70] sm:$0xf0]  ;;  %v6830_v17 = vld [vmem:[%s11260_s2 + $0x68] sm:$0xf] }
 0x3a5   :  { %v10524_v59 = vadd.f32 %v1934_v56, %v1933_v57  ;;  %v1922_v30 = vadd.f32 %v8873_v43, %v1921_v58  ;;  %2497 = vmatpush.bf16.msrb.mxu2 %v6879_v50  ;;  %v6864_v56 = vld [vmem:[%s11260_s2 + $0xb8] sm:$0xf0]  ;;  %2485 = vmatpush.bf16.msrb.mxu1 %v6859_v63  ;;  %v6838_v58 = vld [vmem:[%s11260_s2 + $0x80] sm:$0xf]  ;;  %v8452_v0 = vld [vmem:[%s11260_s2 + $0x74] sm:$0xf0]  ;;  %v6827_v29 = vor.u32 %v8449_v40, %v6824_v41 }
 0x3a6   :  { %2470 = vmatpush.bf16.msrb.mxu0 %v6887_v22  ;;  %v6867_v57 = vor.u32 %v8458_v46, %v6864_v56  ;;  %v8451_v22 = vld [vmem:[%s11260_s2 + $0x6c] sm:$0xf0]  ;;  %v6831_v44 = vor.u32 %v8452_v0, %v6830_v17  ;;  %v8450_v31 = vld [vmem:[%s11260_s2 + $0x6c] sm:$0xf]  ;;  %v8445_v50 = vld [vmem:[%s11260_s2 + $0x44] sm:$0xf]  ;;  %v275_v46 = vadd.f32 %v9503_v36, %v9460_v13 }
 0x3a7   :  { %8876 = vtanh.f32 %v10524_v59  ;;  %v1926_v14 = vsel %vm1925_vm11, %v8873_v43, %v1922_v30  ;;  %v6880_v43 = vld [vmem:[%s11260_s2 + $0xd8] sm:$0xf0]  ;;  %v8455_v30 = vld [vmem:[%s11260_s2 + $0x8c] sm:$0xf0]  ;;  %v6823_v25 = vor.u32 %v8451_v22, %v6822_v15  ;;  %v6835_v9 = vor.u32 %v8450_v31, %v6832_v7  ;;  %v6808_v27 = vld [vmem:[%s11260_s2 + $0x50] sm:$0xf0] }
 0x3a8   :  { %v1931_v37 = vsel %vm1928_vm12, %v1930_v26, %v1926_v14  ;;  %v6883_v11 = vor.u32 %v8462_v2, %v6880_v43  ;;  %v6839_v21 = vor.u32 %v8455_v30, %v6838_v58  ;;  %v6840_v14 = vld [vmem:[%s11260_s2 + $0x90] sm:$0xf0]  ;;  %v6846_v26 = vld [vmem:[%s11260_s2 + $0x88] sm:$0xf]  ;;  %v8447_v45 = vld [vmem:[%s11260_s2 + $0x4c] sm:$0xf0]  ;;  %v6811_v51 = vor.u32 %v8445_v50, %v6808_v27 }
 0x3a9   :  { %2498 = vmatpush.bf16.msrb.mxu2 %v6863_v5  ;;  %v6814_v52 = vld [vmem:[%s11260_s2 + $0x48] sm:$0xf]  ;;  %v8446_v55 = vld [vmem:[%s11260_s2 + $0x4c] sm:$0xf]  ;;  %v6816_v54 = vld [vmem:[%s11260_s2 + $0x58] sm:$0xf0] }
 0x3aa   :  { %2471 = vmatpush.bf16.msrb.mxu0 %v6871_v49  ;;  %2510 = vmatpush.bf16.msrb.mxu3 %v6883_v11  ;;  %v6807_v11 = vor.u32 %v8447_v45, %v6806_v16  ;;  %v6790_v63 = vld [vmem:[%s11260_s2 + $0x20] sm:$0xf]  ;;  %v8443_v5 = vld [vmem:[%s11260_s2 + $0x2c] sm:$0xf0]  ;;  %v6819_v56 = vor.u32 %v8446_v55, %v6816_v54  ;;  %v8441_v58 = vld [vmem:[%s11260_s2 + $0x24] sm:$0xf] }
 0x3ab   :  { %v6792_v30 = vld [vmem:[%s11260_s2 + $0x30] sm:$0xf0]  ;;  %v6774_v22 = vld [vmem:[%s11260_s2] sm:$0xf]  ;;  %v8439_v40 = vld [vmem:[%s11260_s2 + $0xc] sm:$0xf0] }
 0x3ac   :  { %v6795_v36 = vor.u32 %v8441_v58, %v6792_v30  ;;  %v6782_v41 = vld [vmem:[%s11260_s2 + $0x8] sm:$0xf]  ;;  %v8440_v17 = vld [vmem:[%s11260_s2 + $0x14] sm:$0xf0] }
 0x3ad   :  { %v8877_v34 = vpop.eup %8876  ;;  %v6783_v31 = vor.u32 %v8440_v17, %v6782_v41 }
 0x3ae   :  { %v1937_v20 = vmul.f32 %v8877_v34, %v1931_v37  ;;  %2472 = vmatpush.bf16.msrb.mxu0 %v6855_v53  ;;  %2511 = vmatpush.bf16.msrb.mxu3 %v6867_v57  ;;  %v8456_v34 = vld [vmem:[%s11260_s2 + $0x94] sm:$0xf0]  ;;  %v6843_v37 = vor.u32 %v8453_v10, %v6840_v14  ;;  %v6791_v57 = vor.u32 %v8443_v5, %v6790_v63  ;;  %v6798_v10 = vld [vmem:[%s11260_s2 + $0x28] sm:$0xf] }
 0x3af   :  { %v8448_v53 = vld [vmem:[%s11260_s2 + $0x54] sm:$0xf0] }
 0x3b0   :  { %v1940_v8 = vpack.c.bf16 %v1937_v20, %v1937_v20  ;;  %v6847_v20 = vor.u32 %v8456_v34, %v6846_v26  ;;  %2486 = vmatpush.bf16.msrb.mxu1 %v6843_v37  ;;  %v6815_v35 = vor.u32 %v8448_v53, %v6814_v52  ;;  %v8444_v26 = vld [vmem:[%s11260_s2 + $0x34] sm:$0xf0]  ;;  %v8442_v34 = vld [vmem:[%s11260_s2 + $0x2c] sm:$0xf]  ;;  %v6800_v37 = vld [vmem:[%s11260_s2 + $0x38] sm:$0xf0] }
 0x3b1   :  { %v6803_v15 = vor.u32 %v8442_v34, %v6800_v37 }
 0x3b2   :  { %1942 = vst [vmem:[#allocation7 + $0x10] sm:$0xf] %v1940_v8  ;;  %2152 = vmatmul.bf16.vlgmr.msra.gmra.mxu0 %v1940_v8  ;;  %2165 = vmatmul.bf16.vlgmr.msra.gmra.mxu1 %v1940_v8 }
 0x3b3   :  { %2178 = vmatmul.bf16.vlgmr.msra.gmra.mxu2 %v1940_v8  ;;  %2191 = vmatmul.bf16.vlgmr.msra.gmra.mxu3 %v1940_v8  ;;  %v8454_v8 = vld [vmem:[%s11260_s2 + $0x8c] sm:$0xf] }
 0x3b4   :  { %2473 = vmatpush.bf16.msrb.mxu0 %v6839_v21  ;;  %v6851_v62 = vor.u32 %v8454_v8, %v6848_v47  ;;  %2499 = vmatpush.bf16.msrb.mxu2 %v6847_v20 }
 0x3b5   :  { %2487 = vmatpush.bf16.msrb.mxu1 %v6827_v29  ;;  %v6784_v29 = vld [vmem:[%s11260_s2 + $0x18] sm:$0xf0] }
 0x3b6   :  { %2512 = vmatpush.bf16.msrb.mxu3 %v6851_v62  ;;  %v6799_v62 = vor.u32 %v8444_v26, %v6798_v10 }
 0x3b8   :  { %2474 = vmatpush.bf16.msrb.mxu0 %v6823_v25  ;;  %2500 = vmatpush.bf16.msrb.mxu2 %v6831_v44  ;;  %v6776_v25 = vld [vmem:[%s11260_s2 + $0x10] sm:$0xf0] }
 0x3b9   :  { %2488 = vmatpush.bf16.msrb.mxu1 %v6811_v51 }
 0x3ba   :  { %2513 = vmatpush.bf16.msrb.mxu3 %v6835_v9 }
 0x3bc   :  { %2475 = vmatpush.bf16.msrb.mxu0 %v6807_v11  ;;  %2501 = vmatpush.bf16.msrb.mxu2 %v6815_v35 }
 0x3bd   :  { %2489 = vmatpush.bf16.msrb.mxu1 %v6795_v36 }
 0x3be   :  { %2514 = vmatpush.bf16.msrb.mxu3 %v6819_v56 }
 0x3c0   :  { %2476 = vmatpush.bf16.msrb.mxu0 %v6791_v57  ;;  %2502 = vmatpush.bf16.msrb.mxu2 %v6799_v62 }
 0x3c2   :  { %2515 = vmatpush.bf16.msrb.mxu3 %v6803_v15 }
 0x3c4   :  { %2503 = vmatpush.bf16.msrb.mxu2 %v6783_v31 }
 0x42f   :  { %v2153_v19 = vpop.f32.mrf.mxu0  ;;  %v2166_v18 = vpop.f32.mrf.mxu1 }
 0x430   :  { %v2196_v49 = vadd.f32 %v2153_v19, %v188_v33  ;;  %v2197_v1 = vadd.f32 %v2166_v18, %v217_v23  ;;  %v8437_v33 = vld [vmem:[%s11260_s2 + $0x4] sm:$0xf]  ;;  %v6775_v23 = vor.u32 %v8439_v40, %v6774_v22  ;;  %v8438_v18 = vld [vmem:[%s11260_s2 + $0xc] sm:$0xf] }
 0x431   :  { %v6779_v19 = vor.u32 %v8437_v33, %v6776_v25 }
 0x432   :  { %v6769_v2 = vmul.f32 -1.442695, %v2196_v49  ;;  %v6770_v43 = vmul.f32 -1.442695, %v2197_v1  ;;  %v6787_v1 = vor.u32 %v8438_v18, %v6784_v29  ;;  %2477 = vmatpush.bf16.msrb.mxu0 %v6775_v23  ;;  %v8499_v29 = vld [vmem:[%s11260_s2 + $0xec] sm:$0xf0] }
 0x433   :  { %2490 = vmatpush.bf16.msrb.mxu1 %v6779_v19 }
 0x434   :  { %8878 = vpow2.f32 %v6769_v2  ;;  %2516 = vmatpush.bf16.msrb.mxu3 %v6787_v1  ;;  %v246_v2 = vadd.f32 %v9492_v32, %v9458_v12  ;;  %v8500_v1 = vld [vmem:[%s11260_s2 + $0xf4] sm:$0xf0] }
 0x435   :  { %8880 = vpow2.f32 %v6770_v43 }
 0x436   :  { %v2179_v21 = vpop.f32.mrf.mxu2  ;;  %v2192_v14 = vpop.f32.mrf.mxu3 }
 0x437   :  { %v2199_v20 = vadd.f32 %v2192_v14, %v275_v46  ;;  %v2155_v8 = vpop.f32.mrf.mxu0  ;;  %v2168_v47 = vpop.f32.mrf.mxu1  ;;  %v2198_v27 = vadd.f32 %v2179_v21, %v246_v2 }
 0x439   :  { %v6771_v0 = vmul.f32 -1.442695, %v2199_v20 }
 0x43a   :  { %v8879_v44 = vpop.eup %8878 }
 0x43b   :  { %v8881_v7 = vpop.eup %8880  ;;  %v2204_v49 = vadd.f32 1.0, %v8879_v44  ;;  %8882 = vpow2.f32 %v6771_v0  ;;  %v8497_v44 = vld [vmem:[%s11260_s2 + $0xe4] sm:$0xf] }
 0x43c   :  { %v2223_v9 = vadd.f32 1.0, %v8881_v7  ;;  %v7019_v7 = vld [vmem:[%s11260_s2 + $0xf0] sm:$0xf0] }
 0x43d   :  { %8884 = vrcp.f32 %v2204_v49  ;;  %v2216_v54 = vand.u32 2147483648, %v2204_v49  ;;  %v2214_v46 = vand.u32 2147483647, %v2204_v49  ;;  %vm2210_vm15 = vweird.f32 %v2204_v49 }
 0x43e   :  { %8886 = vrcp.f32 %v2223_v9  ;;  %v2181_v16 = vpop.f32.mrf.mxu2  ;;  %v2194_v45 = vpop.f32.mrf.mxu3  ;;  %v2235_v63 = vand.u32 2147483648, %v2223_v9  ;;  %v2233_v57 = vand.u32 2147483647, %v2223_v9  ;;  %vm2229_vm0 = vweird.f32 %v2223_v9 }
 0x43f   :  { %v2217_v30 = vor.u32 1.1754944e-38, %v2216_v54  ;;  %vm2215_vm3 = vcmp.eq.f32.partialorder %v2214_v46, 8.507059e+37  ;;  %v8498_v45 = vld [vmem:[%s11260_s2 + $0xec] sm:$0xf] }
 0x440   :  { %v2236_v14 = vor.u32 1.1754944e-38, %v2235_v63  ;;  %vm2234_vm4 = vcmp.eq.f32.partialorder %v2233_v57, 8.507059e+37  ;;  %v8494_v63 = vld [vmem:[%s11260_s2 + $0xcc] sm:$0xf]  ;;  %v8491_v57 = vld [vmem:[%s11260_s2 + $0xac] sm:$0xf0] }
 0x441   :  { %v8883_v50 = vpop.eup %8882 }
 0x442   :  { %v2243_v43 = vadd.f32 1.0, %v8883_v50  ;;  %v7027_v50 = vld [vmem:[%s11260_s2 + $0xf8] sm:$0xf0] }
 0x443   :  { %v8885_v11 = vpop.eup %8884  ;;  %v7030_v2 = vor.u32 %v8498_v45, %v7027_v50  ;;  %v6937_v50 = vld [vmem:[%s11260_s2 + $0x40] sm:$0xf] }
 0x444   :  { %v8887_v51 = vpop.eup %8886  ;;  %v2206_v52 = vmul.f32 %v8885_v11, %v2204_v49  ;;  %8888 = vrcp.f32 %v2243_v43  ;;  %vm2211_vm13 = vweird.f32 %v8885_v11  ;;  %v2255_v33 = vand.u32 2147483648, %v2243_v43  ;;  %v7025_v49 = vld [vmem:[%s11260_s2 + $0xe8] sm:$0xf] }
 0x445   :  { %v2225_v53 = vmul.f32 %v8887_v51, %v2223_v9  ;;  %8890 = vtanh.f32 %v2198_v27  ;;  %vm2230_vm14 = vweird.f32 %v8887_v51  ;;  %vm2212_vm1 = vmor %vm2210_vm15, %vm2211_vm13  ;;  %vm2249_vm6 = vweird.f32 %v2243_v43  ;;  %2835 = vmatpush.bf16.msra.mxu3 %v7030_v2  ;;  %v8493_v27 = vld [vmem:[%s11260_s2 + $0xc4] sm:$0xf]  ;;  %v8479_v2 = vld [vmem:[%s11260_s2 + $0x4c] sm:$0xf0] }
 0x446   :  { %v2207_v55 = vsub.f32 1.0, %v2206_v52  ;;  %vm2231_vm2 = vmor %vm2229_vm0, %vm2230_vm14  ;;  %v2253_v23 = vand.u32 2147483647, %v2243_v43  ;;  %v2256_v41 = vor.u32 1.1754944e-38, %v2255_v33  ;;  %v7022_v9 = vor.u32 %v8497_v44, %v7019_v7  ;;  %v7003_v52 = vld [vmem:[%s11260_s2 + $0xd0] sm:$0xf0] }
 0x447   :  { %v2226_v35 = vsub.f32 1.0, %v2225_v53  ;;  %v7026_v16 = vor.u32 %v8500_v1, %v7025_v49  ;;  %v7009_v53 = vld [vmem:[%s11260_s2 + $0xc8] sm:$0xf]  ;;  %v8488_v33 = vld [vmem:[%s11260_s2 + $0x94] sm:$0xf0] }
 0x448   :  { %v2208_v5 = vmul.f32 %v8885_v11, %v2207_v55  ;;  %vm2254_vm8 = vcmp.eq.f32.partialorder %v2253_v23, 8.507059e+37  ;;  %2809 = vmatpush.bf16.msra.mxu1 %v7022_v9  ;;  %v8496_v55 = vld [vmem:[%s11260_s2 + $0xd4] sm:$0xf0]  ;;  %v6955_v44 = vld [vmem:[%s11260_s2 + $0x70] sm:$0xf0] }
 0x449   :  { %v2227_v56 = vmul.f32 %v8887_v51, %v2226_v35  ;;  %2822 = vmatpush.bf16.msra.mxu2 %v7026_v16  ;;  %v7006_v35 = vor.u32 %v8493_v27, %v7003_v52  ;;  %v7010_v54 = vor.u32 %v8496_v55, %v7009_v53  ;;  %v8484_v7 = vld [vmem:[%s11260_s2 + $0x74] sm:$0xf0]  ;;  %v8482_v9 = vld [vmem:[%s11260_s2 + $0x6c] sm:$0xf]  ;;  %v6963_v16 = vld [vmem:[%s11260_s2 + $0x78] sm:$0xf0] }
 0x44a   :  { %v8889_v58 = vpop.eup %8888  ;;  %v2209_v32 = vadd.f32 %v8885_v11, %v2208_v5  ;;  %v7011_v5 = vld [vmem:[%s11260_s2 + $0xd8] sm:$0xf0]  ;;  %v6966_v45 = vor.u32 %v8482_v9, %v6963_v16  ;;  %v6939_v27 = vld [vmem:[%s11260_s2 + $0x50] sm:$0xf0]  ;;  %v8480_v52 = vld [vmem:[%s11260_s2 + $0x54] sm:$0xf0] }
 0x44b   :  { %v2228_v10 = vadd.f32 %v8887_v51, %v2227_v56  ;;  %v2245_v21 = vmul.f32 %v8889_v58, %v2243_v43  ;;  %v8891_v26 = vpop.eup %8890  ;;  %vm2250_vm5 = vweird.f32 %v8889_v58  ;;  %v7001_v43 = vld [vmem:[%s11260_s2 + $0xc0] sm:$0xf]  ;;  %v7014_v46 = vor.u32 %v8494_v63, %v7011_v5  ;;  %v8534_v9 = vld [vmem:[#allocation9 + $0xec] sm:$0xf] }
 0x44c   :  { %v2213_v36 = vsel %vm2212_vm1, %v8885_v11, %v2209_v32  ;;  %vm2251_vm7 = vmor %vm2249_vm6, %vm2250_vm5  ;;  %v8495_v11 = vld [vmem:[%s11260_s2 + $0xcc] sm:$0xf0]  ;;  %2810 = vmatpush.bf16.msra.mxu1 %v7006_v35  ;;  %v6985_v56 = vld [vmem:[%s11260_s2 + $0xa0] sm:$0xf] }
 0x44d   :  { %v2218_v34 = vsel %vm2215_vm3, %v2217_v30, %v2213_v36  ;;  %v2232_v37 = vsel %vm2231_vm2, %v8887_v51, %v2228_v10  ;;  %v2246_v20 = vsub.f32 1.0, %v2245_v21  ;;  %v7002_v51 = vor.u32 %v8495_v11, %v7001_v43  ;;  %2823 = vmatpush.bf16.msra.mxu2 %v7010_v54  ;;  %2836 = vmatpush.bf16.msra.mxu3 %v7014_v46  ;;  %v6987_v30 = vld [vmem:[%s11260_s2 + $0xb0] sm:$0xf0]  ;;  %v6993_v10 = vld [vmem:[%s11260_s2 + $0xa8] sm:$0xf] }
 0x44e   :  { %v2237_v8 = vsel %vm2234_vm4, %v2236_v14, %v2232_v37  ;;  %v2260_v47 = vmul.f32 %v8891_v26, %v2218_v34  ;;  %v6986_v32 = vor.u32 %v8491_v57, %v6985_v56  ;;  %v8492_v21 = vld [vmem:[%s11260_s2 + $0xb4] sm:$0xf0]  ;;  %v8490_v26 = vld [vmem:[%s11260_s2 + $0xac] sm:$0xf]  ;;  %v6995_v34 = vld [vmem:[%s11260_s2 + $0xb8] sm:$0xf0]  ;;  %v6938_v11 = vor.u32 %v8479_v2, %v6937_v50 }
 0x44f   :  { %v2259_v62 = vmul.f32 %v2237_v8, %v10524_v59  ;;  %v2247_v15 = vmul.f32 %v8889_v58, %v2246_v20  ;;  %v7017_v59 = vld [vmem:[%s11260_s2 + $0xe0] sm:$0xf]  ;;  %v6994_v36 = vor.u32 %v8492_v21, %v6993_v10  ;;  %v6998_v37 = vor.u32 %v8490_v26, %v6995_v34  ;;  %v8487_v8 = vld [vmem:[%s11260_s2 + $0x8c] sm:$0xf0]  ;;  %v8477_v43 = vld [vmem:[%s11260_s2 + $0x44] sm:$0xf] }
 0x450   :  { %v7018_v31 = vor.u32 %v8499_v29, %v7017_v59  ;;  %v6969_v20 = vld [vmem:[%s11260_s2 + $0x80] sm:$0xf]  ;;  %v8481_v59 = vld [vmem:[%s11260_s2 + $0x64] sm:$0xf]  ;;  %v6942_v53 = vor.u32 %v8477_v43, %v6939_v27  ;;  %v8478_v35 = vld [vmem:[%s11260_s2 + $0x4c] sm:$0xf] }
 0x451   :  { %v10728_v22 = vadd.f32 %v2260_v47, %v2259_v62  ;;  %v2248_v40 = vadd.f32 %v8889_v58, %v2247_v15  ;;  %2824 = vmatpush.bf16.msra.mxu2 %v6994_v36  ;;  %v8485_v47 = vld [vmem:[%s11260_s2 + $0x84] sm:$0xf]  ;;  %2837 = vmatpush.bf16.msra.mxu3 %v6998_v37  ;;  %v6970_v62 = vor.u32 %v8487_v8, %v6969_v20  ;;  %v6971_v15 = vld [vmem:[%s11260_s2 + $0x90] sm:$0xf0]  ;;  %v6947_v54 = vld [vmem:[%s11260_s2 + $0x58] sm:$0xf0] }
 0x452   :  { %2796 = vmatpush.bf16.msra.mxu0 %v7018_v31  ;;  %v6974_v23 = vor.u32 %v8485_v47, %v6971_v15  ;;  %v6961_v31 = vld [vmem:[%s11260_s2 + $0x68] sm:$0xf]  ;;  %v6958_v49 = vor.u32 %v8481_v59, %v6955_v44  ;;  %v6950_v63 = vor.u32 %v8478_v35, %v6947_v54  ;;  %v6921_v5 = vld [vmem:[%s11260_s2 + $0x20] sm:$0xf]  ;;  %v8475_v46 = vld [vmem:[%s11260_s2 + $0x2c] sm:$0xf0] }
 0x453   :  { %8892 = vtanh.f32 %v10728_v22  ;;  %v2252_v25 = vsel %vm2251_vm7, %v8889_v58, %v2248_v40  ;;  %v8489_v58 = vld [vmem:[%s11260_s2 + $0xa4] sm:$0xf]  ;;  %v6977_v40 = vld [vmem:[%s11260_s2 + $0x88] sm:$0xf]  ;;  %v6962_v1 = vor.u32 %v8484_v7, %v6961_v31  ;;  %v6922_v57 = vor.u32 %v8475_v46, %v6921_v5  ;;  %v6931_v36 = vld [vmem:[%s11260_s2 + $0x38] sm:$0xf0] }
 0x454   :  { %v2257_v0 = vsel %vm2254_vm8, %v2256_v41, %v2252_v25  ;;  %v6990_v14 = vor.u32 %v8489_v58, %v6987_v30  ;;  %v6978_v25 = vor.u32 %v8488_v33, %v6977_v40  ;;  %v8486_v41 = vld [vmem:[%s11260_s2 + $0x8c] sm:$0xf]  ;;  %v8473_v56 = vld [vmem:[%s11260_s2 + $0x24] sm:$0xf]  ;;  %v6923_v58 = vld [vmem:[%s11260_s2 + $0x30] sm:$0xf0] }
 0x455   :  { %v8476_v30 = vld [vmem:[%s11260_s2 + $0x34] sm:$0xf0]  ;;  %v6926_v10 = vor.u32 %v8473_v56, %v6923_v58  ;;  %v6905_v34 = vld [vmem:[%s11260_s2] sm:$0xf]  ;;  %v8471_v37 = vld [vmem:[%s11260_s2 + $0xc] sm:$0xf0] }
 0x456   :  { %2797 = vmatpush.bf16.msra.mxu0 %v7002_v51  ;;  %2811 = vmatpush.bf16.msra.mxu1 %v6990_v14  ;;  %v6945_v51 = vld [vmem:[%s11260_s2 + $0x48] sm:$0xf]  ;;  %v8474_v14 = vld [vmem:[%s11260_s2 + $0x2c] sm:$0xf]  ;;  %v8469_v20 = vld [vmem:[%s11260_s2 + $0x4] sm:$0xf]  ;;  %v6906_v8 = vor.u32 %v8471_v37, %v6905_v34 }
 0x457   :  { %2825 = vmatpush.bf16.msra.mxu2 %v6978_v25  ;;  %v6946_v55 = vor.u32 %v8480_v52, %v6945_v51  ;;  %v6934_v26 = vor.u32 %v8474_v14, %v6931_v36  ;;  %v6907_v47 = vld [vmem:[%s11260_s2 + $0x10] sm:$0xf0]  ;;  %v8472_v15 = vld [vmem:[%s11260_s2 + $0x14] sm:$0xf0]  ;;  %v6915_v25 = vld [vmem:[%s11260_s2 + $0x18] sm:$0xf0] }
 0x458   :  { %v6910_v40 = vor.u32 %v8469_v20, %v6907_v47  ;;  %v8533_v59 = vld [vmem:[#allocation9 + $0xe4] sm:$0xf]  ;;  %v7174_v50 = vld [vmem:[#allocation9 + $0xf8] sm:$0xf0]  ;;  %v7148_v2 = vld [vmem:[#allocation9 + $0xc0] sm:$0xf] }
 0x459   :  { %v8893_v17 = vpop.eup %8892  ;;  %v8531_v43 = vld [vmem:[#allocation9 + $0xcc] sm:$0xf0]  ;;  %v7177_v51 = vor.u32 %v8534_v9, %v7174_v50  ;;  %v7158_v5 = vld [vmem:[#allocation9 + $0xd8] sm:$0xf0]  ;;  %v7132_v46 = vld [vmem:[#allocation9 + $0xa0] sm:$0xf] }
 0x45a   :  { %v2263_v19 = vmul.f32 %v8893_v17, %v2257_v0  ;;  %2798 = vmatpush.bf16.msra.mxu0 %v6986_v32  ;;  %v6979_v17 = vld [vmem:[%s11260_s2 + $0x98] sm:$0xf0]  ;;  %2812 = vmatpush.bf16.msra.mxu1 %v6974_v23  ;;  %v6929_v32 = vld [vmem:[%s11260_s2 + $0x28] sm:$0xf]  ;;  %v8470_v23 = vld [vmem:[%s11260_s2 + $0xc] sm:$0xf]  ;;  %v7149_v52 = vor.u32 %v8531_v43, %v7148_v2 }
 0x45b   :  { %v6982_v0 = vor.u32 %v8486_v41, %v6979_v17  ;;  %2826 = vmatpush.bf16.msra.mxu2 %v6962_v1  ;;  %v6930_v21 = vor.u32 %v8476_v30, %v6929_v32  ;;  %v7164_v41 = vld [vmem:[#allocation9 + $0xe0] sm:$0xf]  ;;  %v8536_v1 = vld [vmem:[#allocation9 + $0xf4] sm:$0xf0]  ;;  %v8525_v58 = vld [vmem:[#allocation9 + $0xa4] sm:$0xf] }
 0x45c   :  { %v2266_v18 = vpack.c.bf16 %v2263_v19, %v2263_v19  ;;  %v6953_v19 = vld [vmem:[%s11260_s2 + $0x60] sm:$0xf]  ;;  %v7134_v32 = vld [vmem:[#allocation9 + $0xb0] sm:$0xf0]  ;;  %v7140_v14 = vld [vmem:[#allocation9 + $0xa8] sm:$0xf] }
 0x45d   :  { %2838 = vmatpush.bf16.msra.mxu3 %v6982_v0  ;;  %v8528_v36 = vld [vmem:[#allocation9 + $0xb4] sm:$0xf0]  ;;  %v7100_v9 = vld [vmem:[#allocation9 + $0x60] sm:$0xf]  ;;  %v8519_v50 = vld [vmem:[#allocation9 + $0x6c] sm:$0xf0] }
 0x45e   :  { %2268 = vst [vmem:[#allocation7 + $0x14] sm:$0xf] %v2266_v18  ;;  %2478 = vmatmul.bf16.vlgmr.msrb.gmra.mxu0 %v2266_v18  ;;  %2491 = vmatmul.bf16.vlgmr.msrb.gmra.mxu1 %v2266_v18  ;;  %v7141_v47 = vor.u32 %v8528_v36, %v7140_v14  ;;  %v7101_v2 = vor.u32 %v8519_v50, %v7100_v9  ;;  %v8517_v43 = vld [vmem:[#allocation9 + $0x64] sm:$0xf]  ;;  %v8516_v14 = vld [vmem:[#allocation9 + $0x54] sm:$0xf0] }
 0x45f   :  { %2504 = vmatmul.bf16.vlgmr.msrb.gmra.mxu2 %v2266_v18  ;;  %2517 = vmatmul.bf16.vlgmr.msrb.gmra.mxu3 %v2266_v18  ;;  %v8483_v18 = vld [vmem:[%s11260_s2 + $0x6c] sm:$0xf0] }
 0x460   :  { %2799 = vmatpush.bf16.msra.mxu0 %v6970_v62  ;;  %v6954_v29 = vor.u32 %v8483_v18, %v6953_v19  ;;  %2813 = vmatpush.bf16.msra.mxu1 %v6958_v49  ;;  %v6913_v62 = vld [vmem:[%s11260_s2 + $0x8] sm:$0xf]  ;;  %v6918_v19 = vor.u32 %v8470_v23, %v6915_v25  ;;  %v8535_v18 = vld [vmem:[#allocation9 + $0xec] sm:$0xf0]  ;;  %v8521_v23 = vld [vmem:[#allocation9 + $0x84] sm:$0xf] }
 0x461   :  { %2839 = vmatpush.bf16.msra.mxu3 %v6966_v45  ;;  %2827 = vmatpush.bf16.msra.mxu2 %v6946_v55  ;;  %v6914_v33 = vor.u32 %v8472_v15, %v6913_v62  ;;  %v7165_v7 = vor.u32 %v8535_v18, %v7164_v41  ;;  %v7172_v49 = vld [vmem:[#allocation9 + $0xe8] sm:$0xf]  ;;  %v8532_v55 = vld [vmem:[#allocation9 + $0xd4] sm:$0xf0]  ;;  %v7142_v62 = vld [vmem:[#allocation9 + $0xb8] sm:$0xf0] }
 0x462   :  { %v7173_v45 = vor.u32 %v8536_v1, %v7172_v49  ;;  %v7116_v15 = vld [vmem:[#allocation9 + $0x80] sm:$0xf]  ;;  %v7118_v25 = vld [vmem:[#allocation9 + $0x90] sm:$0xf0]  ;;  %v7124_v41 = vld [vmem:[#allocation9 + $0x88] sm:$0xf] }
 0x463   :  { %v8507_v50 = vld [vmem:[#allocation9 + $0xc] sm:$0xf0] }
 0x464   :  { %2800 = vmatpush.bf16.msra.mxu0 %v6954_v29  ;;  %2814 = vmatpush.bf16.msra.mxu1 %v6942_v53  ;;  %v7166_v29 = vld [vmem:[#allocation9 + $0xf0] sm:$0xf0]  ;;  %v7156_v53 = vld [vmem:[#allocation9 + $0xc8] sm:$0xf] }
 0x465   :  { %2840 = vmatpush.bf16.msra.mxu3 %v6950_v63  ;;  %2828 = vmatpush.bf16.msra.mxu2 %v6930_v21  ;;  %v7169_v16 = vor.u32 %v8533_v59, %v7166_v29  ;;  %v7157_v54 = vor.u32 %v8532_v55, %v7156_v53  ;;  %v8530_v63 = vld [vmem:[#allocation9 + $0xcc] sm:$0xf]  ;;  %v7126_v59 = vld [vmem:[#allocation9 + $0x98] sm:$0xf0] }
 0x466   :  { %v7161_v56 = vor.u32 %v8530_v63, %v7158_v5  ;;  %v7084_v63 = vld [vmem:[#allocation9 + $0x40] sm:$0xf] }
 0x468   :  { %2801 = vmatpush.bf16.msra.mxu0 %v6938_v11  ;;  %2815 = vmatpush.bf16.msra.mxu1 %v6926_v10 }
 0x469   :  { %2841 = vmatpush.bf16.msra.mxu3 %v6934_v26  ;;  %2829 = vmatpush.bf16.msra.mxu2 %v6914_v33  ;;  %v8526_v26 = vld [vmem:[#allocation9 + $0xac] sm:$0xf] }
 0x46a   :  { %v7145_v33 = vor.u32 %v8526_v26, %v7142_v62  ;;  %v7094_v26 = vld [vmem:[#allocation9 + $0x58] sm:$0xf0] }
 0x46c   :  { %2802 = vmatpush.bf16.msra.mxu0 %v6922_v57  ;;  %2816 = vmatpush.bf16.msra.mxu1 %v6910_v40  ;;  %v8527_v57 = vld [vmem:[#allocation9 + $0xac] sm:$0xf0] }
 0x46d   :  { %2842 = vmatpush.bf16.msra.mxu3 %v6918_v19  ;;  %3213 = vmatpush.bf16.msrb.mxu2 %v7173_v45  ;;  %v7133_v21 = vor.u32 %v8527_v57, %v7132_v46  ;;  %v8523_v40 = vld [vmem:[#allocation9 + $0x8c] sm:$0xf0]  ;;  %v8522_v19 = vld [vmem:[#allocation9 + $0x8c] sm:$0xf]  ;;  %v8513_v57 = vld [vmem:[#allocation9 + $0x44] sm:$0xf] }
 0x46e   :  { %v7129_v1 = vor.u32 %v8522_v19, %v7126_v59 }
 0x470   :  { %2803 = vmatpush.bf16.msra.mxu0 %v6906_v8  ;;  %3184 = vmatpush.bf16.msrb.mxu1 %v7169_v16  ;;  %v7137_v8 = vor.u32 %v8525_v58, %v7134_v32 }
 0x471   :  { %3242 = vmatpush.bf16.msrb.mxu3 %v7177_v51  ;;  %3214 = vmatpush.bf16.msrb.mxu2 %v7157_v54  ;;  %v7110_v54 = vld [vmem:[#allocation9 + $0x78] sm:$0xf0] }
 0x474   :  { %3155 = vmatpush.bf16.msrb.mxu0 %v7165_v7 }
 0x475   :  { %3243 = vmatpush.bf16.msrb.mxu3 %v7161_v56  ;;  %3215 = vmatpush.bf16.msrb.mxu2 %v7141_v47  ;;  %v8515_v56 = vld [vmem:[#allocation9 + $0x4c] sm:$0xf0] }
 0x476   :  { %v7085_v32 = vor.u32 %v8515_v56, %v7084_v63  ;;  %v8511_v47 = vld [vmem:[#allocation9 + $0x2c] sm:$0xf0]  ;;  %v8506_v63 = vld [vmem:[#allocation9 + $0xc] sm:$0xf] }
 0x478   :  { %3156 = vmatpush.bf16.msrb.mxu0 %v7149_v52  ;;  %v7108_v52 = vld [vmem:[#allocation9 + $0x68] sm:$0xf] }
 0x479   :  { %3244 = vmatpush.bf16.msrb.mxu3 %v7145_v33 }
 0x47c   :  { %3157 = vmatpush.bf16.msrb.mxu0 %v7133_v21  ;;  %v7092_v21 = vld [vmem:[#allocation9 + $0x48] sm:$0xf] }
 0x47d   :  { %3245 = vmatpush.bf16.msrb.mxu3 %v7129_v1 }
 0x4db   :  { %v2479_v17 = vpop.f32.mrf.mxu0  ;;  %v2492_v0 = vpop.f32.mrf.mxu1 }
 0x4dc   :  { %v2522_v44 = vadd.f32 %v2479_v17, %v9515_v42  ;;  %v2523_v31 = vadd.f32 %v2492_v0, %v9524_v48  ;;  %v8529_v42 = vld [vmem:[#allocation9 + $0xc4] sm:$0xf]  ;;  %v7150_v48 = vld [vmem:[#allocation9 + $0xd0] sm:$0xf0]  ;;  %v8524_v0 = vld [vmem:[#allocation9 + $0x94] sm:$0xf0] }
 0x4dd   :  { %v7153_v35 = vor.u32 %v8529_v42, %v7150_v48  ;;  %v7125_v7 = vor.u32 %v8524_v0, %v7124_v41  ;;  %v8520_v42 = vld [vmem:[#allocation9 + $0x74] sm:$0xf0] }
 0x4de   :  { %v6900_v11 = vmul.f32 -1.442695, %v2522_v44  ;;  %v6901_v27 = vmul.f32 -1.442695, %v2523_v31  ;;  %v7121_v31 = vor.u32 %v8521_v23, %v7118_v25  ;;  %v7109_v55 = vor.u32 %v8520_v42, %v7108_v52  ;;  %v8509_v23 = vld [vmem:[#allocation9 + $0x24] sm:$0xf] }
 0x4df   :  { %3185 = vmatpush.bf16.msrb.mxu1 %v7153_v35  ;;  %3216 = vmatpush.bf16.msrb.mxu2 %v7125_v7  ;;  %v8518_v35 = vld [vmem:[#allocation9 + $0x6c] sm:$0xf]  ;;  %v7070_v25 = vld [vmem:[#allocation9 + $0x30] sm:$0xf0]  ;;  %v7078_v7 = vld [vmem:[#allocation9 + $0x38] sm:$0xf0] }
 0x4e0   :  { %8894 = vpow2.f32 %v6900_v11  ;;  %v7102_v11 = vld [vmem:[#allocation9 + $0x70] sm:$0xf0]  ;;  %v7113_v46 = vor.u32 %v8518_v35, %v7110_v54  ;;  %v7073_v59 = vor.u32 %v8509_v23, %v7070_v25  ;;  %v7060_v52 = vld [vmem:[#allocation9 + $0x8] sm:$0xf]  ;;  %v8508_v42 = vld [vmem:[#allocation9 + $0x14] sm:$0xf0]  ;;  %v193_v23 = vadd.f32 %v9562_v28, %v9444_v4 }
 0x4e1   :  { %8896 = vpow2.f32 %v6901_v27  ;;  %v7105_v51 = vor.u32 %v8517_v43, %v7102_v11  ;;  %v222_v25 = vadd.f32 %v9576_v39, %v9448_v6  ;;  %v7294_v39 = vld [vmem:[#allocation11 + $0xf0] sm:$0xf0] }
 0x4e2   :  { %v2505_v30 = vpop.f32.mrf.mxu2  ;;  %v2518_v10 = vpop.f32.mrf.mxu3  ;;  %3246 = vmatpush.bf16.msrb.mxu3 %v7113_v46  ;;  %v7062_v46 = vld [vmem:[#allocation9 + $0x18] sm:$0xf0] }
 0x4e3   :  { %v2525_v34 = vadd.f32 %v2518_v10, %v9574_v38  ;;  %v2481_v37 = vpop.f32.mrf.mxu0  ;;  %v2494_v20 = vpop.f32.mrf.mxu1  ;;  %v7117_v38 = vor.u32 %v8523_v40, %v7116_v15  ;;  %3186 = vmatpush.bf16.msrb.mxu1 %v7137_v8  ;;  %v2524_v53 = vadd.f32 %v2505_v30, %v9560_v24  ;;  %3217 = vmatpush.bf16.msrb.mxu2 %v7109_v55  ;;  %v7086_v10 = vld [vmem:[#allocation9 + $0x50] sm:$0xf0]  ;;  %v8514_v30 = vld [vmem:[#allocation9 + $0x4c] sm:$0xf] }
 0x4e4   :  { %v7089_v15 = vor.u32 %v8513_v57, %v7086_v10  ;;  %v7093_v40 = vor.u32 %v8516_v14, %v7092_v21  ;;  %v7097_v33 = vor.u32 %v8514_v30, %v7094_v26  ;;  %v7061_v57 = vor.u32 %v8508_v42, %v7060_v52  ;;  %v7276_v52 = vld [vmem:[#allocation11 + $0xc0] sm:$0xf]  ;;  %v8563_v42 = vld [vmem:[#allocation11 + $0xcc] sm:$0xf0] }
 0x4e5   :  { %v6902_v17 = vmul.f32 -1.442695, %v2525_v34  ;;  %3158 = vmatpush.bf16.msrb.mxu0 %v7117_v38  ;;  %v7068_v34 = vld [vmem:[#allocation9 + $0x20] sm:$0xf]  ;;  %v7065_v14 = vor.u32 %v8506_v63, %v7062_v46  ;;  %v8562_v63 = vld [vmem:[#allocation11 + $0xcc] sm:$0xf] }
 0x4e6   :  { %v8895_v18 = vpop.eup %8894  ;;  %v7069_v19 = vor.u32 %v8511_v47, %v7068_v34  ;;  %3247 = vmatpush.bf16.msrb.mxu3 %v7097_v33  ;;  %v8502_v33 = vld [vmem:[#allocation7 + $0x8] sm:$0xff] }
 0x4e7   :  { %v8897_v29 = vpop.eup %8896  ;;  %v10926_v44 = vadd.f32 1.0, %v8895_v18  ;;  %8898 = vpow2.f32 %v6902_v17  ;;  %3187 = vmatpush.bf16.msrb.mxu1 %v7121_v31  ;;  %v7076_v18 = vld [vmem:[#allocation9 + $0x28] sm:$0xf]  ;;  %3218 = vmatpush.bf16.msrb.mxu2 %v7093_v40  ;;  %v8510_v31 = vld [vmem:[#allocation9 + $0x2c] sm:$0xf]  ;;  %v8501_v40 = vld [vmem:[#allocation7] sm:$0xff] }
 0x4e8   :  { %v10928_v49 = vadd.f32 1.0, %v8897_v29  ;;  %v8512_v29 = vld [vmem:[#allocation9 + $0x34] sm:$0xf0] }
 0x4e9   :  { %8900 = vrcp.f32 %v10926_v44  ;;  %v2540_v27 = vand.u32 2147483647, %v10926_v44  ;;  %3159 = vmatpush.bf16.msrb.mxu0 %v7101_v2  ;;  %v2542_v8 = vand.u32 2147483648, %v10926_v44  ;;  %v7077_v9 = vor.u32 %v8512_v29, %v7076_v18  ;;  %v8505_v2 = vld [vmem:[#allocation9 + $0x4] sm:$0xf] }
 0x4ea   :  { %8902 = vrcp.f32 %v10928_v49  ;;  %v2507_v16 = vpop.f32.mrf.mxu2  ;;  %v2520_v45 = vpop.f32.mrf.mxu3  ;;  %v2561_v20 = vand.u32 2147483648, %v10928_v49  ;;  %v2559_v0 = vand.u32 2147483647, %v10928_v49  ;;  %vm2555_vm12 = vweird.f32 %v10928_v49 }
 0x4eb   :  { %3188 = vmatpush.bf16.msrb.mxu1 %v7105_v51  ;;  %vm10947_vm9 = vcmp.eq.f32.partialorder %v2540_v27, 8.507059e+37  ;;  %v7081_v16 = vor.u32 %v8510_v31, %v7078_v7  ;;  %v7052_v45 = vld [vmem:[#allocation9] sm:$0xf]  ;;  %vm2536_vm13 = vweird.f32 %v10926_v44  ;;  %v7054_v51 = vld [vmem:[#allocation9 + $0x10] sm:$0xf0]  ;;  %v2543_v55 = vor.u32 1.1754944e-38, %v2542_v8  ;;  %3219 = vmatpush.bf16.msrb.mxu2 %v7077_v9 }
 0x4ec   :  { %v7053_v27 = vor.u32 %v8507_v50, %v7052_v45  ;;  %vm2560_vm0 = vcmp.eq.f32.partialorder %v2559_v0, 8.507059e+37  ;;  %v7057_v56 = vor.u32 %v8505_v2, %v7054_v51  ;;  %v7292_v7 = vld [vmem:[#allocation11 + $0xe0] sm:$0xf]  ;;  %v8565_v9 = vld [vmem:[#allocation11 + $0xe4] sm:$0xf] }
 0x4ed   :  { %v8899_v48 = vpop.eup %8898  ;;  %3160 = vmatpush.bf16.msrb.mxu0 %v7085_v32  ;;  %3248 = vmatpush.bf16.msrb.mxu3 %v7081_v16  ;;  %v8566_v45 = vld [vmem:[#allocation11 + $0xec] sm:$0xf]  ;;  %v7302_v50 = vld [vmem:[#allocation11 + $0xf8] sm:$0xf0]  ;;  %v7297_v2 = vor.u32 %v8565_v9, %v7294_v39  ;;  %v8551_v9 = vld [vmem:[#allocation11 + $0x6c] sm:$0xf0] }
 0x4ee   :  { %v10934_v5 = vadd.f32 1.0, %v8899_v48  ;;  %v8537_v39 = vld [vmem:[#allocation11 + $0x4] sm:$0xf] }
 0x4ef   :  { %v10936_v58 = vpop.eup %8900  ;;  %3189 = vmatpush.bf16.msrb.mxu1 %v7089_v15  ;;  %3220 = vmatpush.bf16.msrb.mxu2 %v7061_v57  ;;  %v7284_v57 = vld [vmem:[#allocation11 + $0xc8] sm:$0xf] }
 0x4f0   :  { %v10938_v36 = vpop.eup %8902  ;;  %v2532_v24 = vmul.f32 %v10936_v58, %v10926_v44  ;;  %8904 = vrcp.f32 %v10934_v5  ;;  %vm2537_vm10 = vweird.f32 %v10936_v58  ;;  %vm2575_vm2 = vweird.f32 %v10934_v5 }
 0x4f1   :  { %v2551_v37 = vmul.f32 %v10938_v36, %v10928_v49  ;;  %8906 = vtanh.f32 %v2524_v53  ;;  %vm2556_vm11 = vweird.f32 %v10938_v36  ;;  %3161 = vmatpush.bf16.msrb.mxu0 %v7069_v19  ;;  %v2562_v53 = vor.u32 1.1754944e-38, %v2561_v20  ;;  %vm2538_vm14 = vmor %vm2536_vm13, %vm2537_vm10  ;;  %3249 = vmatpush.bf16.msrb.mxu3 %v7065_v14  ;;  %v7260_v14 = vld [vmem:[#allocation11 + $0xa0] sm:$0xf] }
 0x4f2   :  { %v2533_v62 = vsub.f32 1.0, %v2532_v24  ;;  %vm2557_vm15 = vmor %vm2555_vm12, %vm2556_vm11 }
 0x4f3   :  { %v2552_v41 = vsub.f32 1.0, %v2551_v37  ;;  %3190 = vmatpush.bf16.msrb.mxu1 %v7073_v59  ;;  %v2579_v37 = vand.u32 2147483647, %v10934_v5  ;;  %v280_v59 = vadd.f32 %v9623_v61, %v9460_v13 }
 0x4f4   :  { %v2534_v38 = vmul.f32 %v10936_v58, %v2533_v62 }
 0x4f5   :  { %v2553_v1 = vmul.f32 %v10938_v36, %v2552_v41  ;;  %3162 = vmatpush.bf16.msrb.mxu0 %v7053_v27  ;;  %vm2580_vm4 = vcmp.eq.f32.partialorder %v2579_v37, 8.507059e+37  ;;  %v8568_v27 = vld [vmem:[#allocation11 + $0xf4] sm:$0xf0] }
 0x4f6   :  { %v8905_v43 = vpop.eup %8904  ;;  %v2535_v11 = vadd.f32 %v10936_v58, %v2534_v38 }
 0x4f7   :  { %v8907_v48 = vpop.eup %8906  ;;  %v2554_v35 = vadd.f32 %v10938_v36, %v2553_v1  ;;  %v2571_v54 = vmul.f32 %v8905_v43, %v10934_v5  ;;  %3191 = vmatpush.bf16.msrb.mxu1 %v7057_v56  ;;  %vm2576_vm1 = vweird.f32 %v8905_v43  ;;  %v8567_v1 = vld [vmem:[#allocation11 + $0xec] sm:$0xf0]  ;;  %v7286_v56 = vld [vmem:[#allocation11 + $0xd8] sm:$0xf0] }
 0x4f8   :  { %v2539_v44 = vsel %vm2538_vm14, %v10936_v58, %v2535_v11  ;;  %vm2577_vm3 = vmor %vm2575_vm2, %vm2576_vm1  ;;  %v7293_v6 = vor.u32 %v8567_v1, %v7292_v7  ;;  %v7300_v11 = vld [vmem:[#allocation11 + $0xe8] sm:$0xf]  ;;  %v8560_v7 = vld [vmem:[#allocation11 + $0xb4] sm:$0xf0] }
 0x4f9   :  { %v2544_v32 = vsel %vm10947_vm9, %v2543_v55, %v2539_v44  ;;  %v2558_v10 = vsel %vm2557_vm15, %v10938_v36, %v2554_v35  ;;  %v2572_v21 = vsub.f32 1.0, %v2571_v54  ;;  %v2581_v36 = vand.u32 2147483648, %v10934_v5  ;;  %v8503_v5 = vld [vmem:[#allocation7 + $0x10] sm:$0xff]  ;;  %v7228_v1 = vld [vmem:[#allocation11 + $0x60] sm:$0xf] }
 0x4fa   :  { %v2563_v24 = vsel %vm2560_vm0, %v2562_v53, %v2558_v10  ;;  %v2586_v30 = vmul.f32 %v8907_v48, %v2544_v32  ;;  %v7301_v13 = vor.u32 %v8568_v27, %v7300_v11  ;;  %v8561_v48 = vld [vmem:[#allocation11 + $0xc4] sm:$0xf]  ;;  %v7277_v35 = vor.u32 %v8563_v42, %v7276_v52  ;;  %v7278_v54 = vld [vmem:[#allocation11 + $0xd0] sm:$0xf0]  ;;  %v8564_v32 = vld [vmem:[#allocation11 + $0xd4] sm:$0xf0] }
 0x4fb   :  { %v2585_v49 = vmul.f32 %v2563_v24, %v10728_v22  ;;  %v2573_v26 = vmul.f32 %v8905_v43, %v2572_v21  ;;  %v2582_v8 = vor.u32 1.1754944e-38, %v2581_v36  ;;  %v7281_v44 = vor.u32 %v8561_v48, %v7278_v54  ;;  %v7238_v52 = vld [vmem:[#allocation11 + $0x78] sm:$0xf0]  ;;  %v7252_v48 = vld [vmem:[#allocation11 + $0x88] sm:$0xf] }
 0x4fc   :  { %v251_v24 = vadd.f32 %v9610_v3, %v9458_v12  ;;  %v7285_v36 = vor.u32 %v8564_v32, %v7284_v57  ;;  %v8545_v57 = vld [vmem:[#allocation11 + $0x44] sm:$0xf]  ;;  %v7214_v32 = vld [vmem:[#allocation11 + $0x50] sm:$0xf0] }
 0x4fd   :  { %v10972_v58 = vadd.f32 %v2586_v30, %v2585_v49  ;;  %v2574_v34 = vadd.f32 %v8905_v43, %v2573_v26  ;;  %v7289_v49 = vor.u32 %v8562_v63, %v7286_v56  ;;  %v8559_v26 = vld [vmem:[#allocation11 + $0xac] sm:$0xf0] }
 0x4fe   :  { %v8547_v56 = vld [vmem:[#allocation11 + $0x4c] sm:$0xf0] }
 0x4ff   :  { %8908 = vtanh.f32 %v10972_v58  ;;  %v2578_v20 = vsel %vm2577_vm3, %v8905_v43, %v2574_v34  ;;  %v7305_v43 = vor.u32 %v8566_v45, %v7302_v50  ;;  %v8557_v34 = vld [vmem:[#allocation11 + $0xa4] sm:$0xf] }
 0x500   :  { %v2583_v47 = vsel %vm2580_vm4, %v2582_v8, %v2578_v20  ;;  %v7262_v20 = vld [vmem:[#allocation11 + $0xb0] sm:$0xf0]  ;;  %v8558_v8 = vld [vmem:[#allocation11 + $0xac] sm:$0xf] }
 0x505   :  { %v8909_v22 = vpop.eup %8908 }
 0x506   :  { %v2589_v62 = vmul.f32 %v8909_v22, %v2583_v47 }
 0x508   :  { %v2592_v15 = vpack.c.bf16 %v2589_v62, %v2589_v62  ;;  %v7261_v62 = vor.u32 %v8559_v26, %v7260_v14  ;;  %v8546_v14 = vld [vmem:[#allocation11 + $0x4c] sm:$0xf] }
 0x50a   :  { %2594 = vst [vmem:[#allocation7 + $0x18] sm:$0xf] %v2592_v15  ;;  %2804 = vmatmul.bf16.vlgmr.msra.gmra.mxu0 %v2592_v15  ;;  %2817 = vmatmul.bf16.vlgmr.msra.gmra.mxu1 %v2592_v15 }
 0x50b   :  { %2830 = vmatmul.bf16.vlgmr.msra.gmra.mxu2 %v2592_v15  ;;  %2843 = vmatmul.bf16.vlgmr.msra.gmra.mxu3 %v2592_v15  ;;  %v7265_v15 = vor.u32 %v8557_v34, %v7262_v20  ;;  %v8552_v20 = vld [vmem:[#allocation11 + $0x74] sm:$0xf0] }
 0x50c   :  { %3503 = vmatpush.bf16.msra.mxu0 %v7293_v6  ;;  %3516 = vmatpush.bf16.msra.mxu1 %v7297_v2  ;;  %v7230_v2 = vld [vmem:[#allocation11 + $0x70] sm:$0xf0] }
 0x50d   :  { %3542 = vmatpush.bf16.msra.mxu3 %v7305_v43  ;;  %3529 = vmatpush.bf16.msra.mxu2 %v7301_v13  ;;  %v8550_v43 = vld [vmem:[#allocation11 + $0x6c] sm:$0xf] }
 0x50e   :  { %v7241_v63 = vor.u32 %v8550_v43, %v7238_v52  ;;  %v7190_v43 = vld [vmem:[#allocation11 + $0x18] sm:$0xf0]  ;;  %v7188_v52 = vld [vmem:[#allocation11 + $0x8] sm:$0xf] }
 0x510   :  { %3504 = vmatpush.bf16.msra.mxu0 %v7277_v35  ;;  %3517 = vmatpush.bf16.msra.mxu1 %v7281_v44 }
 0x511   :  { %3543 = vmatpush.bf16.msra.mxu3 %v7289_v49  ;;  %3530 = vmatpush.bf16.msra.mxu2 %v7285_v36 }
 0x514   :  { %3505 = vmatpush.bf16.msra.mxu0 %v7261_v62  ;;  %3518 = vmatpush.bf16.msra.mxu1 %v7265_v15  ;;  %v8543_v15 = vld [vmem:[#allocation11 + $0x2c] sm:$0xf0] }
 0x51a   :  { %3163 = vmatmul.bf16.vlgmr.msrb.gmra.mxu0 %v8501_v40  ;;  %3192 = vmatmul.bf16.vlgmr.msrb.gmra.mxu1 %v8501_v40 }
 0x51b   :  { %3221 = vmatmul.bf16.vlgmr.msrb.gmra.mxu2 %v8501_v40  ;;  %3250 = vmatmul.bf16.vlgmr.msrb.gmra.mxu3 %v8501_v40  ;;  %v7270_v40 = vld [vmem:[#allocation11 + $0xb8] sm:$0xf0] }
 0x52a   :  { %3168 = vmatmul.bf16.gmra.mxu0 %v8502_v33  ;;  %3197 = vmatmul.bf16.gmra.mxu1 %v8502_v33 }
 0x52b   :  { %3226 = vmatmul.bf16.gmra.mxu2 %v8502_v33  ;;  %3255 = vmatmul.bf16.gmra.mxu3 %v8502_v33  ;;  %v7244_v33 = vld [vmem:[#allocation11 + $0x80] sm:$0xf] }
 0x53a   :  { %3173 = vmatmul.bf16.gmra.mxu0 %v8503_v5  ;;  %3202 = vmatmul.bf16.gmra.mxu1 %v8503_v5 }
 0x53b   :  { %3231 = vmatmul.bf16.gmra.mxu2 %v8503_v5  ;;  %3260 = vmatmul.bf16.gmra.mxu3 %v8503_v5  ;;  %v8555_v5 = vld [vmem:[#allocation11 + $0x8c] sm:$0xf0] }
 0x587   :  { %v2805_v41 = vpop.f32.mrf.mxu0  ;;  %v2818_v17 = vpop.f32.mrf.mxu1 }
 0x588   :  { %v2848_v0 = vadd.f32 %v2805_v41, %v193_v23  ;;  %v2849_v19 = vadd.f32 %v2818_v17, %v222_v25  ;;  %v7273_v23 = vor.u32 %v8558_v8, %v7270_v40  ;;  %v8553_v25 = vld [vmem:[#allocation11 + $0x84] sm:$0xf]  ;;  %v7246_v41 = vld [vmem:[#allocation11 + $0x90] sm:$0xf0]  ;;  %v7196_v8 = vld [vmem:[#allocation11 + $0x20] sm:$0xf] }
 0x589   :  { %v8541_v40 = vld [vmem:[#allocation11 + $0x24] sm:$0xf] }
 0x58a   :  { %v7031_v18 = vmul.f32 -1.442695, %v2848_v0  ;;  %v7032_v38 = vmul.f32 -1.442695, %v2849_v19  ;;  %v7245_v0 = vor.u32 %v8555_v5, %v7244_v33  ;;  %v7249_v19 = vor.u32 %v8553_v25, %v7246_v41  ;;  %3544 = vmatpush.bf16.msra.mxu3 %v7273_v23  ;;  %v7198_v33 = vld [vmem:[#allocation11 + $0x30] sm:$0xf0] }
 0x58b   :  { %v7220_v41 = vld [vmem:[#allocation11 + $0x48] sm:$0xf] }
 0x58c   :  { %8910 = vpow2.f32 %v7031_v18  ;;  %v8554_v18 = vld [vmem:[#allocation11 + $0x8c] sm:$0xf]  ;;  %3506 = vmatpush.bf16.msra.mxu0 %v7245_v0  ;;  %3519 = vmatpush.bf16.msra.mxu1 %v7249_v19  ;;  %v8548_v0 = vld [vmem:[#allocation11 + $0x54] sm:$0xf0] }
 0x58d   :  { %8912 = vpow2.f32 %v7032_v38  ;;  %v7254_v38 = vld [vmem:[#allocation11 + $0x98] sm:$0xf0] }
 0x58e   :  { %v2831_v29 = vpop.f32.mrf.mxu2  ;;  %v2844_v31 = vpop.f32.mrf.mxu3  ;;  %v7257_v45 = vor.u32 %v8554_v18, %v7254_v38  ;;  %v8542_v18 = vld [vmem:[#allocation11 + $0x2c] sm:$0xf]  ;;  %v7206_v38 = vld [vmem:[#allocation11 + $0x38] sm:$0xf0] }
 0x58f   :  { %v2851_v4 = vadd.f32 %v2844_v31, %v280_v59  ;;  %v2807_v28 = vpop.f32.mrf.mxu0  ;;  %v2820_v16 = vpop.f32.mrf.mxu1  ;;  %v2850_v47 = vadd.f32 %v2831_v29, %v251_v24  ;;  %v7268_v59 = vld [vmem:[#allocation11 + $0xa8] sm:$0xf]  ;;  %v7222_v24 = vld [vmem:[#allocation11 + $0x58] sm:$0xf0] }
 0x590   :  { %v8549_v16 = vld [vmem:[#allocation11 + $0x64] sm:$0xf]  ;;  %v7269_v50 = vor.u32 %v8560_v7, %v7268_v59  ;;  %3545 = vmatpush.bf16.msra.mxu3 %v7257_v45  ;;  %v7225_v25 = vor.u32 %v8546_v14, %v7222_v24  ;;  %v7197_v7 = vor.u32 %v8543_v15, %v7196_v8  ;;  %v7182_v45 = vld [vmem:[#allocation11 + $0x10] sm:$0xf0] }
 0x591   :  { %v7033_v51 = vmul.f32 -1.442695, %v2851_v4  ;;  %v7233_v54 = vor.u32 %v8549_v16, %v7230_v2 }
 0x592   :  { %v8911_v61 = vpop.eup %8910  ;;  %3531 = vmatpush.bf16.msra.mxu2 %v7269_v50  ;;  %v8544_v50 = vld [vmem:[#allocation11 + $0x34] sm:$0xf0] }
 0x593   :  { %v8913_v53 = vpop.eup %8912  ;;  %v10984_v55 = vadd.f32 1.0, %v8911_v61  ;;  %8914 = vpow2.f32 %v7033_v51  ;;  %v7229_v61 = vor.u32 %v8551_v9, %v7228_v1  ;;  %3520 = vmatpush.bf16.msra.mxu1 %v7233_v54  ;;  %v7221_v1 = vor.u32 %v8548_v0, %v7220_v41  ;;  %v7180_v9 = vld [vmem:[#allocation11] sm:$0xf] }
 0x594   :  { %v10986_v46 = vadd.f32 1.0, %v8913_v53  ;;  %v8556_v53 = vld [vmem:[#allocation11 + $0x94] sm:$0xf0]  ;;  %3546 = vmatpush.bf16.msra.mxu3 %v7241_v63 }
 0x595   :  { %8916 = vrcp.f32 %v10984_v55  ;;  %v2866_v30 = vand.u32 2147483647, %v10984_v55  ;;  %v2868_v37 = vand.u32 2147483648, %v10984_v55  ;;  %vm2862_vm6 = vweird.f32 %v10984_v55  ;;  %3507 = vmatpush.bf16.msra.mxu0 %v7229_v61 }
 0x596   :  { %8918 = vrcp.f32 %v10986_v46  ;;  %v2833_v10 = vpop.f32.mrf.mxu2  ;;  %v2846_v21 = vpop.f32.mrf.mxu3  ;;  %v2887_v12 = vand.u32 2147483648, %v10986_v46  ;;  %v2885_v28 = vand.u32 2147483647, %v10986_v46  ;;  %v7253_v44 = vor.u32 %v8556_v53, %v7252_v48 }
 0x597   :  { %vm11009_vm7 = vcmp.eq.f32.partialorder %v2866_v30, 8.507059e+37  ;;  %v2869_v13 = vor.u32 1.1754944e-38, %v2868_v37  ;;  %vm2881_vm10 = vweird.f32 %v10986_v46  ;;  %v7236_v30 = vld [vmem:[#allocation11 + $0x68] sm:$0xf] }
 0x598   :  { %v2888_v27 = vor.u32 1.1754944e-38, %v2887_v12  ;;  %vm11033_vm12 = vcmp.eq.f32.partialorder %v2885_v28, 8.507059e+37  ;;  %3532 = vmatpush.bf16.msra.mxu2 %v7253_v44  ;;  %v7237_v62 = vor.u32 %v8552_v20, %v7236_v30  ;;  %v7204_v28 = vld [vmem:[#allocation11 + $0x28] sm:$0xf]  ;;  %3547 = vmatpush.bf16.msra.mxu3 %v7225_v25 }
 0x599   :  { %v8915_v22 = vpop.eup %8914  ;;  %v7205_v61 = vor.u32 %v8544_v50, %v7204_v28  ;;  %v8595_v28 = vld [vmem:[#allocation11 + $0xcc] sm:$0xf0]  ;;  %v8596_v50 = vld [vmem:[#allocation11 + $0xd4] sm:$0xf0] }
 0x59a   :  { %v10995_v3 = vadd.f32 1.0, %v8915_v22 }
 0x59b   :  { %v10997_v17 = vpop.eup %8916 }
 0x59c   :  { %v10999_v29 = vpop.eup %8918  ;;  %v2858_v31 = vmul.f32 %v10997_v17, %v10984_v55  ;;  %vm2863_vm5 = vweird.f32 %v10997_v17  ;;  %8920 = vrcp.f32 %v10995_v3  ;;  %v7212_v55 = vld [vmem:[#allocation11 + $0x40] sm:$0xf]  ;;  %3533 = vmatpush.bf16.msra.mxu2 %v7237_v62  ;;  %vm2901_vm14 = vweird.f32 %v10995_v3 }
 0x59d   :  { %v2877_v4 = vmul.f32 %v10999_v29, %v10986_v46  ;;  %8922 = vtanh.f32 %v2850_v47  ;;  %vm11015_vm8 = vmor %vm2862_vm6, %vm2863_vm5  ;;  %vm2882_vm9 = vweird.f32 %v10999_v29  ;;  %v7213_v37 = vor.u32 %v8547_v56, %v7212_v55 }
 0x59e   :  { %v2859_v6 = vsub.f32 1.0, %v2858_v31  ;;  %vm11028_vm11 = vmor %vm2881_vm10, %vm2882_vm9  ;;  %v7217_v47 = vor.u32 %v8545_v57, %v7214_v32  ;;  %v2905_v51 = vand.u32 2147483647, %v10995_v3  ;;  %v11061_v57 = vpop.f32.mrf.mxu0  ;;  %v11063_v32 = vpop.f32.mrf.mxu1 }
 0x59f   :  { %v2878_v11 = vsub.f32 1.0, %v2877_v4  ;;  %3508 = vmatpush.bf16.msra.mxu0 %v7213_v37  ;;  %v8539_v4 = vld [vmem:[#allocation11 + $0xc] sm:$0xf0] }
 0x5a0   :  { %v2860_v42 = vmul.f32 %v10997_v17, %v2859_v6  ;;  %3521 = vmatpush.bf16.msra.mxu1 %v7217_v47  ;;  %v7209_v6 = vor.u32 %v8542_v18, %v7206_v38  ;;  %3534 = vmatpush.bf16.msra.mxu2 %v7221_v1  ;;  %vm2906_vm0 = vcmp.eq.f32.partialorder %v2905_v51, 8.507059e+37  ;;  %v8600_v18 = vld [vmem:[#allocation11 + $0xf4] sm:$0xf0]  ;;  %v7433_v1 = vld [vmem:[#allocation11 + $0xf8] sm:$0xf0] }
 0x5a1   :  { %v2879_v35 = vmul.f32 %v10999_v29, %v2878_v11  ;;  %v2907_v11 = vand.u32 2147483648, %v10995_v3 }
 0x5a2   :  { %v11022_v10 = vpop.eup %8920  ;;  %v2861_v21 = vadd.f32 %v10997_v17, %v2860_v42  ;;  %3548 = vmatpush.bf16.msra.mxu3 %v7209_v6  ;;  %v8540_v42 = vld [vmem:[#allocation11 + $0x14] sm:$0xf0] }
 0x5a3   :  { %v8923_v49 = vpop.eup %8922  ;;  %v2880_v34 = vadd.f32 %v10999_v29, %v2879_v35  ;;  %v2897_v46 = vmul.f32 %v11022_v10, %v10995_v3  ;;  %vm2902_vm13 = vweird.f32 %v11022_v10  ;;  %3509 = vmatpush.bf16.msra.mxu0 %v7197_v7  ;;  %v2908_v55 = vor.u32 1.1754944e-38, %v2907_v11  ;;  %v7417_v11 = vld [vmem:[#allocation11 + $0xd8] sm:$0xf0] }
 0x5a4   :  { %v2865_v22 = vsel %vm11015_vm8, %v10997_v17, %v2861_v21  ;;  %vm2903_vm15 = vmor %vm2901_vm14, %vm2902_vm13  ;;  %3535 = vmatpush.bf16.msra.mxu2 %v7205_v61  ;;  %v7189_v35 = vor.u32 %v8540_v42, %v7188_v52  ;;  %v11067_v21 = vpop.f32.mrf.mxu3  ;;  %v8591_v61 = vld [vmem:[#allocation11 + $0xac] sm:$0xf0]  ;;  %v8589_v52 = vld [vmem:[#allocation11 + $0xa4] sm:$0xf] }
 0x5a5   :  { %v2870_v5 = vsel %vm11009_vm7, %v2869_v13, %v2865_v22  ;;  %v2884_v12 = vsel %vm11028_vm11, %v10999_v29, %v2880_v34  ;;  %v2898_v23 = vsub.f32 1.0, %v2897_v46  ;;  %v7201_v29 = vor.u32 %v8541_v40, %v7198_v33 }
 0x5a6   :  { %v2889_v17 = vsel %vm11033_vm12, %v2888_v27, %v2884_v12  ;;  %v2912_v19 = vmul.f32 %v8923_v49, %v2870_v5  ;;  %v7181_v27 = vor.u32 %v8539_v4, %v7180_v9  ;;  %v7185_v13 = vor.u32 %v8537_v39, %v7182_v45  ;;  %v11069_v14 = vpop.f32.mrf.mxu0  ;;  %v11071_v24 = vpop.f32.mrf.mxu1  ;;  %v7423_v5 = vld [vmem:[#allocation11 + $0xe0] sm:$0xf]  ;;  %v8599_v12 = vld [vmem:[#allocation11 + $0xec] sm:$0xf0]  ;;  %v7409_v39 = vld [vmem:[#allocation11 + $0xd0] sm:$0xf0] }
 0x5a7   :  { %v2911_v59 = vmul.f32 %v2889_v17, %v10972_v58  ;;  %v2899_v31 = vmul.f32 %v11022_v10, %v2898_v23  ;;  %v8538_v58 = vld [vmem:[#allocation11 + $0xc] sm:$0xf]  ;;  %3522 = vmatpush.bf16.msra.mxu1 %v7201_v29  ;;  %v8597_v23 = vld [vmem:[#allocation11 + $0xe4] sm:$0xf]  ;;  %v7424_v0 = vor.u32 %v8599_v12, %v7423_v5  ;;  %v7425_v17 = vld [vmem:[#allocation11 + $0xf0] sm:$0xf0] }
 0x5a8   :  { %v7193_v48 = vor.u32 %v8538_v58, %v7190_v43  ;;  %3510 = vmatpush.bf16.msra.mxu0 %v7181_v27  ;;  %3536 = vmatpush.bf16.msra.mxu2 %v7189_v35  ;;  %v8598_v29 = vld [vmem:[#allocation11 + $0xec] sm:$0xf]  ;;  %v7407_v4 = vld [vmem:[#allocation11 + $0xc0] sm:$0xf]  ;;  %v7415_v45 = vld [vmem:[#allocation11 + $0xc8] sm:$0xf] }
 0x5a9   :  { %v2913_v16 = vadd.f32 %v2912_v19, %v2911_v59  ;;  %v2900_v2 = vadd.f32 %v11022_v10, %v2899_v31  ;;  %v7431_v19 = vld [vmem:[#allocation11 + $0xe8] sm:$0xf]  ;;  %v7428_v31 = vor.u32 %v8597_v23, %v7425_v17  ;;  %v7436_v9 = vor.u32 %v8598_v29, %v7433_v1  ;;  %v8594_v43 = vld [vmem:[#allocation11 + $0xcc] sm:$0xf]  ;;  %v11116_v27 = vld [vmem:[%s11264_s6] sm:$0xf] }
 0x5aa   :  { %3549 = vmatpush.bf16.msra.mxu3 %v7193_v48  ;;  %v7432_v7 = vor.u32 %v8600_v18, %v7431_v19  ;;  %v7408_v6 = vor.u32 %v8595_v28, %v7407_v4  ;;  %v7416_v58 = vor.u32 %v8596_v50, %v7415_v45  ;;  %v7420_v51 = vor.u32 %v8594_v43, %v7417_v11  ;;  %v7399_v35 = vld [vmem:[#allocation11 + $0xa8] sm:$0xf]  ;;  %v8590_v5 = vld [vmem:[#allocation11 + $0xac] sm:$0xf]  ;;  %v7401_v12 = vld [vmem:[#allocation11 + $0xb8] sm:$0xf0] }
 0x5ab   :  { %8924 = vtanh.f32 %v2913_v16  ;;  %v2904_v53 = vsel %vm2903_vm15, %v11022_v10, %v2900_v2  ;;  %3523 = vmatpush.bf16.msra.mxu1 %v7185_v13  ;;  %v11065_v10 = vpop.f32.mrf.mxu2  ;;  %v8593_v16 = vld [vmem:[#allocation11 + $0xc4] sm:$0xf]  ;;  %v7391_v13 = vld [vmem:[#allocation11 + $0xa0] sm:$0xf]  ;;  %v11127_v23 = vperm.slane %v11116_v27, 0  ;;  %v7404_v17 = vor.u32 %v8590_v5, %v7401_v12 }
 0x5ac   :  { %v2909_v63 = vsel %vm2906_vm0, %v2908_v55, %v2904_v53  ;;  %v11075_v49 = vpop.f32.mrf.mxu3  ;;  %3827 = vmatpush.bf16.msrb.mxu0 %v7424_v0  ;;  %3853 = vmatpush.bf16.msrb.mxu2 %v7432_v7  ;;  %v7412_v2 = vor.u32 %v8593_v16, %v7409_v39  ;;  %v7392_v53 = vor.u32 %v8591_v61, %v7391_v13  ;;  %v7393_v55 = vld [vmem:[#allocation11 + $0xb0] sm:$0xf0]  ;;  %v11130_v0 = vperm.slane %v11116_v27, 1  ;;  %v7375_v19 = vld [vmem:[#allocation11 + $0x80] sm:$0xf] }
 0x5ad   :  { %v8587_v18 = vld [vmem:[#allocation11 + $0x8c] sm:$0xf0]  ;;  %v7377_v29 = vld [vmem:[#allocation11 + $0x90] sm:$0xf0]  ;;  %v7383_v1 = vld [vmem:[#allocation11 + $0x88] sm:$0xf] }
 0x5ae   :  { %v11077_v26 = vpop.f32.mrf.mxu0  ;;  %v11079_v34 = vpop.f32.mrf.mxu1  ;;  %3866 = vmatpush.bf16.msrb.mxu3 %v7436_v9  ;;  %v7376_v7 = vor.u32 %v8587_v18, %v7375_v19  ;;  %v8588_v9 = vld [vmem:[#allocation11 + $0x94] sm:$0xf0]  ;;  %v8586_v16 = vld [vmem:[#allocation11 + $0x8c] sm:$0xf]  ;;  %v7359_v45 = vld [vmem:[#allocation11 + $0x60] sm:$0xf]  ;;  %v3194_v43 = vadd.f32 %v11063_v32, %v11130_v0 }
 0x5af   :  { %3840 = vmatpush.bf16.msrb.mxu1 %v7428_v31  ;;  %v8585_v31 = vld [vmem:[#allocation11 + $0x84] sm:$0xf]  ;;  %v7384_v28 = vor.u32 %v8588_v9, %v7383_v1  ;;  %v8583_v50 = vld [vmem:[#allocation11 + $0x6c] sm:$0xf0]  ;;  %v7361_v61 = vld [vmem:[#allocation11 + $0x70] sm:$0xf0] }
 0x5b0   :  { %3828 = vmatpush.bf16.msrb.mxu0 %v7408_v6  ;;  %3854 = vmatpush.bf16.msrb.mxu2 %v7416_v58  ;;  %v7380_v4 = vor.u32 %v8585_v31, %v7377_v29  ;;  %v7385_v6 = vld [vmem:[#allocation11 + $0x98] sm:$0xf0]  ;;  %v3165_v58 = vadd.f32 %v11061_v57, %v11127_v23  ;;  %v7360_v13 = vor.u32 %v8583_v50, %v7359_v45  ;;  %v11141_v57 = vperm.slane %v11116_v27, 3  ;;  %v7343_v19 = vld [vmem:[#allocation11 + $0x40] sm:$0xf] }
 0x5b1   :  { %v8925_v54 = vpop.eup %8924  ;;  %v7388_v39 = vor.u32 %v8586_v16, %v7385_v6  ;;  %v7369_v5 = vld [vmem:[#allocation11 + $0x78] sm:$0xf0]  ;;  %v8579_v18 = vld [vmem:[#allocation11 + $0x4c] sm:$0xf0]  ;;  %v8577_v31 = vld [vmem:[#allocation11 + $0x44] sm:$0xf] }
 0x5b2   :  { %v2915_v3 = vmul.f32 %v8925_v54, %v2909_v63  ;;  %3867 = vmatpush.bf16.msrb.mxu3 %v7420_v51  ;;  %v8592_v54 = vld [vmem:[#allocation11 + $0xb4] sm:$0xf0]  ;;  %v7344_v1 = vor.u32 %v8579_v18, %v7343_v19  ;;  %v7345_v9 = vld [vmem:[#allocation11 + $0x50] sm:$0xf0]  ;;  %v8578_v6 = vld [vmem:[#allocation11 + $0x4c] sm:$0xf] }
 0x5b3   :  { %v11073_v30 = vpop.f32.mrf.mxu2  ;;  %3841 = vmatpush.bf16.msrb.mxu1 %v7412_v2  ;;  %v8581_v2 = vld [vmem:[#allocation11 + $0x64] sm:$0xf]  ;;  %v8580_v16 = vld [vmem:[#allocation11 + $0x54] sm:$0xf0]  ;;  %v7353_v45 = vld [vmem:[#allocation11 + $0x58] sm:$0xf0] }
 0x5b4   :  { %v2918_v44 = vpack.c.bf16 %v2915_v3, %v2915_v3  ;;  %v11083_v36 = vpop.f32.mrf.mxu3  ;;  %3829 = vmatpush.bf16.msrb.mxu0 %v7392_v53  ;;  %v8584_v53 = vld [vmem:[#allocation11 + $0x74] sm:$0xf0]  ;;  %v7327_v50 = vld [vmem:[#allocation11 + $0x20] sm:$0xf] }
 0x5b5   :  { %v7311_v18 = vld [vmem:[#allocation11] sm:$0xf] }
 0x5b6   :  { %2920 = vst [vmem:[#allocation7 + $0x1c] sm:$0xf] %v2918_v44  ;;  %v11085_v46 = vpop.f32.mrf.mxu0  ;;  %v11087_v37 = vpop.f32.mrf.mxu1  ;;  %v7396_v44 = vor.u32 %v8589_v52, %v7393_v55  ;;  %3868 = vmatpush.bf16.msrb.mxu3 %v7404_v17  ;;  %v7367_v52 = vld [vmem:[#allocation11 + $0x68] sm:$0xf] }
 0x5b8   :  { %3842 = vmatpush.bf16.msrb.mxu1 %v7396_v44  ;;  %3830 = vmatpush.bf16.msrb.mxu0 %v7376_v7  ;;  %v7368_v44 = vor.u32 %v8584_v53, %v7367_v52  ;;  %v7329_v52 = vld [vmem:[#allocation11 + $0x30] sm:$0xf0]  ;;  %v7335_v53 = vld [vmem:[#allocation11 + $0x28] sm:$0xf] }
 0x5ba   :  { %3869 = vmatpush.bf16.msrb.mxu3 %v7388_v39 }
 0x5bc   :  { %v11091_v8 = vpop.f32.mrf.mxu3  ;;  %3843 = vmatpush.bf16.msrb.mxu1 %v7380_v4  ;;  %3831 = vmatpush.bf16.msrb.mxu0 %v7360_v13  ;;  %v7348_v4 = vor.u32 %v8577_v31, %v7345_v9  ;;  %v8571_v31 = vld [vmem:[#allocation11 + $0xc] sm:$0xf0]  ;;  %v7319_v9 = vld [vmem:[#allocation11 + $0x8] sm:$0xf] }
 0x5bd   :  { %v8504_v56 = vld [vmem:[#allocation7 + $0x18] sm:$0xff] }
 0x5be   :  { %3178 = vmatmul.bf16.gmra.mxu0 %v8504_v56  ;;  %3207 = vmatmul.bf16.gmra.mxu1 %v8504_v56  ;;  %v11093_v22 = vpop.f32.mrf.mxu0  ;;  %v11095_v47 = vpop.f32.mrf.mxu1 }
 0x5bf   :  { %3236 = vmatmul.bf16.gmra.mxu2 %v8504_v56  ;;  %3265 = vmatmul.bf16.gmra.mxu3 %v8504_v56  ;;  %v7400_v56 = vor.u32 %v8592_v54, %v7399_v35  ;;  %v7364_v54 = vor.u32 %v8581_v2, %v7361_v61  ;;  %v8575_v2 = vld [vmem:[#allocation11 + $0x2c] sm:$0xf0]  ;;  %v8573_v61 = vld [vmem:[#allocation11 + $0x24] sm:$0xf] }
 0x5c0   :  { %3832 = vmatpush.bf16.msrb.mxu0 %v7344_v1  ;;  %v7328_v13 = vor.u32 %v8575_v2, %v7327_v50  ;;  %v7313_v1 = vld [vmem:[#allocation11 + $0x10] sm:$0xf0] }
 0x5c1   :  { %3855 = vmatpush.bf16.msrb.mxu2 %v7400_v56  ;;  %v8582_v56 = vld [vmem:[#allocation11 + $0x6c] sm:$0xf]  ;;  %3844 = vmatpush.bf16.msrb.mxu1 %v7364_v54  ;;  %v7332_v54 = vor.u32 %v8573_v61, %v7329_v52 }
 0x5c2   :  { %v7372_v17 = vor.u32 %v8582_v56, %v7369_v5  ;;  %v8574_v56 = vld [vmem:[#allocation11 + $0x2c] sm:$0xf]  ;;  %v7337_v5 = vld [vmem:[#allocation11 + $0x38] sm:$0xf0] }
 0x5c4   :  { %v11099_v15 = vpop.f32.mrf.mxu3  ;;  %3870 = vmatpush.bf16.msrb.mxu3 %v7372_v17  ;;  %3833 = vmatpush.bf16.msrb.mxu0 %v7328_v13  ;;  %v11146_v13 = vperm.slane %v11116_v27, 2 }
 0x5c5   :  { %3856 = vmatpush.bf16.msrb.mxu2 %v7384_v28  ;;  %v7351_v28 = vld [vmem:[#allocation11 + $0x48] sm:$0xf]  ;;  %3845 = vmatpush.bf16.msrb.mxu1 %v7348_v4  ;;  %v8572_v4 = vld [vmem:[#allocation11 + $0x14] sm:$0xf0] }
 0x5c6   :  { %v11101_v40 = vpop.f32.mrf.mxu0  ;;  %v11103_v33 = vpop.f32.mrf.mxu1  ;;  %v7352_v39 = vor.u32 %v8580_v16, %v7351_v28  ;;  %v7320_v50 = vor.u32 %v8572_v4, %v7319_v9 }
 0x5c9   :  { %3857 = vmatpush.bf16.msrb.mxu2 %v7368_v44  ;;  %v8576_v44 = vld [vmem:[#allocation11 + $0x34] sm:$0xf0]  ;;  %3846 = vmatpush.bf16.msrb.mxu1 %v7332_v54  ;;  %v3223_v54 = vadd.f32 %v11065_v10, %v11146_v13 }
 0x5ca   :  { %v7336_v19 = vor.u32 %v8576_v44, %v7335_v53 }
 0x5cc   :  { %v11107_v41 = vpop.f32.mrf.mxu3 }
 0x5cd   :  { %3858 = vmatpush.bf16.msrb.mxu2 %v7352_v39  ;;  %v7321_v39 = vld [vmem:[#allocation11 + $0x18] sm:$0xf0] }
 0x5ce   :  { %3511 = vmatmul.bf16.vlgmr.msra.gmra.mxu0 %v9110_v60  ;;  %3524 = vmatmul.bf16.vlgmr.msra.gmra.mxu1 %v9110_v60 }
 0x5cf   :  { %3537 = vmatmul.bf16.vlgmr.msra.gmra.mxu2 %v9110_v60  ;;  %3550 = vmatmul.bf16.vlgmr.msra.gmra.mxu3 %v9110_v60  ;;  %v11081_v60 = vpop.f32.mrf.mxu2 }
 0x5d1   :  { %3859 = vmatpush.bf16.msrb.mxu2 %v7336_v19 }
 0x5d5   :  { %3860 = vmatpush.bf16.msrb.mxu2 %v7320_v50 }
 0x5d7   :  { %v11089_v20 = vpop.f32.mrf.mxu2 }
 0x5df   :  { %v11097_v62 = vpop.f32.mrf.mxu2 }
 0x5e7   :  { %v11105_v25 = vpop.f32.mrf.mxu2 }
 0x63b   :  { %v11109_v38 = vpop.f32.mrf.mxu0  ;;  %v11111_v59 = vpop.f32.mrf.mxu1 }
 0x642   :  { %v11118_v42 = vpop.f32.mrf.mxu2  ;;  %v11120_v48 = vpop.f32.mrf.mxu3 }
 0x643   :  { %v11122_v63 = vpop.f32.mrf.mxu0  ;;  %v11124_v3 = vpop.f32.mrf.mxu1 }
 0x64a   :  { %v11136_v11 = vpop.f32.mrf.mxu2  ;;  %v11138_v51 = vpop.f32.mrf.mxu3 }
 0x64b   :  { %v3512_v55 = vpop.f32.mrf.mxu0  ;;  %v3525_v35 = vpop.f32.mrf.mxu1 }
 0x64c   :  { %v3555_v12 = vadd.f32 %v3512_v55, %v3165_v58  ;;  %v3556_v32 = vadd.f32 %v3525_v35, %v3194_v43  ;;  %v3252_v58 = vadd.f32 %v11067_v21, %v11141_v57  ;;  %v7356_v43 = vor.u32 %v8578_v6, %v7353_v45  ;;  %v8570_v6 = vld [vmem:[#allocation11 + $0xc] sm:$0xf] }
 0x64d   :  { %v7340_v21 = vor.u32 %v8574_v56, %v7337_v5 }
 0x64e   :  { %v7306_v7 = vmul.f32 -1.442695, %v3555_v12  ;;  %v7307_v29 = vmul.f32 -1.442695, %v3556_v32  ;;  %3871 = vmatpush.bf16.msrb.mxu3 %v7356_v43  ;;  %v7324_v43 = vor.u32 %v8570_v6, %v7321_v39 }
 0x650   :  { %8926 = vpow2.f32 %v7306_v7  ;;  %v8569_v7 = vld [vmem:[#allocation11 + $0x4] sm:$0xf] }
 0x651   :  { %8928 = vpow2.f32 %v7307_v29  ;;  %v7312_v29 = vor.u32 %v8571_v31, %v7311_v18  ;;  %v7316_v16 = vor.u32 %v8569_v7, %v7313_v1 }
 0x652   :  { %v3538_v55 = vpop.f32.mrf.mxu2  ;;  %v3551_v35 = vpop.f32.mrf.mxu3  ;;  %3872 = vmatpush.bf16.msrb.mxu3 %v7340_v21 }
 0x653   :  { %v3558_v12 = vadd.f32 %v3551_v35, %v3252_v58  ;;  %v3514_v32 = vpop.f32.mrf.mxu0  ;;  %v3527_v17 = vpop.f32.mrf.mxu1  ;;  %3834 = vmatpush.bf16.msrb.mxu0 %v7312_v29  ;;  %3847 = vmatpush.bf16.msrb.mxu1 %v7316_v16  ;;  %v3557_v5 = vadd.f32 %v3538_v55, %v3223_v54 }
 0x655   :  { %v7308_v28 = vmul.f32 -1.442695, %v3558_v12 }
 0x656   :  { %v8927_v45 = vpop.eup %8926  ;;  %3873 = vmatpush.bf16.msrb.mxu3 %v7324_v43 }
 0x657   :  { %v8929_v2 = vpop.eup %8928  ;;  %v3563_v58 = vadd.f32 1.0, %v8927_v45  ;;  %8930 = vpow2.f32 %v7308_v28 }
 0x658   :  { %v3582_v61 = vadd.f32 1.0, %v8929_v2 }
 0x659   :  { %8932 = vrcp.f32 %v3563_v58  ;;  %v3575_v21 = vand.u32 2147483648, %v3563_v58  ;;  %v3573_v7 = vand.u32 2147483647, %v3563_v58  ;;  %vm3569_vm3 = vweird.f32 %v3563_v58 }
 0x65a   :  { %8934 = vrcp.f32 %v3582_v61  ;;  %v3553_v52 = vpop.f32.mrf.mxu3  ;;  %v3540_v53 = vpop.f32.mrf.mxu2  ;;  %v3594_v18 = vand.u32 2147483648, %v3582_v61  ;;  %v3592_v1 = vand.u32 2147483647, %v3582_v61  ;;  %vm3588_vm4 = vweird.f32 %v3582_v61 }
 0x65b   :  { %v3576_v55 = vor.u32 1.1754944e-38, %v3575_v21  ;;  %vm3574_vm6 = vcmp.eq.f32.partialorder %v3573_v7, 8.507059e+37  ;;  %v7555_v21 = vld [vmem:[#allocation11 + $0xe0] sm:$0xf]  ;;  %v7557_v7 = vld [vmem:[#allocation11 + $0xf0] sm:$0xf0] }
 0x65c   :  { %v3595_v16 = vor.u32 1.1754944e-38, %v3594_v18  ;;  %vm3593_vm8 = vcmp.eq.f32.partialorder %v3592_v1, 8.507059e+37  ;;  %v8631_v18 = vld [vmem:[#allocation11 + $0xec] sm:$0xf0]  ;;  %v8632_v1 = vld [vmem:[#allocation11 + $0xf4] sm:$0xf0] }
 0x65d   :  { %v8931_v35 = vpop.eup %8930 }
 0x65e   :  { %v3602_v44 = vadd.f32 1.0, %v8931_v35 }
 0x65f   :  { %v8933_v56 = vpop.eup %8932 }
 0x660   :  { %v8935_v12 = vpop.eup %8934  ;;  %v3565_v32 = vmul.f32 %v8933_v56, %v3563_v58  ;;  %8936 = vrcp.f32 %v3602_v44  ;;  %vm3570_vm1 = vweird.f32 %v8933_v56  ;;  %vm3608_vm10 = vweird.f32 %v3602_v44 }
 0x661   :  { %v3584_v17 = vmul.f32 %v8935_v12, %v3582_v61  ;;  %8938 = vtanh.f32 %v3557_v5  ;;  %vm3589_vm2 = vweird.f32 %v8935_v12  ;;  %vm3571_vm5 = vmor %vm3569_vm3, %vm3570_vm1  ;;  %v3614_v61 = vand.u32 2147483648, %v3602_v44 }
 0x662   :  { %v3566_v27 = vsub.f32 1.0, %v3565_v32  ;;  %vm3590_vm7 = vmor %vm3588_vm4, %vm3589_vm2 }
 0x663   :  { %v3585_v19 = vsub.f32 1.0, %v3584_v17  ;;  %v3615_v32 = vor.u32 1.1754944e-38, %v3614_v61 }
 0x664   :  { %v3567_v31 = vmul.f32 %v8933_v56, %v3566_v27 }
 0x665   :  { %v3586_v29 = vmul.f32 %v8935_v12, %v3585_v19 }
 0x666   :  { %v8937_v9 = vpop.eup %8936  ;;  %v3568_v10 = vadd.f32 %v8933_v56, %v3567_v31  ;;  %v8629_v31 = vld [vmem:[#allocation11 + $0xe4] sm:$0xf] }
 0x667   :  { %v3587_v4 = vadd.f32 %v8935_v12, %v3586_v29  ;;  %v3604_v28 = vmul.f32 %v8937_v9, %v3602_v44  ;;  %v8939_v39 = vpop.eup %8938  ;;  %vm3609_vm9 = vweird.f32 %v8937_v9  ;;  %v7563_v29 = vld [vmem:[#allocation11 + $0xe8] sm:$0xf] }
 0x668   :  { %v3572_v6 = vsel %vm3571_vm5, %v8933_v56, %v3568_v10  ;;  %v3612_v56 = vand.u32 2147483647, %v3602_v44  ;;  %vm3610_vm11 = vmor %vm3608_vm10, %vm3609_vm9  ;;  %v7556_v44 = vor.u32 %v8631_v18, %v7555_v21  ;;  %v7564_v10 = vor.u32 %v8632_v1, %v7563_v29  ;;  %v7507_v29 = vld [vmem:[#allocation11 + $0x80] sm:$0xf]  ;;  %v8619_v1 = vld [vmem:[#allocation11 + $0x8c] sm:$0xf0] }
 0x669   :  { %v3577_v45 = vsel %vm3574_vm6, %v3576_v55, %v3572_v6  ;;  %v3591_v50 = vsel %vm3590_vm7, %v8935_v12, %v3587_v4  ;;  %v3605_v2 = vsub.f32 1.0, %v3604_v28  ;;  %v8630_v55 = vld [vmem:[#allocation11 + $0xec] sm:$0xf]  ;;  %v7565_v4 = vld [vmem:[#allocation11 + $0xf8] sm:$0xf0] }
 0x66a   :  { %v3596_v43 = vsel %vm3593_vm8, %v3595_v16, %v3591_v50  ;;  %v3619_v52 = vmul.f32 %v8939_v39, %v3577_v45  ;;  %vm3613_vm12 = vcmp.eq.f32.partialorder %v3612_v56, 8.507059e+37  ;;  %4152 = vmatpush.bf16.msra.mxu0 %v7556_v44  ;;  %v7568_v28 = vor.u32 %v8630_v55, %v7565_v4  ;;  %4178 = vmatpush.bf16.msra.mxu2 %v7564_v10  ;;  %v7539_v16 = vld [vmem:[#allocation11 + $0xc0] sm:$0xf]  ;;  %v8627_v6 = vld [vmem:[#allocation11 + $0xcc] sm:$0xf0] }
 0x66b   :  { %v3618_v53 = vmul.f32 0.0, %v3596_v43  ;;  %v3606_v35 = vmul.f32 %v8937_v9, %v3605_v2  ;;  %v8625_v39 = vld [vmem:[#allocation11 + $0xc4] sm:$0xf]  ;;  %v7540_v45 = vor.u32 %v8627_v6, %v7539_v16  ;;  %v7541_v50 = vld [vmem:[#allocation11 + $0xd0] sm:$0xf0]  ;;  %v7508_v10 = vor.u32 %v8619_v1, %v7507_v29 }
 0x66c   :  { %4191 = vmatpush.bf16.msra.mxu3 %v7568_v28  ;;  %v7547_v2 = vld [vmem:[#allocation11 + $0xc8] sm:$0xf]  ;;  %v8628_v43 = vld [vmem:[#allocation11 + $0xd4] sm:$0xf0]  ;;  %v7523_v56 = vld [vmem:[#allocation11 + $0xa0] sm:$0xf] }
 0x66d   :  { %v11150_v54 = vadd.f32 %v3619_v52, %v3618_v53  ;;  %v3607_v58 = vadd.f32 %v8937_v9, %v3606_v35  ;;  %v7544_v52 = vor.u32 %v8625_v39, %v7541_v50  ;;  %v7548_v53 = vor.u32 %v8628_v43, %v7547_v2  ;;  %v8626_v35 = vld [vmem:[#allocation11 + $0xcc] sm:$0xf]  ;;  %v7533_v44 = vld [vmem:[#allocation11 + $0xb8] sm:$0xf0]  ;;  %v7509_v55 = vld [vmem:[#allocation11 + $0x90] sm:$0xf0] }
 0x66e   :  { %4153 = vmatpush.bf16.msra.mxu0 %v7540_v45  ;;  %v7515_v4 = vld [vmem:[#allocation11 + $0x88] sm:$0xf]  ;;  %v8620_v28 = vld [vmem:[#allocation11 + $0x94] sm:$0xf0]  ;;  %v8618_v39 = vld [vmem:[#allocation11 + $0x8c] sm:$0xf] }
 0x66f   :  { %8940 = vtanh.f32 %v11150_v54  ;;  %v3611_v5 = vsel %vm3610_vm11, %v8937_v9, %v3607_v58  ;;  %v7560_v9 = vor.u32 %v8629_v31, %v7557_v7  ;;  %v7549_v58 = vld [vmem:[#allocation11 + $0xd8] sm:$0xf0]  ;;  %4179 = vmatpush.bf16.msra.mxu2 %v7548_v53  ;;  %v8622_v31 = vld [vmem:[#allocation11 + $0xac] sm:$0xf]  ;;  %v7516_v6 = vor.u32 %v8620_v28, %v7515_v4  ;;  %v7491_v2 = vld [vmem:[#allocation11 + $0x60] sm:$0xf] }
 0x670   :  { %v3616_v17 = vsel %vm3613_vm12, %v3615_v32, %v3611_v5  ;;  %v7552_v61 = vor.u32 %v8626_v35, %v7549_v58  ;;  %v8623_v5 = vld [vmem:[#allocation11 + $0xac] sm:$0xf0]  ;;  %v8621_v32 = vld [vmem:[#allocation11 + $0xa4] sm:$0xf]  ;;  %v7536_v7 = vor.u32 %v8622_v31, %v7533_v44  ;;  %v7517_v45 = vld [vmem:[#allocation11 + $0x98] sm:$0xf0]  ;;  %v3167_v53 = vadd.f32 %v11069_v14, %v11127_v23 }
 0x671   :  { %4165 = vmatpush.bf16.msra.mxu1 %v7560_v9  ;;  %v8617_v9 = vld [vmem:[#allocation11 + $0x84] sm:$0xf]  ;;  %v7520_v50 = vor.u32 %v8618_v39, %v7517_v45  ;;  %v8615_v43 = vld [vmem:[#allocation11 + $0x6c] sm:$0xf0]  ;;  %v3196_v35 = vadd.f32 %v11071_v24, %v11130_v0  ;;  %v7475_v14 = vld [vmem:[#allocation11 + $0x40] sm:$0xf] }
 0x672   :  { %4192 = vmatpush.bf16.msra.mxu3 %v7552_v61  ;;  %v7512_v16 = vor.u32 %v8617_v9, %v7509_v55  ;;  %v7492_v58 = vor.u32 %v8615_v43, %v7491_v2  ;;  %v7493_v61 = vld [vmem:[#allocation11 + $0x70] sm:$0xf0]  ;;  %v8609_v24 = vld [vmem:[#allocation11 + $0x44] sm:$0xf]  ;;  %v7483_v4 = vld [vmem:[#allocation11 + $0x48] sm:$0xf]  ;;  %v3254_v2 = vadd.f32 %v11075_v49, %v11141_v57 }
 0x673   :  { %v8612_v28 = vld [vmem:[#allocation11 + $0x54] sm:$0xf0]  ;;  %v7485_v39 = vld [vmem:[#allocation11 + $0x58] sm:$0xf0]  ;;  %v7459_v45 = vld [vmem:[#allocation11 + $0x20] sm:$0xf] }
 0x675   :  { %v8941_v12 = vpop.eup %8940  ;;  %4166 = vmatpush.bf16.msra.mxu1 %v7544_v52  ;;  %v8613_v52 = vld [vmem:[#allocation11 + $0x64] sm:$0xf] }
 0x676   :  { %v3622_v27 = vmul.f32 %v8941_v12, %v3616_v17  ;;  %v7524_v12 = vor.u32 %v8623_v5, %v7523_v56  ;;  %v7525_v17 = vld [vmem:[#allocation11 + $0xb0] sm:$0xf0]  ;;  %4193 = vmatpush.bf16.msra.mxu3 %v7536_v7  ;;  %v7499_v56 = vld [vmem:[#allocation11 + $0x68] sm:$0xf]  ;;  %v8616_v5 = vld [vmem:[#allocation11 + $0x74] sm:$0xf0] }
 0x677   :  { %v7528_v21 = vor.u32 %v8621_v32, %v7525_v17  ;;  %v7496_v17 = vor.u32 %v8613_v52, %v7493_v61  ;;  %v8611_v7 = vld [vmem:[#allocation11 + $0x4c] sm:$0xf0] }
 0x678   :  { %v3625_v19 = vpack.c.bf16 %v3622_v27, %v3622_v27  ;;  %v7531_v27 = vld [vmem:[#allocation11 + $0xa8] sm:$0xf]  ;;  %4154 = vmatpush.bf16.msra.mxu0 %v7524_v12  ;;  %v7476_v9 = vor.u32 %v8611_v7, %v7475_v14  ;;  %v8601_v14 = vld [vmem:[#allocation11 + $0x4] sm:$0xf] }
 0x679   :  { %4167 = vmatpush.bf16.msra.mxu1 %v7528_v21  ;;  %v7501_v21 = vld [vmem:[#allocation11 + $0x78] sm:$0xf0] }
 0x67a   :  { %3626 = vst [vmem:[%s11265_s7] sm:$0xf] %v3625_v19  ;;  %3835 = vmatmul.bf16.vlgmr.msrb.gmra.mxu0 %v3625_v19  ;;  %3848 = vmatmul.bf16.vlgmr.msrb.gmra.mxu1 %v3625_v19 }
 0x67b   :  { %3861 = vmatmul.bf16.vlgmr.msrb.gmra.mxu2 %v3625_v19  ;;  %3874 = vmatmul.bf16.vlgmr.msrb.gmra.mxu3 %v3625_v19  ;;  %v8624_v19 = vld [vmem:[#allocation11 + $0xb4] sm:$0xf0] }
 0x67c   :  { %v7532_v18 = vor.u32 %v8624_v19, %v7531_v27  ;;  %4155 = vmatpush.bf16.msra.mxu0 %v7508_v10  ;;  %4194 = vmatpush.bf16.msra.mxu3 %v7520_v50  ;;  %v7500_v27 = vor.u32 %v8616_v5, %v7499_v56  ;;  %v8614_v19 = vld [vmem:[#allocation11 + $0x6c] sm:$0xf]  ;;  %v7477_v10 = vld [vmem:[#allocation11 + $0x50] sm:$0xf0]  ;;  %v8607_v50 = vld [vmem:[#allocation11 + $0x2c] sm:$0xf0] }
 0x67d   :  { %4168 = vmatpush.bf16.msra.mxu1 %v7512_v16  ;;  %v7504_v44 = vor.u32 %v8614_v19, %v7501_v21  ;;  %v7480_v55 = vor.u32 %v8609_v24, %v7477_v10  ;;  %v8610_v16 = vld [vmem:[#allocation11 + $0x4c] sm:$0xf]  ;;  %v7460_v52 = vor.u32 %v8607_v50, %v7459_v45  ;;  %v7445_v24 = vld [vmem:[#allocation11 + $0x10] sm:$0xf0] }
 0x67e   :  { %4180 = vmatpush.bf16.msra.mxu2 %v7532_v18  ;;  %v7488_v43 = vor.u32 %v8610_v16, %v7485_v39  ;;  %v7448_v10 = vor.u32 %v8601_v14, %v7445_v24 }
 0x680   :  { %4156 = vmatpush.bf16.msra.mxu0 %v7492_v58  ;;  %4195 = vmatpush.bf16.msra.mxu3 %v7504_v44  ;;  %v7467_v58 = vld [vmem:[#allocation11 + $0x28] sm:$0xf]  ;;  %v8603_v44 = vld [vmem:[#allocation11 + $0xc] sm:$0xf0] }
 0x681   :  { %4169 = vmatpush.bf16.msra.mxu1 %v7496_v17  ;;  %v7469_v17 = vld [vmem:[#allocation11 + $0x38] sm:$0xf0] }
 0x682   :  { %4181 = vmatpush.bf16.msra.mxu2 %v7516_v6  ;;  %v7484_v6 = vor.u32 %v8612_v28, %v7483_v4  ;;  %v7453_v4 = vld [vmem:[#allocation11 + $0x18] sm:$0xf0] }
 0x684   :  { %4157 = vmatpush.bf16.msra.mxu0 %v7476_v9  ;;  %4196 = vmatpush.bf16.msra.mxu3 %v7488_v43 }
 0x685   :  { %4170 = vmatpush.bf16.msra.mxu1 %v7480_v55  ;;  %v8602_v55 = vld [vmem:[#allocation11 + $0xc] sm:$0xf] }
 0x686   :  { %4182 = vmatpush.bf16.msra.mxu2 %v7500_v27  ;;  %v7456_v45 = vor.u32 %v8602_v55, %v7453_v4 }
 0x688   :  { %4158 = vmatpush.bf16.msra.mxu0 %v7460_v52 }
 0x68a   :  { %4183 = vmatpush.bf16.msra.mxu2 %v7484_v6 }
 0x6f7   :  { %v3836_v32 = vpop.f32.mrf.mxu0  ;;  %v3849_v12 = vpop.f32.mrf.mxu1 }
 0x6f8   :  { %v3879_v18 = vadd.f32 %v3836_v32, %v3167_v53  ;;  %v3880_v31 = vadd.f32 %v3849_v12, %v3196_v35  ;;  %v8605_v53 = vld [vmem:[#allocation11 + $0x24] sm:$0xf]  ;;  %v7461_v35 = vld [vmem:[#allocation11 + $0x30] sm:$0xf0]  ;;  %v8608_v32 = vld [vmem:[#allocation11 + $0x34] sm:$0xf0] }
 0x6f9   :  { %v7464_v5 = vor.u32 %v8605_v53, %v7461_v35  ;;  %v8606_v12 = vld [vmem:[#allocation11 + $0x2c] sm:$0xf]  ;;  %v3225_v53 = vadd.f32 %v11073_v30, %v11146_v13 }
 0x6fa   :  { %v7437_v29 = vmul.f32 -1.442695, %v3879_v18  ;;  %v7438_v1 = vmul.f32 -1.442695, %v3880_v31  ;;  %v7468_v18 = vor.u32 %v8608_v32, %v7467_v58  ;;  %v7472_v49 = vor.u32 %v8606_v12, %v7469_v17  ;;  %v7443_v31 = vld [vmem:[#allocation11] sm:$0xf] }
 0x6fb   :  { %v7444_v7 = vor.u32 %v8603_v44, %v7443_v31  ;;  %4171 = vmatpush.bf16.msra.mxu1 %v7464_v5 }
 0x6fc   :  { %8942 = vpow2.f32 %v7437_v29  ;;  %v7451_v29 = vld [vmem:[#allocation11 + $0x8] sm:$0xf]  ;;  %4184 = vmatpush.bf16.msra.mxu2 %v7468_v18  ;;  %4197 = vmatpush.bf16.msra.mxu3 %v7472_v49 }
 0x6fd   :  { %8944 = vpow2.f32 %v7438_v1  ;;  %v8604_v1 = vld [vmem:[#allocation11 + $0x14] sm:$0xf0]  ;;  %4159 = vmatpush.bf16.msra.mxu0 %v7444_v7 }
 0x6fe   :  { %v3862_v61 = vpop.f32.mrf.mxu2  ;;  %v3875_v56 = vpop.f32.mrf.mxu3  ;;  %v7452_v16 = vor.u32 %v8604_v1, %v7451_v29 }
 0x6ff   :  { %v3882_v27 = vadd.f32 %v3875_v56, %v3254_v2  ;;  %v3838_v19 = vpop.f32.mrf.mxu0  ;;  %v3851_v21 = vpop.f32.mrf.mxu1  ;;  %4172 = vmatpush.bf16.msra.mxu1 %v7448_v10  ;;  %v3881_v56 = vadd.f32 %v3862_v61, %v3225_v53 }
 0x700   :  { %4185 = vmatpush.bf16.msra.mxu2 %v7452_v16  ;;  %4198 = vmatpush.bf16.msra.mxu3 %v7456_v45 }
 0x701   :  { %v7439_v9 = vmul.f32 -1.442695, %v3882_v27 }
 0x702   :  { %v8943_v28 = vpop.eup %8942 }
 0x703   :  { %v8945_v6 = vpop.eup %8944  ;;  %v3887_v39 = vadd.f32 1.0, %v8943_v28  ;;  %8946 = vpow2.f32 %v7439_v9 }
 0x704   :  { %v3906_v50 = vadd.f32 1.0, %v8945_v6 }
 0x705   :  { %8948 = vrcp.f32 %v3887_v39  ;;  %v3899_v19 = vand.u32 2147483648, %v3887_v39  ;;  %v3897_v49 = vand.u32 2147483647, %v3887_v39  ;;  %vm3893_vm15 = vweird.f32 %v3887_v39 }
 0x706   :  { %8950 = vrcp.f32 %v3906_v50  ;;  %v3864_v2 = vpop.f32.mrf.mxu2  ;;  %v3877_v43 = vpop.f32.mrf.mxu3  ;;  %v3918_v21 = vand.u32 2147483648, %v3906_v50  ;;  %v3916_v44 = vand.u32 2147483647, %v3906_v50  ;;  %vm3912_vm0 = vweird.f32 %v3906_v50 }
 0x707   :  { %v3900_v61 = vor.u32 1.1754944e-38, %v3899_v19  ;;  %vm3898_vm3 = vcmp.eq.f32.partialorder %v3897_v49, 8.507059e+37  ;;  %v7695_v19 = vld [vmem:[#allocation11 + $0xe8] sm:$0xf] }
 0x708   :  { %v3919_v29 = vor.u32 1.1754944e-38, %v3918_v21  ;;  %vm3917_vm4 = vcmp.eq.f32.partialorder %v3916_v44, 8.507059e+37  ;;  %v8664_v21 = vld [vmem:[#allocation11 + $0xf4] sm:$0xf0]  ;;  %v7697_v44 = vld [vmem:[#allocation11 + $0xf8] sm:$0xf0] }
 0x709   :  { %v8947_v52 = vpop.eup %8946  ;;  %v7696_v49 = vor.u32 %v8664_v21, %v7695_v19  ;;  %v7641_v19 = vld [vmem:[#allocation11 + $0x90] sm:$0xf0]  ;;  %v7647_v21 = vld [vmem:[#allocation11 + $0x88] sm:$0xf] }
 0x70a   :  { %v3926_v35 = vadd.f32 1.0, %v8947_v52 }
 0x70b   :  { %v8949_v58 = vpop.eup %8948  ;;  %4503 = vmatpush.bf16.msrb.mxu2 %v7696_v49 }
 0x70c   :  { %v8951_v5 = vpop.eup %8950  ;;  %v3889_v32 = vmul.f32 %v8949_v58, %v3887_v39  ;;  %8952 = vrcp.f32 %v3926_v35  ;;  %vm3894_vm13 = vweird.f32 %v8949_v58  ;;  %v3938_v2 = vand.u32 2147483648, %v3926_v35 }
 0x70d   :  { %v3908_v12 = vmul.f32 %v8951_v5, %v3906_v50  ;;  %8954 = vtanh.f32 %v3881_v56  ;;  %vm3913_vm14 = vweird.f32 %v8951_v5  ;;  %vm3895_vm1 = vmor %vm3893_vm15, %vm3894_vm13  ;;  %vm3932_vm6 = vweird.f32 %v3926_v35 }
 0x70e   :  { %v3890_v17 = vsub.f32 1.0, %v3889_v32  ;;  %vm3914_vm2 = vmor %vm3912_vm0, %vm3913_vm14  ;;  %v3936_v43 = vand.u32 2147483647, %v3926_v35  ;;  %v3939_v53 = vor.u32 1.1754944e-38, %v3938_v2 }
 0x70f   :  { %v3909_v27 = vsub.f32 1.0, %v3908_v12  ;;  %v8663_v12 = vld [vmem:[#allocation11 + $0xec] sm:$0xf0] }
 0x710   :  { %v3891_v18 = vmul.f32 %v8949_v58, %v3890_v17  ;;  %vm3937_vm8 = vcmp.eq.f32.partialorder %v3936_v43, 8.507059e+37  ;;  %v8661_v17 = vld [vmem:[#allocation11 + $0xe4] sm:$0xf]  ;;  %v7657_v43 = vld [vmem:[#allocation11 + $0xb0] sm:$0xf0] }
 0x711   :  { %v3910_v31 = vmul.f32 %v8951_v5, %v3909_v27  ;;  %v7689_v27 = vld [vmem:[#allocation11 + $0xf0] sm:$0xf0] }
 0x712   :  { %v8953_v14 = vpop.eup %8952  ;;  %v3892_v30 = vadd.f32 %v8949_v58, %v3891_v18  ;;  %v7692_v18 = vor.u32 %v8661_v17, %v7689_v27  ;;  %v8651_v17 = vld [vmem:[#allocation11 + $0x8c] sm:$0xf0] }
 0x713   :  { %v3911_v7 = vadd.f32 %v8951_v5, %v3910_v31  ;;  %v3928_v24 = vmul.f32 %v8953_v14, %v3926_v35  ;;  %v8955_v9 = vpop.eup %8954  ;;  %vm3933_vm5 = vweird.f32 %v8953_v14  ;;  %v8662_v31 = vld [vmem:[#allocation11 + $0xec] sm:$0xf] }
 0x714   :  { %v3896_v1 = vsel %vm3895_vm1, %v8949_v58, %v3892_v30  ;;  %vm3934_vm7 = vmor %vm3932_vm6, %vm3933_vm5  ;;  %4490 = vmatpush.bf16.msrb.mxu1 %v7692_v18  ;;  %v7671_v30 = vld [vmem:[#allocation11 + $0xc0] sm:$0xf]  ;;  %v8652_v18 = vld [vmem:[#allocation11 + $0x94] sm:$0xf0] }
 0x715   :  { %v3901_v10 = vsel %vm3898_vm3, %v3900_v61, %v3896_v1  ;;  %v3915_v55 = vsel %vm3914_vm2, %v8951_v5, %v3911_v7  ;;  %v3929_v4 = vsub.f32 1.0, %v3928_v24  ;;  %v8659_v61 = vld [vmem:[#allocation11 + $0xcc] sm:$0xf0]  ;;  %v8657_v7 = vld [vmem:[#allocation11 + $0xc4] sm:$0xf] }
 0x716   :  { %v3920_v28 = vsel %vm3917_vm4, %v3919_v29, %v3915_v55  ;;  %v3943_v16 = vmul.f32 %v8955_v9, %v3901_v10  ;;  %v7672_v24 = vor.u32 %v8659_v61, %v7671_v30  ;;  %v7673_v29 = vld [vmem:[#allocation11 + $0xd0] sm:$0xf0]  ;;  %v7679_v1 = vld [vmem:[#allocation11 + $0xc8] sm:$0xf]  ;;  %v8660_v9 = vld [vmem:[#allocation11 + $0xd4] sm:$0xf0] }
 0x717   :  { %v3942_v6 = vmul.f32 %v3920_v28, %v11150_v54  ;;  %v3930_v45 = vmul.f32 %v8953_v14, %v3929_v4  ;;  %v7687_v54 = vld [vmem:[#allocation11 + $0xe0] sm:$0xf]  ;;  %v7676_v10 = vor.u32 %v8657_v7, %v7673_v29  ;;  %v7680_v55 = vor.u32 %v8660_v9, %v7679_v1  ;;  %v8658_v4 = vld [vmem:[#allocation11 + $0xcc] sm:$0xf]  ;;  %v7681_v28 = vld [vmem:[#allocation11 + $0xd8] sm:$0xf0] }
 0x718   :  { %v7688_v35 = vor.u32 %v8663_v12, %v7687_v54  ;;  %v7639_v12 = vld [vmem:[#allocation11 + $0x80] sm:$0xf]  ;;  %v8647_v7 = vld [vmem:[#allocation11 + $0x6c] sm:$0xf0]  ;;  %v3170_v29 = vadd.f32 %v11077_v26, %v11127_v23  ;;  %v3199_v1 = vadd.f32 %v11079_v34, %v11130_v0  ;;  %v8641_v34 = vld [vmem:[#allocation11 + $0x44] sm:$0xf] }
 0x719   :  { %v11165_v39 = vadd.f32 %v3943_v16, %v3942_v6  ;;  %v3931_v50 = vadd.f32 %v8953_v14, %v3930_v45  ;;  %v7684_v16 = vor.u32 %v8658_v4, %v7681_v28  ;;  %4491 = vmatpush.bf16.msrb.mxu1 %v7676_v10  ;;  %4504 = vmatpush.bf16.msrb.mxu2 %v7680_v55  ;;  %v7655_v6 = vld [vmem:[#allocation11 + $0xa0] sm:$0xf]  ;;  %v8655_v45 = vld [vmem:[#allocation11 + $0xac] sm:$0xf0]  ;;  %v7625_v10 = vld [vmem:[#allocation11 + $0x70] sm:$0xf0] }
 0x71a   :  { %4477 = vmatpush.bf16.msrb.mxu0 %v7688_v35  ;;  %v7656_v2 = vor.u32 %v8655_v45, %v7655_v6  ;;  %v8649_v35 = vld [vmem:[#allocation11 + $0x84] sm:$0xf]  ;;  %v7640_v27 = vor.u32 %v8651_v17, %v7639_v12  ;;  %v7623_v61 = vld [vmem:[#allocation11 + $0x60] sm:$0xf]  ;;  %v7631_v55 = vld [vmem:[#allocation11 + $0x68] sm:$0xf] }
 0x71b   :  { %8956 = vtanh.f32 %v11165_v39  ;;  %v3935_v52 = vsel %vm3934_vm7, %v8953_v14, %v3931_v50  ;;  %v7700_v14 = vor.u32 %v8662_v31, %v7697_v44  ;;  %v8653_v50 = vld [vmem:[#allocation11 + $0xa4] sm:$0xf]  ;;  %v7644_v49 = vor.u32 %v8649_v35, %v7641_v19  ;;  %v8650_v44 = vld [vmem:[#allocation11 + $0x8c] sm:$0xf]  ;;  %v8648_v4 = vld [vmem:[#allocation11 + $0x74] sm:$0xf0] }
 0x71c   :  { %v3940_v56 = vsel %vm3937_vm8, %v3939_v53, %v3935_v52  ;;  %v7663_v52 = vld [vmem:[#allocation11 + $0xa8] sm:$0xf]  ;;  %v8656_v53 = vld [vmem:[#allocation11 + $0xb4] sm:$0xf0]  ;;  %v7648_v31 = vor.u32 %v8652_v18, %v7647_v21  ;;  %v7624_v9 = vor.u32 %v8647_v7, %v7623_v61  ;;  %v7632_v45 = vor.u32 %v8648_v4, %v7631_v55  ;;  %v7607_v26 = vld [vmem:[#allocation11 + $0x40] sm:$0xf] }
 0x71d   :  { %4516 = vmatpush.bf16.msrb.mxu3 %v7700_v14  ;;  %v7649_v14 = vld [vmem:[#allocation11 + $0x98] sm:$0xf0]  ;;  %v7615_v17 = vld [vmem:[#allocation11 + $0x48] sm:$0xf]  ;;  %v8644_v35 = vld [vmem:[#allocation11 + $0x54] sm:$0xf0] }
 0x71e   :  { %4478 = vmatpush.bf16.msrb.mxu0 %v7672_v24  ;;  %v7652_v30 = vor.u32 %v8650_v44, %v7649_v14  ;;  %v8645_v24 = vld [vmem:[#allocation11 + $0x64] sm:$0xf]  ;;  %v7616_v19 = vor.u32 %v8644_v35, %v7615_v17  ;;  %v7617_v21 = vld [vmem:[#allocation11 + $0x58] sm:$0xf0]  ;;  %v7591_v18 = vld [vmem:[#allocation11 + $0x20] sm:$0xf] }
 0x71f   :  { %v7628_v6 = vor.u32 %v8645_v24, %v7625_v10  ;;  %v7593_v61 = vld [vmem:[#allocation11 + $0x30] sm:$0xf0]  ;;  %v7599_v7 = vld [vmem:[#allocation11 + $0x28] sm:$0xf]  ;;  %v8638_v10 = vld [vmem:[#allocation11 + $0x2c] sm:$0xf] }
 0x720   :  { %v7601_v55 = vld [vmem:[#allocation11 + $0x38] sm:$0xf0] }
 0x721   :  { %v8957_v58 = vpop.eup %8956  ;;  %4517 = vmatpush.bf16.msrb.mxu3 %v7684_v16 }
 0x722   :  { %v3946_v5 = vmul.f32 %v8957_v58, %v3940_v56  ;;  %v7660_v58 = vor.u32 %v8653_v50, %v7657_v43  ;;  %v7664_v56 = vor.u32 %v8656_v53, %v7663_v52  ;;  %4479 = vmatpush.bf16.msrb.mxu0 %v7656_v2  ;;  %v8646_v50 = vld [vmem:[#allocation11 + $0x6c] sm:$0xf]  ;;  %v7633_v2 = vld [vmem:[#allocation11 + $0x78] sm:$0xf0] }
 0x723   :  { %v7636_v53 = vor.u32 %v8646_v50, %v7633_v2  ;;  %v8635_v50 = vld [vmem:[#allocation11 + $0xc] sm:$0xf0]  ;;  %v8633_v2 = vld [vmem:[#allocation11 + $0x4] sm:$0xf] }
 0x724   :  { %v3949_v32 = vpack.c.bf16 %v3946_v5, %v3946_v5  ;;  %v8654_v5 = vld [vmem:[#allocation11 + $0xac] sm:$0xf]  ;;  %4492 = vmatpush.bf16.msrb.mxu1 %v7660_v58  ;;  %4505 = vmatpush.bf16.msrb.mxu2 %v7664_v56  ;;  %v8643_v58 = vld [vmem:[#allocation11 + $0x4c] sm:$0xf0] }
 0x726   :  { %7440 = vst [vmem:[%s11265_s7 + $0x4] sm:$0xf] %v3949_v32  ;;  %4160 = vmatmul.bf16.vlgmr.msra.gmra.mxu0 %v3949_v32  ;;  %4173 = vmatmul.bf16.vlgmr.msra.gmra.mxu1 %v3949_v32 }
 0x727   :  { %4186 = vmatmul.bf16.vlgmr.msra.gmra.mxu2 %v3949_v32  ;;  %4199 = vmatmul.bf16.vlgmr.msra.gmra.mxu3 %v3949_v32  ;;  %v7665_v32 = vld [vmem:[#allocation11 + $0xb8] sm:$0xf0] }
 0x728   :  { %v7668_v54 = vor.u32 %v8654_v5, %v7665_v32  ;;  %4480 = vmatpush.bf16.msrb.mxu0 %v7640_v27  ;;  %4493 = vmatpush.bf16.msrb.mxu1 %v7644_v49  ;;  %v7608_v32 = vor.u32 %v8643_v58, %v7607_v26  ;;  %v8642_v27 = vld [vmem:[#allocation11 + $0x4c] sm:$0xf]  ;;  %v8639_v49 = vld [vmem:[#allocation11 + $0x2c] sm:$0xf0]  ;;  %v8636_v26 = vld [vmem:[#allocation11 + $0x14] sm:$0xf0] }
 0x729   :  { %4506 = vmatpush.bf16.msrb.mxu2 %v7648_v31  ;;  %v3257_v31 = vadd.f32 %v11083_v36, %v11141_v57  ;;  %v7620_v44 = vor.u32 %v8642_v27, %v7617_v21  ;;  %v7592_v14 = vor.u32 %v8639_v49, %v7591_v18  ;;  %v7604_v36 = vor.u32 %v8638_v10, %v7601_v55 }
 0x72a   :  { %4518 = vmatpush.bf16.msrb.mxu3 %v7668_v54  ;;  %v7609_v54 = vld [vmem:[#allocation11 + $0x50] sm:$0xf0]  ;;  %v3228_v49 = vadd.f32 %v11081_v60, %v11146_v13 }
 0x72b   :  { %v7612_v12 = vor.u32 %v8641_v34, %v7609_v54 }
 0x72c   :  { %4481 = vmatpush.bf16.msrb.mxu0 %v7624_v9  ;;  %4494 = vmatpush.bf16.msrb.mxu1 %v7628_v6  ;;  %v8640_v9 = vld [vmem:[#allocation11 + $0x34] sm:$0xf0] }
 0x72d   :  { %4507 = vmatpush.bf16.msrb.mxu2 %v7632_v45  ;;  %v7600_v6 = vor.u32 %v8640_v9, %v7599_v7  ;;  %v7575_v45 = vld [vmem:[#allocation11] sm:$0xf] }
 0x72e   :  { %4519 = vmatpush.bf16.msrb.mxu3 %v7652_v30  ;;  %v8637_v30 = vld [vmem:[#allocation11 + $0x24] sm:$0xf] }
 0x730   :  { %4482 = vmatpush.bf16.msrb.mxu0 %v7608_v32  ;;  %4495 = vmatpush.bf16.msrb.mxu1 %v7612_v12 }
 0x731   :  { %4508 = vmatpush.bf16.msrb.mxu2 %v7616_v19 }
 0x732   :  { %4520 = vmatpush.bf16.msrb.mxu3 %v7636_v53  ;;  %v7583_v53 = vld [vmem:[#allocation11 + $0x8] sm:$0xf] }
 0x733   :  { %v7584_v54 = vor.u32 %v8636_v26, %v7583_v53 }
 0x734   :  { %4483 = vmatpush.bf16.msrb.mxu0 %v7592_v14 }
 0x735   :  { %4509 = vmatpush.bf16.msrb.mxu2 %v7600_v6 }
 0x736   :  { %4521 = vmatpush.bf16.msrb.mxu3 %v7620_v44 }
 0x739   :  { %4510 = vmatpush.bf16.msrb.mxu2 %v7584_v54 }
 0x73a   :  { %4522 = vmatpush.bf16.msrb.mxu3 %v7604_v36 }
 0x7a3   :  { %v4161_v28 = vpop.f32.mrf.mxu0  ;;  %v4174_v16 = vpop.f32.mrf.mxu1 }
 0x7a4   :  { %v4204_v43 = vadd.f32 %v4161_v28, %v3170_v29  ;;  %v4205_v52 = vadd.f32 %v4174_v16, %v3199_v1  ;;  %v7596_v1 = vor.u32 %v8637_v30, %v7593_v61 }
 0x7a6   :  { %v7569_v56 = vmul.f32 -1.442695, %v4204_v43  ;;  %v7570_v5 = vmul.f32 -1.442695, %v4205_v52  ;;  %v7576_v43 = vor.u32 %v8635_v50, %v7575_v45  ;;  %v7577_v52 = vld [vmem:[#allocation11 + $0x10] sm:$0xf0]  ;;  %4496 = vmatpush.bf16.msrb.mxu1 %v7596_v1 }
 0x7a7   :  { %v7580_v34 = vor.u32 %v8633_v2, %v7577_v52 }
 0x7a8   :  { %8958 = vpow2.f32 %v7569_v56  ;;  %v8634_v56 = vld [vmem:[#allocation11 + $0xc] sm:$0xf]  ;;  %4484 = vmatpush.bf16.msrb.mxu0 %v7576_v43 }
 0x7a9   :  { %8960 = vpow2.f32 %v7570_v5  ;;  %v7585_v5 = vld [vmem:[#allocation11 + $0x18] sm:$0xf0] }
 0x7aa   :  { %v4187_v24 = vpop.f32.mrf.mxu2  ;;  %v4200_v29 = vpop.f32.mrf.mxu3  ;;  %v7588_v35 = vor.u32 %v8634_v56, %v7585_v5  ;;  %4497 = vmatpush.bf16.msrb.mxu1 %v7580_v34 }
 0x7ab   :  { %v4207_v4 = vadd.f32 %v4200_v29, %v3257_v31  ;;  %v4163_v28 = vpop.f32.mrf.mxu0  ;;  %v4176_v16 = vpop.f32.mrf.mxu1  ;;  %v4206_v14 = vadd.f32 %v4187_v24, %v3228_v49 }
 0x7ac   :  { %4523 = vmatpush.bf16.msrb.mxu3 %v7588_v35 }
 0x7ad   :  { %v7571_v58 = vmul.f32 -1.442695, %v4207_v4 }
 0x7ae   :  { %v8959_v32 = vpop.eup %8958 }
 0x7af   :  { %v8961_v12 = vpop.eup %8960  ;;  %v4212_v17 = vadd.f32 1.0, %v8959_v32  ;;  %8962 = vpow2.f32 %v7571_v58 }
 0x7b0   :  { %v4231_v27 = vadd.f32 1.0, %v8961_v12 }
 0x7b1   :  { %8964 = vrcp.f32 %v4212_v17  ;;  %v4224_v9 = vand.u32 2147483648, %v4212_v17  ;;  %v4222_v4 = vand.u32 2147483647, %v4212_v17  ;;  %vm4218_vm11 = vweird.f32 %v4212_v17 }
 0x7b2   :  { %8966 = vrcp.f32 %v4231_v27  ;;  %v4189_v19 = vpop.f32.mrf.mxu2  ;;  %v4202_v21 = vpop.f32.mrf.mxu3  ;;  %v4243_v10 = vand.u32 2147483648, %v4231_v27  ;;  %v4241_v16 = vand.u32 2147483647, %v4231_v27  ;;  %vm4237_vm12 = vweird.f32 %v4231_v27 }
 0x7b3   :  { %v4225_v24 = vor.u32 1.1754944e-38, %v4224_v9  ;;  %vm4223_vm15 = vcmp.eq.f32.partialorder %v4222_v4, 8.507059e+37  ;;  %v8694_v9 = vld [vmem:[#allocation11 + $0xec] sm:$0xf]  ;;  %v7803_v4 = vld [vmem:[#allocation11 + $0xc0] sm:$0xf] }
 0x7b4   :  { %v4244_v50 = vor.u32 1.1754944e-38, %v4243_v10  ;;  %vm4242_vm0 = vcmp.eq.f32.partialorder %v4241_v16, 8.507059e+37  ;;  %v7829_v10 = vld [vmem:[#allocation11 + $0xf8] sm:$0xf0]  ;;  %v8689_v16 = vld [vmem:[#allocation11 + $0xc4] sm:$0xf] }
 0x7b5   :  { %v8963_v18 = vpop.eup %8962 }
 0x7b6   :  { %v4251_v31 = vadd.f32 1.0, %v8963_v18 }
 0x7b7   :  { %v8965_v44 = vpop.eup %8964 }
 0x7b8   :  { %v8967_v30 = vpop.eup %8966  ;;  %v4214_v61 = vmul.f32 %v8965_v44, %v4212_v17  ;;  %8968 = vrcp.f32 %v4251_v31  ;;  %vm4219_vm9 = vweird.f32 %v8965_v44  ;;  %v4263_v12 = vand.u32 2147483648, %v4251_v31 }
 0x7b9   :  { %v4233_v7 = vmul.f32 %v8967_v30, %v4231_v27  ;;  %8970 = vtanh.f32 %v4206_v14  ;;  %vm4238_vm10 = vweird.f32 %v8967_v30  ;;  %vm4220_vm13 = vmor %vm4218_vm11, %vm4219_vm9  ;;  %vm4257_vm2 = vweird.f32 %v4251_v31  ;;  %v8693_v14 = vld [vmem:[#allocation11 + $0xe4] sm:$0xf] }
 0x7ba   :  { %v4215_v29 = vsub.f32 1.0, %v4214_v61  ;;  %vm4239_vm14 = vmor %vm4237_vm12, %vm4238_vm10  ;;  %v4261_v17 = vand.u32 2147483647, %v4251_v31  ;;  %v4264_v27 = vor.u32 1.1754944e-38, %v4263_v12  ;;  %v7827_v61 = vld [vmem:[#allocation11 + $0xe8] sm:$0xf] }
 0x7bb   :  { %v4234_v1 = vsub.f32 1.0, %v4233_v7  ;;  %v8696_v7 = vld [vmem:[#allocation11 + $0xf4] sm:$0xf0] }
 0x7bc   :  { %v4216_v55 = vmul.f32 %v8965_v44, %v4215_v29  ;;  %vm4262_vm4 = vcmp.eq.f32.partialorder %v4261_v17, 8.507059e+37 }
 0x7bd   :  { %v4235_v28 = vmul.f32 %v8967_v30, %v4234_v1  ;;  %v7828_v1 = vor.u32 %v8696_v7, %v7827_v61  ;;  %v8682_v7 = vld [vmem:[#allocation11 + $0x8c] sm:$0xf] }
 0x7be   :  { %v8969_v6 = vpop.eup %8968  ;;  %v4217_v60 = vadd.f32 %v8965_v44, %v4216_v55  ;;  %v7832_v55 = vor.u32 %v8694_v9, %v7829_v10  ;;  %v7755_v9 = vld [vmem:[#allocation11 + $0x60] sm:$0xf]  ;;  %v8679_v10 = vld [vmem:[#allocation11 + $0x6c] sm:$0xf0] }
 0x7bf   :  { %v4236_v36 = vadd.f32 %v8967_v30, %v4235_v28  ;;  %v4253_v45 = vmul.f32 %v8969_v6, %v4251_v31  ;;  %v8971_v43 = vpop.eup %8970  ;;  %vm4258_vm1 = vweird.f32 %v8969_v6  ;;  %4828 = vmatpush.bf16.msra.mxu2 %v7828_v1  ;;  %v8691_v28 = vld [vmem:[#allocation11 + $0xcc] sm:$0xf0] }
 0x7c0   :  { %v4221_v2 = vsel %vm4220_vm13, %v8965_v44, %v4217_v60  ;;  %vm4259_vm3 = vmor %vm4257_vm2, %vm4258_vm1  ;;  %v8695_v44 = vld [vmem:[#allocation11 + $0xec] sm:$0xf0]  ;;  %4841 = vmatpush.bf16.msra.mxu3 %v7832_v55  ;;  %v7805_v60 = vld [vmem:[#allocation11 + $0xd0] sm:$0xf0] }
 0x7c1   :  { %v4226_v52 = vsel %vm4223_vm15, %v4225_v24, %v4221_v2  ;;  %v4240_v53 = vsel %vm4239_vm14, %v8967_v30, %v4236_v36  ;;  %v4254_v26 = vsub.f32 1.0, %v4253_v45  ;;  %v7821_v30 = vld [vmem:[#allocation11 + $0xf0] sm:$0xf0]  ;;  %v7811_v24 = vld [vmem:[#allocation11 + $0xc8] sm:$0xf]  ;;  %v7808_v45 = vor.u32 %v8689_v16, %v7805_v60 }
 0x7c2   :  { %v4245_v58 = vsel %vm4242_vm0, %v4244_v50, %v4240_v53  ;;  %v4268_v34 = vmul.f32 %v8971_v43, %v4226_v52  ;;  %v7824_v29 = vor.u32 %v8693_v14, %v7821_v30  ;;  %v8692_v36 = vld [vmem:[#allocation11 + $0xd4] sm:$0xf0]  ;;  %v8690_v2 = vld [vmem:[#allocation11 + $0xcc] sm:$0xf]  ;;  %v7813_v43 = vld [vmem:[#allocation11 + $0xd8] sm:$0xf0]  ;;  %v7756_v16 = vor.u32 %v8679_v10, %v7755_v9 }
 0x7c3   :  { %v4267_v56 = vmul.f32 %v4245_v58, %v11165_v39  ;;  %v4255_v5 = vmul.f32 %v8969_v6, %v4254_v26  ;;  %v7819_v39 = vld [vmem:[#allocation11 + $0xe0] sm:$0xf]  ;;  %v7812_v50 = vor.u32 %v8692_v36, %v7811_v24  ;;  %v7816_v52 = vor.u32 %v8690_v2, %v7813_v43  ;;  %v8687_v26 = vld [vmem:[#allocation11 + $0xac] sm:$0xf0]  ;;  %v8685_v58 = vld [vmem:[#allocation11 + $0xa4] sm:$0xf] }
 0x7c4   :  { %v7820_v31 = vor.u32 %v8695_v44, %v7819_v39  ;;  %4815 = vmatpush.bf16.msra.mxu1 %v7824_v29  ;;  %v7787_v53 = vld [vmem:[#allocation11 + $0xa0] sm:$0xf]  ;;  %v7773_v44 = vld [vmem:[#allocation11 + $0x90] sm:$0xf0]  ;;  %v7779_v14 = vld [vmem:[#allocation11 + $0x88] sm:$0xf] }
 0x7c5   :  { %v11180_v32 = vadd.f32 %v4268_v34, %v4267_v56  ;;  %v4256_v54 = vadd.f32 %v8969_v6, %v4255_v5  ;;  %4829 = vmatpush.bf16.msra.mxu2 %v7812_v50  ;;  %4842 = vmatpush.bf16.msra.mxu3 %v7816_v52  ;;  %v7788_v34 = vor.u32 %v8687_v26, %v7787_v53  ;;  %v7789_v56 = vld [vmem:[#allocation11 + $0xb0] sm:$0xf0]  ;;  %v7795_v5 = vld [vmem:[#allocation11 + $0xa8] sm:$0xf]  ;;  %v7781_v29 = vld [vmem:[#allocation11 + $0x98] sm:$0xf0] }
 0x7c6   :  { %4802 = vmatpush.bf16.msra.mxu0 %v7820_v31  ;;  %v7792_v12 = vor.u32 %v8685_v58, %v7789_v56  ;;  %v8684_v31 = vld [vmem:[#allocation11 + $0x94] sm:$0xf0]  ;;  %v7784_v1 = vor.u32 %v8682_v7, %v7781_v29  ;;  %v8677_v55 = vld [vmem:[#allocation11 + $0x64] sm:$0xf]  ;;  %v7763_v60 = vld [vmem:[#allocation11 + $0x68] sm:$0xf] }
 0x7c7   :  { %8972 = vtanh.f32 %v11180_v32  ;;  %v4260_v35 = vsel %vm4259_vm3, %v8969_v6, %v4256_v54  ;;  %v7804_v6 = vor.u32 %v8691_v28, %v7803_v4  ;;  %v8688_v54 = vld [vmem:[#allocation11 + $0xb4] sm:$0xf0]  ;;  %v7780_v61 = vor.u32 %v8684_v31, %v7779_v14  ;;  %v8678_v43 = vld [vmem:[#allocation11 + $0x6c] sm:$0xf]  ;;  %v7765_v52 = vld [vmem:[#allocation11 + $0x78] sm:$0xf0] }
 0x7c8   :  { %v4265_v21 = vsel %vm4262_vm4, %v4264_v27, %v4260_v35  ;;  %4816 = vmatpush.bf16.msra.mxu1 %v7808_v45  ;;  %v7796_v17 = vor.u32 %v8688_v54, %v7795_v5  ;;  %v8686_v35 = vld [vmem:[#allocation11 + $0xac] sm:$0xf]  ;;  %v7797_v27 = vld [vmem:[#allocation11 + $0xb8] sm:$0xf0]  ;;  %v3172_v4 = vadd.f32 %v11085_v46, %v11127_v23  ;;  %v3201_v28 = vadd.f32 %v11087_v37, %v11130_v0  ;;  %v8680_v24 = vld [vmem:[#allocation11 + $0x74] sm:$0xf0] }
 0x7c9   :  { %v7764_v2 = vor.u32 %v8680_v24, %v7763_v60  ;;  %v7768_v58 = vor.u32 %v8678_v43, %v7765_v52  ;;  %v7739_v46 = vld [vmem:[#allocation11 + $0x40] sm:$0xf]  ;;  %v8673_v37 = vld [vmem:[#allocation11 + $0x44] sm:$0xf]  ;;  %v7731_v7 = vld [vmem:[#allocation11 + $0x28] sm:$0xf] }
 0x7ca   :  { %4803 = vmatpush.bf16.msra.mxu0 %v7804_v6  ;;  %4830 = vmatpush.bf16.msra.mxu2 %v7796_v17  ;;  %v7757_v6 = vld [vmem:[#allocation11 + $0x70] sm:$0xf0]  ;;  %v8672_v10 = vld [vmem:[#allocation11 + $0x34] sm:$0xf0]  ;;  %v7707_v24 = vld [vmem:[#allocation11] sm:$0xf] }
 0x7cb   :  { %v7760_v50 = vor.u32 %v8677_v55, %v7757_v6  ;;  %v8670_v55 = vld [vmem:[#allocation11 + $0x2c] sm:$0xf]  ;;  %v7732_v60 = vor.u32 %v8672_v10, %v7731_v7  ;;  %v7715_v43 = vld [vmem:[#allocation11 + $0x8] sm:$0xf]  ;;  %v8668_v52 = vld [vmem:[#allocation11 + $0x14] sm:$0xf0] }
 0x7cc   :  { %4817 = vmatpush.bf16.msra.mxu1 %v7792_v12  ;;  %v7741_v12 = vld [vmem:[#allocation11 + $0x50] sm:$0xf0] }
 0x7cd   :  { %v8973_v19 = vpop.eup %8972  ;;  %v7744_v17 = vor.u32 %v8673_v37, %v7741_v12  ;;  %v7716_v37 = vor.u32 %v8668_v52, %v7715_v43 }
 0x7ce   :  { %v4271_v18 = vmul.f32 %v8973_v19, %v4265_v21  ;;  %4804 = vmatpush.bf16.msra.mxu0 %v7788_v34  ;;  %v7800_v19 = vor.u32 %v8686_v35, %v7797_v27  ;;  %v7771_v21 = vld [vmem:[#allocation11 + $0x80] sm:$0xf]  ;;  %4831 = vmatpush.bf16.msra.mxu2 %v7780_v61  ;;  %v8675_v34 = vld [vmem:[#allocation11 + $0x4c] sm:$0xf0]  ;;  %v7747_v35 = vld [vmem:[#allocation11 + $0x48] sm:$0xf] }
 0x7cf   :  { %v7740_v54 = vor.u32 %v8675_v34, %v7739_v46  ;;  %v8676_v27 = vld [vmem:[#allocation11 + $0x54] sm:$0xf0]  ;;  %v7725_v61 = vld [vmem:[#allocation11 + $0x30] sm:$0xf0]  ;;  %v7717_v46 = vld [vmem:[#allocation11 + $0x18] sm:$0xf0] }
 0x7d0   :  { %v4274_v49 = vpack.c.bf16 %v4271_v18, %v4271_v18  ;;  %v8683_v18 = vld [vmem:[#allocation11 + $0x8c] sm:$0xf0]  ;;  %4843 = vmatpush.bf16.msra.mxu3 %v7800_v19  ;;  %v8674_v19 = vld [vmem:[#allocation11 + $0x4c] sm:$0xf] }
 0x7d1   :  { %v7772_v39 = vor.u32 %v8683_v18, %v7771_v21  ;;  %v7748_v21 = vor.u32 %v8676_v27, %v7747_v35  ;;  %v7749_v18 = vld [vmem:[#allocation11 + $0x58] sm:$0xf0] }
 0x7d2   :  { %7572 = vst [vmem:[%s11265_s7 + $0x8] sm:$0xf] %v4274_v49  ;;  %4485 = vmatmul.bf16.vlgmr.msrb.gmra.mxu0 %v4274_v49  ;;  %4498 = vmatmul.bf16.vlgmr.msrb.gmra.mxu1 %v4274_v49  ;;  %v7752_v14 = vor.u32 %v8674_v19, %v7749_v18  ;;  %v3230_v19 = vadd.f32 %v11089_v20, %v11146_v13 }
 0x7d3   :  { %4511 = vmatmul.bf16.vlgmr.msrb.gmra.mxu2 %v4274_v49  ;;  %4524 = vmatmul.bf16.vlgmr.msrb.gmra.mxu3 %v4274_v49  ;;  %v8681_v49 = vld [vmem:[#allocation11 + $0x84] sm:$0xf] }
 0x7d4   :  { %v7776_v30 = vor.u32 %v8681_v49, %v7773_v44  ;;  %4805 = vmatpush.bf16.msra.mxu0 %v7772_v39  ;;  %4844 = vmatpush.bf16.msra.mxu3 %v7784_v1  ;;  %v7723_v49 = vld [vmem:[#allocation11 + $0x20] sm:$0xf]  ;;  %v8671_v39 = vld [vmem:[#allocation11 + $0x2c] sm:$0xf0]  ;;  %v3259_v44 = vadd.f32 %v11091_v8, %v11141_v57 }
 0x7d5   :  { %4832 = vmatpush.bf16.msra.mxu2 %v7764_v2  ;;  %v7724_v31 = vor.u32 %v8671_v39, %v7723_v49  ;;  %v7709_v2 = vld [vmem:[#allocation11 + $0x10] sm:$0xf0] }
 0x7d6   :  { %4818 = vmatpush.bf16.msra.mxu1 %v7776_v30  ;;  %v8669_v30 = vld [vmem:[#allocation11 + $0x24] sm:$0xf] }
 0x7d7   :  { %v7728_v9 = vor.u32 %v8669_v30, %v7725_v61 }
 0x7d8   :  { %4806 = vmatpush.bf16.msra.mxu0 %v7756_v16  ;;  %4845 = vmatpush.bf16.msra.mxu3 %v7768_v58  ;;  %v8666_v58 = vld [vmem:[#allocation11 + $0xc] sm:$0xf] }
 0x7d9   :  { %4833 = vmatpush.bf16.msra.mxu2 %v7748_v21 }
 0x7da   :  { %4819 = vmatpush.bf16.msra.mxu1 %v7760_v50 }
 0x7dc   :  { %4807 = vmatpush.bf16.msra.mxu0 %v7740_v54  ;;  %4846 = vmatpush.bf16.msra.mxu3 %v7752_v14  ;;  %v7720_v54 = vor.u32 %v8666_v58, %v7717_v46 }
 0x7dd   :  { %4834 = vmatpush.bf16.msra.mxu2 %v7732_v60 }
 0x7de   :  { %4820 = vmatpush.bf16.msra.mxu1 %v7744_v17 }
 0x7e0   :  { %4808 = vmatpush.bf16.msra.mxu0 %v7724_v31 }
 0x7e1   :  { %4835 = vmatpush.bf16.msra.mxu2 %v7716_v37 }
 0x7e2   :  { %4821 = vmatpush.bf16.msra.mxu1 %v7728_v9 }
 0x84f   :  { %v4486_v36 = vpop.f32.mrf.mxu0  ;;  %v4499_v45 = vpop.f32.mrf.mxu1 }
 0x850   :  { %v4529_v53 = vadd.f32 %v4486_v36, %v3172_v4  ;;  %v4530_v26 = vadd.f32 %v4499_v45, %v3201_v28  ;;  %v7733_v4 = vld [vmem:[#allocation11 + $0x38] sm:$0xf0]  ;;  %v8667_v36 = vld [vmem:[#allocation11 + $0xc] sm:$0xf0]  ;;  %v8665_v45 = vld [vmem:[#allocation11 + $0x4] sm:$0xf] }
 0x851   :  { %v7736_v8 = vor.u32 %v8670_v55, %v7733_v4  ;;  %v7708_v50 = vor.u32 %v8667_v36, %v7707_v24 }
 0x852   :  { %v7701_v56 = vmul.f32 -1.442695, %v4529_v53  ;;  %v7702_v5 = vmul.f32 -1.442695, %v4530_v26  ;;  %v7712_v26 = vor.u32 %v8665_v45, %v7709_v2 }
 0x853   :  { %4847 = vmatpush.bf16.msra.mxu3 %v7736_v8  ;;  %4809 = vmatpush.bf16.msra.mxu0 %v7708_v50 }
 0x854   :  { %8974 = vpow2.f32 %v7701_v56  ;;  %4822 = vmatpush.bf16.msra.mxu1 %v7712_v26 }
 0x855   :  { %8976 = vpow2.f32 %v7702_v5 }
 0x856   :  { %v4512_v29 = vpop.f32.mrf.mxu2  ;;  %v4525_v1 = vpop.f32.mrf.mxu3 }
 0x857   :  { %v4532_v28 = vadd.f32 %v4525_v1, %v3259_v44  ;;  %v4488_v16 = vpop.f32.mrf.mxu0  ;;  %v4501_v6 = vpop.f32.mrf.mxu1  ;;  %4848 = vmatpush.bf16.msra.mxu3 %v7720_v54  ;;  %v4531_v49 = vadd.f32 %v4512_v29, %v3230_v19  ;;  %v7953_v19 = vld [vmem:[#allocation11 + $0xf0] sm:$0xf0] }
 0x859   :  { %v7703_v53 = vmul.f32 -1.442695, %v4532_v28 }
 0x85a   :  { %v8975_v34 = vpop.eup %8974 }
 0x85b   :  { %v8977_v56 = vpop.eup %8976  ;;  %v4537_v5 = vadd.f32 1.0, %v8975_v34  ;;  %8978 = vpow2.f32 %v7703_v53 }
 0x85c   :  { %v4556_v12 = vadd.f32 1.0, %v8977_v56 }
 0x85d   :  { %8980 = vrcp.f32 %v4537_v5  ;;  %v4549_v61 = vand.u32 2147483648, %v4537_v5  ;;  %v4547_v9 = vand.u32 2147483647, %v4537_v5  ;;  %vm4543_vm7 = vweird.f32 %v4537_v5 }
 0x85e   :  { %8982 = vrcp.f32 %v4556_v12  ;;  %v4514_v17 = vpop.f32.mrf.mxu2  ;;  %v4527_v35 = vpop.f32.mrf.mxu3  ;;  %v4568_v7 = vand.u32 2147483648, %v4556_v12  ;;  %v4566_v55 = vand.u32 2147483647, %v4556_v12  ;;  %vm4562_vm8 = vweird.f32 %v4556_v12 }
 0x85f   :  { %v4550_v29 = vor.u32 1.1754944e-38, %v4549_v61  ;;  %vm4548_vm11 = vcmp.eq.f32.partialorder %v4547_v9, 8.507059e+37  ;;  %v8727_v17 = vld [vmem:[#allocation11 + $0xec] sm:$0xf0]  ;;  %v8725_v35 = vld [vmem:[#allocation11 + $0xe4] sm:$0xf] }
 0x860   :  { %v4569_v6 = vor.u32 1.1754944e-38, %v4568_v7  ;;  %vm4567_vm12 = vcmp.eq.f32.partialorder %v4566_v55, 8.507059e+37  ;;  %v8723_v61 = vld [vmem:[#allocation11 + $0xcc] sm:$0xf0]  ;;  %v8721_v7 = vld [vmem:[#allocation11 + $0xc4] sm:$0xf] }
 0x861   :  { %v8979_v27 = vpop.eup %8978  ;;  %v7937_v9 = vld [vmem:[#allocation11 + $0xd0] sm:$0xf0]  ;;  %v8724_v55 = vld [vmem:[#allocation11 + $0xd4] sm:$0xf0] }
 0x862   :  { %v4576_v21 = vadd.f32 1.0, %v8979_v27 }
 0x863   :  { %v8981_v18 = vpop.eup %8980 }
 0x864   :  { %v8983_v39 = vpop.eup %8982  ;;  %v4539_v44 = vmul.f32 %v8981_v18, %v4537_v5  ;;  %8984 = vrcp.f32 %v4576_v21  ;;  %vm4544_vm5 = vweird.f32 %v8981_v18  ;;  %v4588_v58 = vand.u32 2147483648, %v4576_v21 }
 0x865   :  { %v4558_v14 = vmul.f32 %v8983_v39, %v4556_v12  ;;  %8986 = vtanh.f32 %v4531_v49  ;;  %vm4563_vm6 = vweird.f32 %v8983_v39  ;;  %vm4545_vm9 = vmor %vm4543_vm7, %vm4544_vm5  ;;  %vm4582_vm14 = vweird.f32 %v4576_v21 }
 0x866   :  { %v4540_v31 = vsub.f32 1.0, %v4539_v44  ;;  %vm4564_vm10 = vmor %vm4562_vm8, %vm4563_vm6  ;;  %v4586_v46 = vand.u32 2147483647, %v4576_v21  ;;  %v4589_v37 = vor.u32 1.1754944e-38, %v4588_v58  ;;  %v7956_v49 = vor.u32 %v8725_v35, %v7953_v19  ;;  %v8726_v44 = vld [vmem:[#allocation11 + $0xec] sm:$0xf] }
 0x867   :  { %v4559_v30 = vsub.f32 1.0, %v4558_v14  ;;  %v7961_v14 = vld [vmem:[#allocation11 + $0xf8] sm:$0xf0]  ;;  %v8714_v35 = vld [vmem:[#allocation11 + $0x8c] sm:$0xf] }
 0x868   :  { %v4541_v1 = vmul.f32 %v8981_v18, %v4540_v31  ;;  %vm4587_vm0 = vcmp.eq.f32.partialorder %v4586_v46, 8.507059e+37  ;;  %v7964_v31 = vor.u32 %v8726_v44, %v7961_v14  ;;  %5140 = vmatpush.bf16.msrb.mxu1 %v7956_v49  ;;  %v7903_v46 = vld [vmem:[#allocation11 + $0x80] sm:$0xf]  ;;  %v8709_v49 = vld [vmem:[#allocation11 + $0x64] sm:$0xf]  ;;  %v3204_v44 = vadd.f32 %v11095_v47, %v11130_v0 }
 0x869   :  { %v4560_v10 = vmul.f32 %v8983_v39, %v4559_v30  ;;  %v7935_v30 = vld [vmem:[#allocation11 + $0xc0] sm:$0xf]  ;;  %v8705_v47 = vld [vmem:[#allocation11 + $0x44] sm:$0xf] }
 0x86a   :  { %v8985_v4 = vpop.eup %8984  ;;  %v4542_v20 = vadd.f32 %v8981_v18, %v4541_v1  ;;  %5166 = vmatpush.bf16.msrb.mxu3 %v7964_v31  ;;  %v7936_v1 = vor.u32 %v8723_v61, %v7935_v30  ;;  %v7889_v31 = vld [vmem:[#allocation11 + $0x70] sm:$0xf0]  ;;  %v7895_v30 = vld [vmem:[#allocation11 + $0x68] sm:$0xf]  ;;  %v8712_v61 = vld [vmem:[#allocation11 + $0x74] sm:$0xf0] }
 0x86b   :  { %v4561_v28 = vadd.f32 %v8983_v39, %v4560_v10  ;;  %v4578_v16 = vmul.f32 %v8985_v4, %v4576_v21  ;;  %v8987_v8 = vpop.eup %8986  ;;  %vm4583_vm13 = vweird.f32 %v8985_v4  ;;  %v7959_v21 = vld [vmem:[#allocation11 + $0xe8] sm:$0xf] }
 0x86c   :  { %v4546_v60 = vsel %vm4545_vm9, %v8981_v18, %v4542_v20  ;;  %vm4584_vm15 = vmor %vm4582_vm14, %vm4583_vm13  ;;  %v8728_v18 = vld [vmem:[#allocation11 + $0xf4] sm:$0xf0]  ;;  %v7943_v10 = vld [vmem:[#allocation11 + $0xc8] sm:$0xf] }
 0x86d   :  { %v4551_v24 = vsel %vm4548_vm11, %v4550_v29, %v4546_v60  ;;  %v4565_v36 = vsel %vm4564_vm10, %v8983_v39, %v4561_v28  ;;  %v4579_v45 = vsub.f32 1.0, %v4578_v16  ;;  %v7960_v39 = vor.u32 %v8728_v18, %v7959_v21  ;;  %v8722_v29 = vld [vmem:[#allocation11 + $0xcc] sm:$0xf]  ;;  %v7945_v28 = vld [vmem:[#allocation11 + $0xd8] sm:$0xf0] }
 0x86e   :  { %v4570_v50 = vsel %vm4567_vm12, %v4569_v6, %v4565_v36  ;;  %v4593_v2 = vmul.f32 %v8987_v8, %v4551_v24  ;;  %v7944_v20 = vor.u32 %v8724_v55, %v7943_v10  ;;  %v7948_v16 = vor.u32 %v8722_v29, %v7945_v28  ;;  %v7919_v6 = vld [vmem:[#allocation11 + $0xa0] sm:$0xf]  ;;  %v8719_v60 = vld [vmem:[#allocation11 + $0xac] sm:$0xf0]  ;;  %v8717_v8 = vld [vmem:[#allocation11 + $0xa4] sm:$0xf] }
 0x86f   :  { %v4592_v43 = vmul.f32 %v4570_v50, %v11180_v32  ;;  %v4580_v52 = vmul.f32 %v8985_v4, %v4579_v45  ;;  %v7951_v32 = vld [vmem:[#allocation11 + $0xe0] sm:$0xf]  ;;  %5153 = vmatpush.bf16.msrb.mxu2 %v7960_v39  ;;  %v7920_v24 = vor.u32 %v8719_v60, %v7919_v6  ;;  %v7921_v36 = vld [vmem:[#allocation11 + $0xb0] sm:$0xf0]  ;;  %v7927_v45 = vld [vmem:[#allocation11 + $0xa8] sm:$0xf]  ;;  %v3175_v39 = vadd.f32 %v11093_v22, %v11127_v23 }
 0x870   :  { %v7952_v27 = vor.u32 %v8727_v17, %v7951_v32  ;;  %5167 = vmatpush.bf16.msrb.mxu3 %v7948_v16  ;;  %v8720_v50 = vld [vmem:[#allocation11 + $0xb4] sm:$0xf0]  ;;  %v7887_v21 = vld [vmem:[#allocation11 + $0x60] sm:$0xf]  ;;  %v8711_v18 = vld [vmem:[#allocation11 + $0x6c] sm:$0xf0]  ;;  %v7896_v10 = vor.u32 %v8712_v61, %v7895_v30 }
 0x871   :  { %v11195_v53 = vadd.f32 %v4593_v2, %v4592_v43  ;;  %v4581_v26 = vadd.f32 %v8985_v4, %v4580_v52  ;;  %v7924_v2 = vor.u32 %v8717_v8, %v7921_v36  ;;  %v7928_v43 = vor.u32 %v8720_v50, %v7927_v45  ;;  %v8718_v52 = vld [vmem:[#allocation11 + $0xac] sm:$0xf]  ;;  %v7871_v22 = vld [vmem:[#allocation11 + $0x40] sm:$0xf]  ;;  %v8707_v16 = vld [vmem:[#allocation11 + $0x4c] sm:$0xf0] }
 0x872   :  { %5127 = vmatpush.bf16.msrb.mxu0 %v7952_v27  ;;  %v7913_v27 = vld [vmem:[#allocation11 + $0x98] sm:$0xf0]  ;;  %v7888_v14 = vor.u32 %v8711_v18, %v7887_v21  ;;  %v8710_v55 = vld [vmem:[#allocation11 + $0x6c] sm:$0xf]  ;;  %v7872_v8 = vor.u32 %v8707_v16, %v7871_v22  ;;  %v7879_v45 = vld [vmem:[#allocation11 + $0x48] sm:$0xf] }
 0x873   :  { %8988 = vtanh.f32 %v11195_v53  ;;  %v4585_v34 = vsel %vm4584_vm15, %v8985_v4, %v4581_v26  ;;  %v7940_v4 = vor.u32 %v8721_v7, %v7937_v9  ;;  %5154 = vmatpush.bf16.msrb.mxu2 %v7944_v20  ;;  %v7929_v26 = vld [vmem:[#allocation11 + $0xb8] sm:$0xf0]  ;;  %v7916_v19 = vor.u32 %v8714_v35, %v7913_v27  ;;  %v8708_v50 = vld [vmem:[#allocation11 + $0x54] sm:$0xf0]  ;;  %v8702_v27 = vld [vmem:[#allocation11 + $0x2c] sm:$0xf] }
 0x874   :  { %v4590_v5 = vsel %vm4587_vm0, %v4589_v37, %v4585_v34  ;;  %v7932_v58 = vor.u32 %v8718_v52, %v7929_v26  ;;  %v8715_v34 = vld [vmem:[#allocation11 + $0x8c] sm:$0xf0]  ;;  %v8713_v37 = vld [vmem:[#allocation11 + $0x84] sm:$0xf]  ;;  %v7892_v9 = vor.u32 %v8709_v49, %v7889_v31  ;;  %v7881_v52 = vld [vmem:[#allocation11 + $0x58] sm:$0xf0] }
 0x875   :  { %5141 = vmatpush.bf16.msrb.mxu1 %v7940_v4  ;;  %v7897_v4 = vld [vmem:[#allocation11 + $0x78] sm:$0xf0]  ;;  %v7855_v26 = vld [vmem:[#allocation11 + $0x20] sm:$0xf]  ;;  %v8704_v35 = vld [vmem:[#allocation11 + $0x34] sm:$0xf0] }
 0x876   :  { %5128 = vmatpush.bf16.msrb.mxu0 %v7936_v1  ;;  %5168 = vmatpush.bf16.msrb.mxu3 %v7932_v58  ;;  %v7900_v28 = vor.u32 %v8710_v55, %v7897_v4  ;;  %v8703_v58 = vld [vmem:[#allocation11 + $0x2c] sm:$0xf0]  ;;  %v8697_v31 = vld [vmem:[#allocation11 + $0x4] sm:$0xf]  ;;  %v7841_v61 = vld [vmem:[#allocation11 + $0x10] sm:$0xf0] }
 0x877   :  { %5155 = vmatpush.bf16.msrb.mxu2 %v7928_v43  ;;  %v7880_v43 = vor.u32 %v8708_v50, %v7879_v45  ;;  %v8698_v55 = vld [vmem:[#allocation11 + $0xc] sm:$0xf]  ;;  %v7849_v4 = vld [vmem:[#allocation11 + $0x18] sm:$0xf0] }
 0x878   :  { %v7852_v16 = vor.u32 %v8698_v55, %v7849_v4 }
 0x879   :  { %v8989_v56 = vpop.eup %8988  ;;  %5142 = vmatpush.bf16.msrb.mxu1 %v7924_v2  ;;  %v8706_v2 = vld [vmem:[#allocation11 + $0x4c] sm:$0xf] }
 0x87a   :  { %v4596_v54 = vmul.f32 %v8989_v56, %v4590_v5  ;;  %5129 = vmatpush.bf16.msrb.mxu0 %v7920_v24  ;;  %v7904_v56 = vor.u32 %v8715_v34, %v7903_v46  ;;  %v7905_v5 = vld [vmem:[#allocation11 + $0x90] sm:$0xf0]  ;;  %5169 = vmatpush.bf16.msrb.mxu3 %v7916_v19  ;;  %v3262_v46 = vadd.f32 %v11099_v15, %v11141_v57  ;;  %v7865_v19 = vld [vmem:[#allocation11 + $0x38] sm:$0xf0] }
 0x87b   :  { %v7908_v32 = vor.u32 %v8713_v37, %v7905_v5  ;;  %v7873_v24 = vld [vmem:[#allocation11 + $0x50] sm:$0xf0]  ;;  %v7884_v34 = vor.u32 %v8706_v2, %v7881_v52  ;;  %v7856_v37 = vor.u32 %v8703_v58, %v7855_v26  ;;  %v7868_v15 = vor.u32 %v8702_v27, %v7865_v19 }
 0x87c   :  { %v4599_v12 = vpack.c.bf16 %v4596_v54, %v4596_v54  ;;  %v7911_v54 = vld [vmem:[#allocation11 + $0x88] sm:$0xf]  ;;  %v7876_v36 = vor.u32 %v8705_v47, %v7873_v24  ;;  %v7857_v5 = vld [vmem:[#allocation11 + $0x30] sm:$0xf0]  ;;  %v3233_v24 = vadd.f32 %v11097_v62, %v11146_v13 }
 0x87d   :  { %5143 = vmatpush.bf16.msrb.mxu1 %v7908_v32 }
 0x87e   :  { %7704 = vst [vmem:[%s11265_s7 + $0xc] sm:$0xf] %v4599_v12  ;;  %4810 = vmatmul.bf16.vlgmr.msra.gmra.mxu0 %v4599_v12  ;;  %4823 = vmatmul.bf16.vlgmr.msra.gmra.mxu1 %v4599_v12 }
 0x87f   :  { %4836 = vmatmul.bf16.vlgmr.msra.gmra.mxu2 %v4599_v12  ;;  %4849 = vmatmul.bf16.vlgmr.msra.gmra.mxu3 %v4599_v12  ;;  %v8716_v12 = vld [vmem:[#allocation11 + $0x94] sm:$0xf0] }
 0x880   :  { %v7912_v17 = vor.u32 %v8716_v12, %v7911_v54  ;;  %5130 = vmatpush.bf16.msrb.mxu0 %v7904_v56  ;;  %5170 = vmatpush.bf16.msrb.mxu3 %v7900_v28  ;;  %v8701_v56 = vld [vmem:[#allocation11 + $0x24] sm:$0xf]  ;;  %v7863_v54 = vld [vmem:[#allocation11 + $0x28] sm:$0xf] }
 0x881   :  { %5144 = vmatpush.bf16.msrb.mxu1 %v7892_v9 }
 0x882   :  { %5156 = vmatpush.bf16.msrb.mxu2 %v7912_v17  ;;  %v7860_v17 = vor.u32 %v8701_v56, %v7857_v5 }
 0x884   :  { %5131 = vmatpush.bf16.msrb.mxu0 %v7888_v14  ;;  %5171 = vmatpush.bf16.msrb.mxu3 %v7884_v34  ;;  %v8699_v14 = vld [vmem:[#allocation11 + $0xc] sm:$0xf0] }
 0x885   :  { %5145 = vmatpush.bf16.msrb.mxu1 %v7876_v36 }
 0x886   :  { %5157 = vmatpush.bf16.msrb.mxu2 %v7896_v10  ;;  %v7844_v10 = vor.u32 %v8697_v31, %v7841_v61 }
 0x888   :  { %5132 = vmatpush.bf16.msrb.mxu0 %v7872_v8  ;;  %5172 = vmatpush.bf16.msrb.mxu3 %v7868_v15 }
 0x889   :  { %5146 = vmatpush.bf16.msrb.mxu1 %v7860_v17 }
 0x88a   :  { %5158 = vmatpush.bf16.msrb.mxu2 %v7880_v43 }
 0x88c   :  { %5133 = vmatpush.bf16.msrb.mxu0 %v7856_v37  ;;  %5173 = vmatpush.bf16.msrb.mxu3 %v7852_v16 }
 0x88d   :  { %5147 = vmatpush.bf16.msrb.mxu1 %v7844_v10 }
 0x8fb   :  { %v4811_v7 = vpop.f32.mrf.mxu0  ;;  %v4824_v1 = vpop.f32.mrf.mxu1 }
 0x8fc   :  { %v4854_v20 = vadd.f32 %v4811_v7, %v3175_v39  ;;  %v4855_v29 = vadd.f32 %v4824_v1, %v3204_v44  ;;  %v7864_v39 = vor.u32 %v8704_v35, %v7863_v54  ;;  %v7839_v44 = vld [vmem:[#allocation11] sm:$0xf]  ;;  %v7847_v7 = vld [vmem:[#allocation11 + $0x8] sm:$0xf]  ;;  %v8700_v1 = vld [vmem:[#allocation11 + $0x14] sm:$0xf0] }
 0x8fd   :  { %v7840_v30 = vor.u32 %v8699_v14, %v7839_v44 }
 0x8fe   :  { %v7833_v6 = vmul.f32 -1.442695, %v4854_v20  ;;  %v7834_v60 = vmul.f32 -1.442695, %v4855_v29  ;;  %5159 = vmatpush.bf16.msrb.mxu2 %v7864_v39  ;;  %v7848_v29 = vor.u32 %v8700_v1, %v7847_v7 }
 0x8ff   :  { %5134 = vmatpush.bf16.msrb.mxu0 %v7840_v30 }
 0x900   :  { %8990 = vpow2.f32 %v7833_v6 }
 0x901   :  { %8992 = vpow2.f32 %v7834_v60 }
 0x902   :  { %v4837_v12 = vpop.f32.mrf.mxu2  ;;  %v4850_v32 = vpop.f32.mrf.mxu3  ;;  %5160 = vmatpush.bf16.msrb.mxu2 %v7848_v29 }
 0x903   :  { %v4857_v21 = vadd.f32 %v4850_v32, %v3262_v46  ;;  %v4813_v18 = vpop.f32.mrf.mxu0  ;;  %v4826_v49 = vpop.f32.mrf.mxu1  ;;  %v4856_v50 = vadd.f32 %v4837_v12, %v3233_v24 }
 0x905   :  { %v7835_v9 = vmul.f32 -1.442695, %v4857_v21 }
 0x906   :  { %v8991_v20 = vpop.eup %8990 }
 0x907   :  { %v8993_v28 = vpop.eup %8992  ;;  %v4862_v22 = vadd.f32 1.0, %v8991_v20  ;;  %8994 = vpow2.f32 %v7835_v9 }
 0x908   :  { %v4881_v47 = vadd.f32 1.0, %v8993_v28  ;;  %v8759_v28 = vld [vmem:[#allocation11 + $0xec] sm:$0xf0] }
 0x909   :  { %8996 = vrcp.f32 %v4862_v22  ;;  %v4874_v46 = vand.u32 2147483648, %v4862_v22  ;;  %v4872_v56 = vand.u32 2147483647, %v4862_v22  ;;  %vm4868_vm3 = vweird.f32 %v4862_v22 }
 0x90a   :  { %8998 = vrcp.f32 %v4881_v47  ;;  %v4839_v6 = vpop.f32.mrf.mxu2  ;;  %v4852_v60 = vpop.f32.mrf.mxu3  ;;  %v4893_v34 = vand.u32 2147483648, %v4881_v47  ;;  %v4891_v54 = vand.u32 2147483647, %v4881_v47  ;;  %vm4887_vm4 = vweird.f32 %v4881_v47 }
 0x90b   :  { %v4875_v12 = vor.u32 1.1754944e-38, %v4874_v46  ;;  %vm4873_vm7 = vcmp.eq.f32.partialorder %v4872_v56, 8.507059e+37  ;;  %v8091_v6 = vld [vmem:[#allocation11 + $0xe8] sm:$0xf]  ;;  %v8760_v60 = vld [vmem:[#allocation11 + $0xf4] sm:$0xf0] }
 0x90c   :  { %v4894_v27 = vor.u32 1.1754944e-38, %v4893_v34  ;;  %vm4892_vm8 = vcmp.eq.f32.partialorder %v4891_v54, 8.507059e+37  ;;  %v8092_v24 = vor.u32 %v8760_v60, %v8091_v6  ;;  %v8075_v46 = vld [vmem:[#allocation11 + $0xc8] sm:$0xf]  ;;  %v8756_v34 = vld [vmem:[#allocation11 + $0xd4] sm:$0xf0]  ;;  %v3206_v6 = vadd.f32 %v11103_v33, %v11130_v0 }
 0x90d   :  { %v8995_v8 = vpop.eup %8994  ;;  %v8076_v56 = vor.u32 %v8756_v34, %v8075_v46  ;;  %v8077_v54 = vld [vmem:[#allocation11 + $0xd8] sm:$0xf0]  ;;  %v8737_v33 = vld [vmem:[#allocation11 + $0x44] sm:$0xf] }
 0x90e   :  { %v4901_v36 = vadd.f32 1.0, %v8995_v8  ;;  %5478 = vmatpush.bf16.msra.mxu2 %v8092_v24  ;;  %v8027_v24 = vld [vmem:[#allocation11 + $0x68] sm:$0xf] }
 0x90f   :  { %v8997_v45 = vpop.eup %8996 }
 0x910   :  { %v8999_v2 = vpop.eup %8998  ;;  %v4864_v43 = vmul.f32 %v8997_v45, %v4862_v22  ;;  %9000 = vrcp.f32 %v4901_v36  ;;  %vm4869_vm1 = vweird.f32 %v8997_v45  ;;  %v4913_v7 = vand.u32 2147483648, %v4901_v36  ;;  %v8757_v22 = vld [vmem:[#allocation11 + $0xe4] sm:$0xf] }
 0x911   :  { %v4883_v52 = vmul.f32 %v8999_v2, %v4881_v47  ;;  %9002 = vtanh.f32 %v4856_v50  ;;  %vm4888_vm2 = vweird.f32 %v8999_v2  ;;  %vm4870_vm5 = vmor %vm4868_vm3, %vm4869_vm1  ;;  %vm4907_vm10 = vweird.f32 %v4901_v36  ;;  %v8085_v47 = vld [vmem:[#allocation11 + $0xf0] sm:$0xf0] }
 0x912   :  { %v4865_v26 = vsub.f32 1.0, %v4864_v43  ;;  %vm4889_vm6 = vmor %vm4887_vm4, %vm4888_vm2  ;;  %v4911_v1 = vand.u32 2147483647, %v4901_v36  ;;  %v4914_v10 = vor.u32 1.1754944e-38, %v4913_v7  ;;  %v8088_v8 = vor.u32 %v8757_v22, %v8085_v47  ;;  %v8755_v43 = vld [vmem:[#allocation11 + $0xcc] sm:$0xf0]  ;;  %5479 = vmatpush.bf16.msra.mxu2 %v8076_v56 }
 0x913   :  { %v4884_v58 = vsub.f32 1.0, %v4883_v52  ;;  %v8753_v52 = vld [vmem:[#allocation11 + $0xc4] sm:$0xf]  ;;  %v8743_v22 = vld [vmem:[#allocation11 + $0x6c] sm:$0xf0]  ;;  %v3177_v47 = vadd.f32 %v11101_v40, %v11127_v23 }
 0x914   :  { %v4866_v37 = vmul.f32 %v8997_v45, %v4865_v26  ;;  %vm4912_vm12 = vcmp.eq.f32.partialorder %v4911_v1, 8.507059e+37  ;;  %5465 = vmatpush.bf16.msra.mxu1 %v8088_v8  ;;  %v8037_v1 = vld [vmem:[#allocation11 + $0x90] sm:$0xf0]  ;;  %v8003_v40 = vld [vmem:[#allocation11 + $0x40] sm:$0xf] }
 0x915   :  { %v4885_v5 = vmul.f32 %v8999_v2, %v4884_v58  ;;  %v8069_v58 = vld [vmem:[#allocation11 + $0xd0] sm:$0xf0] }
 0x916   :  { %v9001_v32 = vpop.eup %9000  ;;  %v4867_v62 = vadd.f32 %v8997_v45, %v4866_v37  ;;  %v8072_v37 = vor.u32 %v8753_v52, %v8069_v58  ;;  %v8021_v8 = vld [vmem:[#allocation11 + $0x70] sm:$0xf0]  ;;  %v8742_v52 = vld [vmem:[#allocation11 + $0x6c] sm:$0xf] }
 0x917   :  { %v4886_v17 = vadd.f32 %v8999_v2, %v4885_v5  ;;  %v4903_v35 = vmul.f32 %v9001_v32, %v4901_v36  ;;  %v9003_v21 = vpop.eup %9002  ;;  %vm4908_vm9 = vweird.f32 %v9001_v32  ;;  %v8758_v36 = vld [vmem:[#allocation11 + $0xec] sm:$0xf] }
 0x918   :  { %v4871_v19 = vsel %vm4870_vm5, %v8997_v45, %v4867_v62  ;;  %vm4909_vm11 = vmor %vm4907_vm10, %vm4908_vm9  ;;  %v8093_v45 = vld [vmem:[#allocation11 + $0xf8] sm:$0xf0]  ;;  %v8754_v5 = vld [vmem:[#allocation11 + $0xcc] sm:$0xf]  ;;  %5466 = vmatpush.bf16.msra.mxu1 %v8072_v37 }
 0x919   :  { %v4876_v18 = vsel %vm4873_vm7, %v4875_v12, %v4871_v19  ;;  %v4890_v49 = vsel %vm4889_vm6, %v8999_v2, %v4886_v17  ;;  %v4904_v39 = vsub.f32 1.0, %v4903_v35  ;;  %v8096_v50 = vor.u32 %v8758_v36, %v8093_v45  ;;  %v8067_v2 = vld [vmem:[#allocation11 + $0xc0] sm:$0xf]  ;;  %v8751_v12 = vld [vmem:[#allocation11 + $0xac] sm:$0xf0] }
 0x91a   :  { %v4895_v15 = vsel %vm4892_vm8, %v4894_v27, %v4890_v49  ;;  %v4918_v44 = vmul.f32 %v9003_v21, %v4876_v18  ;;  %v8068_v26 = vor.u32 %v8755_v43, %v8067_v2  ;;  %v8051_v62 = vld [vmem:[#allocation11 + $0xa0] sm:$0xf]  ;;  %v8749_v17 = vld [vmem:[#allocation11 + $0xa4] sm:$0xf]  ;;  %v8053_v27 = vld [vmem:[#allocation11 + $0xb0] sm:$0xf0] }
 0x91b   :  { %v4917_v14 = vmul.f32 %v4895_v15, %v11195_v53  ;;  %v4905_v31 = vmul.f32 %v9001_v32, %v4904_v39  ;;  %v8083_v53 = vld [vmem:[#allocation11 + $0xe0] sm:$0xf]  ;;  %5491 = vmatpush.bf16.msra.mxu3 %v8096_v50  ;;  %v8052_v35 = vor.u32 %v8751_v12, %v8051_v62  ;;  %v8059_v19 = vld [vmem:[#allocation11 + $0xa8] sm:$0xf]  ;;  %v8752_v21 = vld [vmem:[#allocation11 + $0xb4] sm:$0xf0]  ;;  %v8056_v18 = vor.u32 %v8749_v17, %v8053_v27 }
 0x91c   :  { %v8084_v16 = vor.u32 %v8759_v28, %v8083_v53  ;;  %v8060_v49 = vor.u32 %v8752_v21, %v8059_v19  ;;  %v8750_v39 = vld [vmem:[#allocation11 + $0xac] sm:$0xf]  ;;  %v8061_v15 = vld [vmem:[#allocation11 + $0xb8] sm:$0xf0]  ;;  %v8019_v28 = vld [vmem:[#allocation11 + $0x60] sm:$0xf] }
 0x91d   :  { %v11210_v30 = vadd.f32 %v4918_v44, %v4917_v14  ;;  %v4906_v61 = vadd.f32 %v9001_v32, %v4905_v31  ;;  %v8064_v44 = vor.u32 %v8750_v39, %v8061_v15  ;;  %5467 = vmatpush.bf16.msra.mxu1 %v8056_v18  ;;  %v8035_v14 = vld [vmem:[#allocation11 + $0x80] sm:$0xf]  ;;  %v8747_v31 = vld [vmem:[#allocation11 + $0x8c] sm:$0xf0]  ;;  %v8020_v60 = vor.u32 %v8743_v22, %v8019_v28  ;;  %v8744_v36 = vld [vmem:[#allocation11 + $0x74] sm:$0xf0] }
 0x91e   :  { %5452 = vmatpush.bf16.msra.mxu0 %v8084_v16  ;;  %5480 = vmatpush.bf16.msra.mxu2 %v8060_v49  ;;  %v8036_v7 = vor.u32 %v8747_v31, %v8035_v14  ;;  %v8741_v16 = vld [vmem:[#allocation11 + $0x64] sm:$0xf]  ;;  %v8028_v43 = vor.u32 %v8744_v36, %v8027_v24  ;;  %v8739_v37 = vld [vmem:[#allocation11 + $0x4c] sm:$0xf0]  ;;  %v8011_v12 = vld [vmem:[#allocation11 + $0x48] sm:$0xf]  ;;  %v3264_v49 = vadd.f32 %v11107_v41, %v11141_v57 }
 0x91f   :  { %9004 = vtanh.f32 %v11210_v30  ;;  %v4910_v9 = vsel %vm4909_vm11, %v9001_v32, %v4906_v61  ;;  %v8080_v32 = vor.u32 %v8754_v5, %v8077_v54  ;;  %v8745_v61 = vld [vmem:[#allocation11 + $0x84] sm:$0xf]  ;;  %v8024_v2 = vor.u32 %v8741_v16, %v8021_v8  ;;  %v8740_v17 = vld [vmem:[#allocation11 + $0x54] sm:$0xf0]  ;;  %v8013_v19 = vld [vmem:[#allocation11 + $0x58] sm:$0xf0] }
 0x920   :  { %v4915_v4 = vsel %vm4912_vm12, %v4914_v10, %v4910_v9  ;;  %v8043_v9 = vld [vmem:[#allocation11 + $0x88] sm:$0xf]  ;;  %v8748_v10 = vld [vmem:[#allocation11 + $0x94] sm:$0xf0]  ;;  %v8004_v54 = vor.u32 %v8739_v37, %v8003_v40  ;;  %v8012_v27 = vor.u32 %v8740_v17, %v8011_v12  ;;  %v7987_v21 = vld [vmem:[#allocation11 + $0x20] sm:$0xf] }
 0x921   :  { %5492 = vmatpush.bf16.msra.mxu3 %v8080_v32  ;;  %v8005_v32 = vld [vmem:[#allocation11 + $0x50] sm:$0xf0]  ;;  %v8735_v18 = vld [vmem:[#allocation11 + $0x2c] sm:$0xf0]  ;;  %v7995_v31 = vld [vmem:[#allocation11 + $0x28] sm:$0xf] }
 0x922   :  { %5453 = vmatpush.bf16.msra.mxu0 %v8068_v26  ;;  %v8029_v26 = vld [vmem:[#allocation11 + $0x78] sm:$0xf0]  ;;  %v8008_v62 = vor.u32 %v8737_v33, %v8005_v32  ;;  %v7988_v15 = vor.u32 %v8735_v18, %v7987_v21  ;;  %v7989_v14 = vld [vmem:[#allocation11 + $0x30] sm:$0xf0]  ;;  %v7971_v28 = vld [vmem:[#allocation11] sm:$0xf]  ;;  %v3235_v33 = vadd.f32 %v11105_v25, %v11146_v13 }
 0x923   :  { %v8032_v34 = vor.u32 %v8742_v52, %v8029_v26  ;;  %v8731_v22 = vld [vmem:[#allocation11 + $0xc] sm:$0xf0]  ;;  %v8729_v16 = vld [vmem:[#allocation11 + $0x4] sm:$0xf]  ;;  %v8732_v8 = vld [vmem:[#allocation11 + $0x14] sm:$0xf0] }
 0x925   :  { %v9005_v55 = vpop.eup %9004  ;;  %5493 = vmatpush.bf16.msra.mxu3 %v8064_v44  ;;  %v8733_v44 = vld [vmem:[#allocation11 + $0x24] sm:$0xf] }
 0x926   :  { %v4921_v20 = vmul.f32 %v9005_v55, %v4915_v4  ;;  %5454 = vmatpush.bf16.msra.mxu0 %v8052_v35  ;;  %v8040_v55 = vor.u32 %v8745_v61, %v8037_v1  ;;  %v8044_v4 = vor.u32 %v8748_v10, %v8043_v9  ;;  %v8738_v35 = vld [vmem:[#allocation11 + $0x4c] sm:$0xf]  ;;  %v7992_v1 = vor.u32 %v8733_v44, %v7989_v14  ;;  %v8736_v9 = vld [vmem:[#allocation11 + $0x34] sm:$0xf0] }
 0x927   :  { %v8016_v39 = vor.u32 %v8738_v35, %v8013_v19  ;;  %v8734_v10 = vld [vmem:[#allocation11 + $0x2c] sm:$0xf] }
 0x928   :  { %v4924_v29 = vpack.c.bf16 %v4921_v20, %v4921_v20  ;;  %v8746_v20 = vld [vmem:[#allocation11 + $0x8c] sm:$0xf]  ;;  %5468 = vmatpush.bf16.msra.mxu1 %v8040_v55  ;;  %5481 = vmatpush.bf16.msra.mxu2 %v8044_v4  ;;  %v7997_v55 = vld [vmem:[#allocation11 + $0x38] sm:$0xf0] }
 0x929   :  { %v8000_v41 = vor.u32 %v8734_v10, %v7997_v55 }
 0x92a   :  { %7836 = vst [vmem:[%s11265_s7 + $0x10] sm:$0xf] %v4924_v29  ;;  %5135 = vmatmul.bf16.vlgmr.msrb.gmra.mxu0 %v4924_v29  ;;  %5148 = vmatmul.bf16.vlgmr.msrb.gmra.mxu1 %v4924_v29 }
 0x92b   :  { %5161 = vmatmul.bf16.vlgmr.msrb.gmra.mxu2 %v4924_v29  ;;  %5174 = vmatmul.bf16.vlgmr.msrb.gmra.mxu3 %v4924_v29  ;;  %v8045_v29 = vld [vmem:[#allocation11 + $0x98] sm:$0xf0] }
 0x92c   :  { %5455 = vmatpush.bf16.msra.mxu0 %v8036_v7  ;;  %v8048_v53 = vor.u32 %v8746_v20, %v8045_v29  ;;  %5469 = vmatpush.bf16.msra.mxu1 %v8024_v2 }
 0x92d   :  { %5482 = vmatpush.bf16.msra.mxu2 %v8028_v43 }
 0x92e   :  { %5494 = vmatpush.bf16.msra.mxu3 %v8048_v53  ;;  %v7996_v53 = vor.u32 %v8736_v9, %v7995_v31 }
 0x930   :  { %5456 = vmatpush.bf16.msra.mxu0 %v8020_v60  ;;  %5470 = vmatpush.bf16.msra.mxu1 %v8008_v62  ;;  %v7979_v60 = vld [vmem:[#allocation11 + $0x8] sm:$0xf] }
 0x931   :  { %5483 = vmatpush.bf16.msra.mxu2 %v8012_v27  ;;  %v7980_v43 = vor.u32 %v8732_v8, %v7979_v60 }
 0x932   :  { %5495 = vmatpush.bf16.msra.mxu3 %v8032_v34 }
 0x934   :  { %5457 = vmatpush.bf16.msra.mxu0 %v8004_v54  ;;  %5471 = vmatpush.bf16.msra.mxu1 %v7992_v1 }
 0x935   :  { %5484 = vmatpush.bf16.msra.mxu2 %v7996_v53 }
 0x936   :  { %5496 = vmatpush.bf16.msra.mxu3 %v8016_v39 }
 0x938   :  { %5458 = vmatpush.bf16.msra.mxu0 %v7988_v15 }
 0x939   :  { %5485 = vmatpush.bf16.msra.mxu2 %v7980_v43  ;;  %v8217_v43 = vld [vmem:[#allocation11 + $0xf0] sm:$0xf0] }
 0x93a   :  { %5497 = vmatpush.bf16.msra.mxu3 %v8000_v41 }
 0x9a7   :  { %v5136_v45 = vpop.f32.mrf.mxu0  ;;  %v5149_v50 = vpop.f32.mrf.mxu1 }
 0x9a8   :  { %v5179_v58 = vadd.f32 %v5136_v45, %v3177_v47  ;;  %v5180_v46 = vadd.f32 %v5149_v50, %v3206_v6  ;;  %v7972_v47 = vor.u32 %v8731_v22, %v7971_v28  ;;  %v7973_v6 = vld [vmem:[#allocation11 + $0x10] sm:$0xf0]  ;;  %v8730_v45 = vld [vmem:[#allocation11 + $0xc] sm:$0xf]  ;;  %v7981_v50 = vld [vmem:[#allocation11 + $0x18] sm:$0xf0] }
 0x9a9   :  { %v7976_v36 = vor.u32 %v8729_v16, %v7973_v6 }
 0x9aa   :  { %v7965_v56 = vmul.f32 -1.442695, %v5179_v58  ;;  %v7966_v5 = vmul.f32 -1.442695, %v5180_v46  ;;  %v7984_v58 = vor.u32 %v8730_v45, %v7981_v50  ;;  %5459 = vmatpush.bf16.msra.mxu0 %v7972_v47  ;;  %v8791_v45 = vld [vmem:[#allocation11 + $0xec] sm:$0xf0] }
 0x9ab   :  { %5472 = vmatpush.bf16.msra.mxu1 %v7976_v36  ;;  %v8789_v50 = vld [vmem:[#allocation11 + $0xe4] sm:$0xf] }
 0x9ac   :  { %9006 = vpow2.f32 %v7965_v56  ;;  %5498 = vmatpush.bf16.msra.mxu3 %v7984_v58  ;;  %v8220_v58 = vor.u32 %v8789_v50, %v8217_v43  ;;  %v8159_v43 = vld [vmem:[#allocation11 + $0x68] sm:$0xf] }
 0x9ad   :  { %9008 = vpow2.f32 %v7966_v5 }
 0x9ae   :  { %v5162_v61 = vpop.f32.mrf.mxu2  ;;  %v5175_v7 = vpop.f32.mrf.mxu3 }
 0x9af   :  { %v5182_v4 = vadd.f32 %v5175_v7, %v3264_v49  ;;  %v5138_v20 = vpop.f32.mrf.mxu0  ;;  %v5151_v29 = vpop.f32.mrf.mxu1  ;;  %v5181_v54 = vadd.f32 %v5162_v61, %v3235_v33  ;;  %5790 = vmatpush.bf16.msrb.mxu1 %v8220_v58  ;;  %v8199_v33 = vld [vmem:[#allocation11 + $0xc0] sm:$0xf] }
 0x9b1   :  { %v7967_v24 = vmul.f32 -1.442695, %v5182_v4 }
 0x9b2   :  { %v9007_v2 = vpop.eup %9006 }
 0x9b3   :  { %v9009_v52 = vpop.eup %9008  ;;  %v5187_v26 = vadd.f32 1.0, %v9007_v2  ;;  %9010 = vpow2.f32 %v7967_v24 }
 0x9b4   :  { %v5206_v46 = vadd.f32 1.0, %v9009_v52  ;;  %v8223_v52 = vld [vmem:[#allocation11 + $0xe8] sm:$0xf] }
 0x9b5   :  { %9012 = vrcp.f32 %v5187_v26  ;;  %v5199_v27 = vand.u32 2147483648, %v5187_v26  ;;  %v5197_v18 = vand.u32 2147483647, %v5187_v26  ;;  %vm5193_vm15 = vweird.f32 %v5187_v26 }
 0x9b6   :  { %9014 = vrcp.f32 %v5206_v46  ;;  %v5164_v34 = vpop.f32.mrf.mxu2  ;;  %v5177_v40 = vpop.f32.mrf.mxu3  ;;  %v5218_v19 = vand.u32 2147483648, %v5206_v46  ;;  %v5216_v39 = vand.u32 2147483647, %v5206_v46  ;;  %vm5212_vm0 = vweird.f32 %v5206_v46 }
 0x9b7   :  { %v5200_v44 = vor.u32 1.1754944e-38, %v5199_v27  ;;  %vm5198_vm3 = vcmp.eq.f32.partialorder %v5197_v18, 8.507059e+37  ;;  %v8790_v34 = vld [vmem:[#allocation11 + $0xec] sm:$0xf]  ;;  %v8225_v40 = vld [vmem:[#allocation11 + $0xf8] sm:$0xf0] }
 0x9b8   :  { %v5219_v61 = vor.u32 1.1754944e-38, %v5218_v19  ;;  %vm5217_vm4 = vcmp.eq.f32.partialorder %v5216_v39, 8.507059e+37  ;;  %v8786_v27 = vld [vmem:[#allocation11 + $0xcc] sm:$0xf]  ;;  %v8209_v19 = vld [vmem:[#allocation11 + $0xd8] sm:$0xf0] }
 0x9b9   :  { %v9011_v37 = vpop.eup %9010  ;;  %v8183_v18 = vld [vmem:[#allocation11 + $0xa0] sm:$0xf]  ;;  %v8781_v39 = vld [vmem:[#allocation11 + $0xa4] sm:$0xf] }
 0x9ba   :  { %v5226_v56 = vadd.f32 1.0, %v9011_v37  ;;  %v8228_v37 = vor.u32 %v8790_v34, %v8225_v40  ;;  %v8774_v40 = vld [vmem:[#allocation11 + $0x6c] sm:$0xf] }
 0x9bb   :  { %v9013_v5 = vpop.eup %9012 }
 0x9bc   :  { %v9015_v32 = vpop.eup %9014  ;;  %v5189_v62 = vmul.f32 %v9013_v5, %v5187_v26  ;;  %9016 = vrcp.f32 %v5226_v56  ;;  %vm5194_vm13 = vweird.f32 %v9013_v5  ;;  %v5238_v22 = vand.u32 2147483648, %v5226_v56  ;;  %v8792_v26 = vld [vmem:[#allocation11 + $0xf4] sm:$0xf0]  ;;  %5816 = vmatpush.bf16.msrb.mxu3 %v8228_v37  ;;  %v8161_v37 = vld [vmem:[#allocation11 + $0x78] sm:$0xf0] }
 0x9bd   :  { %v5208_v12 = vmul.f32 %v9015_v32, %v5206_v46  ;;  %9018 = vtanh.f32 %v5181_v54  ;;  %vm5213_vm14 = vweird.f32 %v9015_v32  ;;  %vm5195_vm1 = vmor %vm5193_vm15, %vm5194_vm13  ;;  %vm5232_vm6 = vweird.f32 %v5226_v56 }
 0x9be   :  { %v5190_v17 = vsub.f32 1.0, %v5189_v62  ;;  %vm5214_vm2 = vmor %vm5212_vm0, %vm5213_vm14  ;;  %v5236_v16 = vand.u32 2147483647, %v5226_v56  ;;  %v5239_v6 = vor.u32 1.1754944e-38, %v5238_v22  ;;  %v8224_v46 = vor.u32 %v8792_v26, %v8223_v52  ;;  %v8207_v62 = vld [vmem:[#allocation11 + $0xc8] sm:$0xf] }
 0x9bf   :  { %v5209_v35 = vsub.f32 1.0, %v5208_v12  ;;  %v8788_v12 = vld [vmem:[#allocation11 + $0xd4] sm:$0xf0] }
 0x9c0   :  { %v5191_v21 = vmul.f32 %v9013_v5, %v5190_v17  ;;  %vm5237_vm8 = vcmp.eq.f32.partialorder %v5236_v16, 8.507059e+37  ;;  %5803 = vmatpush.bf16.msrb.mxu2 %v8224_v46  ;;  %v8776_v52 = vld [vmem:[#allocation11 + $0x74] sm:$0xf0] }
 0x9c1   :  { %v5210_v49 = vmul.f32 %v9015_v32, %v5209_v35  ;;  %v8208_v35 = vor.u32 %v8788_v12, %v8207_v62  ;;  %v8160_v34 = vor.u32 %v8776_v52, %v8159_v43 }
 0x9c2   :  { %v9017_v15 = vpop.eup %9016  ;;  %v5192_v25 = vadd.f32 %v9013_v5, %v5191_v21  ;;  %v8212_v21 = vor.u32 %v8786_v27, %v8209_v19  ;;  %v8143_v27 = vld [vmem:[#allocation11 + $0x48] sm:$0xf]  ;;  %v8772_v19 = vld [vmem:[#allocation11 + $0x54] sm:$0xf0] }
 0x9c3   :  { %v5211_v14 = vadd.f32 %v9015_v32, %v5210_v49  ;;  %v5228_v31 = vmul.f32 %v9017_v15, %v5226_v56  ;;  %v9019_v1 = vpop.eup %9018  ;;  %vm5233_vm5 = vweird.f32 %v9017_v15  ;;  %v8787_v56 = vld [vmem:[#allocation11 + $0xcc] sm:$0xf0] }
 0x9c4   :  { %v5196_v7 = vsel %vm5195_vm1, %v9013_v5, %v5192_v25  ;;  %vm5234_vm7 = vmor %vm5232_vm6, %vm5233_vm5  ;;  %v8785_v5 = vld [vmem:[#allocation11 + $0xc4] sm:$0xf]  ;;  %v8200_v54 = vor.u32 %v8787_v56, %v8199_v33  ;;  %5804 = vmatpush.bf16.msrb.mxu2 %v8208_v35  ;;  %v8783_v49 = vld [vmem:[#allocation11 + $0xac] sm:$0xf0]  ;;  %5817 = vmatpush.bf16.msrb.mxu3 %v8212_v21 }
 0x9c5   :  { %v5201_v9 = vsel %vm5198_vm3, %v5200_v44, %v5196_v7  ;;  %v5215_v10 = vsel %vm5214_vm2, %v9015_v32, %v5211_v14  ;;  %v5229_v55 = vsub.f32 1.0, %v5228_v31  ;;  %v8201_v32 = vld [vmem:[#allocation11 + $0xd0] sm:$0xf0]  ;;  %v8191_v44 = vld [vmem:[#allocation11 + $0xa8] sm:$0xf] }
 0x9c6   :  { %v5220_v4 = vsel %vm5217_vm4, %v5219_v61, %v5215_v10  ;;  %v5243_v20 = vmul.f32 %v9019_v1, %v5201_v9  ;;  %v8204_v17 = vor.u32 %v8785_v5, %v8201_v32  ;;  %v8185_v25 = vld [vmem:[#allocation11 + $0xb0] sm:$0xf0]  ;;  %v8784_v14 = vld [vmem:[#allocation11 + $0xb4] sm:$0xf0]  ;;  %v8782_v7 = vld [vmem:[#allocation11 + $0xac] sm:$0xf]  ;;  %v8164_v5 = vor.u32 %v8774_v40, %v8161_v37 }
 0x9c7   :  { %v5242_v29 = vmul.f32 %v5220_v4, %v11210_v30  ;;  %v5230_v53 = vmul.f32 %v9017_v15, %v5229_v55  ;;  %v8215_v30 = vld [vmem:[#allocation11 + $0xe0] sm:$0xf]  ;;  %v8188_v31 = vor.u32 %v8781_v39, %v8185_v25  ;;  %v8192_v61 = vor.u32 %v8784_v14, %v8191_v44  ;;  %v8193_v1 = vld [vmem:[#allocation11 + $0xb8] sm:$0xf0]  ;;  %v8779_v55 = vld [vmem:[#allocation11 + $0x8c] sm:$0xf0] }
 0x9c8   :  { %v8216_v2 = vor.u32 %v8791_v45, %v8215_v30  ;;  %5791 = vmatpush.bf16.msrb.mxu1 %v8204_v17  ;;  %v8196_v9 = vor.u32 %v8782_v7, %v8193_v1  ;;  %v8167_v10 = vld [vmem:[#allocation11 + $0x80] sm:$0xf]  ;;  %v8777_v4 = vld [vmem:[#allocation11 + $0x84] sm:$0xf]  ;;  %v3180_v30 = vadd.f32 %v11109_v38, %v11127_v23  ;;  %v3209_v45 = vadd.f32 %v11111_v59, %v11130_v0  ;;  %v8137_v17 = vld [vmem:[#allocation11 + $0x50] sm:$0xf0] }
 0x9c9   :  { %v11225_v41 = vadd.f32 %v5243_v20, %v5242_v29  ;;  %v5231_v28 = vadd.f32 %v9017_v15, %v5230_v53  ;;  %5805 = vmatpush.bf16.msrb.mxu2 %v8192_v61  ;;  %v8168_v20 = vor.u32 %v8779_v55, %v8167_v10  ;;  %v8169_v29 = vld [vmem:[#allocation11 + $0x90] sm:$0xf0]  ;;  %v8175_v53 = vld [vmem:[#allocation11 + $0x88] sm:$0xf]  ;;  %v8135_v38 = vld [vmem:[#allocation11 + $0x40] sm:$0xf]  ;;  %v3267_v25 = vadd.f32 %v11120_v48, %v11141_v57 }
 0x9ca   :  { %5777 = vmatpush.bf16.msrb.mxu0 %v8216_v2  ;;  %5818 = vmatpush.bf16.msrb.mxu3 %v8196_v9  ;;  %v8172_v22 = vor.u32 %v8777_v4, %v8169_v29  ;;  %v8153_v2 = vld [vmem:[#allocation11 + $0x70] sm:$0xf0]  ;;  %v8769_v59 = vld [vmem:[#allocation11 + $0x44] sm:$0xf]  ;;  %v8770_v21 = vld [vmem:[#allocation11 + $0x4c] sm:$0xf] }
 0x9cb   :  { %9020 = vtanh.f32 %v11225_v41  ;;  %v5235_v47 = vsel %vm5234_vm7, %v9017_v15, %v5231_v28  ;;  %v8184_v15 = vor.u32 %v8783_v49, %v8183_v18  ;;  %v8780_v28 = vld [vmem:[#allocation11 + $0x94] sm:$0xf0]  ;;  %v8140_v35 = vor.u32 %v8769_v59, %v8137_v17  ;;  %v8145_v49 = vld [vmem:[#allocation11 + $0x58] sm:$0xf0]  ;;  %v8119_v39 = vld [vmem:[#allocation11 + $0x20] sm:$0xf] }
 0x9cc   :  { %v5240_v8 = vsel %vm5237_vm8, %v5239_v6, %v5235_v47  ;;  %5792 = vmatpush.bf16.msrb.mxu1 %v8188_v31  ;;  %v8176_v16 = vor.u32 %v8780_v28, %v8175_v53  ;;  %v8778_v47 = vld [vmem:[#allocation11 + $0x8c] sm:$0xf]  ;;  %v8177_v6 = vld [vmem:[#allocation11 + $0x98] sm:$0xf0]  ;;  %v8144_v18 = vor.u32 %v8772_v19, %v8143_v27  ;;  %v8148_v44 = vor.u32 %v8770_v21, %v8145_v49  ;;  %v8765_v31 = vld [vmem:[#allocation11 + $0x24] sm:$0xf] }
 0x9cd   :  { %v8121_v61 = vld [vmem:[#allocation11 + $0x30] sm:$0xf0]  ;;  %v8127_v7 = vld [vmem:[#allocation11 + $0x28] sm:$0xf]  ;;  %v8768_v55 = vld [vmem:[#allocation11 + $0x34] sm:$0xf0] }
 0x9ce   :  { %5778 = vmatpush.bf16.msrb.mxu0 %v8200_v54  ;;  %5806 = vmatpush.bf16.msrb.mxu2 %v8176_v16  ;;  %v8771_v54 = vld [vmem:[#allocation11 + $0x4c] sm:$0xf0]  ;;  %v8124_v10 = vor.u32 %v8765_v31, %v8121_v61  ;;  %v8766_v4 = vld [vmem:[#allocation11 + $0x2c] sm:$0xf]  ;;  %v8103_v16 = vld [vmem:[#allocation11] sm:$0xf] }
 0x9cf   :  { %v8136_v12 = vor.u32 %v8771_v54, %v8135_v38 }
 0x9d0   :  { %5793 = vmatpush.bf16.msrb.mxu1 %v8172_v22  ;;  %v8128_v22 = vor.u32 %v8768_v55, %v8127_v7 }
 0x9d1   :  { %v9021_v60 = vpop.eup %9020 }
 0x9d2   :  { %v5246_v24 = vmul.f32 %v9021_v60, %v5240_v8  ;;  %5779 = vmatpush.bf16.msrb.mxu0 %v8184_v15  ;;  %v8180_v60 = vor.u32 %v8778_v47, %v8177_v6  ;;  %v8151_v8 = vld [vmem:[#allocation11 + $0x60] sm:$0xf]  ;;  %5807 = vmatpush.bf16.msrb.mxu2 %v8160_v34  ;;  %v8767_v15 = vld [vmem:[#allocation11 + $0x2c] sm:$0xf0]  ;;  %v8761_v6 = vld [vmem:[#allocation11 + $0x4] sm:$0xf] }
 0x9d3   :  { %v8120_v14 = vor.u32 %v8767_v15, %v8119_v39  ;;  %v8763_v47 = vld [vmem:[#allocation11 + $0xc] sm:$0xf0] }
 0x9d4   :  { %v5249_v36 = vpack.c.bf16 %v5246_v24, %v5246_v24  ;;  %v8775_v24 = vld [vmem:[#allocation11 + $0x6c] sm:$0xf0]  ;;  %5819 = vmatpush.bf16.msrb.mxu3 %v8180_v60  ;;  %v8104_v60 = vor.u32 %v8763_v47, %v8103_v16 }
 0x9d5   :  { %v8152_v50 = vor.u32 %v8775_v24, %v8151_v8  ;;  %v8105_v8 = vld [vmem:[#allocation11 + $0x10] sm:$0xf0]  ;;  %v8111_v24 = vld [vmem:[#allocation11 + $0x8] sm:$0xf] }
 0x9d6   :  { %7968 = vst [vmem:[%s11265_s7 + $0x14] sm:$0xf] %v5249_v36  ;;  %5460 = vmatmul.bf16.vlgmr.msra.gmra.mxu0 %v5249_v36  ;;  %5473 = vmatmul.bf16.vlgmr.msra.gmra.mxu1 %v5249_v36 }
 0x9d7   :  { %5486 = vmatmul.bf16.vlgmr.msra.gmra.mxu2 %v5249_v36  ;;  %5499 = vmatmul.bf16.vlgmr.msra.gmra.mxu3 %v5249_v36  ;;  %v8773_v36 = vld [vmem:[#allocation11 + $0x64] sm:$0xf] }
 0x9d8   :  { %5780 = vmatpush.bf16.msrb.mxu0 %v8168_v20  ;;  %v8156_v46 = vor.u32 %v8773_v36, %v8153_v2  ;;  %5820 = vmatpush.bf16.msrb.mxu3 %v8164_v5  ;;  %v8129_v20 = vld [vmem:[#allocation11 + $0x38] sm:$0xf0]  ;;  %v8764_v36 = vld [vmem:[#allocation11 + $0x14] sm:$0xf0] }
 0x9d9   :  { %5808 = vmatpush.bf16.msrb.mxu2 %v8144_v18  ;;  %v8132_v48 = vor.u32 %v8766_v4, %v8129_v20  ;;  %v8113_v2 = vld [vmem:[#allocation11 + $0x18] sm:$0xf0]  ;;  %v8112_v52 = vor.u32 %v8764_v36, %v8111_v24  ;;  %v3211_v24 = vadd.f32 %v11124_v3, %v11130_v0 }
 0x9da   :  { %5794 = vmatpush.bf16.msrb.mxu1 %v8156_v46 }
 0x9dc   :  { %5781 = vmatpush.bf16.msrb.mxu0 %v8152_v50  ;;  %5821 = vmatpush.bf16.msrb.mxu3 %v8148_v44  ;;  %v8762_v50 = vld [vmem:[#allocation11 + $0xc] sm:$0xf] }
 0x9dd   :  { %5809 = vmatpush.bf16.msrb.mxu2 %v8128_v22  ;;  %v8116_v46 = vor.u32 %v8762_v50, %v8113_v2 }
 0x9de   :  { %5795 = vmatpush.bf16.msrb.mxu1 %v8140_v35 }
 0x9e0   :  { %5782 = vmatpush.bf16.msrb.mxu0 %v8136_v12  ;;  %5822 = vmatpush.bf16.msrb.mxu3 %v8132_v48 }
 0x9e1   :  { %5810 = vmatpush.bf16.msrb.mxu2 %v8112_v52  ;;  %v3269_v52 = vadd.f32 %v11138_v51, %v11141_v57  ;;  %v3240_v51 = vadd.f32 %v11136_v11, %v11146_v13 }
 0x9e2   :  { %5796 = vmatpush.bf16.msrb.mxu1 %v8124_v10 }
 0x9e4   :  { %5783 = vmatpush.bf16.msrb.mxu0 %v8120_v14  ;;  %5823 = vmatpush.bf16.msrb.mxu3 %v8116_v46 }
 0x9e8   :  { %5784 = vmatpush.bf16.msrb.mxu0 %v8104_v60 }
 0xa53   :  { %v5461_v26 = vpop.f32.mrf.mxu0  ;;  %v5474_v58 = vpop.f32.mrf.mxu1 }
 0xa54   :  { %v5504_v33 = vadd.f32 %v5461_v26, %v3180_v30  ;;  %v5505_v56 = vadd.f32 %v5474_v58, %v3209_v45  ;;  %v8108_v45 = vor.u32 %v8761_v6, %v8105_v8 }
 0xa56   :  { %v8097_v32 = vmul.f32 -1.442695, %v5504_v33  ;;  %v8098_v62 = vmul.f32 -1.442695, %v5505_v56  ;;  %5797 = vmatpush.bf16.msrb.mxu1 %v8108_v45  ;;  %v3238_v56 = vadd.f32 %v11118_v42, %v11146_v13 }
 0xa58   :  { %9022 = vpow2.f32 %v8097_v32 }
 0xa59   :  { %9024 = vpow2.f32 %v8098_v62 }
 0xa5a   :  { %v5487_v1 = vpop.f32.mrf.mxu2  ;;  %v5500_v9 = vpop.f32.mrf.mxu3 }
 0xa5b   :  { %v5507_v29 = vadd.f32 %v5500_v9, %v3267_v25  ;;  %v5463_v53 = vpop.f32.mrf.mxu0  ;;  %v5476_v28 = vpop.f32.mrf.mxu1  ;;  %v5506_v54 = vadd.f32 %v5487_v1, %v3238_v56 }
 0xa5d   :  { %v8099_v30 = vmul.f32 -1.442695, %v5507_v29 }
 0xa5e   :  { %v9023_v43 = vpop.eup %9022 }
 0xa5f   :  { %v9025_v26 = vpop.eup %9024  ;;  %v5512_v58 = vadd.f32 1.0, %v9023_v43  ;;  %9026 = vpow2.f32 %v8099_v30 }
 0xa60   :  { %v5531_v34 = vadd.f32 1.0, %v9025_v26 }
 0xa61   :  { %9028 = vrcp.f32 %v5512_v58  ;;  %v5524_v35 = vand.u32 2147483648, %v5512_v58  ;;  %v5522_v21 = vand.u32 2147483647, %v5512_v58  ;;  %vm5518_vm11 = vweird.f32 %v5512_v58 }
 0xa62   :  { %9030 = vrcp.f32 %v5531_v34  ;;  %v5489_v40 = vpop.f32.mrf.mxu2  ;;  %v5502_v37 = vpop.f32.mrf.mxu3  ;;  %v5543_v27 = vand.u32 2147483648, %v5531_v34  ;;  %v5541_v49 = vand.u32 2147483647, %v5531_v34  ;;  %vm5537_vm12 = vweird.f32 %v5531_v34 }
 0xa63   :  { %v5525_v15 = vor.u32 1.1754944e-38, %v5524_v35  ;;  %vm5523_vm15 = vcmp.eq.f32.partialorder %v5522_v21, 8.507059e+37 }
 0xa64   :  { %v5544_v14 = vor.u32 1.1754944e-38, %v5543_v27  ;;  %vm5542_vm0 = vcmp.eq.f32.partialorder %v5541_v49, 8.507059e+37 }
 0xa65   :  { %v9027_v33 = vpop.eup %9026 }
 0xa66   :  { %v5551_v5 = vadd.f32 1.0, %v9027_v33 }
 0xa67   :  { %v9029_v38 = vpop.eup %9028 }
 0xa68   :  { %v9031_v59 = vpop.eup %9030  ;;  %v5514_v32 = vmul.f32 %v9029_v38, %v5512_v58  ;;  %9032 = vrcp.f32 %v5551_v5  ;;  %vm5519_vm9 = vweird.f32 %v9029_v38  ;;  %v5563_v28 = vand.u32 2147483648, %v5551_v5 }
 0xa69   :  { %v5533_v62 = vmul.f32 %v9031_v59, %v5531_v34  ;;  %9034 = vtanh.f32 %v5506_v54  ;;  %vm5538_vm10 = vweird.f32 %v9031_v59  ;;  %vm5520_vm13 = vmor %vm5518_vm11, %vm5519_vm9  ;;  %vm5557_vm2 = vweird.f32 %v5551_v5 }
 0xa6a   :  { %v5515_v12 = vsub.f32 1.0, %v5514_v32  ;;  %vm5539_vm14 = vmor %vm5537_vm12, %vm5538_vm10  ;;  %v5561_v22 = vand.u32 2147483647, %v5551_v5  ;;  %v5564_v16 = vor.u32 1.1754944e-38, %v5563_v28 }
 0xa6b   :  { %v5534_v17 = vsub.f32 1.0, %v5533_v62 }
 0xa6c   :  { %v5516_v19 = vmul.f32 %v9029_v38, %v5515_v12  ;;  %vm5562_vm4 = vcmp.eq.f32.partialorder %v5561_v22, 8.507059e+37 }
 0xa6d   :  { %v5535_v18 = vmul.f32 %v9031_v59, %v5534_v17 }
 0xa6e   :  { %v9033_v39 = vpop.eup %9032  ;;  %v5517_v42 = vadd.f32 %v9029_v38, %v5516_v19 }
 0xa6f   :  { %v5536_v25 = vadd.f32 %v9031_v59, %v5535_v18  ;;  %v5553_v44 = vmul.f32 %v9033_v39, %v5551_v5  ;;  %v9035_v61 = vpop.eup %9034  ;;  %vm5558_vm1 = vweird.f32 %v9033_v39 }
 0xa70   :  { %v5521_v31 = vsel %vm5520_vm13, %v9029_v38, %v5517_v42  ;;  %vm5559_vm3 = vmor %vm5557_vm2, %vm5558_vm1 }
 0xa71   :  { %v5526_v7 = vsel %vm5523_vm15, %v5525_v15, %v5521_v31  ;;  %v5540_v1 = vsel %vm5539_vm14, %v9031_v59, %v5536_v25  ;;  %v5554_v9 = vsub.f32 1.0, %v5553_v44 }
 0xa72   :  { %v5545_v10 = vsel %vm5542_vm0, %v5544_v14, %v5540_v1  ;;  %v5568_v55 = vmul.f32 %v9035_v61, %v5526_v7 }
 0xa73   :  { %v5567_v4 = vmul.f32 %v5545_v10, %v11225_v41  ;;  %v5555_v20 = vmul.f32 %v9033_v39, %v5554_v9  ;;  %v3182_v41 = vadd.f32 %v11122_v63, %v11127_v23 }
 0xa75   :  { %v11240_v29 = vadd.f32 %v5568_v55, %v5567_v4  ;;  %v5556_v53 = vadd.f32 %v9033_v39, %v5555_v20 }
 0xa77   :  { %9036 = vtanh.f32 %v11240_v29  ;;  %v5560_v48 = vsel %vm5559_vm3, %v9033_v39, %v5556_v53 }
 0xa78   :  { %v5565_v6 = vsel %vm5562_vm4, %v5564_v16, %v5560_v48 }
 0xa7d   :  { %v9037_v47 = vpop.eup %9036 }
 0xa7e   :  { %v5571_v60 = vmul.f32 %v9037_v47, %v5565_v6 }
 0xa80   :  { %v5574_v8 = vpack.c.bf16 %v5571_v60, %v5571_v60 }
 0xa82   :  { %8100 = vst [vmem:[%s11265_s7 + $0x18] sm:$0xf] %v5574_v8  ;;  %5785 = vmatmul.bf16.vlgmr.msrb.gmra.mxu0 %v5574_v8  ;;  %5798 = vmatmul.bf16.vlgmr.msrb.gmra.mxu1 %v5574_v8 }
 0xa83   :  { %5811 = vmatmul.bf16.vlgmr.msrb.gmra.mxu2 %v5574_v8  ;;  %5824 = vmatmul.bf16.vlgmr.msrb.gmra.mxu3 %v5574_v8 }
 0xaff   :  { %v5786_v36 = vpop.f32.mrf.mxu0  ;;  %v5799_v30 = vpop.f32.mrf.mxu1 }
 0xb00   :  { %v5829_v45 = vadd.f32 %v5786_v36, %v3182_v41  ;;  %v5830_v50 = vadd.f32 %v5799_v30, %v3211_v24 }
 0xb02   :  { %v8229_v2 = vmul.f32 -1.442695, %v5829_v45  ;;  %v8230_v43 = vmul.f32 -1.442695, %v5830_v50 }
 0xb04   :  { %9038 = vpow2.f32 %v8229_v2 }
 0xb05   :  { %9040 = vpow2.f32 %v8230_v43 }
 0xb06   :  { %v5812_v26 = vpop.f32.mrf.mxu2  ;;  %v5825_v58 = vpop.f32.mrf.mxu3 }
 0xb07   :  { %v5832_v46 = vadd.f32 %v5825_v58, %v3269_v52  ;;  %v5788_v34 = vpop.f32.mrf.mxu0  ;;  %v5801_v40 = vpop.f32.mrf.mxu1  ;;  %v5831_v54 = vadd.f32 %v5812_v26, %v3240_v51 }
 0xb09   :  { %v8231_v63 = vmul.f32 -1.442695, %v5832_v46 }
 0xb0a   :  { %v9039_v23 = vpop.eup %9038 }
 0xb0b   :  { %v9041_v37 = vpop.eup %9040  ;;  %v5837_v3 = vadd.f32 1.0, %v9039_v23  ;;  %9042 = vpow2.f32 %v8231_v63 }
 0xb0c   :  { %v5856_v0 = vadd.f32 1.0, %v9041_v37 }
 0xb0d   :  { %9044 = vrcp.f32 %v5837_v3  ;;  %v5849_v35 = vand.u32 2147483648, %v5837_v3  ;;  %v5847_v21 = vand.u32 2147483647, %v5837_v3  ;;  %vm5843_vm7 = vweird.f32 %v5837_v3 }
 0xb0e   :  { %9046 = vrcp.f32 %v5856_v0  ;;  %v5814_v33 = vpop.f32.mrf.mxu2  ;;  %v5827_v56 = vpop.f32.mrf.mxu3  ;;  %v5868_v27 = vand.u32 2147483648, %v5856_v0  ;;  %v5866_v49 = vand.u32 2147483647, %v5856_v0  ;;  %vm5862_vm8 = vweird.f32 %v5856_v0 }
 0xb0f   :  { %v5850_v13 = vor.u32 1.1754944e-38, %v5849_v35  ;;  %vm5848_vm11 = vcmp.eq.f32.partialorder %v5847_v21, 8.507059e+37 }
 0xb10   :  { %v5869_v25 = vor.u32 1.1754944e-38, %v5868_v27  ;;  %vm5867_vm12 = vcmp.eq.f32.partialorder %v5866_v49, 8.507059e+37 }
 0xb11   :  { %v9043_v5 = vpop.eup %9042 }
 0xb12   :  { %v5876_v57 = vadd.f32 1.0, %v9043_v5 }
 0xb13   :  { %v9045_v38 = vpop.eup %9044 }
 0xb14   :  { %v9047_v59 = vpop.eup %9046  ;;  %v5839_v32 = vmul.f32 %v9045_v38, %v5837_v3  ;;  %9048 = vrcp.f32 %v5876_v57  ;;  %vm5844_vm5 = vweird.f32 %v9045_v38  ;;  %v5888_v53 = vand.u32 2147483648, %v5876_v57 }
 0xb15   :  { %v5858_v62 = vmul.f32 %v9047_v59, %v5856_v0  ;;  %9050 = vtanh.f32 %v5831_v54  ;;  %vm5863_vm6 = vweird.f32 %v9047_v59  ;;  %vm5845_vm9 = vmor %vm5843_vm7, %vm5844_vm5  ;;  %vm5882_vm14 = vweird.f32 %v5876_v57 }
 0xb16   :  { %v5840_v12 = vsub.f32 1.0, %v5839_v32  ;;  %vm5864_vm10 = vmor %vm5862_vm8, %vm5863_vm6  ;;  %v5886_v28 = vand.u32 2147483647, %v5876_v57  ;;  %v5889_v48 = vor.u32 1.1754944e-38, %v5888_v53 }
 0xb17   :  { %v5859_v17 = vsub.f32 1.0, %v5858_v62 }
 0xb18   :  { %v5841_v19 = vmul.f32 %v9045_v38, %v5840_v12  ;;  %vm5887_vm0 = vcmp.eq.f32.partialorder %v5886_v28, 8.507059e+37 }
 0xb19   :  { %v5860_v18 = vmul.f32 %v9047_v59, %v5859_v17 }
 0xb1a   :  { %v9049_v39 = vpop.eup %9048  ;;  %v5842_v11 = vadd.f32 %v9045_v38, %v5841_v19 }
 0xb1b   :  { %v5861_v42 = vadd.f32 %v9047_v59, %v5860_v18  ;;  %v5878_v15 = vmul.f32 %v9049_v39, %v5876_v57  ;;  %v9051_v14 = vpop.eup %9050  ;;  %vm5883_vm13 = vweird.f32 %v9049_v39 }
 0xb1c   :  { %v5846_v44 = vsel %vm5845_vm9, %v9045_v38, %v5842_v11  ;;  %vm5884_vm15 = vmor %vm5882_vm14, %vm5883_vm13 }
 0xb1d   :  { %v5851_v31 = vsel %vm5848_vm11, %v5850_v13, %v5846_v44  ;;  %v5865_v61 = vsel %vm5864_vm10, %v9047_v59, %v5861_v42  ;;  %v5879_v7 = vsub.f32 1.0, %v5878_v15 }
 0xb1e   :  { %v5870_v1 = vsel %vm5867_vm12, %v5869_v25, %v5865_v61  ;;  %v5893_v9 = vmul.f32 %v9051_v14, %v5851_v31 }
 0xb1f   :  { %v5892_v10 = vmul.f32 %v5870_v1, %v11240_v29  ;;  %v5880_v55 = vmul.f32 %v9049_v39, %v5879_v7 }
 0xb21   :  { %v5894_v4 = vadd.f32 %v5893_v9, %v5892_v10  ;;  %v5881_v20 = vadd.f32 %v9049_v39, %v5880_v55 }
 0xb23   :  { %9052 = vtanh.f32 %v5894_v4  ;;  %v5885_v22 = vsel %vm5884_vm15, %v9049_v39, %v5881_v20 }
 0xb24   :  { %v5890_v47 = vsel %vm5887_vm0, %v5889_v48, %v5885_v22 }
 0xb29   :  { %v9053_v16 = vpop.eup %9052 }
 0xb2a   :  { %v5896_v6 = vmul.f32 %v9053_v16, %v5890_v47 }
 0xb2c   :  { %v5899_v60 = vpack.c.bf16 %v5896_v6, %v5896_v6 }
 0xb2e   :  { %8232 = vst [vmem:[%s11265_s7 + $0x1c] sm:$0xf] %v5899_v60 }
 0xb2f   :  { %5906 = vsyncpa [#allocation10], 1 }
 0xb30   :  { %5907 = vsyncpa [#allocation12], 1 }

</bundles_post_ra>
